<compile_context>
chip_gen: v6e
topology: v6e:2x2x1
jax: 0.10.0
libtpu: 0.0.40
codegen_flags: <defaults>
</compile_context>

<pallas_src>
import jax
import jax.numpy as jnp
from jax.experimental import pallas as pl
from jax.experimental.pallas import tpu as pltpu

C_CARD = 32        # BottleNeck.C (cardinality)
EXPANSION = 4      # BottleNeck.expansion
DEPTH = 4          # BottleNeck.depth
BASE_DEPTH = 64    # BottleNeck.base_depth
EPS = 1e-5

_VMEM_WORKSET_BUDGET = 24 * 1024 * 1024   # per-step working-set target used to size Nb


def _wide_mxu():
    """True on chips with a 256x256 MXU (v6e / v7x); False on 128x128 (v5e and older)."""
    try:
        kind = jax.devices()[0].device_kind.lower()
    except Exception:
        return True
    return not any(t in kind for t in ("v2", "v3", "v4", "v5"))


# ---------------------------------------------------------------------------
# Fused kernel factory (specialized on static config).
# ---------------------------------------------------------------------------
def _make_bottleneck_kernel(Nb, H, W, Cin, mid, cout, bw, nb, stride, has_proj):
    s = stride
    Ho, Wo = H // s, W // s
    Qh, Qw = (H + 2 + s - 1) // s, (W + 2 + s - 1) // s   # parity-plane spatial extents
    M, Mo = Nb * H * W, Nb * Ho * Wo
    bf16, f32 = jnp.bfloat16, jnp.float32

    def kernel(*refs):
        (x_ref, s1_ref, b1_ref, w1_ref, s2_ref, b2_ref, w2_ref,
         s3_ref, b3_ref, w3_ref) = refs[:10]
        i = 10
        if has_proj:
            ssc_ref, bsc_ref, wsc_ref = refs[i:i + 3]
            i += 3
        out_ref, h2p_scr = refs[i], refs[i + 1]

        # ---- BN1 + ReLU -> grouped 1x1 conv (block-diag dense matmul) -> BN2 + ReLU ------
        x2d = x_ref[...].reshape(M, Cin)                                      # bf16
        a = jnp.maximum(x2d.astype(f32) * s1_ref[...] + b1_ref[...], 0.0)
        h1 = jnp.dot(a.astype(bf16), w1_ref[...], preferred_element_type=f32)
        h2 = jnp.maximum(h1 * s2_ref[...] + b2_ref[...], 0.0).astype(bf16)    # (M, mid)
        h2r = h2.reshape(Nb, H, W, mid)

        # ---- write h2 into the zero-halo bf16 scratch ------------------------------------
        # For stride s the scratch holds s*s parity planes of the zero-padded map, so the
        # strided 3x3 conv below only ever reads contiguous slices at output resolution.
        # Only the halo strips are re-zeroed each step (cheap, core-assignment independent).
        for ph in range(s):
            q0h = 1 if ph == 0 else 0
            sh = (ph - 1) % s
            for pw in range(s):
                q0w = 1 if pw == 0 else 0
                sw = (pw - 1) % s
                pidx = ph * s + pw
                for r in list(range(q0h)) + list(range(q0h + Ho, Qh)):
                    h2p_scr[pidx, :, r:r + 1, :, :] = jnp.zeros((Nb, 1, Qw, mid), bf16)
                for c in list(range(q0w)) + list(range(q0w + Wo, Qw)):
                    h2p_scr[pidx, :, :, c:c + 1, :] = jnp.zeros((Nb, Qh, 1, mid), bf16)
                if s == 1:
                    t = h2r
                else:
                    t = h2r.reshape(Nb, Ho, s, W, mid)[:, :, sh:sh + 1, :, :]
                    t = t.reshape(Nb, Ho, W, mid)
                    t = t.reshape(Nb, Ho, Wo, s, mid)[:, :, :, sw:sw + 1, :]
                    t = t.reshape(Nb, Ho, Wo, mid)
                h2p_scr[pidx, :, q0h:q0h + Ho, q0w:q0w + Wo, :] = t

        # ---- grouped 3x3 conv: per bw-wide channel band, lane-concat the 9 shifted
        #      patches into a single K = 9*bw MXU matmul; concat bands along lanes.
        conv_bands = []
        for b in range(nb):
            ch0 = b * bw
            taps = []
            for t9 in range(9):
                dy, dx = t9 // 3, t9 % 3
                pidx = (dy % s) * s + (dx % s)
                r0, c0 = dy // s, dx // s
                taps.append(h2p_scr[pidx, :, r0:r0 + Ho, c0:c0 + Wo, ch0:ch0 + bw])
            kcat = jnp.concatenate(taps, axis=-1).reshape(Mo, 9 * bw)         # bf16
            conv_bands.append(jnp.dot(kcat, w2_ref[b], preferred_element_type=f32))
        conv = conv_bands[0] if nb == 1 else jnp.concatenate(conv_bands, axis=-1)
        h3 = jnp.maximum(conv * s3_ref[...] + b3_ref[...], 0.0)               # (Mo, mid)

        # ---- shortcut (fused; strided subsample done in-kernel) ---------------------------
        if has_proj:
            if s == 1:
                xs = x2d
            else:
                xr = x2d.reshape(Nb, H, W, Cin)
                xr = xr.reshape(Nb, Ho, s, W, Cin)[:, :, 0:1, :, :].reshape(Nb, Ho, W, Cin)
                xr = xr.reshape(Nb, Ho, Wo, s, Cin)[:, :, :, 0:1, :].reshape(Nb, Ho, Wo, Cin)
                xs = xr.reshape(Mo, Cin)
            asc = jnp.maximum(xs.astype(f32) * ssc_ref[...] + bsc_ref[...], 0.0)
            base = jnp.dot(asc.astype(bf16), wsc_ref[...], preferred_element_type=f32)
        else:
            base = x2d.astype(f32)        # identity (stride == 1, Cin == cout)

        # ---- final 1x1 + residual add; single lane-dense output store ---------------------
        out = base + jnp.dot(h3.astype(bf16), w3_ref[...], preferred_element_type=f32)
        out_ref[...] = out.reshape(Nb, Ho * Wo, cout)

    return kernel


# ---------------------------------------------------------------------------
# Parameter construction / packing / block sizing (plain-JAX glue).
# ---------------------------------------------------------------------------
def init_params(key, in_ch, out_ch):
    D = DEPTH * out_ch // BASE_DEPTH
    mid = C_CARD * D
    cout = out_ch * EXPANSION
    keys = jax.random.split(key, 8)

    def bn(k, c):
        kg, kb, km, kv = jax.random.split(k, 4)
        gamma = jax.random.uniform(kg, (c,), jnp.float32, 0.5, 1.5)
        beta = 0.1 * jax.random.normal(kb, (c,), jnp.float32)
        mean = 0.1 * jax.random.normal(km, (c,), jnp.float32)
        var = jax.random.uniform(kv, (c,), jnp.float32, 0.5, 1.5)
        return gamma, beta, mean, var

    return {
        'bn1': bn(keys[0], in_ch),
        'w1': 0.1 * jax.random.normal(keys[1], (mid, in_ch // C_CARD, 1, 1), jnp.float32),
        'bn2': bn(keys[2], mid),
        'w2': 0.1 * jax.random.normal(keys[3], (mid, mid // D, 3, 3), jnp.float32),
        'bn3': bn(keys[4], mid),
        'w3': 0.1 * jax.random.normal(keys[5], (cout, mid, 1, 1), jnp.float32),
        'bn_sc': bn(keys[6], in_ch),
        'w_sc': 0.1 * jax.random.normal(keys[7], (cout, in_ch, 1, 1), jnp.float32),
    }


def _bn_affine(bn):
    g, b, m, v = bn
    s = g / jnp.sqrt(v + EPS)
    return s.reshape(1, -1), (b - m * s).reshape(1, -1)


def _pack_w1(w1_oihw, in_ch, mid):
    # grouped 1x1 conv (groups=C_CARD) as a block-diagonal dense (Cin, mid) matrix (bf16).
    w1 = w1_oihw[:, :, 0, 0]
    gin, gout = in_ch // C_CARD, mid // C_CARD
    dense = jnp.zeros((in_ch, mid), jnp.float32)
    for g in range(C_CARD):
        dense = dense.at[g * gin:(g + 1) * gin, g * gout:(g + 1) * gout].set(
            w1[g * gout:(g + 1) * gout, :].T)
    return dense.astype(jnp.bfloat16)


def _pack_w2(w2_oihw, mid, D, bw):
    # grouped 3x3 conv (groups=D) packed, per bw-wide channel band, as a (9*bw, bw)
    # block-diagonal matrix whose rows are tap-major, matching the in-kernel K-concat order.
    gsz = mid // D
    nb = mid // bw
    banded = jnp.zeros((9, nb, bw, bw), jnp.float32)
    for t in range(9):
        ky, kx = t // 3, t % 3
        for g in range(D):
            b = (g * gsz) // bw
            off = g * gsz - b * bw
            banded = banded.at[t, b, off:off + gsz, off:off + gsz].set(
                w2_oihw[g * gsz:(g + 1) * gsz, :, ky, kx].T)
    return jnp.transpose(banded, (1, 0, 2, 3)).reshape(nb, 9 * bw, bw).astype(jnp.bfloat16)


def _step_vmem_bytes(Nb, H, W, Cin, mid, cout, bw, nb, stride):
    s = stride
    Ho, Wo = H // s, W // s
    Qh, Qw = (H + 2 + s - 1) // s, (W + 2 + s - 1) // s
    M, Mo = Nb * H * W, Nb * Ho * Wo
    per = 0
    per += 2 * M * Cin * 2                 # x block (bf16, double-buffered)
    per += 2 * Mo * cout * 4               # out block (f32, double-buffered)
    per += s * s * Nb * Qh * Qw * mid * 2  # padded h2 scratch (bf16)
    per += M * Cin * 4 + 2 * M * mid * 4   # a, h1, h2 intermediates (f32)
    per += Mo * 9 * bw * 2                 # K-concat patches (bf16)
    per += Mo * mid * 4 + 2 * Mo * cout * 4
    fixed = 2 * (Cin * mid + nb * 9 * bw * bw + mid * cout + Cin * cout) * 2
    return per + fixed


def _pick_batch_block(N, H, W, Cin, mid, cout, bw, nb, stride):
    divisors = [d for d in range(1, N + 1) if N % d == 0]
    feas = [d for d in divisors
            if _step_vmem_bytes(d, H, W, Cin, mid, cout, bw, nb, stride)
            <= _VMEM_WORKSET_BUDGET]
    if not feas:
        feas = [1]
    HW = H * W

    def score(d):
        rows = d * HW
        # prefer: MXU-filling M (>=256 rows), then >=2 grid steps (megacore), then bigger M.
        return (rows >= 256, (N // d) >= 2, min(rows, 1024))

    return max(feas, key=score)


# ---------------------------------------------------------------------------
# Forward wrappers.
# ---------------------------------------------------------------------------
def bottleneck_forward_nhwc(x_nhwc, params, in_ch, out_ch, stride):
    N, H, W, Cin = x_nhwc.shape
    assert Cin == in_ch and in_ch % C_CARD == 0
    assert H % stride == 0 and W % stride == 0
    D = DEPTH * out_ch // BASE_DEPTH
    mid = C_CARD * D
    cout = out_ch * EXPANSION
    has_proj = (stride != 1) or (in_ch != cout)
    Ho, Wo = H // stride, W // stride
    Qh = (H + 2 + stride - 1) // stride
    Qw = (W + 2 + stride - 1) // stride

    # Channel-band width for the block-diagonal grouped 3x3 conv: 256 fills the v6e/v7x MXU;
    # 128 is native on v5e and older (group width 32 always divides the band).
    if _wide_mxu() and mid % 256 == 0:
        bw = 256
    elif mid % 128 == 0:
        bw = 128
    else:
        bw = mid
    nb = mid // bw

    Nb = _pick_batch_block(N, H, W, Cin, mid, cout, bw, nb, stride)

    x2 = x_nhwc.reshape(N, H * W, Cin).astype(jnp.bfloat16)   # bf16 activations -> half DMA

    s1, b1 = _bn_affine(params['bn1'])
    s2, b2 = _bn_affine(params['bn2'])
    s3, b3 = _bn_affine(params['bn3'])
    w1d = _pack_w1(params['w1'], in_ch, mid)
    w2p = _pack_w2(params['w2'], mid, D, bw)
    w3d = params['w3'][:, :, 0, 0].T.astype(jnp.bfloat16)      # (mid, cout)

    row3 = lambda n: (n, 0, 0)
    fixed2 = lambda n: (0, 0)
    fixed3 = lambda n: (0, 0, 0)

    # NOTE: the constant-index weight/scale specs could be single-buffered on v7x
    # (pipeline_mode=pl.Buffered(1)) to reclaim VMEM; left at the default here.
    in_specs = [
        pl.BlockSpec((Nb, H * W, Cin), row3),
        pl.BlockSpec((1, Cin), fixed2), pl.BlockSpec((1, Cin), fixed2),
        pl.BlockSpec((Cin, mid), fixed2),
        pl.BlockSpec((1, mid), fixed2), pl.BlockSpec((1, mid), fixed2),
        pl.BlockSpec((nb, 9 * bw, bw), fixed3),
        pl.BlockSpec((1, mid), fixed2), pl.BlockSpec((1, mid), fixed2),
        pl.BlockSpec((mid, cout), fixed2),
    ]
    inputs = [x2, s1, b1, w1d, s2, b2, w2p, s3, b3, w3d]

    if has_proj:
        ssc, bsc = _bn_affine(params['bn_sc'])
        wscd = params['w_sc'][:, :, 0, 0].T.astype(jnp.bfloat16)   # (Cin, cout)
        in_specs += [pl.BlockSpec((1, Cin), fixed2), pl.BlockSpec((1, Cin), fixed2),
                     pl.BlockSpec((Cin, cout), fixed2)]
        inputs += [ssc, bsc, wscd]

    kernel = _make_bottleneck_kernel(Nb, H, W, Cin, mid, cout, bw, nb, stride, has_proj)

    est = _step_vmem_bytes(Nb, H, W, Cin, mid, cout, bw, nb, stride)
    vmem_limit = int(min(60 * 2 ** 20, max(32 * 2 ** 20, 2 * est)))

    out2 = pl.pallas_call(
        kernel,
        out_shape=jax.ShapeDtypeStruct((N, Ho * Wo, cout), jnp.float32),
        grid=(N // Nb,),
        in_specs=in_specs,
        out_specs=pl.BlockSpec((Nb, Ho * Wo, cout), row3),
        scratch_shapes=[pltpu.VMEM((stride * stride, Nb, Qh, Qw, mid), jnp.bfloat16)],
        compiler_params=pltpu.CompilerParams(
            dimension_semantics=("parallel",),
            vmem_limit_bytes=vmem_limit),
    )(*inputs)

    return out2.reshape(N, Ho, Wo, cout)


def bottleneck_forward(x_nchw, params, in_ch, out_ch, stride):
    # Thin NCHW adapter matching the PyTorch module interface; real pipelines should call
    # bottleneck_forward_nhwc directly (NHWC / bf16 end-to-end, no transpose passes).
    x_nhwc = jnp.transpose(x_nchw, (0, 2, 3, 1))
    out = bottleneck_forward_nhwc(x_nhwc, params, in_ch, out_ch, stride)
    return jnp.transpose(out, (0, 3, 1, 2))


# ---------------------------------------------------------------------------
# Pure-JAX f32 reference (NCHW, lax convs) used to verify the kernel.
# ---------------------------------------------------------------------------
def reference(x, params, in_ch, out_ch, stride):
    def bn_relu(h, bn):
        g, b, m, v = bn
        s = g / jnp.sqrt(v + EPS)
        y = (h - m[None, :, None, None]) * s[None, :, None, None] + b[None, :, None, None]
        return jnp.maximum(y, 0.0)

    def conv(h, w, stride=1, pad=0, groups=1):
        return jax.lax.conv_general_dilated(
            h, w, (stride, stride), [(pad, pad), (pad, pad)],
            feature_group_count=groups,
            dimension_numbers=('NCHW', 'OIHW', 'NCHW'))

    D = DEPTH * out_ch // BASE_DEPTH
    cout = out_ch * EXPANSION
    h = bn_relu(x, params['bn1'])
    h = conv(h, params['w1'], groups=C_CARD)
    h = bn_relu(h, params['bn2'])
    h = conv(h, params['w2'], stride=stride, pad=1, groups=D)
    h = bn_relu(h, params['bn3'])
    h = conv(h, params['w3'])
    if stride != 1 or in_ch != cout:
        s = bn_relu(x, params['bn_sc'])
        s = conv(s, params['w_sc'], stride=stride)
    else:
        s = x
    return h + s


if __name__ == "__main__":
    key = jax.random.PRNGKey(0)
    N, H, W = 8, 8, 8
    # (in_ch, out_ch, stride): projection / identity / strided-downsample (multi-band) blocks
    configs = [(64, 64, 1), (256, 64, 1), (256, 128, 2)]

    for idx, (in_ch, out_ch, stride) in enumerate(configs):
        kx, kp = jax.random.split(jax.random.fold_in(key, idx))
        x = jax.random.normal(kx, (N, in_ch, H, W), jnp.float32)
        params = init_params(kp, in_ch, out_ch)

        out = jax.block_until_ready(bottleneck_forward(x, params, in_ch, out_ch, stride))
        ref = reference(x, params, in_ch, out_ch, stride)
        assert out.shape == ref.shape, (out.shape, ref.shape)
        err = float(jnp.max(jnp.abs(out - ref)))
        scale = float(jnp.max(jnp.abs(ref)))
        # bf16 activations / matmul operands (f32 accumulation) -> loosened tolerance vs f32
        assert err <= 5e-2 * max(1.0, scale), f"cfg{idx}: max abs err {err} (ref scale {scale})"

    print("KERNEL_OK")
</pallas_src>

<mosaic_0001>
module attributes {stable_mosaic.version = 11 : i64} {
  func.func @kernel(%arg0: i32, %arg1: memref<4x64x64xbf16, #tpu.memory_space<vmem>>, %arg2: memref<1x64xf32, #tpu.memory_space<vmem>>, %arg3: memref<1x64xf32, #tpu.memory_space<vmem>>, %arg4: memref<64x128xbf16, #tpu.memory_space<vmem>>, %arg5: memref<1x128xf32, #tpu.memory_space<vmem>>, %arg6: memref<1x128xf32, #tpu.memory_space<vmem>>, %arg7: memref<1x1152x128xbf16, #tpu.memory_space<vmem>>, %arg8: memref<1x128xf32, #tpu.memory_space<vmem>>, %arg9: memref<1x128xf32, #tpu.memory_space<vmem>>, %arg10: memref<128x256xbf16, #tpu.memory_space<vmem>>, %arg11: memref<1x64xf32, #tpu.memory_space<vmem>>, %arg12: memref<1x64xf32, #tpu.memory_space<vmem>>, %arg13: memref<64x256xbf16, #tpu.memory_space<vmem>>, %arg14: memref<4x64x256xf32, #tpu.memory_space<vmem>>, %arg15: memref<1x4x10x10x128xbf16, #tpu.memory_space<vmem>>) attributes {dimension_semantics = [#tpu.dimension_semantics<parallel>], iteration_bounds = array<i64: 2>, scalar_prefetch = 0 : i64, scratch_operands = 1 : i64, tpu.core_type = #tpu.core_type<tc>, window_params = [{transform_indices = @transform_0, window_bounds = array<i64: 4, 64, 64>}, {pipeline_mode = #tpu.pipeline_mode<synchronous>, transform_indices = @transform_1, window_bounds = array<i64: 1, 64>}, {pipeline_mode = #tpu.pipeline_mode<synchronous>, transform_indices = @transform_2, window_bounds = array<i64: 1, 64>}, {pipeline_mode = #tpu.pipeline_mode<synchronous>, transform_indices = @transform_3, window_bounds = array<i64: 64, 128>}, {pipeline_mode = #tpu.pipeline_mode<synchronous>, transform_indices = @transform_4, window_bounds = array<i64: 1, 128>}, {pipeline_mode = #tpu.pipeline_mode<synchronous>, transform_indices = @transform_5, window_bounds = array<i64: 1, 128>}, {pipeline_mode = #tpu.pipeline_mode<synchronous>, transform_indices = @transform_6, window_bounds = array<i64: 1, 1152, 128>}, {pipeline_mode = #tpu.pipeline_mode<synchronous>, transform_indices = @transform_7, window_bounds = array<i64: 1, 128>}, {pipeline_mode = #tpu.pipeline_mode<synchronous>, transform_indices = @transform_8, window_bounds = array<i64: 1, 128>}, {pipeline_mode = #tpu.pipeline_mode<synchronous>, transform_indices = @transform_9, window_bounds = array<i64: 128, 256>}, {pipeline_mode = #tpu.pipeline_mode<synchronous>, transform_indices = @transform_10, window_bounds = array<i64: 1, 64>}, {pipeline_mode = #tpu.pipeline_mode<synchronous>, transform_indices = @transform_11, window_bounds = array<i64: 1, 64>}, {pipeline_mode = #tpu.pipeline_mode<synchronous>, transform_indices = @transform_12, window_bounds = array<i64: 64, 256>}, {transform_indices = @transform_13, window_bounds = array<i64: 4, 64, 256>}]} {
    %c0 = arith.constant 0 : index
    %c0_0 = arith.constant 0 : index
    %c0_1 = arith.constant 0 : index
    %0 = vector.load %arg1[%c0, %c0_0, %c0_1] : memref<4x64x64xbf16, #tpu.memory_space<vmem>>, vector<4x64x64xbf16>
    %1 = vector.shape_cast %0 : vector<4x64x64xbf16> to vector<256x64xbf16>
    %2 = arith.extf %1 : vector<256x64xbf16> to vector<256x64xf32>
    %c0_2 = arith.constant 0 : index
    %c0_3 = arith.constant 0 : index
    %3 = vector.load %arg2[%c0_2, %c0_3] : memref<1x64xf32, #tpu.memory_space<vmem>>, vector<1x64xf32>
    %4 = vector.broadcast %3 : vector<1x64xf32> to vector<256x64xf32>
    %5 = arith.mulf %2, %4 : vector<256x64xf32>
    %c0_4 = arith.constant 0 : index
    %c0_5 = arith.constant 0 : index
    %6 = vector.load %arg3[%c0_4, %c0_5] : memref<1x64xf32, #tpu.memory_space<vmem>>, vector<1x64xf32>
    %7 = vector.broadcast %6 : vector<1x64xf32> to vector<256x64xf32>
    %8 = arith.addf %5, %7 : vector<256x64xf32>
    %cst = arith.constant 0.000000e+00 : f32
    %9 = vector.broadcast %cst : f32 to vector<256x64xf32>
    %10 = arith.maximumf %8, %9 : vector<256x64xf32>
    %11 = arith.truncf %10 : vector<256x64xf32> to vector<256x64xbf16>
    %c0_6 = arith.constant 0 : index
    %c0_7 = arith.constant 0 : index
    %12 = vector.load %arg4[%c0_6, %c0_7] : memref<64x128xbf16, #tpu.memory_space<vmem>>, vector<64x128xbf16>
    %cst_8 = arith.constant dense<0.000000e+00> : vector<256x128xf32>
    %13 = tpu.matmul %11, %12, %cst_8 {dimension_numbers = #tpu.dot_dimension_numbers<[1], [0], [0], [1], [0, 0, 1, 1], [], []>} : vector<256x64xbf16>, vector<64x128xbf16>, vector<256x128xf32> -> vector<256x128xf32>
    %c0_9 = arith.constant 0 : index
    %c0_10 = arith.constant 0 : index
    %14 = vector.load %arg5[%c0_9, %c0_10] : memref<1x128xf32, #tpu.memory_space<vmem>>, vector<1x128xf32>
    %15 = vector.broadcast %14 : vector<1x128xf32> to vector<256x128xf32>
    %16 = arith.mulf %13, %15 : vector<256x128xf32>
    %c0_11 = arith.constant 0 : index
    %c0_12 = arith.constant 0 : index
    %17 = vector.load %arg6[%c0_11, %c0_12] : memref<1x128xf32, #tpu.memory_space<vmem>>, vector<1x128xf32>
    %18 = vector.broadcast %17 : vector<1x128xf32> to vector<256x128xf32>
    %19 = arith.addf %16, %18 : vector<256x128xf32>
    %cst_13 = arith.constant 0.000000e+00 : f32
    %20 = vector.broadcast %cst_13 : f32 to vector<256x128xf32>
    %21 = arith.maximumf %19, %20 : vector<256x128xf32>
    %22 = arith.truncf %21 : vector<256x128xf32> to vector<256x128xbf16>
    %23 = vector.shape_cast %22 : vector<256x128xbf16> to vector<4x8x8x128xbf16>
    %cst_14 = arith.constant 0.000000e+00 : bf16
    %24 = vector.broadcast %cst_14 : bf16 to vector<4x1x10x128xbf16>
    %c0_15 = arith.constant 0 : index
    %c0_16 = arith.constant 0 : index
    %c0_17 = arith.constant 0 : index
    %c0_18 = arith.constant 0 : index
    %c0_19 = arith.constant 0 : index
    %25 = vector.load %arg15[%c0_15, %c0_16, %c0_17, %c0_18, %c0_19] : memref<1x4x10x10x128xbf16, #tpu.memory_space<vmem>>, vector<1x4x1x10x128xbf16>
    %26 = vector.shape_cast %25 : vector<1x4x1x10x128xbf16> to vector<4x1x10x128xbf16>
    %27 = vector.shape_cast %24 : vector<4x1x10x128xbf16> to vector<1x4x1x10x128xbf16>
    tpu.vector_store %arg15[%c0_15, %c0_16, %c0_17, %c0_18, %c0_19], %27 {strides = array<i32>} : memref<1x4x10x10x128xbf16, #tpu.memory_space<vmem>>, vector<1x4x1x10x128xbf16>,
    %cst_20 = arith.constant 0.000000e+00 : bf16
    %28 = vector.broadcast %cst_20 : bf16 to vector<4x1x10x128xbf16>
    %c0_21 = arith.constant 0 : index
    %c0_22 = arith.constant 0 : index
    %c9 = arith.constant 9 : index
    %c0_23 = arith.constant 0 : index
    %c0_24 = arith.constant 0 : index
    %29 = vector.load %arg15[%c0_21, %c0_22, %c9, %c0_23, %c0_24] : memref<1x4x10x10x128xbf16, #tpu.memory_space<vmem>>, vector<1x4x1x10x128xbf16>
    %30 = vector.shape_cast %29 : vector<1x4x1x10x128xbf16> to vector<4x1x10x128xbf16>
    %31 = vector.shape_cast %28 : vector<4x1x10x128xbf16> to vector<1x4x1x10x128xbf16>
    tpu.vector_store %arg15[%c0_21, %c0_22, %c9, %c0_23, %c0_24], %31 {strides = array<i32>} : memref<1x4x10x10x128xbf16, #tpu.memory_space<vmem>>, vector<1x4x1x10x128xbf16>,
    %cst_25 = arith.constant 0.000000e+00 : bf16
    %32 = vector.broadcast %cst_25 : bf16 to vector<4x10x1x128xbf16>
    %c0_26 = arith.constant 0 : index
    %c0_27 = arith.constant 0 : index
    %c0_28 = arith.constant 0 : index
    %c0_29 = arith.constant 0 : index
    %c0_30 = arith.constant 0 : index
    %33 = vector.load %arg15[%c0_26, %c0_27, %c0_28, %c0_29, %c0_30] : memref<1x4x10x10x128xbf16, #tpu.memory_space<vmem>>, vector<1x4x10x1x128xbf16>
    %34 = vector.shape_cast %33 : vector<1x4x10x1x128xbf16> to vector<4x10x1x128xbf16>
    %35 = vector.shape_cast %32 : vector<4x10x1x128xbf16> to vector<1x4x10x1x128xbf16>
    tpu.vector_store %arg15[%c0_26, %c0_27, %c0_28, %c0_29, %c0_30], %35 {strides = array<i32>} : memref<1x4x10x10x128xbf16, #tpu.memory_space<vmem>>, vector<1x4x10x1x128xbf16>,
    %cst_31 = arith.constant 0.000000e+00 : bf16
    %36 = vector.broadcast %cst_31 : bf16 to vector<4x10x1x128xbf16>
    %c0_32 = arith.constant 0 : index
    %c0_33 = arith.constant 0 : index
    %c0_34 = arith.constant 0 : index
    %c9_35 = arith.constant 9 : index
    %c0_36 = arith.constant 0 : index
    %37 = vector.load %arg15[%c0_32, %c0_33, %c0_34, %c9_35, %c0_36] : memref<1x4x10x10x128xbf16, #tpu.memory_space<vmem>>, vector<1x4x10x1x128xbf16>
    %38 = vector.shape_cast %37 : vector<1x4x10x1x128xbf16> to vector<4x10x1x128xbf16>
    %39 = vector.shape_cast %36 : vector<4x10x1x128xbf16> to vector<1x4x10x1x128xbf16>
    tpu.vector_store %arg15[%c0_32, %c0_33, %c0_34, %c9_35, %c0_36], %39 {strides = array<i32>} : memref<1x4x10x10x128xbf16, #tpu.memory_space<vmem>>, vector<1x4x10x1x128xbf16>,
    %c0_37 = arith.constant 0 : index
    %c0_38 = arith.constant 0 : index
    %c1 = arith.constant 1 : index
    %c1_39 = arith.constant 1 : index
    %c0_40 = arith.constant 0 : index
    %40 = vector.load %arg15[%c0_37, %c0_38, %c1, %c1_39, %c0_40] : memref<1x4x10x10x128xbf16, #tpu.memory_space<vmem>>, vector<1x4x8x8x128xbf16>
    %41 = vector.shape_cast %40 : vector<1x4x8x8x128xbf16> to vector<4x8x8x128xbf16>
    %42 = vector.shape_cast %23 : vector<4x8x8x128xbf16> to vector<1x4x8x8x128xbf16>
    tpu.vector_store %arg15[%c0_37, %c0_38, %c1, %c1_39, %c0_40], %42 {strides = array<i32>} : memref<1x4x10x10x128xbf16, #tpu.memory_space<vmem>>, vector<1x4x8x8x128xbf16>,
    %c0_41 = arith.constant 0 : index
    %c0_42 = arith.constant 0 : index
    %c0_43 = arith.constant 0 : index
    %c0_44 = arith.constant 0 : index
    %c0_45 = arith.constant 0 : index
    %43 = vector.load %arg15[%c0_41, %c0_42, %c0_43, %c0_44, %c0_45] : memref<1x4x10x10x128xbf16, #tpu.memory_space<vmem>>, vector<1x4x8x8x128xbf16>
    %44 = vector.shape_cast %43 : vector<1x4x8x8x128xbf16> to vector<4x8x8x128xbf16>
    %c0_46 = arith.constant 0 : index
    %c0_47 = arith.constant 0 : index
    %c0_48 = arith.constant 0 : index
    %c1_49 = arith.constant 1 : index
    %c0_50 = arith.constant 0 : index
    %45 = vector.load %arg15[%c0_46, %c0_47, %c0_48, %c1_49, %c0_50] : memref<1x4x10x10x128xbf16, #tpu.memory_space<vmem>>, vector<1x4x8x8x128xbf16>
    %46 = vector.shape_cast %45 : vector<1x4x8x8x128xbf16> to vector<4x8x8x128xbf16>
    %c0_51 = arith.constant 0 : index
    %c0_52 = arith.constant 0 : index
    %c0_53 = arith.constant 0 : index
    %c2 = arith.constant 2 : index
    %c0_54 = arith.constant 0 : index
    %47 = vector.load %arg15[%c0_51, %c0_52, %c0_53, %c2, %c0_54] : memref<1x4x10x10x128xbf16, #tpu.memory_space<vmem>>, vector<1x4x8x8x128xbf16>
    %48 = vector.shape_cast %47 : vector<1x4x8x8x128xbf16> to vector<4x8x8x128xbf16>
    %c0_55 = arith.constant 0 : index
    %c0_56 = arith.constant 0 : index
    %c1_57 = arith.constant 1 : index
    %c0_58 = arith.constant 0 : index
    %c0_59 = arith.constant 0 : index
    %49 = vector.load %arg15[%c0_55, %c0_56, %c1_57, %c0_58, %c0_59] : memref<1x4x10x10x128xbf16, #tpu.memory_space<vmem>>, vector<1x4x8x8x128xbf16>
    %50 = vector.shape_cast %49 : vector<1x4x8x8x128xbf16> to vector<4x8x8x128xbf16>
    %c0_60 = arith.constant 0 : index
    %c0_61 = arith.constant 0 : index
    %c1_62 = arith.constant 1 : index
    %c1_63 = arith.constant 1 : index
    %c0_64 = arith.constant 0 : index
    %51 = vector.load %arg15[%c0_60, %c0_61, %c1_62, %c1_63, %c0_64] : memref<1x4x10x10x128xbf16, #tpu.memory_space<vmem>>, vector<1x4x8x8x128xbf16>
    %52 = vector.shape_cast %51 : vector<1x4x8x8x128xbf16> to vector<4x8x8x128xbf16>
    %c0_65 = arith.constant 0 : index
    %c0_66 = arith.constant 0 : index
    %c1_67 = arith.constant 1 : index
    %c2_68 = arith.constant 2 : index
    %c0_69 = arith.constant 0 : index
    %53 = vector.load %arg15[%c0_65, %c0_66, %c1_67, %c2_68, %c0_69] : memref<1x4x10x10x128xbf16, #tpu.memory_space<vmem>>, vector<1x4x8x8x128xbf16>
    %54 = vector.shape_cast %53 : vector<1x4x8x8x128xbf16> to vector<4x8x8x128xbf16>
    %c0_70 = arith.constant 0 : index
    %c0_71 = arith.constant 0 : index
    %c2_72 = arith.constant 2 : index
    %c0_73 = arith.constant 0 : index
    %c0_74 = arith.constant 0 : index
    %55 = vector.load %arg15[%c0_70, %c0_71, %c2_72, %c0_73, %c0_74] : memref<1x4x10x10x128xbf16, #tpu.memory_space<vmem>>, vector<1x4x8x8x128xbf16>
    %56 = vector.shape_cast %55 : vector<1x4x8x8x128xbf16> to vector<4x8x8x128xbf16>
    %c0_75 = arith.constant 0 : index
    %c0_76 = arith.constant 0 : index
    %c2_77 = arith.constant 2 : index
    %c1_78 = arith.constant 1 : index
    %c0_79 = arith.constant 0 : index
    %57 = vector.load %arg15[%c0_75, %c0_76, %c2_77, %c1_78, %c0_79] : memref<1x4x10x10x128xbf16, #tpu.memory_space<vmem>>, vector<1x4x8x8x128xbf16>
    %58 = vector.shape_cast %57 : vector<1x4x8x8x128xbf16> to vector<4x8x8x128xbf16>
    %c0_80 = arith.constant 0 : index
    %c0_81 = arith.constant 0 : index
    %c2_82 = arith.constant 2 : index
    %c2_83 = arith.constant 2 : index
    %c0_84 = arith.constant 0 : index
    %59 = vector.load %arg15[%c0_80, %c0_81, %c2_82, %c2_83, %c0_84] : memref<1x4x10x10x128xbf16, #tpu.memory_space<vmem>>, vector<1x4x8x8x128xbf16>
    %60 = vector.shape_cast %59 : vector<1x4x8x8x128xbf16> to vector<4x8x8x128xbf16>
    %61 = tpu.concatenate %44, %46, %48, %50, %52, %54, %56, %58, %60 in 3 : vector<4x8x8x128xbf16>, vector<4x8x8x128xbf16>, vector<4x8x8x128xbf16>, vector<4x8x8x128xbf16>, vector<4x8x8x128xbf16>, vector<4x8x8x128xbf16>, vector<4x8x8x128xbf16>, vector<4x8x8x128xbf16>, vector<4x8x8x128xbf16> -> vector<4x8x8x1152xbf16>
    %62 = vector.shape_cast %61 : vector<4x8x8x1152xbf16> to vector<256x1152xbf16>
    %c0_85 = arith.constant 0 : index
    %c0_86 = arith.constant 0 : index
    %c0_87 = arith.constant 0 : index
    %63 = vector.load %arg7[%c0_85, %c0_86, %c0_87] : memref<1x1152x128xbf16, #tpu.memory_space<vmem>>, vector<1x1152x128xbf16>
    %64 = vector.shape_cast %63 : vector<1x1152x128xbf16> to vector<1152x128xbf16>
    %cst_88 = arith.constant dense<0.000000e+00> : vector<256x128xf32>
    %65 = tpu.matmul %62, %64, %cst_88 {dimension_numbers = #tpu.dot_dimension_numbers<[1], [0], [0], [1], [0, 0, 1, 1], [], []>} : vector<256x1152xbf16>, vector<1152x128xbf16>, vector<256x128xf32> -> vector<256x128xf32>
    %c0_89 = arith.constant 0 : index
    %c0_90 = arith.constant 0 : index
    %66 = vector.load %arg8[%c0_89, %c0_90] : memref<1x128xf32, #tpu.memory_space<vmem>>, vector<1x128xf32>
    %67 = vector.broadcast %66 : vector<1x128xf32> to vector<256x128xf32>
    %68 = arith.mulf %65, %67 : vector<256x128xf32>
    %c0_91 = arith.constant 0 : index
    %c0_92 = arith.constant 0 : index
    %69 = vector.load %arg9[%c0_91, %c0_92] : memref<1x128xf32, #tpu.memory_space<vmem>>, vector<1x128xf32>
    %70 = vector.broadcast %69 : vector<1x128xf32> to vector<256x128xf32>
    %71 = arith.addf %68, %70 : vector<256x128xf32>
    %cst_93 = arith.constant 0.000000e+00 : f32
    %72 = vector.broadcast %cst_93 : f32 to vector<256x128xf32>
    %73 = arith.maximumf %71, %72 : vector<256x128xf32>
    %74 = arith.extf %1 : vector<256x64xbf16> to vector<256x64xf32>
    %c0_94 = arith.constant 0 : index
    %c0_95 = arith.constant 0 : index
    %75 = vector.load %arg11[%c0_94, %c0_95] : memref<1x64xf32, #tpu.memory_space<vmem>>, vector<1x64xf32>
    %76 = vector.broadcast %75 : vector<1x64xf32> to vector<256x64xf32>
    %77 = arith.mulf %74, %76 : vector<256x64xf32>
    %c0_96 = arith.constant 0 : index
    %c0_97 = arith.constant 0 : index
    %78 = vector.load %arg12[%c0_96, %c0_97] : memref<1x64xf32, #tpu.memory_space<vmem>>, vector<1x64xf32>
    %79 = vector.broadcast %78 : vector<1x64xf32> to vector<256x64xf32>
    %80 = arith.addf %77, %79 : vector<256x64xf32>
    %cst_98 = arith.constant 0.000000e+00 : f32
    %81 = vector.broadcast %cst_98 : f32 to vector<256x64xf32>
    %82 = arith.maximumf %80, %81 : vector<256x64xf32>
    %83 = arith.truncf %82 : vector<256x64xf32> to vector<256x64xbf16>
    %c0_99 = arith.constant 0 : index
    %c0_100 = arith.constant 0 : index
    %84 = vector.load %arg13[%c0_99, %c0_100] : memref<64x256xbf16, #tpu.memory_space<vmem>>, vector<64x256xbf16>
    %cst_101 = arith.constant dense<0.000000e+00> : vector<256x256xf32>
    %85 = tpu.matmul %83, %84, %cst_101 {dimension_numbers = #tpu.dot_dimension_numbers<[1], [0], [0], [1], [0, 0, 1, 1], [], []>} : vector<256x64xbf16>, vector<64x256xbf16>, vector<256x256xf32> -> vector<256x256xf32>
    %86 = arith.truncf %73 : vector<256x128xf32> to vector<256x128xbf16>
    %c0_102 = arith.constant 0 : index
    %c0_103 = arith.constant 0 : index
    %87 = vector.load %arg10[%c0_102, %c0_103] : memref<128x256xbf16, #tpu.memory_space<vmem>>, vector<128x256xbf16>
    %cst_104 = arith.constant dense<0.000000e+00> : vector<256x256xf32>
    %88 = tpu.matmul %86, %87, %cst_104 {dimension_numbers = #tpu.dot_dimension_numbers<[1], [0], [0], [1], [0, 0, 1, 1], [], []>} : vector<256x128xbf16>, vector<128x256xbf16>, vector<256x256xf32> -> vector<256x256xf32>
    %89 = arith.addf %85, %88 : vector<256x256xf32>
    %90 = vector.shape_cast %89 : vector<256x256xf32> to vector<4x64x256xf32>
    %c0_105 = arith.constant 0 : index
    %c0_106 = arith.constant 0 : index
    %c0_107 = arith.constant 0 : index
    %91 = vector.load %arg14[%c0_105, %c0_106, %c0_107] : memref<4x64x256xf32, #tpu.memory_space<vmem>>, vector<4x64x256xf32>
    tpu.vector_store %arg14[%c0_105, %c0_106, %c0_107], %90 {strides = array<i32>} : memref<4x64x256xf32, #tpu.memory_space<vmem>>, vector<4x64x256xf32>,
    return
  }
  func.func @transform_0(%arg0: i32) -> (i32, i32, i32) {
    %c0_i32 = arith.constant 0 : i32
    %c0_i32_0 = arith.constant 0 : i32
    %c0_i32_1 = arith.constant 0 : i32
    return %arg0, %c0_i32, %c0_i32_0 : i32, i32, i32
  }
  func.func @transform_1(%arg0: i32) -> (i32, i32) {
    %c0_i32 = arith.constant 0 : i32
    %c0_i32_0 = arith.constant 0 : i32
    %c0_i32_1 = arith.constant 0 : i32
    return %c0_i32, %c0_i32_0 : i32, i32
  }
  func.func @transform_2(%arg0: i32) -> (i32, i32) {
    %c0_i32 = arith.constant 0 : i32
    %c0_i32_0 = arith.constant 0 : i32
    %c0_i32_1 = arith.constant 0 : i32
    return %c0_i32, %c0_i32_0 : i32, i32
  }
  func.func @transform_3(%arg0: i32) -> (i32, i32) {
    %c0_i32 = arith.constant 0 : i32
    %c0_i32_0 = arith.constant 0 : i32
    %c0_i32_1 = arith.constant 0 : i32
    return %c0_i32, %c0_i32_0 : i32, i32
  }
  func.func @transform_4(%arg0: i32) -> (i32, i32) {
    %c0_i32 = arith.constant 0 : i32
    %c0_i32_0 = arith.constant 0 : i32
    %c0_i32_1 = arith.constant 0 : i32
    return %c0_i32, %c0_i32_0 : i32, i32
  }
  func.func @transform_5(%arg0: i32) -> (i32, i32) {
    %c0_i32 = arith.constant 0 : i32
    %c0_i32_0 = arith.constant 0 : i32
    %c0_i32_1 = arith.constant 0 : i32
    return %c0_i32, %c0_i32_0 : i32, i32
  }
  func.func @transform_6(%arg0: i32) -> (i32, i32, i32) {
    %c0_i32 = arith.constant 0 : i32
    %c0_i32_0 = arith.constant 0 : i32
    %c0_i32_1 = arith.constant 0 : i32
    %c0_i32_2 = arith.constant 0 : i32
    return %c0_i32, %c0_i32_0, %c0_i32_1 : i32, i32, i32
  }
  func.func @transform_7(%arg0: i32) -> (i32, i32) {
    %c0_i32 = arith.constant 0 : i32
    %c0_i32_0 = arith.constant 0 : i32
    %c0_i32_1 = arith.constant 0 : i32
    return %c0_i32, %c0_i32_0 : i32, i32
  }
  func.func @transform_8(%arg0: i32) -> (i32, i32) {
    %c0_i32 = arith.constant 0 : i32
    %c0_i32_0 = arith.constant 0 : i32
    %c0_i32_1 = arith.constant 0 : i32
    return %c0_i32, %c0_i32_0 : i32, i32
  }
  func.func @transform_9(%arg0: i32) -> (i32, i32) {
    %c0_i32 = arith.constant 0 : i32
    %c0_i32_0 = arith.constant 0 : i32
    %c0_i32_1 = arith.constant 0 : i32
    return %c0_i32, %c0_i32_0 : i32, i32
  }
  func.func @transform_10(%arg0: i32) -> (i32, i32) {
    %c0_i32 = arith.constant 0 : i32
    %c0_i32_0 = arith.constant 0 : i32
    %c0_i32_1 = arith.constant 0 : i32
    return %c0_i32, %c0_i32_0 : i32, i32
  }
  func.func @transform_11(%arg0: i32) -> (i32, i32) {
    %c0_i32 = arith.constant 0 : i32
    %c0_i32_0 = arith.constant 0 : i32
    %c0_i32_1 = arith.constant 0 : i32
    return %c0_i32, %c0_i32_0 : i32, i32
  }
  func.func @transform_12(%arg0: i32) -> (i32, i32) {
    %c0_i32 = arith.constant 0 : i32
    %c0_i32_0 = arith.constant 0 : i32
    %c0_i32_1 = arith.constant 0 : i32
    return %c0_i32, %c0_i32_0 : i32, i32
  }
  func.func @transform_13(%arg0: i32) -> (i32, i32, i32) {
    %c0_i32 = arith.constant 0 : i32
    %c0_i32_0 = arith.constant 0 : i32
    %c0_i32_1 = arith.constant 0 : i32
    return %arg0, %c0_i32, %c0_i32_0 : i32, i32, i32
  }
}

</mosaic_0001>

<bundles_post_ra>
// kernel: tpu_custom_call.1
= control target key start
LH: loop header
LB: loop body
LE: loop exit
PB: predicated region body
PF: predicated region fallthrough
CT: control target
= control target key end

     0   :  { %s11519_s0 = inlined_call_operand.hbm [shape: bf16[8,64,64], index: 0, kind: input, shape index: {}]   ;;  %s11520_s1 = inlined_call_operand.vmem [shape: f32[1,64], index: 1, kind: input, shape index: {}]   ;;  %s11521_s2 = inlined_call_operand.vmem [shape: f32[1,64], index: 2, kind: input, shape index: {}]   ;;  %s11522_s3 = inlined_call_operand.hbm [shape: bf16[64,128], index: 3, kind: input, shape index: {}]   ;;  %s11523_s4 = inlined_call_operand.vmem [shape: f32[1,128], index: 4, kind: input, shape index: {}]   ;;  %s11524_s5 = inlined_call_operand.vmem [shape: f32[1,128], index: 5, kind: input, shape index: {}]   ;;  %s11525_s6 = inlined_call_operand.hbm [shape: bf16[1,1152,128], index: 6, kind: input, shape index: {}]   ;;  %s11526_s7 = inlined_call_operand.vmem [shape: f32[1,128], index: 7, kind: input, shape index: {}]   ;;  %s11527_s8 = inlined_call_operand.vmem [shape: f32[1,128], index: 8, kind: input, shape index: {}]   ;;  %s11528_s9 = inlined_call_operand.hbm [shape: bf16[128,256], index: 9, kind: input, shape index: {}]   ;;  %s11529_s10 = inlined_call_operand.vmem [shape: f32[1,64], index: 10, kind: input, shape index: {}]   ;;  %s11530_s11 = inlined_call_operand.vmem [shape: f32[1,64], index: 11, kind: input, shape index: {}]   ;;  %s11531_s12 = inlined_call_operand.hbm [shape: bf16[64,256], index: 12, kind: input, shape index: {}]   ;;  %s11532_s13 = inlined_call_operand.hbm [shape: f32[8,64,256], index: 13, kind: output, shape index: {}]  }
   0x1   :  { %11627 = sst [smem:[#allocation72_spill]] %s11522_s3 }
   0x2   :  { %11628 = sst [smem:[#allocation73_spill]] %s11525_s6 }
   0x3   :  { %11629 = sst [smem:[#allocation74_spill]] %s11528_s9 }
   0x4   :  { %11630 = sst [smem:[#allocation75_spill]] %s11531_s12 }
   0x5   :  { %18 = vsyncpa [#allocation4], 0 }
   0x6   :  { %20 = vsyncpa [#allocation4 + $0x1], 0 }
   0x7   :  { %21 = vsyncpa [#allocation7], 0 }
   0x8   :  { %22 = vsyncpa [#allocation10], 0 }
   0x9   :  { %23 = vsyncpa [#allocation5], 0 }
   0xa   :  { %25 = vsyncpa [#allocation5 + $0x1], 0  ;;  %s8649_s25 = smov 0   ;;  %s8651_s26 = smov 0  }
   0xb   :  { %s8653_s27 = smov 0   ;;  %s8655_s28 = smov 0  }
   0xc LB: > { %11631 = sst [smem:[#allocation17_spill]] %s8560_s27  ;;  %s8670_s29 = sadd.s32 4294967295, %s8564_s28   ;;  %s8564_s28 = sphi %s8655_s28, %s11963_s28   ;;  %s8560_s27 = sphi %s8653_s27, %s11965_s27   ;;  %s8556_s26 = sphi %s8651_s26, %s11967_s26   ;;  %s8552_s25 = sphi %s8649_s25, %s11966_s25  }
   0xd   : > { %11632 = sst [smem:[#allocation18_spill]] %s8564_s28  ;;  %s6642_s30 = sadd.s32 4294967294, %s8564_s28  }
   0xe   : > { %p51_p0 = scmp.ne.s32.totalorder %s8556_s26, %s8552_s25  ;;  %p11538_p1 = scmp.eq.s32.totalorder %s8670_s29, 0 }
   0xf   : > { %p333_p3 = scmp.eq.s32.totalorder %s6642_s30, 1  ;;  %p6643_p5 = scmp.ge.s32.totalorder %s8564_s28, 1 }
  0x10   : > { %p8679_p4 = por %p11538_p1, %p51_p0  ;;  %p340_p7 = scmp.lt.s32.totalorder %s8564_s28, 3 }
  0x11   : > { %p8684_p6 = por %p333_p3, %p51_p0  ;;  %s8566_s17 = smov [#allocation6]  }
  0x12   : > { %s11633_s14 = scalar_select %p8679_p4, 1, 0 }
  0x13   : > { %s11634_s15 = scalar_select %p8684_p6, 1, 0 }
  0x14   : > { %p8689_p8 = pnand %p6643_p5, %p340_p7  ;;  %s358_s18 = sshll.u32 %s8566_s17, 4  ;;  %s359_s18 = int_to_ptr.vmem [resolvable:$true] %s358_s18 }
  0x15   : > { %11635 = sst [smem:[#allocation19_spill]] %s11634_s15  ;;  %s8567_s20 = smov [#allocation9]  }
  0x16   : > { %s11636_s16 = scalar_select %p8689_p8, 1, 0 }
  0x17   : > { %p7897_p9 = pneg %p8689_p8  ;;  %s396_s21 = sshll.u32 %s8567_s20, 4  ;;  %s397_s21 = int_to_ptr.vmem [resolvable:$true] %s396_s21 }
  0x18   : > { %s8371_s22 = scalar_lea.vmem %s359_s18, 512  ;;  %p8379_p5 = scmp.lt.s32.totalorder %s359_s18, %s359_s18 }
  0x19   : > { %p8698_p11 = pnand %p7897_p9, %p11538_p1  ;;  %p8372_p13 = scmp.ne.s32.totalorder %s359_s18, %s8371_s22 }
  0x1a   : > { %p8380_p7 = scmp.lt.s32.totalorder %s8371_s22, %s8371_s22 }
  0x1b   : > { %p8362_p12 = pneg %p8698_p11 }
  0x1c   : > { %p8381_p10 = por %p8380_p7, %p8379_p5 }
  0x1d   : > { %p8374_p0 = pnand %p8372_p13, %p8362_p12 }
  0x1f   : > { %p8375_p3 = pneg %p8374_p0 }
  0x21   : > { %p8382_p9 = pnand %p8381_p10, %p8375_p3 }
  0x23   : > { %8385 = shalt.err (!%p8382_p9)
}
  0x24   : > { %s11534_s23 = smov 64   ;;  %s11536_s24 = smov 4  }
  0x25   : > { %s11638_s3 = sld [smem:[#allocation72_spill]]  ;;  %s8397_s20 = scalar_lea.vmem %s397_s21, 2048 }
  0x26   : > { %p8398_p13 = scmp.ne.s32.totalorder %s397_s21, %s8397_s20  ;;  %p8405_p10 = scmp.lt.s32.totalorder %s397_s21, %s397_s21 }
  0x27   : > { %p8406_p3 = scmp.lt.s32.totalorder %s8397_s20, %s8397_s20 }
  0x28   : > { %p8400_p0 = pnand %p8398_p13, %p8362_p12 }
  0x29   : > { %p8407_p7 = por %p8406_p3, %p8405_p10 }
  0x2a   : > { %p8401_p5 = pneg %p8400_p0 }
  0x2b   : > { %7900 = dma.hbm_to_vmem [thread:$0]  (!%p8698_p11), %s11638_s3, 512, %s359_s18, [#allocation7], %s11534_s23, %s11534_s23, %s11536_s24  }
  0x2c   : > { %p8408_p9 = pnand %p8407_p7, %p8401_p5 }
  0x2e   : > { %8411 = shalt.err (!%p8408_p9)
}
  0x2f   : > { %s8570_s22 = smov 128   ;;  %s8571_s15 = smov 8  }
  0x30   : > { %s11639_s9 = sld [smem:[#allocation74_spill]]  ;;  %s8572_s17 = smov [#allocation8]  }
  0x31   : > { %s377_s23 = sshll.u32 %s8572_s17, 4  ;;  %s8573_s24 = smov [#allocation11]   ;;  %s378_s23 = int_to_ptr.vmem [resolvable:$true] %s377_s23 }
  0x32   : > { %s415_s3 = sshll.u32 %s8573_s24, 4  ;;  %s8423_s20 = scalar_lea.vmem %s378_s23, 9216  ;;  %s416_s3 = int_to_ptr.vmem [resolvable:$true] %s415_s3 }
  0x33   : > { %p8424_p13 = scmp.ne.s32.totalorder %s378_s23, %s8423_s20  ;;  %p8431_p10 = scmp.lt.s32.totalorder %s378_s23, %s378_s23 }
  0x34   : > { %p8432_p3 = scmp.lt.s32.totalorder %s8423_s20, %s8423_s20 }
  0x35   : > { %p8426_p0 = pnand %p8424_p13, %p8362_p12 }
  0x36   : > { %7906 = dma.hbm_to_vmem [thread:$0]  (!%p8698_p11), %s11639_s9, 2048, %s397_s21, [#allocation10], %s8570_s22, %s8570_s22, %s8571_s15  }
  0x37   : > { %p8427_p5 = pneg %p8426_p0  ;;  %p8433_p7 = por %p8432_p3, %p8431_p10 }
  0x39   : > { %p8434_p9 = pnand %p8433_p7, %p8427_p5 }
  0x3b   : > { %8437 = shalt.err (!%p8434_p9)
}
  0x3c   : > { %s11640_s21 = smov 4   ;;  %s11641_s18 = smov 64  }
  0x3d   : > { %s11642_s6 = sld [smem:[#allocation73_spill]]  ;;  %s8449_s17 = scalar_lea.vmem %s416_s3, 1024 }
  0x3e   : > { %p8450_p1 = scmp.ne.s32.totalorder %s416_s3, %s8449_s17  ;;  %p8457_p2 = scmp.lt.s32.totalorder %s416_s3, %s416_s3 }
  0x3f   : > { %p8458_p10 = scmp.lt.s32.totalorder %s8449_s17, %s8449_s17 }
  0x40   : > { %p8452_p13 = pnand %p8450_p1, %p8362_p12 }
  0x41   : > { %p8459_p5 = por %p8458_p10, %p8457_p2 }
  0x42   : > { %p8453_p0 = pneg %p8452_p13 }
  0x43   : > { %7903 = dma.hbm_to_vmem [thread:$0]  (!%p8698_p11), %s11642_s6, 9216, %s378_s23, [#allocation7], %s11641_s18, %s11641_s18, %s11640_s21  }
  0x44   : > { %p8460_p3 = pnand %p8459_p5, %p8453_p0 }
  0x46   : > { %8463 = shalt.err (!%p8460_p3)
}
  0x47   : > { %s11643_s12 = sld [smem:[#allocation75_spill]]  ;;  %s8749_s23 = sadd.s32 1, %s8564_s28  }
  0x48   : > { %11644 = sst [smem:[#allocation20_spill]] %s8749_s23  ;;  %s35_s19 = ssub.s32 %s8564_s28, %s8749_s23 }
  0x49   : > { %p36_p1 = scmp.eq.s32.totalorder %s35_s19, 0  ;;  %s38_s24 = sadd.s32 1, %s8560_s27 }
  0x4a   : > { %p45_p2 = scmp.ne.s32.totalorder %s8560_s27, %s8556_s26  ;;  %p46_p12 = scmp.eq.s32.totalorder %s8564_s28, 0 }
  0x4b   : > { %s8758_s17 = scalar_select %p36_p1, %s8560_s27, %s38_s24  }
  0x4c   : > { %p47_p7 = por %p46_p12, %p45_p2  ;;  %p11646_p9 = scmp.eq.s32.totalorder %s8670_s29, 1 }
  0x4d   : > { %7909 = dma.hbm_to_vmem [thread:$0]  (!%p8698_p11), %s11643_s12, 1024, %s416_s3, [#allocation10], %s8570_s22, %s8570_s22, %s8571_s15  }
  0x4e   : > { %11645 = sst [smem:[#allocation21_spill]] %s8758_s17  ;;  %p8762_p13 = por %p11646_p9, %p45_p2 }
  0x4f   : > { %p7922_p0 = scmp.lt.s32.totalorder %s8564_s28, 2  ;;  %s429_s30 = sand.u32 1, %s8560_s27  }
  0x50   : > { %s11647_s20 = scalar_select %p8762_p13, 1, 0 }
  0x51   : > { %s6649_s6 = sshll.u32 %s429_s30, 7  ;;  %s7175_s3 = sshll.u32 %s8564_s28, 11 }
  0x52   : > { %s8772_s9 = scalar_lea.hbm %s11519_s0, %s7175_s3  ;;  %s433_s19 = scalar_lea.vmem [#allocation3], %s6649_s6 }
  0x53   : > { %s441_s24 = sshll.u32 %s433_s19, 4  ;;  %p8776_p11 = pnand %p7922_p0, %p47_p7  ;;  %s8774_s24 = int_to_ptr.vmem [resolvable:$true] %s441_s24 }
  0x54   : > { %s8780_s17 = scalar_lea.sflag [#allocation4], %s429_s30  ;;  %s8464_s27 = scalar_lea.hbm %s8772_s9, 2048 }
  0x55   : > { %p8465_p10 = scmp.ne.s32.totalorder %s8772_s9, %s8464_s27  ;;  %p8466_p5 = pneg %p8776_p11 }
  0x56   : > { %s8469_s6 = scalar_lea.hbm %s11519_s0, 4096  ;;  %p8470_p2 = scmp.lt.s32.totalorder %s8772_s9, %s11519_s0 }
  0x57   : > { %p8467_p3 = pnand %p8466_p5, %p8465_p10  ;;  %p8471_p12 = scmp.lt.s32.totalorder %s8469_s6, %s8464_s27 }
  0x59   : > { %p8468_p1 = pneg %p8467_p3  ;;  %p8472_p7 = por %p8471_p12, %p8470_p2 }
  0x5b   : > { %p8473_p9 = pnand %p8472_p7, %p8468_p1 }
  0x5d   : > { %8476 = shalt.err (!%p8473_p9)
}
  0x5e   : > { %s8477_s30 = scalar_lea.vmem %s8774_s24, 2048  ;;  %s8574_s23 = smov [#allocation3]  }
  0x5f   : > { %p8478_p0 = scmp.ne.s32.totalorder %s8774_s24, %s8477_s30  ;;  %s8482_s28 = sshll.u32 %s8574_s23, 4  ;;  %s8483_s28 = int_to_ptr.vmem [resolvable:$false] %s8482_s28 }
  0x60   : > { %s8484_s3 = scalar_lea.vmem %s8483_s28, 4096  ;;  %p8485_p3 = scmp.lt.s32.totalorder %s8774_s24, %s8483_s28 }
  0x61   : > { %p8480_p6 = pnand %p8478_p0, %p8466_p5  ;;  %p8486_p13 = scmp.lt.s32.totalorder %s8484_s3, %s8477_s30 }
  0x63   : > { %p8481_p10 = pneg %p8480_p6  ;;  %p8487_p4 = por %p8486_p13, %p8485_p3 }
  0x65   : > { %p8488_p8 = pnand %p8487_p4, %p8481_p10 }
  0x67   : > { %8491 = shalt.err (!%p8488_p8)
}
  0x68   : > { %7913 = dma.hbm_to_vmem [thread:$0]  (!%p8776_p11), %s8772_s9, 2048, %s8774_s24, %s8780_s17, %s11641_s18, %s11641_s18, %s11640_s21  }
  0x69   : > { %p11649_p6 = scmp.ne.s32.totalorder %s11636_s16, 0 }
  0x6b   : > { %453 = sbr.rel (%p11649_p6) target bundleno = 1228 (0x4cc), region = 72 }
  0x70   : > { %s8807_s27 = sand.u32 1, %s8556_s26   ;;  %p11650_p4 = scmp.ne.s32.totalorder %s11633_s14, 0 }
  0x71   : > { %s6654_s28 = sshll.u32 %s8807_s27, 7  ;;  %s456_s23 = scalar_lea.sflag [#allocation4], %s8807_s27 }
  0x72   : > { %s8811_s15 = scalar_lea.vmem [#allocation3], %s6654_s28 }
  0x73   : > { %8535 = dma.done.wait (%p11650_p4), %s456_s23, 2048  }
  0x74   : > { %8537 = vsyncadd (%p11650_p4), %s456_s23, 4294965248  ;;  %p11651_p8 = scmp.eq.s32.totalorder %s8670_s29, 0 }
  0x76   : > { %8539 = dma.done.wait (%p11651_p8), [#allocation7], 9728   ;;  %p11652_p13 = pmov %p11651_p8 }
  0x77   : > { %p11653_p11 = pmov %p11651_p8 }
  0x78   : > { %8541 = vsyncadd (%p11652_p13), [#allocation7], 4294957568 }
  0x79   : > { %8543 = dma.done.wait (%p11653_p11), [#allocation10], 3072   ;;  %p11654_p5 = pmov %p11651_p8 }
  0x7a   : > { %v7971_v0 = vld [vmem:[#allocation6 + $0x18] sm:$0xff]   ;;  %v7972_v1 = vld [vmem:[#allocation6 + $0x10] sm:$0xff]   ;;  %v7973_v2 = vld [vmem:[#allocation6 + $0x8] sm:$0xff]   ;;  %vm743_vm0 = vcmask 523264   ;;  %vm1096_vm1 = vcmask 1040384   ;;  %vm1742_vm6 = vcmask 1043456  }
  0x7b   : > { %8545 = vsyncadd (%p11654_p5), [#allocation10], 4294964224  ;;  %7781 = vmatprep.subr.bf16.mxu0 %v7971_v0  ;;  %v7211_v3 = vld [vmem:[%s8811_s15] sm:$0xff]   ;;  %v7274_v8 = vld [vmem:[%s8811_s15 + $0x8] sm:$0xff]   ;;  %vm1097_vm2 = vsmask.f32 256 }
  0x7c   : > { %7782 = vmatpush3.bf16.msra.mxu0 %v7971_v0  ;;  %v8829_v4 = vld [vmem:[%s11520_s1] ss:$0 sm:$0xff]  ;;  %v7212_v5 = vunpack.c.l.bf16 %v7211_v3  ;;  %v7213_v6 = vunpack.c.h.bf16 %v7211_v3  ;;  %v7216_v10 = vunpack.c.l.bf16 %v7274_v8  ;;  %v7217_v11 = vunpack.c.h.bf16 %v7274_v8  ;;  %v8856_v26 = vld [vmem:[%s8811_s15 + $0x10] sm:$0xff]   ;;  %v8861_v31 = vld [vmem:[%s8811_s15 + $0x18] sm:$0xff]   ;;  %s6659_s6 = sshll.u32 %s8807_s27, 9  ;;  %s7209_s19 = sshll.u32 %s8670_s29, 13 }
  0x7d   : > { %7783 = vmatprep.subr.bf16.mxu0 %v7972_v1  ;;  %v8834_v7 = vld [vmem:[%s11529_s10] ss:$0 sm:$0xff]  ;;  %11655 = vst [vmem:[#allocation22_spill] sm:$0xff] %v8856_v26  ;;  %11656 = vst [vmem:[#allocation23_spill] sm:$0xff] %v8861_v31  ;;  %v11557_v43 = vunpack.c.l.bf16 %v8856_v26  ;;  %v11556_v44 = vunpack.c.h.bf16 %v8856_v26  ;;  %v11555_v47 = vunpack.c.l.bf16 %v8861_v31  ;;  %v11554_v48 = vunpack.c.h.bf16 %v8861_v31  ;;  %v8883_v52 = vld [vmem:[%s8811_s15 + $0x28] sm:$0xff]   ;;  %s11341_s22 = scalar_lea.vmem [#allocation12], %s6659_s6  ;;  %s11471_s23 = scalar_lea.hbm %s11532_s13, %s7209_s19 }
  0x7e   : > { %v8840_v9 = vld [vmem:[%s11521_s2] ss:$0 sm:$0xff]  ;;  %v592_v12 = vmul.f32 %v7212_v5, %v8829_v4  ;;  %v593_v13 = vmul.f32 %v7213_v6, %v8829_v4  ;;  %v5739_v14 = vmul.f32 %v7212_v5, %v8834_v7  ;;  %v5740_v15 = vmul.f32 %v7213_v6, %v8834_v7  ;;  %11660 = vst [vmem:[#allocation27_spill] sm:$0xff] %v8883_v52  ;;  %v8892_v55 = vld [vmem:[%s8811_s15 + $0x30] sm:$0xff]   ;;  %vm9043_vm4 = vmand %vm1096_vm1, %vm1097_vm2  ;;  %s6531_s30 = sshll.u32 %s11341_s22, 4  ;;  %s6517_s29 = scalar_lea.sflag [#allocation5], %s8807_s27  ;;  %s11473_s30 = int_to_ptr.vmem [resolvable:$true] %s6531_s30 }
  0x7f   : > { %v7127_v16 = vld [vmem:[%s11530_s11] ss:$0 sm:$0xff]  ;;  %v594_v18 = vmul.f32 %v7216_v10, %v8829_v4  ;;  %v595_v19 = vmul.f32 %v7217_v11, %v8829_v4  ;;  %v5741_v20 = vmul.f32 %v7216_v10, %v8834_v7  ;;  %v5742_v21 = vmul.f32 %v7217_v11, %v8834_v7  ;;  %11661 = vst [vmem:[#allocation28_spill] sm:$0xff] %v8892_v55  ;;  %p11958_p2 = scmp.ne.s32.totalorder %s11647_s20, 0  ;;  %s8576_s9 = smov [#allocation12]  }
  0x80   : > { %7784 = vmatpush3.bf16.msra.mxu0 %v7972_v1  ;;  %v7974_v17 = vld [vmem:[#allocation6] sm:$0xff]   ;;  %v631_v22 = vadd.f32 %v8840_v9, %v592_v12  ;;  %v632_v23 = vadd.f32 %v8840_v9, %v593_v13  ;;  %v5778_v24 = vadd.f32 %v7127_v16, %v5739_v14  ;;  %v5779_v25 = vadd.f32 %v7127_v16, %v5740_v15  ;;  %v8907_v1 = vld [vmem:[%s8811_s15 + $0x38] sm:$0xff]   ;;  %s8496_s12 = sshll.u32 %s8576_s9, 4  ;;  %s8497_s12 = int_to_ptr.vmem [resolvable:$false] %s8496_s12 }
  0x81   : > { %7785 = vmatprep.subr.bf16.mxu0 %v7973_v2  ;;  %v633_v27 = vadd.f32 %v8840_v9, %v594_v18  ;;  %v634_v28 = vadd.f32 %v8840_v9, %v595_v19  ;;  %v5780_v29 = vadd.f32 %v7127_v16, %v5741_v20  ;;  %v5781_v30 = vadd.f32 %v7127_v16, %v5742_v21  ;;  %v8864_v32 = vld [vmem:[%s8811_s15 + $0x20] sm:$0xff]   ;;  %s8498_s14 = scalar_lea.vmem %s8497_s12, 16384  ;;  %p8499_p9 = scmp.lt.s32.totalorder %s11473_s30, %s8497_s12 }
  0x82   : > { %11657 = vst [vmem:[#allocation24_spill] sm:$0xff] %v8864_v32  ;;  %v663_v33 = vmax.f32 %v631_v22, 0.0  ;;  %v664_v34 = vmax.f32 %v632_v23, 0.0  ;;  %v5810_v35 = vmax.f32 %v5778_v24, 0.0  ;;  %v5811_v36 = vmax.f32 %v5779_v25, 0.0  ;;  %11662 = vst [vmem:[#allocation29_spill] sm:$0xff] %v8907_v1 }
  0x83   : > { %v665_v37 = vmax.f32 %v633_v27, 0.0  ;;  %v666_v38 = vmax.f32 %v634_v28, 0.0  ;;  %v5812_v39 = vmax.f32 %v5780_v29, 0.0  ;;  %v5813_v40 = vmax.f32 %v5781_v30, 0.0  ;;  %v7281_v16 = vld [vmem:[%s8811_s15 + $0x40] sm:$0xff]   ;;  %v7282_v27 = vld [vmem:[%s8811_s15 + $0x48] sm:$0xff]  }
  0x84   : > { %7786 = vmatpush3.bf16.msra.mxu0 %v7973_v2  ;;  %v695_v41 = vpack.c.bf16 %v664_v34, %v663_v33  ;;  %v8866_v42 = vpack.c.bf16 %v5811_v36, %v5810_v35  ;;  %v596_v49 = vmul.f32 %v11557_v43, %v8829_v4  ;;  %v597_v50 = vmul.f32 %v11556_v44, %v8829_v4 }
  0x85   : > { %7787 = vmatprep.subr.bf16.mxu0 %v7974_v17  ;;  %v696_v45 = vpack.c.bf16 %v666_v38, %v665_v37  ;;  %v8870_v46 = vpack.c.bf16 %v5813_v40, %v5812_v39  ;;  %v11553_v51 = vunpack.c.l.bf16 %v8864_v32  ;;  %v598_v53 = vmul.f32 %v11555_v47, %v8829_v4  ;;  %v7283_v40 = vld [vmem:[%s8811_s15 + $0x50] sm:$0xff]  }
  0x86   : > { %11658 = vst [vmem:[#allocation25_spill] sm:$0xff] %v8866_v42  ;;  %7789 = vmatprep.mubr.msk.bf16.mxu0 %vm743_vm0, %v695_v41  ;;  %v599_v54 = vmul.f32 %v11554_v48, %v8829_v4  ;;  %v635_v56 = vadd.f32 %v8840_v9, %v596_v49  ;;  %v636_v57 = vadd.f32 %v8840_v9, %v597_v50  ;;  %v11552_v58 = vunpack.c.h.bf16 %v8864_v32 }
  0x87   : > { %11659 = vst [vmem:[#allocation26_spill] sm:$0xff] %v8870_v46  ;;  %v637_v59 = vadd.f32 %v8840_v9, %v598_v53  ;;  %v600_v61 = vmul.f32 %v11553_v51, %v8829_v4  ;;  %v11551_v6 = vunpack.c.l.bf16 %v8883_v52  ;;  %v11550_v11 = vunpack.c.h.bf16 %v8883_v52 }
  0x88   : > { %7788 = vmatpush3.bf16.msra.mxu0 %v7974_v17  ;;  %v638_v60 = vadd.f32 %v8840_v9, %v599_v54  ;;  %v667_v62 = vmax.f32 %v635_v56, 0.0  ;;  %v668_v63 = vmax.f32 %v636_v57, 0.0  ;;  %v601_v0 = vmul.f32 %v11552_v58, %v8829_v4 }
  0x89   : > { %v669_v2 = vmax.f32 %v637_v59, 0.0  ;;  %v639_v5 = vadd.f32 %v8840_v9, %v600_v61  ;;  %v11549_v12 = vunpack.c.l.bf16 %v8892_v55  ;;  %v602_v15 = vmul.f32 %v11551_v6, %v8829_v4 }
  0x8a   : > { %v670_v3 = vmax.f32 %v638_v60, 0.0  ;;  %v697_v8 = vpack.c.bf16 %v668_v63, %v667_v62  ;;  %v640_v10 = vadd.f32 %v8840_v9, %v601_v0  ;;  %v603_v18 = vmul.f32 %v11550_v11, %v8829_v4  ;;  %v7284_v63 = vld [vmem:[%s8811_s15 + $0x58] sm:$0xff]  }
  0x8b   : > { %7790 = vmatmul.mubr.msk.bf16.vlgmr.msra.gmra.mxu0 %vm743_vm0, %v696_v45  ;;  %v671_v14 = vmax.f32 %v639_v5, 0.0  ;;  %v11548_v19 = vunpack.c.h.bf16 %v8892_v55  ;;  %v641_v20 = vadd.f32 %v8840_v9, %v602_v15  ;;  %v604_v21 = vmul.f32 %v11549_v12, %v8829_v4  ;;  %v7285_v15 = vld [vmem:[%s8811_s15 + $0x60] sm:$0xff]  }
  0x8c   : > { %v698_v13 = vpack.c.bf16 %v670_v3, %v669_v2  ;;  %7793 = vmatprep.mubr.msk.bf16.mxu0 %vm743_vm0, %v697_v8  ;;  %v672_v17 = vmax.f32 %v640_v10, 0.0  ;;  %v11547_v22 = vunpack.c.l.bf16 %v8907_v1  ;;  %v642_v24 = vadd.f32 %v8840_v9, %v603_v18 }
  0x8d   : > { %v605_v25 = vmul.f32 %v11548_v19, %v8829_v4  ;;  %v673_v28 = vmax.f32 %v641_v20, 0.0  ;;  %v643_v29 = vadd.f32 %v8840_v9, %v604_v21  ;;  %v11546_v30 = vunpack.c.h.bf16 %v8907_v1 }
  0x8e   : > { %v699_v23 = vpack.c.bf16 %v672_v17, %v671_v14  ;;  %v606_v33 = vmul.f32 %v11547_v22, %v8829_v4  ;;  %v674_v34 = vmax.f32 %v642_v24, 0.0  ;;  %v7244_v36 = vunpack.c.l.bf16 %v7281_v16 }
  0x8f   : > { %v644_v35 = vadd.f32 %v8840_v9, %v605_v25  ;;  %v675_v37 = vmax.f32 %v643_v29, 0.0  ;;  %v607_v38 = vmul.f32 %v11546_v30, %v8829_v4  ;;  %v7245_v49 = vunpack.c.h.bf16 %v7281_v16 }
  0x90   : > { %v645_v39 = vadd.f32 %v8840_v9, %v606_v33  ;;  %v700_v41 = vpack.c.bf16 %v674_v34, %v673_v28  ;;  %v608_v50 = vmul.f32 %v7244_v36, %v8829_v4  ;;  %v8949_v56 = vmul.f32 %v7244_v36, %v8834_v7  ;;  %v7286_v34 = vld [vmem:[%s8811_s15 + $0x68] sm:$0xff]  }
  0x91   : > { %v676_v45 = vmax.f32 %v644_v35, 0.0  ;;  %v646_v53 = vadd.f32 %v8840_v9, %v607_v38  ;;  %v7248_v57 = vunpack.c.l.bf16 %v7282_v27  ;;  %v609_v60 = vmul.f32 %v7245_v49, %v8829_v4 }
  0x92   : > { %v677_v54 = vmax.f32 %v645_v39, 0.0  ;;  %11663 = vst [vmem:[#allocation30_spill] sm:$0xff] %v8949_v56  ;;  %v647_v61 = vadd.f32 %v8840_v9, %v608_v50  ;;  %v8954_v62 = vmul.f32 %v7245_v49, %v8834_v7  ;;  %v7249_v2 = vunpack.c.h.bf16 %v7282_v27 }
  0x93   : > { %7794 = vmatmul.mubr.msk.bf16.gmra.mxu0 %vm743_vm0, %v698_v13  ;;  %v701_v59 = vpack.c.bf16 %v676_v45, %v675_v37  ;;  %v678_v0 = vmax.f32 %v646_v53, 0.0  ;;  %v610_v3 = vmul.f32 %v7248_v57, %v8829_v4  ;;  %v8959_v5 = vmul.f32 %v7248_v57, %v8834_v7  ;;  %v7287_v57 = vld [vmem:[%s8811_s15 + $0x70] sm:$0xff]  }
  0x94   : > { %7797 = vmatprep.mubr.msk.bf16.mxu0 %vm743_vm0, %v699_v23  ;;  %11664 = vst [vmem:[#allocation31_spill] sm:$0xff] %v8954_v62  ;;  %v648_v8 = vadd.f32 %v8840_v9, %v609_v60  ;;  %v679_v10 = vmax.f32 %v647_v61, 0.0  ;;  %v7252_v13 = vunpack.c.l.bf16 %v7283_v40  ;;  %v7253_v14 = vunpack.c.h.bf16 %v7283_v40 }
  0x95   : > { %11665 = vst [vmem:[#allocation32_spill] sm:$0xff] %v8959_v5  ;;  %v702_v16 = vpack.c.bf16 %v678_v0, %v677_v54  ;;  %v611_v17 = vmul.f32 %v7249_v2, %v8829_v4  ;;  %v649_v18 = vadd.f32 %v8840_v9, %v610_v3  ;;  %v8967_v20 = vmul.f32 %v7249_v2, %v8834_v7 }
  0x96   : > { %v680_v21 = vmax.f32 %v648_v8, 0.0  ;;  %v612_v23 = vmul.f32 %v7252_v13, %v8829_v4  ;;  %v613_v24 = vmul.f32 %v7253_v14, %v8829_v4  ;;  %v8973_v25 = vmul.f32 %v7252_v13, %v8834_v7 }
  0x97   : > { %11666 = vst [vmem:[#allocation33_spill] sm:$0xff] %v8967_v20  ;;  %v650_v27 = vadd.f32 %v8840_v9, %v611_v17  ;;  %v681_v28 = vmax.f32 %v649_v18, 0.0  ;;  %v8977_v29 = vmul.f32 %v7253_v14, %v8834_v7  ;;  %v7256_v33 = vunpack.c.l.bf16 %v7284_v63 }
  0x98   : > { %11667 = vst [vmem:[#allocation34_spill] sm:$0xff] %v8973_v25  ;;  %v703_v35 = vpack.c.bf16 %v680_v21, %v679_v10  ;;  %v651_v36 = vadd.f32 %v8840_v9, %v612_v23  ;;  %v652_v37 = vadd.f32 %v8840_v9, %v613_v24  ;;  %v7257_v38 = vunpack.c.h.bf16 %v7284_v63 }
  0x99   : > { %11668 = vst [vmem:[#allocation35_spill] sm:$0xff] %v8977_v29  ;;  %v682_v39 = vmax.f32 %v650_v27, 0.0  ;;  %v614_v40 = vmul.f32 %v7256_v33, %v8829_v4  ;;  %v7260_v45 = vunpack.c.l.bf16 %v7285_v15  ;;  %v7261_v60 = vunpack.c.h.bf16 %v7285_v15  ;;  %v7288_v15 = vld [vmem:[%s8811_s15 + $0x78] sm:$0xff]   ;;  %s8492_s15 = scalar_lea.vmem %s11473_s30, 8192 }
  0x9a   : > { %v683_v49 = vmax.f32 %v651_v36, 0.0  ;;  %v684_v50 = vmax.f32 %v652_v37, 0.0  ;;  %v615_v53 = vmul.f32 %v7257_v38, %v8829_v4  ;;  %v8988_v54 = vmul.f32 %v7257_v38, %v8834_v7  ;;  %p8493_p1 = scmp.ne.s32.totalorder %s11473_s30, %s8492_s15  ;;  %p8500_p0 = scmp.lt.s32.totalorder %s8498_s14, %s8492_s15 }
  0x9b   : > { %7798 = vmatmul.mubr.msk.bf16.gmra.mxu0 %vm743_vm0, %v700_v41  ;;  %v8984_v41 = vmul.f32 %v7256_v33, %v8834_v7  ;;  %v616_v61 = vmul.f32 %v7260_v45, %v8829_v4  ;;  %v704_v63 = vpack.c.bf16 %v682_v39, %v681_v28  ;;  %v8995_v2 = vmul.f32 %v7260_v45, %v8834_v7 }
  0x9c   : > { %7801 = vmatprep.mubr.msk.bf16.mxu0 %vm743_vm0, %v701_v59  ;;  %11670 = vst [vmem:[#allocation37_spill] sm:$0xff] %v8988_v54  ;;  %v653_v59 = vadd.f32 %v8840_v9, %v614_v40  ;;  %v654_v0 = vadd.f32 %v8840_v9, %v615_v53  ;;  %v7264_v3 = vunpack.c.l.bf16 %v7286_v34  ;;  %v617_v10 = vmul.f32 %v7261_v60, %v8829_v4  ;;  %v1329_v54 = vld [vmem:[#allocation2 + $0x124] sm:$0x1]  ;;  %p8494_p12 = pnand %p8493_p1, %p11958_p2  ;;  %p8501_p10 = por %p8500_p0, %p8499_p9 }
  0x9d   : > { %11669 = vst [vmem:[#allocation36_spill] sm:$0xff] %v8984_v41  ;;  %11671 = vst [vmem:[#allocation38_spill] sm:$0xff] %v8995_v2  ;;  %v655_v13 = vadd.f32 %v8840_v9, %v616_v61  ;;  %v9001_v14 = vmul.f32 %v7261_v60, %v8834_v7  ;;  %v7265_v18 = vunpack.c.h.bf16 %v7286_v34  ;;  %v7268_v27 = vunpack.c.l.bf16 %v7287_v57 }
  0x9e   : > { %v685_v8 = vmax.f32 %v653_v59, 0.0  ;;  %v686_v17 = vmax.f32 %v654_v0, 0.0  ;;  %v618_v21 = vmul.f32 %v7264_v3, %v8829_v4  ;;  %v9007_v23 = vmul.f32 %v7264_v3, %v8834_v7  ;;  %p8495_p7 = pneg %p8494_p12 }
  0x9f   : > { %11672 = vst [vmem:[#allocation39_spill] sm:$0xff] %v9001_v14  ;;  %v687_v24 = vmax.f32 %v655_v13, 0.0  ;;  %v7269_v28 = vunpack.c.h.bf16 %v7287_v57  ;;  %v705_v33 = vpack.c.bf16 %v684_v50, %v683_v49  ;;  %v619_v36 = vmul.f32 %v7265_v18, %v8829_v4 }
  0xa0   : > { %11673 = vst [vmem:[#allocation40_spill] sm:$0xff] %v9007_v23  ;;  %v657_v37 = vadd.f32 %v8840_v9, %v618_v21  ;;  %v9013_v38 = vmul.f32 %v7265_v18, %v8834_v7  ;;  %v620_v34 = vmul.f32 %v7268_v27, %v8829_v4  ;;  %v9018_v40 = vmul.f32 %v7268_v27, %v8834_v7  ;;  %p8502_p3 = pnand %p8501_p10, %p8495_p7 }
  0xa1   : > { %v621_v39 = vmul.f32 %v7269_v28, %v8829_v4  ;;  %v658_v45 = vadd.f32 %v8840_v9, %v619_v36  ;;  %v9022_v49 = vmul.f32 %v7269_v28, %v8834_v7  ;;  %v7272_v50 = vunpack.c.l.bf16 %v7288_v15 }
  0xa2   : > { %11674 = vst [vmem:[#allocation41_spill] sm:$0xff] %v9013_v38  ;;  %11675 = vst [vmem:[#allocation42_spill] sm:$0xff] %v9018_v40  ;;  %v689_v53 = vmax.f32 %v657_v37, 0.0  ;;  %v659_v57 = vadd.f32 %v8840_v9, %v620_v34  ;;  %v7273_v60 = vunpack.c.h.bf16 %v7288_v15  ;;  %v706_v28 = vpack.c.bf16 %v686_v17, %v685_v8  ;;  %v1108_v17 = vld [vmem:[#allocation2 + $0x18] sm:$0x1] }
  0xa3   : > { %7802 = vmatmul.mubr.msk.bf16.gmra.mxu0 %vm743_vm0, %v702_v16  ;;  %v656_v16 = vadd.f32 %v8840_v9, %v617_v10  ;;  %11676 = vst [vmem:[#allocation43_spill] sm:$0xff] %v9022_v49  ;;  %v660_v59 = vadd.f32 %v8840_v9, %v621_v39  ;;  %v690_v61 = vmax.f32 %v658_v45, 0.0  ;;  %v622_v0 = vmul.f32 %v7272_v50, %v8829_v4  ;;  %v7978_v45 = vld [vmem:[#allocation8 + $0x38] sm:$0xff]  }
  0xa4   : > { %7805 = vmatprep.mubr.msk.bf16.mxu0 %vm743_vm0, %v703_v35  ;;  %v9028_v3 = vmul.f32 %v7272_v50, %v8834_v7  ;;  %v691_v10 = vmax.f32 %v659_v57, 0.0  ;;  %v623_v18 = vmul.f32 %v7273_v60, %v8829_v4  ;;  %v9033_v21 = vmul.f32 %v7273_v60, %v8834_v7  ;;  %v7975_v7 = vld [vmem:[#allocation8 + $0xf8] sm:$0xff]   ;;  %v1102_v57 = vld [vmem:[#allocation2 + $0x8] sm:$0x1]  ;;  %v7980_v60 = vld [vmem:[#allocation8 + $0xb0] sm:$0xff]  }
  0xa5   : > { %v688_v35 = vmax.f32 %v656_v16, 0.0  ;;  %v692_v13 = vmax.f32 %v660_v59, 0.0  ;;  %v661_v16 = vadd.f32 %v8840_v9, %v622_v0  ;;  %7421 = vmatprep.subr.bf16.mxu0 %v7975_v7  ;;  %vm1219_vm3 = vsmask.f32 7938  ;;  %v1224_v59 = vld [vmem:[#allocation2 + $0xc] sm:$0x1] }
  0xa6   : > { %11677 = vst [vmem:[#allocation44_spill] sm:$0xff] %v9028_v3  ;;  %11678 = vst [vmem:[#allocation45_spill] sm:$0xff] %v9033_v21  ;;  %v662_v15 = vadd.f32 %v8840_v9, %v623_v18  ;;  %v7977_v9 = vld [vmem:[#allocation8 + $0x78] sm:$0xff]   ;;  %v1111_v18 = vld [vmem:[#allocation2 + $0x20] sm:$0x1] }
  0xa7   : > { %v693_v27 = vmax.f32 %v661_v16, 0.0  ;;  %v707_v37 = vpack.c.bf16 %v688_v35, %v687_v24  ;;  %v709_v34 = vpack.c.bf16 %v692_v13, %v691_v10  ;;  %v1230_v24 = vld [vmem:[#allocation2 + $0x1c] sm:$0x1]  ;;  %v1109_v35 = vsel %vm9043_vm4, 0, %v1108_v17  ;;  %vm9050_vm5 = vmand %vm1096_vm1, %vm1219_vm3  ;;  %7309 = vmatprep.subr.bf16.mxu1 %v7977_v9  ;;  %v7981_v10 = vld [vmem:[#allocation8 + $0x70] sm:$0xff]  }
  0xa8   : > { %v694_v36 = vmax.f32 %v662_v15, 0.0  ;;  %1110 = vst [vmem:[#allocation2 + $0x18] sm:$0x1] %v1109_v35  ;;  %v1231_v50 = vsel %vm9050_vm5, 0, %v1230_v24  ;;  %v1225_v0 = vsel %vm9050_vm5, 0, %v1224_v59  ;;  %7310 = vmatpush3.bf16.msra.mxu1 %v7978_v45  ;;  %v7983_v13 = vld [vmem:[#allocation8 + $0xe8] sm:$0xff]   ;;  %vm9216_vm7 = vmand %vm1742_vm6, %vm1219_vm3 }
  0xa9   : > { %1232 = vst [vmem:[#allocation2 + $0x1c] sm:$0x1] %v1231_v50  ;;  %1226 = vst [vmem:[#allocation2 + $0xc] sm:$0x1] %v1225_v0  ;;  %v1233_v16 = vld [vmem:[#allocation2 + $0x24] sm:$0x1]  ;;  %7311 = vmatprep.subr.bf16.mxu1 %v7981_v10 }
  0xaa   : > { %v710_v4 = vpack.c.bf16 %v694_v36, %v693_v27  ;;  %v7982_v15 = vld [vmem:[#allocation8 + $0x30] sm:$0xff]   ;;  %v1112_v27 = vsel %vm9043_vm4, 0, %v1111_v18  ;;  %v7984_v36 = vld [vmem:[#allocation8 + $0xa8] sm:$0xff]   ;;  %v1120_v24 = vld [vmem:[#allocation2 + $0x38] sm:$0x1] }
  0xab   : > { %7806 = vmatmul.mubr.msk.bf16.gmra.mxu0 %vm743_vm0, %v704_v63  ;;  %v708_v63 = vpack.c.bf16 %v690_v61, %v689_v53  ;;  %v7979_v53 = vld [vmem:[#allocation8 + $0xf0] sm:$0xff]   ;;  %v1103_v61 = vsel %vm9043_vm4, 0, %v1102_v57  ;;  %1113 = vst [vmem:[#allocation2 + $0x20] sm:$0x1] %v1112_v27  ;;  %v7985_v7 = vld [vmem:[#allocation8 + $0x68] sm:$0xff]   ;;  %v1121_v45 = vsel %vm9043_vm4, 0, %v1120_v24 }
  0xac   : > { %7809 = vmatprep.mubr.msk.bf16.mxu0 %vm743_vm0, %v705_v33  ;;  %v7976_v33 = vld [vmem:[#allocation8 + $0xb8] sm:$0xff]   ;;  %1104 = vst [vmem:[#allocation2 + $0x8] sm:$0x1] %v1103_v61  ;;  %7312 = vmatpush3.bf16.msra.mxu1 %v7982_v15  ;;  %v1236_v9 = vld [vmem:[#allocation2 + $0x2c] sm:$0x1]  ;;  %v7987_v59 = vld [vmem:[#allocation8 + $0xe0] sm:$0xff]  }
  0xad   : > { %7422 = vmatpush3.bf16.msra.mxu0 %v7976_v33  ;;  %v1114_v33 = vld [vmem:[#allocation2 + $0x28] sm:$0x1]  ;;  %v1242_v35 = vld [vmem:[#allocation2 + $0x3c] sm:$0x1]  ;;  %7313 = vmatprep.subr.bf16.mxu1 %v7985_v7  ;;  %v1237_v57 = vsel %vm9050_vm5, 0, %v1236_v9  ;;  %v7989_v61 = vld [vmem:[#allocation8 + $0x60] sm:$0xff]  }
  0xae   : > { %7423 = vmatprep.subr.bf16.mxu0 %v7979_v53  ;;  %v7986_v17 = vld [vmem:[#allocation8 + $0x28] sm:$0xff]   ;;  %v1243_v53 = vsel %vm9050_vm5, 0, %v1242_v35  ;;  %v1115_v50 = vsel %vm9043_vm4, 0, %v1114_v33  ;;  %1122 = vst [vmem:[#allocation2 + $0x38] sm:$0x1] %v1121_v45  ;;  %v7990_v18 = vld [vmem:[#allocation8 + $0x20] sm:$0xff]  }
  0xaf   : > { %1244 = vst [vmem:[#allocation2 + $0x3c] sm:$0x1] %v1243_v53  ;;  %1116 = vst [vmem:[#allocation2 + $0x28] sm:$0x1] %v1115_v50  ;;  %v1123_v0 = vld [vmem:[#allocation2 + $0x40] sm:$0x1] }
  0xb0   : > { %7314 = vmatpush3.bf16.msra.mxu1 %v7986_v17  ;;  %1238 = vst [vmem:[#allocation2 + $0x2c] sm:$0x1] %v1237_v57  ;;  %v1124_v10 = vsel %vm9043_vm4, 0, %v1123_v0  ;;  %v7992_v27 = vld [vmem:[#allocation8 + $0x98] sm:$0xff]   ;;  %v7995_v33 = vld [vmem:[#allocation8 + $0xd0] sm:$0xff]   ;;  %v7999_v24 = vld [vmem:[#allocation8 + $0xc8] sm:$0xff]  }
  0xb1   : > { %7424 = vmatpush3.bf16.msra.mxu0 %v7980_v60  ;;  %v7988_v60 = vld [vmem:[#allocation8 + $0xa0] sm:$0xff]   ;;  %7315 = vmatprep.subr.bf16.mxu1 %v7989_v61  ;;  %1125 = vst [vmem:[#allocation2 + $0x40] sm:$0x1] %v1124_v10  ;;  %v7994_v7 = vld [vmem:[#allocation8 + $0x18] sm:$0xff]   ;;  %v7996_v9 = vld [vmem:[#allocation8 + $0x90] sm:$0xff]  }
  0xb2   : > { %7425 = vmatprep.subr.bf16.mxu0 %v7983_v13  ;;  %v1245_v13 = vld [vmem:[#allocation2 + $0x44] sm:$0x1]  ;;  %v7997_v17 = vld [vmem:[#allocation8 + $0x50] sm:$0xff]   ;;  %v8000_v53 = vld [vmem:[#allocation8 + $0x88] sm:$0xff]  }
  0xb3   : > { %7810 = vmatmul.mubr.msk.bf16.gmra.mxu0 %vm743_vm0, %v706_v28  ;;  %v1234_v28 = vsel %vm9050_vm5, 0, %v1233_v16  ;;  %v7991_v16 = vld [vmem:[#allocation8 + $0xd8] sm:$0xff]   ;;  %v1246_v15 = vsel %vm9050_vm5, 0, %v1245_v13  ;;  %v7998_v35 = vld [vmem:[#allocation8 + $0x10] sm:$0xff]   ;;  %v1138_v57 = vld [vmem:[#allocation2 + $0x68] sm:$0x1] }
  0xb4   : > { %7813 = vmatprep.mubr.msk.bf16.mxu0 %vm743_vm0, %v707_v37  ;;  %1235 = vst [vmem:[#allocation2 + $0x24] sm:$0x1] %v1234_v28  ;;  %v1105_v37 = vld [vmem:[#allocation2 + $0x10] sm:$0x1]  ;;  %v11558_v28 = vmov 0   ;;  %7316 = vmatpush3.bf16.msra.mxu1 %v7990_v18  ;;  %v1139_v61 = vsel %vm9043_vm4, 0, %v1138_v57 }
  0xb5   : > { %7426 = vmatpush3.bf16.msra.mxu0 %v7984_v36  ;;  %1079 = vst [vmem:[#allocation2] sm:$0xf] %v11558_v28  ;;  %1080 = vst [vmem:[#allocation2 + $0x4] sm:$0x1] %v11558_v28  ;;  %v1117_v36 = vld [vmem:[#allocation2 + $0x30] sm:$0x1] }
  0xb6   : > { %7427 = vmatprep.subr.bf16.mxu0 %v7987_v59  ;;  %1081 = vst [vmem:[#allocation2 + $0x50] sm:$0xf] %v11558_v28  ;;  %1082 = vst [vmem:[#allocation2 + $0x54] sm:$0x1] %v11558_v28  ;;  %v1260_v59 = vld [vmem:[#allocation2 + $0x6c] sm:$0x1] }
  0xb7   : > { %1083 = vst [vmem:[#allocation2 + $0xa0] sm:$0xf] %v11558_v28  ;;  %1084 = vst [vmem:[#allocation2 + $0xa4] sm:$0x1] %v11558_v28  ;;  %v1261_v0 = vsel %vm9050_vm5, 0, %v1260_v59  ;;  %v8002_v10 = vld [vmem:[#allocation8 + $0x8] sm:$0xff]  }
  0xb8   : > { %1085 = vst [vmem:[#allocation2 + $0xf0] sm:$0xf] %v11558_v28  ;;  %1086 = vst [vmem:[#allocation2 + $0xf4] sm:$0x1] %v11558_v28  ;;  %v8003_v13 = vld [vmem:[#allocation8 + $0xc0] sm:$0xff]  }
  0xb9   : > { %7428 = vmatpush3.bf16.msra.mxu0 %v7988_v60  ;;  %1088 = vst [vmem:[#allocation2 + $0x48] sm:$0xf] %v11558_v28  ;;  %1089 = vst [vmem:[#allocation2 + $0x4c] sm:$0x1] %v11558_v28  ;;  %v8001_v60 = vld [vmem:[#allocation8 + $0x48] sm:$0xff]   ;;  %v8004_v18 = vld [vmem:[#allocation8 + $0x80] sm:$0xff]  }
  0xba   : > { %1090 = vst [vmem:[#allocation2 + $0x98] sm:$0xf] %v11558_v28  ;;  %1091 = vst [vmem:[#allocation2 + $0x9c] sm:$0x1] %v11558_v28  ;;  %7429 = vmatprep.subr.bf16.mxu0 %v7991_v16  ;;  %v1132_v16 = vld [vmem:[#allocation2 + $0x58] sm:$0x1] }
  0xbb   : > { %7814 = vmatmul.mubr.msk.bf16.gmra.mxu0 %vm743_vm0, %v708_v63  ;;  %v1227_v63 = vld [vmem:[#allocation2 + $0x14] sm:$0x1]  ;;  %1092 = vst [vmem:[#allocation2 + $0xe8] sm:$0xf] %v11558_v28  ;;  %1093 = vst [vmem:[#allocation2 + $0xec] sm:$0x1] %v11558_v28 }
  0xbc   : > { %7817 = vmatprep.mubr.msk.bf16.mxu0 %vm743_vm0, %v709_v34  ;;  %v1106_v34 = vsel %vm9043_vm4, 0, %v1105_v37  ;;  %1094 = vst [vmem:[#allocation2 + $0x138] sm:$0xf] %v11558_v28  ;;  %1095 = vst [vmem:[#allocation2 + $0x13c] sm:$0x1] %v11558_v28 }
  0xbd   : > { %1107 = vst [vmem:[#allocation2 + $0x10] sm:$0x1] %v1106_v34  ;;  %1247 = vst [vmem:[#allocation2 + $0x44] sm:$0x1] %v1246_v15  ;;  %v1239_v37 = vld [vmem:[#allocation2 + $0x34] sm:$0x1]  ;;  %7430 = vmatpush3.bf16.msra.mxu0 %v7992_v27 }
  0xbe   : > { %v1118_v34 = vsel %vm9043_vm4, 0, %v1117_v36  ;;  %7431 = vmatprep.subr.bf16.mxu0 %v7995_v33  ;;  %v1221_v45 = vld [vmem:[#allocation2 + $0x4] sm:$0x1]  ;;  %1140 = vst [vmem:[#allocation2 + $0x68] sm:$0x1] %v1139_v61  ;;  %v1133_v36 = vsel %vm9043_vm4, 0, %v1132_v16 }
  0xbf   : > { %1119 = vst [vmem:[#allocation2 + $0x30] sm:$0x1] %v1118_v34  ;;  %v1222_v50 = vsel %vm9050_vm5, 0, %v1221_v45  ;;  %1262 = vst [vmem:[#allocation2 + $0x6c] sm:$0x1] %v1261_v0 }
  0xc0   : > { %1223 = vst [vmem:[#allocation2 + $0x4] sm:$0x1] %v1222_v50  ;;  %v1254_v15 = vld [vmem:[#allocation2 + $0x5c] sm:$0x1]  ;;  %v1141_v27 = vld [vmem:[#allocation2 + $0x70] sm:$0x1] }
  0xc1   : > { %7432 = vmatpush3.bf16.msra.mxu0 %v7996_v9  ;;  %v1263_v34 = vld [vmem:[#allocation2 + $0x74] sm:$0x1]  ;;  %1134 = vst [vmem:[#allocation2 + $0x58] sm:$0x1] %v1133_v36  ;;  %v1135_v33 = vld [vmem:[#allocation2 + $0x60] sm:$0x1] }
  0xc2   : > { %7433 = vmatprep.subr.bf16.mxu0 %v7999_v24  ;;  %v1257_v9 = vld [vmem:[#allocation2 + $0x64] sm:$0x1]  ;;  %v1266_v45 = vld [vmem:[#allocation2 + $0x7c] sm:$0x1]  ;;  %v1099_v57 = vld [vmem:[#allocation2] sm:$0x1] }
  0xc3   : > { %7818 = vmatmul.mubr.msk.bf16.gmra.mxu0 %vm743_vm0, %v710_v4  ;;  %v1228_v4 = vsel %vm9050_vm5, 0, %v1227_v63  ;;  %v7993_v63 = vld [vmem:[#allocation8 + $0x58] sm:$0xff]   ;;  %v1258_v24 = vsel %vm9050_vm5, 0, %v1257_v9  ;;  %v1267_v50 = vsel %vm9050_vm5, 0, %v1266_v45  ;;  %v1100_v59 = vsel %vm9043_vm4, 0, %v1099_v57 }
  0xc4   : > { %1229 = vst [vmem:[#allocation2 + $0x14] sm:$0x1] %v1228_v4  ;;  %v1240_v4 = vsel %vm9050_vm5, 0, %v1239_v37  ;;  %7317 = vmatprep.subr.bf16.mxu1 %v7993_v63  ;;  %v1255_v37 = vsel %vm9050_vm5, 0, %v1254_v15  ;;  %v1142_v63 = vsel %vm9043_vm4, 0, %v1141_v27 }
  0xc5   : > { %1241 = vst [vmem:[#allocation2 + $0x34] sm:$0x1] %v1240_v4  ;;  %7318 = vmatpush3.bf16.msra.mxu1 %v7994_v7  ;;  %7434 = vmatpush3.bf16.msra.mxu0 %v8000_v53  ;;  %v8005_v4 = vld [vmem:[#allocation8 + $0x40] sm:$0xff]   ;;  %1256 = vst [vmem:[#allocation2 + $0x5c] sm:$0x1] %v1255_v37  ;;  %v1264_v7 = vsel %vm9050_vm5, 0, %v1263_v34 }
  0xc6   : > { %7319 = vmatprep.subr.bf16.mxu1 %v7997_v17  ;;  %7435 = vmatprep.subr.bf16.mxu0 %v8003_v13  ;;  %1143 = vst [vmem:[#allocation2 + $0x70] sm:$0x1] %v1142_v63  ;;  %1265 = vst [vmem:[#allocation2 + $0x74] sm:$0x1] %v1264_v7  ;;  %v1136_v17 = vsel %vm9043_vm4, 0, %v1135_v33  ;;  %v8009_v13 = vld [vmem:[#allocation8] sm:$0xff]  }
  0xc7   : > { %1137 = vst [vmem:[#allocation2 + $0x60] sm:$0x1] %v1136_v17  ;;  %1259 = vst [vmem:[#allocation2 + $0x64] sm:$0x1] %v1258_v24  ;;  %v1272_v61 = vld [vmem:[#allocation2 + $0x8c] sm:$0x1] }
  0xc8   : > { %1268 = vst [vmem:[#allocation2 + $0x7c] sm:$0x1] %v1267_v50  ;;  %1101 = vst [vmem:[#allocation2] sm:$0x1] %v1100_v59  ;;  %v1153_v16 = vld [vmem:[#allocation2 + $0x90] sm:$0x1] }
  0xc9   : > { %7320 = vmatpush3.bf16.msra.mxu1 %v7998_v35  ;;  %7436 = vmatpush3.bf16.msra.mxu0 %v8004_v18  ;;  %v1144_v35 = vld [vmem:[#allocation2 + $0x78] sm:$0x1]  ;;  %v1275_v15 = vld [vmem:[#allocation2 + $0x94] sm:$0x1]  ;;  %v1154_v27 = vsel %vm9043_vm4, 0, %v1153_v16 }
  0xca   : > { %7321 = vmatprep.subr.bf16.mxu1 %v8001_v60  ;;  %v1145_v53 = vsel %vm9043_vm4, 0, %v1144_v35  ;;  %v1150_v60 = vld [vmem:[#allocation2 + $0x88] sm:$0x1]  ;;  %v8016_v18 = vld [vmem:[#allocation8 + $0x178] sm:$0xff]   ;;  %v1276_v36 = vsel %vm9050_vm5, 0, %v1275_v15 }
  0xcb   : > { %1146 = vst [vmem:[#allocation2 + $0x78] sm:$0x1] %v1145_v53  ;;  %v1151_v0 = vsel %vm9043_vm4, 0, %v1150_v60  ;;  %1155 = vst [vmem:[#allocation2 + $0x90] sm:$0x1] %v1154_v27 }
  0xcc   : > { %1152 = vst [vmem:[#allocation2 + $0x88] sm:$0x1] %v1151_v0  ;;  %1277 = vst [vmem:[#allocation2 + $0x94] sm:$0x1] %v1276_v36  ;;  %v1147_v37 = vld [vmem:[#allocation2 + $0x80] sm:$0x1] }
  0xcd   : > { %7322 = vmatpush3.bf16.msra.mxu1 %v8002_v10  ;;  %v1273_v10 = vsel %vm9050_vm5, 0, %v1272_v61  ;;  %v1269_v63 = vld [vmem:[#allocation2 + $0x84] sm:$0x1]  ;;  %v1148_v34 = vsel %vm9043_vm4, 0, %v1147_v37  ;;  %v1168_v7 = vld [vmem:[#allocation2 + $0xb8] sm:$0x1] }
  0xce   : > { %7323 = vmatprep.subr.bf16.mxu1 %v8005_v4  ;;  %1274 = vst [vmem:[#allocation2 + $0x8c] sm:$0x1] %v1273_v10  ;;  %v1270_v4 = vsel %vm9050_vm5, 0, %v1269_v63  ;;  %1149 = vst [vmem:[#allocation2 + $0x80] sm:$0x1] %v1148_v34  ;;  %v1169_v9 = vsel %vm9043_vm4, 0, %v1168_v7 }
  0xcf   : > { %1271 = vst [vmem:[#allocation2 + $0x84] sm:$0x1] %v1270_v4  ;;  %v1290_v33 = vld [vmem:[#allocation2 + $0xbc] sm:$0x1]  ;;  %1170 = vst [vmem:[#allocation2 + $0xb8] sm:$0x1] %v1169_v9 }
  0xd0   : > { %v1291_v17 = vsel %vm9050_vm5, 0, %v1290_v33  ;;  %v1162_v24 = vld [vmem:[#allocation2 + $0xa8] sm:$0x1]  ;;  %v1284_v35 = vld [vmem:[#allocation2 + $0xac] sm:$0x1] }
  0xd1   : > { %7324 = vmatpush3.bf16.msra.mxu1 %v8009_v13  ;;  %1292 = vst [vmem:[#allocation2 + $0xbc] sm:$0x1] %v1291_v17  ;;  %v1163_v45 = vsel %vm9043_vm4, 0, %v1162_v24  ;;  %v1285_v53 = vsel %vm9050_vm5, 0, %v1284_v35  ;;  %v1171_v50 = vld [vmem:[#allocation2 + $0xc0] sm:$0x1] }
  0xd2   : > { %7533 = vmatprep.subr.bf16.mxu1 %v8016_v18  ;;  %1164 = vst [vmem:[#allocation2 + $0xa8] sm:$0x1] %v1163_v45  ;;  %1286 = vst [vmem:[#allocation2 + $0xac] sm:$0x1] %v1285_v53  ;;  %v1172_v57 = vsel %vm9043_vm4, 0, %v1171_v50 }
  0xd3   : > { %v1293_v59 = vld [vmem:[#allocation2 + $0xc4] sm:$0x1]  ;;  %v1165_v60 = vld [vmem:[#allocation2 + $0xb0] sm:$0x1]  ;;  %1173 = vst [vmem:[#allocation2 + $0xc0] sm:$0x1] %v1172_v57 }
  0xd4   : > { %v1294_v61 = vsel %vm9050_vm5, 0, %v1293_v59  ;;  %v1166_v0 = vsel %vm9043_vm4, 0, %v1165_v60  ;;  %v1287_v10 = vld [vmem:[#allocation2 + $0xb4] sm:$0x1]  ;;  %v1129_v18 = vld [vmem:[#allocation2 + $0x50] sm:$0x1] }
  0xd5   : > { %1295 = vst [vmem:[#allocation2 + $0xc4] sm:$0x1] %v1294_v61  ;;  %1167 = vst [vmem:[#allocation2 + $0xb0] sm:$0x1] %v1166_v0  ;;  %v1288_v13 = vsel %vm9050_vm5, 0, %v1287_v10  ;;  %v1130_v36 = vsel %vm9043_vm4, 0, %v1129_v18 }
  0xd6   : > { %1289 = vst [vmem:[#allocation2 + $0xb4] sm:$0x1] %v1288_v13  ;;  %v1251_v16 = vld [vmem:[#allocation2 + $0x54] sm:$0x1]  ;;  %v1180_v15 = vld [vmem:[#allocation2 + $0xd8] sm:$0x1] }
  0xd7   : > { %v1302_v27 = vld [vmem:[#allocation2 + $0xdc] sm:$0x1]  ;;  %v1252_v37 = vsel %vm9050_vm5, 0, %v1251_v16  ;;  %v1181_v63 = vsel %vm9043_vm4, 0, %v1180_v15  ;;  %1131 = vst [vmem:[#allocation2 + $0x50] sm:$0x1] %v1130_v36 }
  0xd8   : > { %v1303_v34 = vsel %vm9050_vm5, 0, %v1302_v27  ;;  %1253 = vst [vmem:[#allocation2 + $0x54] sm:$0x1] %v1252_v37  ;;  %1182 = vst [vmem:[#allocation2 + $0xd8] sm:$0x1] %v1181_v63 }
  0xd9   : > { %1304 = vst [vmem:[#allocation2 + $0xdc] sm:$0x1] %v1303_v34  ;;  %v1174_v4 = vld [vmem:[#allocation2 + $0xc8] sm:$0x1]  ;;  %v1296_v7 = vld [vmem:[#allocation2 + $0xcc] sm:$0x1] }
  0xda   : > { %v1175_v33 = vsel %vm9043_vm4, 0, %v1174_v4  ;;  %v1297_v9 = vsel %vm9050_vm5, 0, %v1296_v7  ;;  %v1183_v17 = vld [vmem:[#allocation2 + $0xe0] sm:$0x1]  ;;  %v1305_v24 = vld [vmem:[#allocation2 + $0xe4] sm:$0x1] }
  0xdb   : > { %1176 = vst [vmem:[#allocation2 + $0xc8] sm:$0x1] %v1175_v33  ;;  %1298 = vst [vmem:[#allocation2 + $0xcc] sm:$0x1] %v1297_v9  ;;  %v1184_v35 = vsel %vm9043_vm4, 0, %v1183_v17  ;;  %v1306_v45 = vsel %vm9050_vm5, 0, %v1305_v24 }
  0xdc   : > { %1185 = vst [vmem:[#allocation2 + $0xe0] sm:$0x1] %v1184_v35  ;;  %1307 = vst [vmem:[#allocation2 + $0xe4] sm:$0x1] %v1306_v45  ;;  %v1177_v53 = vld [vmem:[#allocation2 + $0xd0] sm:$0x1] }
  0xdd   : > { %v1299_v50 = vld [vmem:[#allocation2 + $0xd4] sm:$0x1]  ;;  %v1178_v57 = vsel %vm9043_vm4, 0, %v1177_v53  ;;  %v1198_v60 = vld [vmem:[#allocation2 + $0x108] sm:$0x1] }
  0xde   : > { %v1300_v59 = vsel %vm9050_vm5, 0, %v1299_v50  ;;  %1179 = vst [vmem:[#allocation2 + $0xd0] sm:$0x1] %v1178_v57  ;;  %v1320_v61 = vld [vmem:[#allocation2 + $0x10c] sm:$0x1]  ;;  %v1199_v0 = vsel %vm9043_vm4, 0, %v1198_v60 }
  0xdf   : > { %1301 = vst [vmem:[#allocation2 + $0xd4] sm:$0x1] %v1300_v59  ;;  %v1321_v10 = vsel %vm9050_vm5, 0, %v1320_v61  ;;  %1200 = vst [vmem:[#allocation2 + $0x108] sm:$0x1] %v1199_v0 }
  0xe0   : > { %1322 = vst [vmem:[#allocation2 + $0x10c] sm:$0x1] %v1321_v10  ;;  %v1192_v13 = vld [vmem:[#allocation2 + $0xf8] sm:$0x1]  ;;  %v1314_v18 = vld [vmem:[#allocation2 + $0xfc] sm:$0x1] }
  0xe1   : > { %v1193_v16 = vsel %vm9043_vm4, 0, %v1192_v13  ;;  %v1315_v15 = vsel %vm9050_vm5, 0, %v1314_v18  ;;  %v9183_v27 = vld [vmem:[%s11523_s4] ss:$0 sm:$0xff]  ;;  %v1201_v36 = vld [vmem:[#allocation2 + $0x110] sm:$0x1] }
  0xe2   : > { %1194 = vst [vmem:[#allocation2 + $0xf8] sm:$0x1] %v1193_v16  ;;  %1316 = vst [vmem:[#allocation2 + $0xfc] sm:$0x1] %v1315_v15  ;;  %v9188_v37 = vld [vmem:[%s11524_s5] ss:$0 sm:$0xff] }
  0xe3   : > { %v1202_v63 = vsel %vm9043_vm4, 0, %v1201_v36  ;;  %v1323_v4 = vld [vmem:[#allocation2 + $0x114] sm:$0x1]  ;;  %v1195_v7 = vld [vmem:[#allocation2 + $0x100] sm:$0x1] }
  0xe4   : > { %1203 = vst [vmem:[#allocation2 + $0x110] sm:$0x1] %v1202_v63  ;;  %v1317_v33 = vld [vmem:[#allocation2 + $0x104] sm:$0x1]  ;;  %v1324_v17 = vsel %vm9050_vm5, 0, %v1323_v4  ;;  %v1196_v24 = vsel %vm9043_vm4, 0, %v1195_v7 }
  0xe5   : > { %v1318_v35 = vsel %vm9050_vm5, 0, %v1317_v33  ;;  %v1210_v45 = vld [vmem:[#allocation2 + $0x128] sm:$0x1]  ;;  %1325 = vst [vmem:[#allocation2 + $0x114] sm:$0x1] %v1324_v17 }
  0xe6   : > { %1197 = vst [vmem:[#allocation2 + $0x100] sm:$0x1] %v1196_v24  ;;  %1319 = vst [vmem:[#allocation2 + $0x104] sm:$0x1] %v1318_v35  ;;  %v1211_v50 = vsel %vm9043_vm4, 0, %v1210_v45 }
  0xe7   : > { %v1332_v57 = vld [vmem:[#allocation2 + $0x12c] sm:$0x1]  ;;  %1212 = vst [vmem:[#allocation2 + $0x128] sm:$0x1] %v1211_v50  ;;  %v1159_v10 = vld [vmem:[#allocation2 + $0xa0] sm:$0x1] }
  0xe8   : > { %v1333_v61 = vsel %vm9050_vm5, 0, %v1332_v57  ;;  %v1281_v13 = vld [vmem:[#allocation2 + $0xa4] sm:$0x1]  ;;  %v1160_v36 = vsel %vm9043_vm4, 0, %v1159_v10  ;;  %v2024_v32 = vld [vmem:[#allocation2 + $0xf0] sm:$0xe] }
  0xe9   : > { %1334 = vst [vmem:[#allocation2 + $0x12c] sm:$0x1] %v1333_v61  ;;  %1161 = vst [vmem:[#allocation2 + $0xa0] sm:$0x1] %v1160_v36 }
 0x14b   : > { %v7791_v34 = vpop.f32.mrf.mxu0 }
 0x14c   : > { %v962_v9 = vmul.f32 %v7791_v34, %v9183_v27  ;;  %v1282_v34 = vsel %vm9050_vm5, 0, %v1281_v13 }
 0x14d   : > { %v826_v53 = vpop.f32.mrf.mxu0  ;;  %1283 = vst [vmem:[#allocation2 + $0xa4] sm:$0x1] %v1282_v34 }
 0x14e   : > { %v1001_v59 = vadd.f32 %v9188_v37, %v962_v9  ;;  %v960_v60 = vmul.f32 %v9183_v27, %v826_v53  ;;  %v1204_v53 = vld [vmem:[#allocation2 + $0x118] sm:$0x1] }
 0x14f   : > { %v7792_v0 = vpop.f32.mrf.mxu0 }
 0x150   : > { %v1033_v18 = vmax.f32 %v1001_v59, 0.0  ;;  %v999_v16 = vadd.f32 %v9188_v37, %v960_v60  ;;  %v963_v15 = vmul.f32 %v7792_v0, %v9183_v27 }
 0x151   : > { %v829_v63 = vpop.f32.mrf.mxu0 }
 0x152   : > { %v7178_v4 = vpack.c.bf16 %v1033_v18, %v1033_v18  ;;  %v1031_v7 = vmax.f32 %v999_v16, 0.0  ;;  %v1002_v33 = vadd.f32 %v9188_v37, %v963_v15  ;;  %v961_v9 = vmul.f32 %v9183_v27, %v829_v63  ;;  %v1756_v16 = vld [vmem:[#allocation2 + $0x18] sm:$0xf]  ;;  %v1759_v15 = vld [vmem:[#allocation2 + $0x1c] sm:$0x1] }
 0x153   : > { %v7795_v17 = vpop.f32.mrf.mxu0 }
 0x154   : > { %v1438_v24 = vshrl.u32 %v7178_v4, 16  ;;  %v7176_v35 = vpack.c.bf16 %v1031_v7, %v1031_v7  ;;  %v1034_v45 = vmax.f32 %v1002_v33, 0.0  ;;  %v1441_v50 = vshll.u32 %v7178_v4, 16 }
 0x155   : > { %v1000_v57 = vadd.f32 %v9188_v37, %v961_v9  ;;  %v966_v59 = vmul.f32 %v7795_v17, %v9183_v27  ;;  %v842_v60 = vpop.f32.mrf.mxu0  ;;  %v1205_v7 = vsel %vm9043_vm4, 0, %v1204_v53 }
 0x156   : > { %v1440_v61 = vrot.slane %v1438_v24, 7  ;;  %v1422_v0 = vshrl.u32 %v7176_v35, 16  ;;  %v1425_v10 = vshll.u32 %v7176_v35, 16  ;;  %v7179_v13 = vpack.c.bf16 %v1034_v45, %v1034_v45  ;;  %1206 = vst [vmem:[#allocation2 + $0x118] sm:$0x1] %v1205_v7 }
 0x157   : > { %v1032_v36 = vmax.f32 %v1000_v57, 0.0  ;;  %v1005_v63 = vadd.f32 %v9188_v37, %v966_v59  ;;  %v964_v34 = vmul.f32 %v9183_v27, %v842_v60  ;;  %v7796_v4 = vpop.f32.mrf.mxu0  ;;  %v1744_v35 = vld [vmem:[#allocation2 + $0x8] sm:$0xf]  ;;  %v1747_v45 = vld [vmem:[#allocation2 + $0xc] sm:$0x1] }
 0x158   : > { %v1443_v33 = vor.u32 %v1441_v50, %v1440_v61  ;;  %v1444_v9 = vrot.slane %v1440_v61, 4  ;;  %v1424_v17 = vrot.slane %v1422_v0, 7  ;;  %v1446_v24 = vshrl.u32 %v7179_v13, 16 }
 0x159   : > { %v1449_v30 = vshll.u32 %v7179_v13, 16  ;;  %v7177_v22 = vpack.c.bf16 %v1032_v36, %v1032_v36  ;;  %v1037_v19 = vmax.f32 %v1005_v63, 0.0  ;;  %v1003_v57 = vadd.f32 %v9188_v37, %v964_v34  ;;  %v845_v12 = vpop.f32.mrf.mxu0  ;;  %v1762_v34 = vld [vmem:[#allocation2 + $0x20] sm:$0xf] }
 0x15a   : > { %v1757_v59 = vsel %vm9216_vm7, %v1443_v33, %v1756_v16  ;;  %v1760_v60 = vsel %vm9043_vm4, %v1444_v9, %v1759_v15  ;;  %v1427_v53 = vor.u32 %v1425_v10, %v1424_v17  ;;  %v1428_v50 = vrot.slane %v1424_v17, 4  ;;  %v1765_v16 = vld [vmem:[#allocation2 + $0x24] sm:$0x1] }
 0x15b   : > { %1758 = vst [vmem:[#allocation2 + $0x18] sm:$0xf] %v1757_v59  ;;  %1761 = vst [vmem:[#allocation2 + $0x1c] sm:$0x1] %v1760_v60  ;;  %v1448_v61 = vrot.slane %v1446_v24, 7  ;;  %v1430_v0 = vshrl.u32 %v7177_v22, 16  ;;  %v7182_v11 = vpack.c.bf16 %v1037_v19, %v1037_v19  ;;  %v7799_v13 = vpop.f32.mrf.mxu0  ;;  %v967_v15 = vmul.f32 %v7796_v4, %v9183_v27 }
 0x15c   : > { %v1433_v7 = vshll.u32 %v7177_v22, 16  ;;  %v1745_v36 = vsel %vm9216_vm7, %v1427_v53, %v1744_v35  ;;  %v1748_v63 = vsel %vm9043_vm4, %v1428_v50, %v1747_v45  ;;  %v1035_v33 = vmax.f32 %v1003_v57, 0.0  ;;  %v1750_v19 = vld [vmem:[#allocation2 + $0x10] sm:$0xf]  ;;  %v1753_v59 = vld [vmem:[#allocation2 + $0x14] sm:$0x1] }
 0x15d   : > { %1746 = vst [vmem:[#allocation2 + $0x8] sm:$0xf] %v1745_v36  ;;  %1749 = vst [vmem:[#allocation2 + $0xc] sm:$0x1] %v1748_v63  ;;  %v1451_v10 = vor.u32 %v1449_v30, %v1448_v61  ;;  %v1452_v9 = vrot.slane %v1448_v61, 4  ;;  %v1432_v17 = vrot.slane %v1430_v0, 7  ;;  %v858_v22 = vpop.f32.mrf.mxu0  ;;  %v1006_v35 = vadd.f32 %v9188_v37, %v967_v15 }
 0x15e   : > { %v1470_v24 = vshrl.u32 %v7182_v11, 16  ;;  %v1473_v60 = vshll.u32 %v7182_v11, 16  ;;  %v7180_v6 = vpack.c.bf16 %v1035_v33, %v1035_v33  ;;  %v965_v45 = vmul.f32 %v9183_v27, %v845_v12  ;;  %v1780_v33 = vld [vmem:[#allocation2 + $0x38] sm:$0xf] }
 0x15f   : > { %v1763_v57 = vsel %vm9216_vm7, %v1451_v10, %v1762_v34  ;;  %v1766_v4 = vsel %vm9043_vm4, %v1452_v9, %v1765_v16  ;;  %v1435_v53 = vor.u32 %v1433_v7, %v1432_v17  ;;  %v1436_v30 = vrot.slane %v1432_v17, 4  ;;  %v7800_v50 = vpop.f32.mrf.mxu0  ;;  %v1783_v34 = vld [vmem:[#allocation2 + $0x3c] sm:$0x1] }
 0x160   : > { %1764 = vst [vmem:[#allocation2 + $0x20] sm:$0xf] %v1763_v57  ;;  %1767 = vst [vmem:[#allocation2 + $0x24] sm:$0x1] %v1766_v4  ;;  %v1472_v61 = vrot.slane %v1470_v24, 7  ;;  %v1454_v0 = vshrl.u32 %v7180_v6, 16  ;;  %v1004_v15 = vadd.f32 %v9188_v37, %v965_v45  ;;  %v970_v7 = vmul.f32 %v7799_v13, %v9183_v27 }
 0x161   : > { %v1457_v36 = vshll.u32 %v7180_v6, 16  ;;  %v1038_v11 = vmax.f32 %v1006_v35, 0.0  ;;  %v1751_v63 = vsel %vm9216_vm7, %v1435_v53, %v1750_v19  ;;  %v1754_v12 = vsel %vm9043_vm4, %v1436_v30, %v1753_v59  ;;  %v1768_v6 = vld [vmem:[#allocation2 + $0x28] sm:$0xf]  ;;  %v1771_v24 = vld [vmem:[#allocation2 + $0x2c] sm:$0x1]  ;;  %v861_v4 = vpop.f32.mrf.mxu0 }
 0x162   : > { %1752 = vst [vmem:[#allocation2 + $0x10] sm:$0xf] %v1751_v63  ;;  %1755 = vst [vmem:[#allocation2 + $0x14] sm:$0x1] %v1754_v12  ;;  %v1475_v16 = vor.u32 %v1473_v60, %v1472_v61  ;;  %v1476_v10 = vrot.slane %v1472_v61, 4  ;;  %v1456_v9 = vrot.slane %v1454_v0, 7  ;;  %v1009_v19 = vadd.f32 %v9188_v37, %v970_v7 }
 0x163   : > { %v7183_v17 = vpack.c.bf16 %v1038_v11, %v1038_v11  ;;  %v1036_v35 = vmax.f32 %v1004_v15, 0.0  ;;  %v968_v57 = vmul.f32 %v9183_v27, %v858_v22  ;;  %v971_v59 = vmul.f32 %v7800_v50, %v9183_v27  ;;  %v7803_v7 = vpop.f32.mrf.mxu0 }
 0x164   : > { %v1781_v45 = vsel %vm9216_vm7, %v1475_v16, %v1780_v33  ;;  %v1784_v13 = vsel %vm9043_vm4, %v1476_v10, %v1783_v34  ;;  %v1459_v60 = vor.u32 %v1457_v36, %v1456_v9  ;;  %v1460_v53 = vrot.slane %v1456_v9, 4  ;;  %v1786_v16 = vld [vmem:[#allocation2 + $0x40] sm:$0xf]  ;;  %v1789_v10 = vld [vmem:[#allocation2 + $0x44] sm:$0x1] }
 0x165   : > { %1782 = vst [vmem:[#allocation2 + $0x38] sm:$0xf] %v1781_v45  ;;  %1785 = vst [vmem:[#allocation2 + $0x3c] sm:$0x1] %v1784_v13  ;;  %v1478_v30 = vshrl.u32 %v7183_v17, 16  ;;  %v1481_v61 = vshll.u32 %v7183_v17, 16  ;;  %v7181_v0 = vpack.c.bf16 %v1036_v35, %v1036_v35  ;;  %v1007_v63 = vadd.f32 %v9188_v37, %v968_v57 }
 0x166   : > { %v1041_v11 = vmax.f32 %v1009_v19, 0.0  ;;  %v1769_v22 = vsel %vm9216_vm7, %v1459_v60, %v1768_v6  ;;  %v1772_v50 = vsel %vm9043_vm4, %v1460_v53, %v1771_v24  ;;  %v1010_v12 = vadd.f32 %v9188_v37, %v971_v59  ;;  %v1774_v59 = vld [vmem:[#allocation2 + $0x30] sm:$0xf]  ;;  %v1777_v13 = vld [vmem:[#allocation2 + $0x34] sm:$0x1] }
 0x167   : > { %1770 = vst [vmem:[#allocation2 + $0x28] sm:$0xf] %v1769_v22  ;;  %1773 = vst [vmem:[#allocation2 + $0x2c] sm:$0x1] %v1772_v50  ;;  %v1480_v36 = vrot.slane %v1478_v30, 7  ;;  %v1462_v33 = vshrl.u32 %v7181_v0, 16  ;;  %v969_v6 = vmul.f32 %v9183_v27, %v861_v4  ;;  %v974_v35 = vmul.f32 %v7803_v7, %v9183_v27 }
 0x168   : > { %v1465_v34 = vshll.u32 %v7181_v0, 16  ;;  %v7186_v15 = vpack.c.bf16 %v1041_v11, %v1041_v11  ;;  %v1039_v9 = vmax.f32 %v1007_v63, 0.0  ;;  %v1042_v17 = vmax.f32 %v1010_v12, 0.0  ;;  %v9266_v63 = vld [vmem:[#allocation2 + $0x4] sm:$0x1] }
 0x169   : > { %v1483_v24 = vor.u32 %v1481_v61, %v1480_v36  ;;  %v1484_v19 = vrot.slane %v1480_v36, 4  ;;  %v1464_v57 = vrot.slane %v1462_v33, 7  ;;  %v1008_v0 = vadd.f32 %v9188_v37, %v969_v6  ;;  %v9268_v7 = vld [vmem:[#allocation2] sm:$0xf] }
 0x16a   : > { %v1502_v45 = vshrl.u32 %v7186_v15, 16  ;;  %v1505_v60 = vshll.u32 %v7186_v15, 16  ;;  %v7184_v53 = vpack.c.bf16 %v1039_v9, %v1039_v9  ;;  %v7187_v30 = vpack.c.bf16 %v1042_v17, %v1042_v17  ;;  %v874_v15 = vpop.f32.mrf.mxu0 }
 0x16b   : > { %v1787_v11 = vsel %vm9216_vm7, %v1483_v24, %v1786_v16  ;;  %v1790_v22 = vsel %vm9043_vm4, %v1484_v19, %v1789_v10  ;;  %v1467_v4 = vor.u32 %v1465_v34, %v1464_v57  ;;  %v1468_v50 = vrot.slane %v1464_v57, 4  ;;  %v1804_v10 = vld [vmem:[#allocation2 + $0x68] sm:$0xf]  ;;  %v1807_v34 = vld [vmem:[#allocation2 + $0x6c] sm:$0x1] }
 0x16c   : > { %1788 = vst [vmem:[#allocation2 + $0x40] sm:$0xf] %v1787_v11  ;;  %1791 = vst [vmem:[#allocation2 + $0x44] sm:$0x1] %v1790_v22  ;;  %v1504_v61 = vrot.slane %v1502_v45, 7  ;;  %v1486_v12 = vshrl.u32 %v7184_v53, 16  ;;  %v1013_v58 = vadd.f32 %v9188_v37, %v974_v35 }
 0x16d   : > { %v1489_v36 = vshll.u32 %v7184_v53, 16  ;;  %v1510_v33 = vshrl.u32 %v7187_v30, 16  ;;  %v1775_v9 = vsel %vm9216_vm7, %v1467_v4, %v1774_v59  ;;  %v1778_v16 = vsel %vm9043_vm4, %v1468_v50, %v1777_v13  ;;  %v1792_v53 = vld [vmem:[#allocation2 + $0x58] sm:$0xf]  ;;  %v1795_v11 = vld [vmem:[#allocation2 + $0x5c] sm:$0x1] }
 0x16e   : > { %v1513_v17 = vshll.u32 %v7187_v30, 16  ;;  %v1040_v6 = vmax.f32 %v1008_v0, 0.0  ;;  %1776 = vst [vmem:[#allocation2 + $0x30] sm:$0xf] %v1775_v9  ;;  %1779 = vst [vmem:[#allocation2 + $0x34] sm:$0x1] %v1778_v16  ;;  %v1507_v24 = vor.u32 %v1505_v60, %v1504_v61  ;;  %v972_v59 = vmul.f32 %v9183_v27, %v874_v15 }
 0x16f   : > { %v1508_v19 = vrot.slane %v1504_v61, 4  ;;  %v1488_v57 = vrot.slane %v1486_v12, 7  ;;  %v1512_v45 = vrot.slane %v1510_v33, 7  ;;  %v9278_v13 = vcombine.low %v9268_v7, %v9266_v63  ;;  %v1810_v50 = vld [vmem:[#allocation2 + $0x70] sm:$0xf] }
 0x170   : > { %v7185_v22 = vpack.c.bf16 %v1040_v6, %v1040_v6  ;;  %v1805_v30 = vsel %vm9216_vm7, %v1507_v24, %v1804_v10  ;;  %v1813_v61 = vld [vmem:[#allocation2 + $0x74] sm:$0x1]  ;;  %v2000_v9 = vld [vmem:[#allocation2] sm:$0xe]  ;;  %v1045_v6 = vmax.f32 %v1013_v58, 0.0 }
 0x171   : > { %v1808_v60 = vsel %vm9043_vm4, %v1508_v19, %v1807_v34  ;;  %v1491_v0 = vor.u32 %v1489_v36, %v1488_v57  ;;  %v1492_v4 = vrot.slane %v1488_v57, 4  ;;  %1806 = vst [vmem:[#allocation2 + $0x68] sm:$0xf] %v1805_v30  ;;  %v1515_v12 = vor.u32 %v1513_v17, %v1512_v45  ;;  %v1798_v19 = vld [vmem:[#allocation2 + $0x60] sm:$0xf] }
 0x172   : > { %1809 = vst [vmem:[#allocation2 + $0x6c] sm:$0x1] %v1808_v60  ;;  %v1516_v35 = vrot.slane %v1512_v45, 4  ;;  %v1494_v33 = vshrl.u32 %v7185_v22, 16  ;;  %v1497_v15 = vshll.u32 %v7185_v22, 16  ;;  %v1011_v34 = vadd.f32 %v9188_v37, %v972_v59 }
 0x173   : > { %v1793_v16 = vsel %vm9216_vm7, %v1491_v0, %v1792_v53  ;;  %v1796_v10 = vsel %vm9043_vm4, %v1492_v4, %v1795_v11  ;;  %v1811_v36 = vsel %vm9216_vm7, %v1515_v12, %v1810_v50  ;;  %v2388_v57 = vshll.u32 %v9278_v13, 16  ;;  %v1801_v45 = vld [vmem:[#allocation2 + $0x64] sm:$0x1]  ;;  %v2033_v58 = vld [vmem:[#allocation2 + $0x10] sm:$0xf] }
 0x174   : > { %1794 = vst [vmem:[#allocation2 + $0x58] sm:$0xf] %v1793_v16  ;;  %1797 = vst [vmem:[#allocation2 + $0x5c] sm:$0x1] %v1796_v10  ;;  %v1814_v17 = vsel %vm9043_vm4, %v1516_v35, %v1813_v61  ;;  %v1496_v24 = vrot.slane %v1494_v33, 7  ;;  %v7190_v53 = vpack.c.bf16 %v1045_v6, %v1045_v6  ;;  %v1043_v11 = vmax.f32 %v1011_v34, 0.0 }
 0x175   : > { %1812 = vst [vmem:[#allocation2 + $0x70] sm:$0xf] %v1811_v36  ;;  %1815 = vst [vmem:[#allocation2 + $0x74] sm:$0x1] %v1814_v17  ;;  %v6748_v22 = vcombine.low %v2000_v9, %v9266_v63  ;;  %v2032_v60 = vld [vmem:[#allocation2 + $0x8] sm:$0xf] }
 0x176   : > { %v1499_v59 = vor.u32 %v1497_v15, %v1496_v24  ;;  %v1500_v30 = vrot.slane %v1496_v24, 4  ;;  %v2386_v0 = vshrl.u32 %v9278_v13, 16  ;;  %v1534_v4 = vshrl.u32 %v7190_v53, 16  ;;  %v1969_v12 = vld [vmem:[#allocation2 + $0xc] sm:$0x1] }
 0x177   : > { %v1537_v50 = vshll.u32 %v7190_v53, 16  ;;  %v7188_v61 = vpack.c.bf16 %v1043_v11, %v1043_v11  ;;  %v2001_v35 = vld [vmem:[#allocation2 + $0x8] sm:$0xe]  ;;  %v6911_v10 = vcombine.low %v2032_v60, %v2033_v58  ;;  %v2390_v6 = vrot.slane %v2388_v57, 1  ;;  %v1831_v17 = vld [vmem:[#allocation2 + $0x8c] sm:$0x1] }
 0x178   : > { %v1799_v33 = vsel %vm9216_vm7, %v1499_v59, %v1798_v19  ;;  %v1802_v16 = vsel %vm9043_vm4, %v1500_v30, %v1801_v45  ;;  %v1536_v63 = vrot.slane %v1534_v4, 7  ;;  %v2705_v34 = vrot.slane %v6748_v22, 1  ;;  %v9300_v13 = vld [vmem:[#allocation2 + $0x8] sm:$0xf]  ;;  %v1816_v24 = vld [vmem:[#allocation2 + $0x78] sm:$0xf] }
 0x179   : > { %1800 = vst [vmem:[#allocation2 + $0x60] sm:$0xf] %v1799_v33  ;;  %1803 = vst [vmem:[#allocation2 + $0x64] sm:$0x1] %v1802_v16  ;;  %v1518_v15 = vshrl.u32 %v7188_v61, 16  ;;  %v1521_v9 = vshll.u32 %v7188_v61, 16  ;;  %5010 = vmatprep.mubr.bf16.mxu0 %v6911_v10  ;;  %v6749_v11 = vcombine.low %v2001_v35, %v1969_v12  ;;  %v6717_v61 = vcombine.low %v9300_v13, %v1969_v12 }
 0x17a   : > { %v1828_v36 = vld [vmem:[#allocation2 + $0x88] sm:$0xf]  ;;  %v1819_v53 = vld [vmem:[#allocation2 + $0x7c] sm:$0x1]  ;;  %v9302_v19 = vld [vmem:[#allocation2 + $0x18] sm:$0xf]  ;;  %v1539_v59 = vor.u32 %v1537_v50, %v1536_v63  ;;  %v2391_v22 = vor.u32 %v2390_v6, %v2386_v0 }
 0x17b   : > { %v1540_v45 = vrot.slane %v1536_v63, 4  ;;  %v1520_v58 = vrot.slane %v1518_v15, 7  ;;  %v2034_v57 = vld [vmem:[#allocation2 + $0x18] sm:$0xf]  ;;  %v2035_v30 = vld [vmem:[#allocation2 + $0x20] sm:$0xf] }
 0x17c   : > { %v1971_v60 = vld [vmem:[#allocation2 + $0x1c] sm:$0x1]  ;;  %v2706_v4 = vrot.slane %v6749_v11, 1  ;;  %v9305_v33 = vld [vmem:[#allocation2 + $0x10] sm:$0xf]  ;;  %v1829_v51 = vsel %vm9216_vm7, %v1539_v59, %v1828_v36  ;;  %v6920_v11 = vcombine.low %v2034_v57, %v2035_v30  ;;  %v2393_v47 = vshrl.u32 %v6717_v61, 16 }
 0x17d   : > { %v1970_v16 = vld [vmem:[#allocation2 + $0x14] sm:$0x1]  ;;  %v1832_v35 = vsel %vm9043_vm4, %v1540_v45, %v1831_v17  ;;  %v1523_v10 = vor.u32 %v1521_v9, %v1520_v58  ;;  %v1524_v50 = vrot.slane %v1520_v58, 4  ;;  %v2002_v63 = vld [vmem:[#allocation2 + $0x10] sm:$0xe]  ;;  %v2395_v12 = vshll.u32 %v6717_v61, 16  ;;  %v7804_v9 = vpop.f32.mrf.mxu0 }
 0x17e   : > { %v2003_v15 = vld [vmem:[#allocation2 + $0x18] sm:$0xe]  ;;  %1830 = vst [vmem:[#allocation2 + $0x88] sm:$0xf] %v1829_v51  ;;  %1833 = vst [vmem:[#allocation2 + $0x8c] sm:$0x1] %v1832_v35  ;;  %v6910_v48 = vcombine.low %v2705_v34, %v2706_v4  ;;  %v6718_v36 = vcombine.low %v9305_v33, %v1970_v16  ;;  %v6719_v17 = vcombine.low %v9302_v19, %v1971_v60 }
 0x17f   : > { %v1817_v0 = vsel %vm9216_vm7, %v1523_v10, %v1816_v24  ;;  %v1820_v6 = vsel %vm9043_vm4, %v1524_v50, %v1819_v53  ;;  %v2397_v51 = vrot.slane %v2395_v12, 1  ;;  %v6750_v59 = vcombine.low %v2002_v63, %v1970_v16  ;;  %v9318_v24 = vld [vmem:[#allocation2 + $0x20] sm:$0xf]  ;;  %v1972_v30 = vld [vmem:[#allocation2 + $0x24] sm:$0x1] }
 0x180   : > { %1818 = vst [vmem:[#allocation2 + $0x78] sm:$0xf] %v1817_v0  ;;  %1821 = vst [vmem:[#allocation2 + $0x7c] sm:$0x1] %v1820_v6  ;;  %5011 = vmatmul.mubr.bf16.vlgmr.msra.gmra.mxu0 %v6910_v48  ;;  %v6751_v34 = vcombine.low %v2003_v15, %v1971_v60  ;;  %v975_v45 = vmul.f32 %v7804_v9, %v9183_v27  ;;  %v2402_v58 = vshll.u32 %v6718_v36, 16  ;;  %v2409_v57 = vshll.u32 %v6719_v17, 16  ;;  %v877_v15 = vpop.f32.mrf.mxu0 }
 0x181   : > { %5018 = vmatprep.mubr.bf16.mxu0 %v6920_v11  ;;  %v2398_v53 = vor.u32 %v2397_v51, %v2393_v47  ;;  %v2400_v4 = vshrl.u32 %v6718_v36, 16  ;;  %v2707_v61 = vrot.slane %v6750_v59, 1  ;;  %v9321_v10 = vld [vmem:[#allocation2 + $0x28] sm:$0xf]  ;;  %v2004_v50 = vld [vmem:[#allocation2 + $0x20] sm:$0xe]  ;;  %v6908_v47 = vcombine.low %v9268_v7, %v9300_v13 }
 0x182   : > { %v1014_v35 = vadd.f32 %v9188_v37, %v975_v45  ;;  %v2404_v48 = vrot.slane %v2402_v58, 1  ;;  %v2407_v12 = vshrl.u32 %v6719_v17, 16  ;;  %v2411_v16 = vrot.slane %v2409_v57, 1  ;;  %v2037_v63 = vld [vmem:[#allocation2 + $0x30] sm:$0xf]  ;;  %v8018_v0 = vld [vmem:[#allocation8 + $0x138] sm:$0xff]   ;;  %v7807_v7 = vpop.f32.mrf.mxu0 }
 0x183   : > { %v2708_v60 = vrot.slane %v6751_v34, 1  ;;  %v6909_v11 = vcombine.low %v2391_v22, %v2398_v53  ;;  %v1973_v9 = vld [vmem:[#allocation2 + $0x2c] sm:$0x1]  ;;  %v2005_v44 = vld [vmem:[#allocation2 + $0x28] sm:$0xe]  ;;  %v973_v17 = vmul.f32 %v9183_v27, %v877_v15  ;;  %v6720_v34 = vcombine.low %v9318_v24, %v1972_v30  ;;  %v8034_v57 = vld [vmem:[#allocation8 + $0x170] sm:$0xff]  }
 0x184   : > { %v1046_v6 = vmax.f32 %v1014_v35, 0.0  ;;  %v2405_v36 = vor.u32 %v2404_v48, %v2400_v4  ;;  %v2412_v51 = vor.u32 %v2411_v16, %v2407_v12  ;;  %v2036_v45 = vld [vmem:[#allocation2 + $0x28] sm:$0xf]  ;;  %v8121_v22 = vld [vmem:[#allocation8 + $0x1f8] sm:$0xff]   ;;  %v6721_v35 = vcombine.low %v9321_v10, %v1973_v9  ;;  %v8036_v48 = vld [vmem:[#allocation8 + $0x130] sm:$0xff]  }
 0x185   : > { %v6919_v59 = vcombine.low %v2707_v61, %v2708_v60  ;;  %4849 = vmatprep.mubr.bf16.mxu1 %v6909_v11  ;;  %v6929_v58 = vcombine.low %v2036_v45, %v2037_v63  ;;  %v6752_v28 = vcombine.low %v2004_v50, %v1972_v30  ;;  %v6753_v42 = vcombine.low %v2005_v44, %v1973_v9  ;;  %v8125_v12 = vld [vmem:[#allocation8 + $0x1b8] sm:$0xff]   ;;  %v1834_v16 = vld [vmem:[#allocation2 + $0x90] sm:$0xf]  ;;  %v1837_v60 = vld [vmem:[#allocation2 + $0x94] sm:$0x1] }
 0x186   : > { %v7191_v43 = vpack.c.bf16 %v1046_v6, %v1046_v6  ;;  %4850 = vmatmul.mubr.bf16.vlgmr.msra.gmra.mxu1 %v6908_v47  ;;  %v6918_v53 = vcombine.low %v2405_v36, %v2412_v51  ;;  %v1012_v61 = vadd.f32 %v9188_v37, %v973_v17  ;;  %v2416_v63 = vshll.u32 %v6720_v34, 16  ;;  %v8052_v47 = vld [vmem:[#allocation8 + $0x168] sm:$0xff]   ;;  %v9332_v9 = vld [vmem:[#allocation2 + $0x54] sm:$0x1]  ;;  %7645 = vmatprep.subr.bf16.mxu0 %v8121_v22  ;;  %v9620_v41 = vld [vmem:[#allocation2 + $0x3c] sm:$0x1] }
 0x187   : > { %7534 = vmatpush3.bf16.msra.mxu1 %v8018_v0  ;;  %v2421_v15 = vshrl.u32 %v6721_v35, 16  ;;  %v2423_v11 = vshll.u32 %v6721_v35, 16  ;;  %v2709_v6 = vrot.slane %v6752_v28, 1  ;;  %v2710_v50 = vrot.slane %v6753_v42, 1  ;;  %v8054_v28 = vld [vmem:[#allocation8 + $0x128] sm:$0xff]   ;;  %7646 = vmatpush3.bf16.msra.mxu0 %v8125_v12  ;;  %v8129_v17 = vld [vmem:[#allocation8 + $0x1f0] sm:$0xff]  }
 0x188   : > { %5019 = vmatmul.mubr.bf16.gmra.mxu0 %v6919_v59  ;;  %v1542_v13 = vshrl.u32 %v7191_v43, 16  ;;  %v1545_v4 = vshll.u32 %v7191_v43, 16  ;;  %4857 = vmatprep.mubr.bf16.mxu1 %v6918_v53  ;;  %v1044_v44 = vmax.f32 %v1012_v61, 0.0  ;;  %v978_v0 = vmul.f32 %v7807_v7, %v9183_v27  ;;  %v9330_v43 = vld [vmem:[#allocation2 + $0x50] sm:$0xf]  ;;  %11687 = vst [vmem:[#allocation47_spill] sm:$0xff] %v9620_v41 }
 0x189   : > { %5026 = vmatprep.mubr.bf16.mxu0 %v6929_v58  ;;  %7535 = vmatprep.subr.bf16.mxu1 %v8034_v57  ;;  %v6917_v36 = vcombine.low %v9305_v33, %v9302_v19  ;;  %v2414_v51 = vshrl.u32 %v6720_v34, 16  ;;  %v2418_v59 = vrot.slane %v2416_v63, 1  ;;  %v2425_v45 = vrot.slane %v2423_v11, 1  ;;  %v890_v58 = vpop.f32.mrf.mxu0  ;;  %v2038_v57 = vld [vmem:[#allocation2 + $0x38] sm:$0xf]  ;;  %v8132_v22 = vld [vmem:[#allocation8 + $0x1b0] sm:$0xff]  }
 0x18a   : > { %v1544_v30 = vrot.slane %v1542_v13, 7  ;;  %v7189_v35 = vpack.c.bf16 %v1044_v44, %v1044_v44  ;;  %v6928_v7 = vcombine.low %v2709_v6, %v2710_v50  ;;  %v9336_v13 = vld [vmem:[#allocation2 + $0x38] sm:$0xf]  ;;  %v1326_v61 = vld [vmem:[#allocation2 + $0x11c] sm:$0x1]  ;;  %v1017_v19 = vadd.f32 %v9188_v37, %v978_v0  ;;  %7647 = vmatprep.subr.bf16.mxu0 %v8129_v17 }
 0x18b   : > { %7536 = vmatpush3.bf16.msra.mxu1 %v8036_v48  ;;  %v2419_v21 = vor.u32 %v2418_v59, %v2414_v51  ;;  %v2426_v3 = vor.u32 %v2425_v45, %v2421_v15  ;;  %v2039_v33 = vld [vmem:[#allocation2 + $0x40] sm:$0xf]  ;;  %v9339_v34 = vld [vmem:[#allocation2 + $0x30] sm:$0xf]  ;;  %v9341_v63 = vld [vmem:[#allocation2 + $0x3c] sm:$0x1]  ;;  %v9351_v51 = vcombine.low %v9330_v43, %v9332_v9  ;;  %7648 = vmatpush3.bf16.msra.mxu0 %v8132_v22 }
 0x18c   : > { %v1547_v53 = vor.u32 %v1545_v4, %v1544_v30  ;;  %v1548_v42 = vrot.slane %v1544_v30, 4  ;;  %7537 = vmatprep.subr.bf16.mxu1 %v8052_v47  ;;  %v1526_v12 = vshrl.u32 %v7189_v35, 16  ;;  %v1529_v11 = vshll.u32 %v7189_v35, 16  ;;  %v9347_v6 = vld [vmem:[#allocation2 + $0x34] sm:$0x1]  ;;  %v8070_v15 = vld [vmem:[#allocation8 + $0x160] sm:$0xff]   ;;  %v7808_v47 = vpop.f32.mrf.mxu0 }
 0x18d   : > { %v8135_v30 = vld [vmem:[#allocation8 + $0x1e8] sm:$0xff]   ;;  %v6927_v44 = vcombine.low %v2419_v21, %v2426_v3  ;;  %v1049_v50 = vmax.f32 %v1017_v19, 0.0  ;;  %v6938_v0 = vcombine.low %v2038_v57, %v2039_v33  ;;  %v976_v59 = vmul.f32 %v9183_v27, %v890_v58  ;;  %v8072_v3 = vld [vmem:[#allocation8 + $0x120] sm:$0xff]   ;;  %v9365_v19 = vld [vmem:[#allocation2 + $0x30] sm:$0xe] }
 0x18e   : > { %v1835_v4 = vsel %vm9216_vm7, %v1547_v53, %v1834_v16  ;;  %v1838_v48 = vsel %vm9043_vm4, %v1548_v42, %v1837_v60  ;;  %4858 = vmatmul.mubr.bf16.gmra.mxu1 %v6917_v36  ;;  %v8139_v16 = vld [vmem:[#allocation8 + $0x1a8] sm:$0xff]   ;;  %v1528_v60 = vrot.slane %v1526_v12, 7  ;;  %v6926_v45 = vcombine.low %v9318_v24, %v9321_v10  ;;  %v8141_v21 = vld [vmem:[#allocation8 + $0x1e0] sm:$0xff]   ;;  %v8088_v24 = vld [vmem:[#allocation8 + $0x158] sm:$0xff]   ;;  %7649 = vmatprep.subr.bf16.mxu0 %v8135_v30 }
 0x18f   : > { %1836 = vst [vmem:[#allocation2 + $0x90] sm:$0xf] %v1835_v4  ;;  %1839 = vst [vmem:[#allocation2 + $0x94] sm:$0x1] %v1838_v48  ;;  %v979_v17 = vmul.f32 %v7808_v47, %v9183_v27  ;;  %7538 = vmatpush3.bf16.msra.mxu1 %v8054_v28  ;;  %v1822_v36 = vld [vmem:[#allocation2 + $0x80] sm:$0xf]  ;;  %4865 = vmatprep.mubr.bf16.mxu1 %v6927_v44  ;;  %v7194_v42 = vpack.c.bf16 %v1049_v50, %v1049_v50 }
 0x190   : > { %5027 = vmatmul.mubr.bf16.gmra.mxu0 %v6928_v7  ;;  %v1825_v53 = vld [vmem:[#allocation2 + $0x84] sm:$0x1]  ;;  %v6722_v35 = vcombine.low %v9339_v34, %v9347_v6  ;;  %v6723_v7 = vcombine.low %v9336_v13, %v9341_v63  ;;  %v1327_v58 = vsel %vm9050_vm5, 0, %v1326_v61  ;;  %v1531_v10 = vor.u32 %v1529_v11, %v1528_v60  ;;  %7539 = vmatprep.subr.bf16.mxu1 %v8070_v15  ;;  %v8090_v47 = vld [vmem:[#allocation8 + $0x118] sm:$0xff]   ;;  %v9699_v1 = vld [vmem:[#allocation2 + $0x74] sm:$0x1] }
 0x191   : > { %5034 = vmatprep.mubr.bf16.mxu0 %v6938_v0  ;;  %v1532_v57 = vrot.slane %v1528_v60, 4  ;;  %v1015_v28 = vadd.f32 %v9188_v37, %v976_v59  ;;  %v1018_v22 = vadd.f32 %v9188_v37, %v979_v17  ;;  %1328 = vst [vmem:[#allocation2 + $0x11c] sm:$0x1] %v1327_v58  ;;  %v1566_v33 = vshrl.u32 %v7194_v42, 16  ;;  %7650 = vmatpush3.bf16.msra.mxu0 %v8139_v16  ;;  %v8144_v44 = vld [vmem:[#allocation8 + $0x1a0] sm:$0xff]   ;;  %v8147_v15 = vld [vmem:[#allocation8 + $0x1d8] sm:$0xff]   ;;  %v893_v16 = vpop.f32.mrf.mxu0 }
 0x192   : > { %v1569_v4 = vshll.u32 %v7194_v42, 16  ;;  %v2428_v48 = vshrl.u32 %v6722_v35, 16  ;;  %v2430_v12 = vshll.u32 %v6722_v35, 16  ;;  %v1823_v61 = vsel %vm9216_vm7, %v1531_v10, %v1822_v36  ;;  %7651 = vmatprep.subr.bf16.mxu0 %v8141_v21  ;;  %v8106_v42 = vld [vmem:[#allocation8 + $0x150] sm:$0xff]   ;;  %v1852_v35 = vld [vmem:[#allocation2 + $0xb8] sm:$0xf] }
 0x193   : > { %v1826_v11 = vsel %vm9043_vm4, %v1532_v57, %v1825_v53  ;;  %v1047_v50 = vmax.f32 %v1015_v28, 0.0  ;;  %v1050_v0 = vmax.f32 %v1018_v22, 0.0  ;;  %7540 = vmatpush3.bf16.msra.mxu1 %v8072_v3  ;;  %1824 = vst [vmem:[#allocation2 + $0x80] sm:$0xf] %v1823_v61  ;;  %v1568_v30 = vrot.slane %v1566_v33, 7  ;;  %11701 = vst [vmem:[#allocation59_spill] sm:$0xff] %v9699_v1 }
 0x194   : > { %1827 = vst [vmem:[#allocation2 + $0x84] sm:$0x1] %v1826_v11  ;;  %v2432_v60 = vrot.slane %v2430_v12, 1  ;;  %v2435_v59 = vshrl.u32 %v6723_v7, 16  ;;  %v2437_v17 = vshll.u32 %v6723_v7, 16  ;;  %7541 = vmatprep.subr.bf16.mxu1 %v8088_v24  ;;  %v977_v53 = vmul.f32 %v9183_v27, %v893_v16  ;;  %v8151_v24 = vld [vmem:[#allocation8 + $0x198] sm:$0xff]  }
 0x195   : > { %v1855_v36 = vld [vmem:[#allocation2 + $0xbc] sm:$0x1]  ;;  %v7192_v58 = vpack.c.bf16 %v1047_v50, %v1047_v50  ;;  %v7195_v10 = vpack.c.bf16 %v1050_v0, %v1050_v0  ;;  %v6754_v3 = vcombine.low %v9365_v19, %v9347_v6  ;;  %v9374_v21 = vld [vmem:[#allocation2 + $0x50] sm:$0xe]  ;;  %v1571_v57 = vor.u32 %v1569_v4, %v1568_v30  ;;  %v2007_v7 = vld [vmem:[#allocation2 + $0x38] sm:$0xe]  ;;  %7652 = vmatpush3.bf16.msra.mxu0 %v8144_v44  ;;  %v7811_v44 = vpop.f32.mrf.mxu0 }
 0x196   : > { %v1572_v28 = vrot.slane %v1568_v30, 4  ;;  %4866 = vmatmul.mubr.bf16.gmra.mxu1 %v6926_v45  ;;  %v2433_v22 = vor.u32 %v2432_v60, %v2428_v48  ;;  %v2439_v33 = vrot.slane %v2437_v17, 1  ;;  %v8108_v0 = vld [vmem:[#allocation8 + $0x110] sm:$0xff]   ;;  %7653 = vmatprep.subr.bf16.mxu0 %v8147_v15  ;;  %v1840_v45 = vld [vmem:[#allocation2 + $0xa8] sm:$0xf]  ;;  %v1016_v48 = vadd.f32 %v9188_v37, %v977_v53 }
 0x197   : > { %v1550_v12 = vshrl.u32 %v7192_v58, 16  ;;  %v1553_v61 = vshll.u32 %v7192_v58, 16  ;;  %v1574_v11 = vshrl.u32 %v7195_v10, 16  ;;  %v1577_v50 = vshll.u32 %v7195_v10, 16  ;;  %7542 = vmatpush3.bf16.msra.mxu1 %v8090_v47  ;;  %v8155_v16 = vld [vmem:[#allocation8 + $0x1d0] sm:$0xff]   ;;  %v8126_v30 = vld [vmem:[#allocation8 + $0x148] sm:$0xff]  }
 0x198   : > { %v1853_v6 = vsel %vm9216_vm7, %v1571_v57, %v1852_v35  ;;  %v1856_v19 = vsel %vm9043_vm4, %v1572_v28, %v1855_v36  ;;  %v2440_v4 = vor.u32 %v2439_v33, %v2435_v59  ;;  %7543 = vmatprep.subr.bf16.mxu1 %v8106_v42  ;;  %v1843_v47 = vld [vmem:[#allocation2 + $0xac] sm:$0x1]  ;;  %v1858_v15 = vld [vmem:[#allocation2 + $0xc0] sm:$0xf]  ;;  %v6755_v58 = vcombine.low %v2007_v7, %v9341_v63  ;;  %v1861_v10 = vld [vmem:[#allocation2 + $0xc4] sm:$0x1] }
 0x199   : > { %1854 = vst [vmem:[#allocation2 + $0xb8] sm:$0xf] %v1853_v6  ;;  %1857 = vst [vmem:[#allocation2 + $0xbc] sm:$0x1] %v1856_v19  ;;  %v1552_v60 = vrot.slane %v1550_v12, 7  ;;  %v1576_v17 = vrot.slane %v1574_v11, 7  ;;  %v982_v53 = vmul.f32 %v7811_v44, %v9183_v27  ;;  %7654 = vmatpush3.bf16.msra.mxu0 %v8151_v24 }
 0x19a   : > { %v6936_v36 = vcombine.low %v2433_v22, %v2440_v4  ;;  %v1048_v57 = vmax.f32 %v1016_v48, 0.0  ;;  %v2711_v59 = vrot.slane %v6754_v3, 1  ;;  %v8158_v42 = vld [vmem:[#allocation8 + $0x190] sm:$0xff]   ;;  %v8128_v11 = vld [vmem:[#allocation8 + $0x108] sm:$0xff]   ;;  %7655 = vmatprep.subr.bf16.mxu0 %v8155_v16  ;;  %v2712_v7 = vrot.slane %v6755_v58, 1  ;;  %v906_v4 = vpop.f32.mrf.mxu0  ;;  %v8152_v27 = vld [vmem:[#allocation8 + $0x140] sm:$0xff]  }
 0x19b   : > { %v1555_v28 = vor.u32 %v1553_v61, %v1552_v60  ;;  %v1556_v33 = vrot.slane %v1552_v60, 4  ;;  %v1579_v6 = vor.u32 %v1577_v50, %v1576_v17  ;;  %v1580_v12 = vrot.slane %v1576_v17, 4  ;;  %7544 = vmatpush3.bf16.msra.mxu1 %v8108_v0  ;;  %v8161_v19 = vld [vmem:[#allocation8 + $0x1c8] sm:$0xff]   ;;  %v2040_v22 = vld [vmem:[#allocation2 + $0x58] sm:$0xf] }
 0x19c   : > { %4873 = vmatprep.mubr.bf16.mxu1 %v6936_v36  ;;  %v7193_v63 = vpack.c.bf16 %v1048_v57, %v1048_v57  ;;  %v1021_v35 = vadd.f32 %v9188_v37, %v982_v53  ;;  %v2444_v3 = vshll.u32 %v9351_v51, 16  ;;  %7545 = vmatprep.subr.bf16.mxu1 %v8126_v30  ;;  %v9395_v16 = vld [vmem:[#allocation2 + $0x58] sm:$0xf]  ;;  %v1977_v37 = vld [vmem:[#allocation2 + $0x5c] sm:$0x1]  ;;  %v2442_v36 = vshrl.u32 %v9351_v51, 16 }
 0x19d   : > { %v1841_v24 = vsel %vm9216_vm7, %v1555_v28, %v1840_v45  ;;  %v1844_v61 = vsel %vm9043_vm4, %v1556_v33, %v1843_v47  ;;  %v1859_v50 = vsel %vm9216_vm7, %v1579_v6, %v1858_v15  ;;  %v1862_v0 = vsel %vm9043_vm4, %v1580_v12, %v1861_v10  ;;  %v2009_v48 = vld [vmem:[#allocation2 + $0x58] sm:$0xe]  ;;  %v9397_v17 = vld [vmem:[#allocation2 + $0x60] sm:$0xf]  ;;  %7656 = vmatpush3.bf16.msra.mxu0 %v8158_v42  ;;  %v8162_v47 = vld [vmem:[#allocation8 + $0x188] sm:$0xff]  }
 0x19e   : > { %1842 = vst [vmem:[#allocation2 + $0xa8] sm:$0xf] %v1841_v24  ;;  %1845 = vst [vmem:[#allocation2 + $0xac] sm:$0x1] %v1844_v61  ;;  %v1558_v44 = vshrl.u32 %v7193_v63, 16  ;;  %v1561_v30 = vshll.u32 %v7193_v63, 16  ;;  %v6937_v45 = vcombine.low %v2711_v59, %v2712_v7  ;;  %v6947_v15 = vcombine.low %v2040_v22, %v9397_v17  ;;  %7657 = vmatprep.subr.bf16.mxu0 %v8161_v19 }
 0x19f   : > { %1860 = vst [vmem:[#allocation2 + $0xc0] sm:$0xf] %v1859_v50  ;;  %1863 = vst [vmem:[#allocation2 + $0xc4] sm:$0x1] %v1862_v0  ;;  %v1053_v60 = vmax.f32 %v1021_v35, 0.0  ;;  %7546 = vmatpush3.bf16.msra.mxu1 %v8128_v11  ;;  %v8154_v57 = vld [vmem:[#allocation8 + $0x100] sm:$0xff]   ;;  %v6935_v42 = vcombine.low %v9339_v34, %v9336_v13  ;;  %v6725_v28 = vcombine.low %v9395_v16, %v1977_v37 }
 0x1a0   : > { %v9403_v58 = vld [vmem:[%s11523_s4] ss:$0 sm:$0xff]  ;;  %v1560_v35 = vrot.slane %v1558_v44, 7  ;;  %5035 = vmatmul.mubr.bf16.gmra.mxu0 %v6937_v45  ;;  %7547 = vmatprep.subr.bf16.mxu1 %v8152_v27  ;;  %v8175_v33 = vld [vmem:[#allocation8 + $0x238] sm:$0xff]   ;;  %v1846_v6 = vld [vmem:[#allocation2 + $0xb0] sm:$0xf]  ;;  %v6757_v63 = vcombine.low %v2009_v48, %v1977_v37  ;;  %v11685_v7 = vcombine.low %v9374_v21, %v9332_v9 }
 0x1a1   : > { %v980_v10 = vmul.f32 %v9403_v58, %v906_v4  ;;  %v8166_v59 = vld [vmem:[#allocation8 + $0x1c0] sm:$0xff]   ;;  %v7198_v53 = vpack.c.bf16 %v1053_v60, %v1053_v60  ;;  %v1849_v12 = vld [vmem:[#allocation2 + $0xb4] sm:$0x1]  ;;  %5042 = vmatprep.mubr.bf16.mxu0 %v6947_v15  ;;  %v2446_v19 = vrot.slane %v2444_v3, 1  ;;  %4874 = vmatmul.mubr.bf16.gmra.mxu1 %v6935_v42  ;;  %v1876_v61 = vld [vmem:[#allocation2 + $0xd8] sm:$0xf] }
 0x1a2   : > { %v9413_v51 = vld [vmem:[%s11524_s5] ss:$0 sm:$0xff]  ;;  %v2713_v13 = vrot.slane %v11685_v7, 1  ;;  %v1563_v34 = vor.u32 %v1561_v30, %v1560_v35  ;;  %v1564_v22 = vrot.slane %v1560_v35, 4  ;;  %7658 = vmatpush3.bf16.msra.mxu0 %v8162_v47  ;;  %v1879_v50 = vld [vmem:[#allocation2 + $0xdc] sm:$0x1] }
 0x1a3   : > { %v1019_v11 = vadd.f32 %v9413_v51, %v980_v10  ;;  %v1598_v4 = vshrl.u32 %v7198_v53, 16  ;;  %v1601_v27 = vshll.u32 %v7198_v53, 16  ;;  %v8169_v24 = vld [vmem:[#allocation8 + $0x180] sm:$0xff]   ;;  %v2449_v44 = vshrl.u32 %v6725_v28, 16  ;;  %v9419_v15 = vld [vmem:[#allocation2 + $0x68] sm:$0xf]  ;;  %7548 = vmatpush3.bf16.msra.mxu1 %v8154_v57  ;;  %7659 = vmatprep.subr.bf16.mxu0 %v8166_v59 }
 0x1a4   : > { %v2451_v45 = vshll.u32 %v6725_v28, 16  ;;  %v2714_v60 = vrot.slane %v6757_v63, 1  ;;  %v9421_v3 = vld [vmem:[#allocation2 + $0x70] sm:$0xf]  ;;  %v9423_v37 = vld [vmem:[#allocation2 + $0x68] sm:$0xf]  ;;  %v1847_v9 = vsel %vm9216_vm7, %v1563_v34, %v1846_v6  ;;  %v1850_v21 = vsel %vm9043_vm4, %v1564_v22, %v1849_v12  ;;  %7821 = vmatprep.subr.bf16.mxu1 %v8175_v33 }
 0x1a5   : > { %v1051_v0 = vmax.f32 %v1019_v11, 0.0  ;;  %v1600_v48 = vrot.slane %v1598_v4, 7  ;;  %v9429_v30 = vld [vmem:[#allocation2 + $0x60] sm:$0xf]  ;;  %v1978_v47 = vld [vmem:[#allocation2 + $0x64] sm:$0x1]  ;;  %v2447_v35 = vor.u32 %v2446_v19, %v2442_v36  ;;  %v6956_v6 = vcombine.low %v9419_v15, %v9421_v3 }
 0x1a6   : > { %1848 = vst [vmem:[#allocation2 + $0xb0] sm:$0xf] %v1847_v9  ;;  %1851 = vst [vmem:[#allocation2 + $0xb4] sm:$0x1] %v1850_v21  ;;  %v2453_v53 = vrot.slane %v2451_v45, 1  ;;  %v6946_v42 = vcombine.low %v2713_v13, %v2714_v60  ;;  %v6944_v12 = vcombine.low %v9330_v43, %v9395_v16  ;;  %7660 = vmatpush3.bf16.msra.mxu0 %v8169_v24 }
 0x1a7   : > { %v7196_v10 = vpack.c.bf16 %v1051_v0, %v1051_v0  ;;  %v1979_v28 = vld [vmem:[#allocation2 + $0x6c] sm:$0x1]  ;;  %v2010_v57 = vld [vmem:[#allocation2 + $0x60] sm:$0xe]  ;;  %v1603_v59 = vor.u32 %v1601_v27, %v1600_v48  ;;  %v1604_v11 = vrot.slane %v1600_v48, 4  ;;  %v6726_v34 = vcombine.low %v9429_v30, %v1978_v47  ;;  %v7812_v27 = vpop.f32.mrf.mxu0 }
 0x1a8   : > { %v2454_v33 = vor.u32 %v2453_v53, %v2449_v44  ;;  %v2011_v22 = vld [vmem:[#allocation2 + $0x68] sm:$0xe]  ;;  %5043 = vmatmul.mubr.bf16.gmra.mxu0 %v6946_v42  ;;  %v6727_v13 = vcombine.low %v9423_v37, %v1979_v28  ;;  %v6758_v4 = vcombine.low %v2010_v57, %v1978_v47  ;;  %v1867_v45 = vld [vmem:[#allocation2 + $0xcc] sm:$0x1]  ;;  %v983_v47 = vmul.f32 %v9403_v58, %v7812_v27  ;;  %v8332_v56 = vld [vmem:[#allocation2 + $0x58] sm:$0xf] }
 0x1a9   : > { %v1582_v63 = vshrl.u32 %v7196_v10, 16  ;;  %v1585_v7 = vshll.u32 %v7196_v10, 16  ;;  %v1877_v36 = vsel %vm9216_vm7, %v1603_v59, %v1876_v61  ;;  %v1880_v19 = vsel %vm9043_vm4, %v1604_v11, %v1879_v50  ;;  %v1864_v16 = vld [vmem:[#allocation2 + $0xc8] sm:$0xf]  ;;  %5050 = vmatprep.mubr.bf16.mxu0 %v6956_v6  ;;  %v909_v57 = vpop.f32.mrf.mxu0  ;;  %v9442_v59 = vld [vmem:[#allocation2 + $0x70] sm:$0xf] }
 0x1aa   : > { %1878 = vst [vmem:[#allocation2 + $0xd8] sm:$0xf] %v1877_v36  ;;  %1881 = vst [vmem:[#allocation2 + $0xdc] sm:$0x1] %v1880_v19  ;;  %v6945_v24 = vcombine.low %v2447_v35, %v2454_v33  ;;  %v2456_v0 = vshrl.u32 %v6726_v34, 16  ;;  %v2458_v44 = vshll.u32 %v6726_v34, 16  ;;  %v6759_v61 = vcombine.low %v2011_v22, %v1979_v28 }
 0x1ab   : > { %v1584_v43 = vrot.slane %v1582_v63, 7  ;;  %v2463_v60 = vshrl.u32 %v6727_v13, 16  ;;  %v2465_v9 = vshll.u32 %v6727_v13, 16  ;;  %v2715_v21 = vrot.slane %v6758_v4, 1  ;;  %v1980_v35 = vld [vmem:[#allocation2 + $0x74] sm:$0x1] }
 0x1ac   : > { %4881 = vmatprep.mubr.bf16.mxu1 %v6945_v24  ;;  %v2460_v10 = vrot.slane %v2458_v44, 1  ;;  %v2716_v42 = vrot.slane %v6759_v61, 1  ;;  %v1022_v63 = vadd.f32 %v9413_v51, %v983_v47  ;;  %v1981_v33 = vld [vmem:[#allocation2 + $0x7c] sm:$0x1]  ;;  %v2012_v34 = vld [vmem:[#allocation2 + $0x70] sm:$0xe]  ;;  %v7815_v24 = vpop.f32.mrf.mxu0  ;;  %v6728_v44 = vcombine.low %v9442_v59, %v1980_v35 }
 0x1ad   : > { %v1587_v48 = vor.u32 %v1585_v7, %v1584_v43  ;;  %v1588_v50 = vrot.slane %v1584_v43, 4  ;;  %4882 = vmatmul.mubr.bf16.gmra.mxu1 %v6944_v12  ;;  %v2467_v53 = vrot.slane %v2465_v9, 1  ;;  %v9449_v7 = vld [vmem:[#allocation2 + $0x78] sm:$0xf]  ;;  %v9453_v19 = vld [vmem:[#allocation2 + $0x80] sm:$0xf]  ;;  %v981_v43 = vmul.f32 %v9403_v58, %v909_v57 }
 0x1ae   : > { %v2461_v6 = vor.u32 %v2460_v10, %v2456_v0  ;;  %v6955_v22 = vcombine.low %v2715_v21, %v2716_v42  ;;  %v9451_v36 = vld [vmem:[#allocation2 + $0x78] sm:$0xf]  ;;  %v1054_v4 = vmax.f32 %v1022_v63, 0.0  ;;  %v2472_v10 = vshll.u32 %v6728_v44, 16  ;;  %v9725_v55 = vld [vmem:[#allocation2 + $0x7c] sm:$0x1] }
 0x1af   : > { %v1865_v11 = vsel %vm9216_vm7, %v1587_v48, %v1864_v16  ;;  %v1868_v28 = vsel %vm9043_vm4, %v1588_v50, %v1867_v45  ;;  %v2468_v12 = vor.u32 %v2467_v53, %v2463_v60  ;;  %v2013_v13 = vld [vmem:[#allocation2 + $0x78] sm:$0xe]  ;;  %v6965_v27 = vcombine.low %v9451_v36, %v9453_v19  ;;  %11704 = vst [vmem:[#allocation62_spill] sm:$0xff] %v9725_v55 }
 0x1b0   : > { %1866 = vst [vmem:[#allocation2 + $0xc8] sm:$0xf] %v1865_v11  ;;  %1869 = vst [vmem:[#allocation2 + $0xcc] sm:$0x1] %v1868_v28  ;;  %v6953_v16 = vcombine.low %v9429_v30, %v9423_v37  ;;  %5051 = vmatmul.mubr.bf16.gmra.mxu0 %v6955_v22  ;;  %v6729_v45 = vcombine.low %v9449_v7, %v1981_v33  ;;  %v6760_v60 = vcombine.low %v2012_v34, %v1980_v35  ;;  %v922_v11 = vpop.f32.mrf.mxu0  ;;  %v1885_v22 = vld [vmem:[#allocation2 + $0xe4] sm:$0x1] }
 0x1b1   : > { %v6954_v0 = vcombine.low %v2461_v6, %v2468_v12  ;;  %v7199_v9 = vpack.c.bf16 %v1054_v4, %v1054_v4  ;;  %5058 = vmatprep.mubr.bf16.mxu0 %v6965_v27  ;;  %v1020_v61 = vadd.f32 %v9413_v51, %v981_v43  ;;  %v6761_v21 = vcombine.low %v2013_v13, %v1981_v33  ;;  %v1882_v12 = vld [vmem:[#allocation2 + $0xe0] sm:$0xf] }
 0x1b2   : > { %v986_v48 = vmul.f32 %v9403_v58, %v7815_v24  ;;  %v2470_v50 = vshrl.u32 %v6728_v44, 16  ;;  %v2477_v47 = vshrl.u32 %v6729_v45, 16  ;;  %v2479_v37 = vshll.u32 %v6729_v45, 16 }
 0x1b3   : > { %4889 = vmatprep.mubr.bf16.mxu1 %v6954_v0  ;;  %v1606_v30 = vshrl.u32 %v7199_v9, 16  ;;  %v1609_v53 = vshll.u32 %v7199_v9, 16  ;;  %v1052_v42 = vmax.f32 %v1020_v61, 0.0  ;;  %v2717_v57 = vrot.slane %v6760_v60, 1  ;;  %v9465_v60 = vld [vmem:[#allocation2 + $0x88] sm:$0xf] }
 0x1b4   : > { %v2474_v28 = vrot.slane %v2472_v10, 1  ;;  %v2481_v35 = vrot.slane %v2479_v37, 1  ;;  %v2718_v6 = vrot.slane %v6761_v21, 1  ;;  %v1025_v63 = vadd.f32 %v9413_v51, %v986_v48  ;;  %v9467_v21 = vld [vmem:[#allocation2 + $0x90] sm:$0xf] }
 0x1b5   : > { %4890 = vmatmul.mubr.bf16.gmra.mxu1 %v6953_v16  ;;  %v1608_v34 = vrot.slane %v1606_v30, 7  ;;  %v7197_v33 = vpack.c.bf16 %v1052_v42, %v1052_v42  ;;  %v7816_v16 = vpop.f32.mrf.mxu0  ;;  %v9469_v48 = vld [vmem:[#allocation2 + $0x80] sm:$0xf]  ;;  %v9471_v10 = vld [vmem:[#allocation2 + $0x84] sm:$0x1]  ;;  %v6974_v30 = vcombine.low %v9465_v60, %v9467_v21 }
 0x1b6   : > { %v2475_v13 = vor.u32 %v2474_v28, %v2470_v50  ;;  %v2482_v4 = vor.u32 %v2481_v35, %v2477_v47  ;;  %v6964_v27 = vcombine.low %v2717_v57, %v2718_v6  ;;  %v1057_v43 = vmax.f32 %v1025_v63, 0.0  ;;  %v9481_v42 = vld [vmem:[#allocation2 + $0x8c] sm:$0x1]  ;;  %v1870_v57 = vld [vmem:[#allocation2 + $0xd0] sm:$0xf] }
 0x1b7   : > { %v1611_v24 = vor.u32 %v1609_v53, %v1608_v34  ;;  %v1612_v0 = vrot.slane %v1608_v34, 4  ;;  %v1590_v44 = vshrl.u32 %v7197_v33, 16  ;;  %v1593_v45 = vshll.u32 %v7197_v33, 16  ;;  %v9479_v53 = vld [vmem:[#allocation2 + $0x88] sm:$0xf] }
 0x1b8   : > { %v6963_v9 = vcombine.low %v2475_v13, %v2482_v4  ;;  %5059 = vmatmul.mubr.bf16.gmra.mxu0 %v6964_v27  ;;  %v7202_v61 = vpack.c.bf16 %v1057_v43, %v1057_v43  ;;  %v1873_v28 = vld [vmem:[#allocation2 + $0xd4] sm:$0x1]  ;;  %v984_v63 = vmul.f32 %v9403_v58, %v922_v11  ;;  %v6962_v34 = vcombine.low %v9442_v59, %v9449_v7  ;;  %v925_v4 = vpop.f32.mrf.mxu0 }
 0x1b9   : > { %v1883_v50 = vsel %vm9216_vm7, %v1611_v24, %v1882_v12  ;;  %v1886_v47 = vsel %vm9043_vm4, %v1612_v0, %v1885_v22  ;;  %v1592_v37 = vrot.slane %v1590_v44, 7  ;;  %5066 = vmatprep.mubr.bf16.mxu0 %v6974_v30  ;;  %v987_v22 = vmul.f32 %v9403_v58, %v7816_v16  ;;  %v1900_v0 = vld [vmem:[#allocation2 + $0x108] sm:$0xf]  ;;  %v1903_v44 = vld [vmem:[#allocation2 + $0x10c] sm:$0x1] }
 0x1ba   : > { %1884 = vst [vmem:[#allocation2 + $0xe0] sm:$0xf] %v1883_v50  ;;  %1887 = vst [vmem:[#allocation2 + $0xe4] sm:$0x1] %v1886_v47  ;;  %4897 = vmatprep.mubr.bf16.mxu1 %v6963_v9  ;;  %v1630_v35 = vshrl.u32 %v7202_v61, 16  ;;  %v1633_v6 = vshll.u32 %v7202_v61, 16  ;;  %v6730_v13 = vcombine.low %v9469_v48, %v9471_v10  ;;  %v1023_v43 = vadd.f32 %v9413_v51, %v984_v63 }
 0x1bb   : > { %v1595_v33 = vor.u32 %v1593_v45, %v1592_v37  ;;  %v1596_v12 = vrot.slane %v1592_v37, 4  ;;  %v6731_v24 = vcombine.low %v9479_v53, %v9481_v42  ;;  %v985_v11 = vmul.f32 %v9403_v58, %v925_v4  ;;  %v2014_v37 = vld [vmem:[#allocation2 + $0x80] sm:$0xe] }
 0x1bc   : > { %v1632_v27 = vrot.slane %v1630_v35, 7  ;;  %v1026_v45 = vadd.f32 %v9413_v51, %v987_v22  ;;  %v2484_v16 = vshrl.u32 %v6730_v13, 16  ;;  %v1055_v50 = vmax.f32 %v1023_v43, 0.0 }
 0x1bd   : > { %4898 = vmatmul.mubr.bf16.gmra.mxu1 %v6962_v34  ;;  %v1871_v59 = vsel %vm9216_vm7, %v1595_v33, %v1870_v57  ;;  %v1874_v7 = vsel %vm9043_vm4, %v1596_v12, %v1873_v28  ;;  %v2486_v47 = vshll.u32 %v6730_v13, 16  ;;  %v2491_v35 = vshrl.u32 %v6731_v24, 16  ;;  %v2015_v34 = vld [vmem:[#allocation2 + $0x88] sm:$0xe] }
 0x1be   : > { %1872 = vst [vmem:[#allocation2 + $0xd0] sm:$0xf] %v1871_v59  ;;  %1875 = vst [vmem:[#allocation2 + $0xd4] sm:$0x1] %v1874_v7  ;;  %v1635_v9 = vor.u32 %v1633_v6, %v1632_v27  ;;  %v1636_v61 = vrot.slane %v1632_v27, 4  ;;  %v1058_v30 = vmax.f32 %v1026_v45, 0.0  ;;  %v1024_v57 = vadd.f32 %v9413_v51, %v985_v11 }
 0x1bf   : > { %v2493_v63 = vshll.u32 %v6731_v24, 16  ;;  %v7200_v12 = vpack.c.bf16 %v1055_v50, %v1055_v50  ;;  %v2488_v22 = vrot.slane %v2486_v47, 1  ;;  %v6762_v27 = vcombine.low %v2014_v37, %v9471_v10  ;;  %v1888_v7 = vld [vmem:[#allocation2 + $0xf8] sm:$0xf]  ;;  %v1891_v45 = vld [vmem:[#allocation2 + $0xfc] sm:$0x1] }
 0x1c0   : > { %v1901_v28 = vsel %vm9216_vm7, %v1635_v9, %v1900_v0  ;;  %v1904_v33 = vsel %vm9043_vm4, %v1636_v61, %v1903_v44  ;;  %v7203_v6 = vpack.c.bf16 %v1058_v30, %v1058_v30  ;;  %v1056_v13 = vmax.f32 %v1024_v57, 0.0  ;;  %v7819_v61 = vpop.f32.mrf.mxu0  ;;  %v1906_v47 = vld [vmem:[#allocation2 + $0x110] sm:$0xf]  ;;  %v1909_v10 = vld [vmem:[#allocation2 + $0x114] sm:$0x1] }
 0x1c1   : > { %1902 = vst [vmem:[#allocation2 + $0x108] sm:$0xf] %v1901_v28  ;;  %1905 = vst [vmem:[#allocation2 + $0x10c] sm:$0x1] %v1904_v33  ;;  %v2495_v4 = vrot.slane %v2493_v63, 1  ;;  %v1614_v43 = vshrl.u32 %v7200_v12, 16  ;;  %v2489_v59 = vor.u32 %v2488_v22, %v2484_v16  ;;  %v6763_v11 = vcombine.low %v2015_v34, %v9481_v42 }
 0x1c2   : > { %v1617_v24 = vshll.u32 %v7200_v12, 16  ;;  %v1638_v0 = vshrl.u32 %v7203_v6, 16  ;;  %v1641_v9 = vshll.u32 %v7203_v6, 16  ;;  %v7201_v44 = vpack.c.bf16 %v1056_v13, %v1056_v13  ;;  %v1894_v34 = vld [vmem:[#allocation2 + $0x100] sm:$0xf] }
 0x1c3   : > { %v2496_v49 = vor.u32 %v2495_v4, %v2491_v35  ;;  %v1616_v50 = vrot.slane %v1614_v43, 7  ;;  %v2719_v28 = vrot.slane %v6762_v27, 1  ;;  %v2720_v30 = vrot.slane %v6763_v11, 1  ;;  %v1897_v22 = vld [vmem:[#allocation2 + $0x104] sm:$0x1] }
 0x1c4   : > { %v990_v63 = vmul.f32 %v9403_v58, %v7819_v61  ;;  %v1640_v57 = vrot.slane %v1638_v0, 7  ;;  %v1622_v33 = vshrl.u32 %v7201_v44, 16  ;;  %v1625_v16 = vshll.u32 %v7201_v44, 16  ;;  %v9507_v27 = vld [vmem:[#allocation2 + $0xa0] sm:$0xf]  ;;  %v938_v0 = vpop.f32.mrf.mxu0 }
 0x1c5   : > { %v6972_v37 = vcombine.low %v2489_v59, %v2496_v49  ;;  %v1619_v12 = vor.u32 %v1617_v24, %v1616_v50  ;;  %v1620_v42 = vrot.slane %v1616_v50, 4  ;;  %v6973_v40 = vcombine.low %v2719_v28, %v2720_v30  ;;  %v1984_v43 = vld [vmem:[#allocation2 + $0xa4] sm:$0x1]  ;;  %v9513_v59 = vld [vmem:[#allocation2 + $0xa8] sm:$0xf] }
 0x1c6   : > { %v1029_v35 = vadd.f32 %v9413_v51, %v990_v63  ;;  %v1643_v6 = vor.u32 %v1641_v9, %v1640_v57  ;;  %v1644_v4 = vrot.slane %v1640_v57, 4  ;;  %v1624_v13 = vrot.slane %v1622_v33, 7  ;;  %v9515_v44 = vld [vmem:[#allocation2 + $0xa8] sm:$0xf]  ;;  %v9521_v28 = vld [vmem:[#allocation2 + $0xb0] sm:$0xf] }
 0x1c7   : > { %4905 = vmatprep.mubr.bf16.mxu1 %v6972_v37  ;;  %v1889_v11 = vsel %vm9216_vm7, %v1619_v12, %v1888_v7  ;;  %v1892_v49 = vsel %vm9043_vm4, %v1620_v42, %v1891_v45  ;;  %5067 = vmatmul.mubr.bf16.gmra.mxu0 %v6973_v40  ;;  %v1985_v45 = vld [vmem:[#allocation2 + $0xac] sm:$0x1]  ;;  %v6983_v30 = vcombine.low %v9513_v59, %v9521_v28  ;;  %v2016_v63 = vld [vmem:[#allocation2 + $0xa0] sm:$0xe]  ;;  %v2017_v57 = vld [vmem:[#allocation2 + $0xa8] sm:$0xe] }
 0x1c8   : > { %v1061_v24 = vmax.f32 %v1029_v35, 0.0  ;;  %1890 = vst [vmem:[#allocation2 + $0xf8] sm:$0xf] %v1889_v11  ;;  %1893 = vst [vmem:[#allocation2 + $0xfc] sm:$0x1] %v1892_v49  ;;  %v1907_v9 = vsel %vm9216_vm7, %v1643_v6, %v1906_v47  ;;  %v1910_v61 = vsel %vm9043_vm4, %v1644_v4, %v1909_v10  ;;  %v1627_v50 = vor.u32 %v1625_v16, %v1624_v13 }
 0x1c9   : > { %v1628_v7 = vrot.slane %v1624_v13, 4  ;;  %1908 = vst [vmem:[#allocation2 + $0x110] sm:$0xf] %v1907_v9  ;;  %1911 = vst [vmem:[#allocation2 + $0x114] sm:$0x1] %v1910_v61  ;;  %v988_v10 = vmul.f32 %v9403_v58, %v938_v0  ;;  %v6971_v33 = vcombine.low %v9469_v48, %v9479_v53  ;;  %5074 = vmatprep.mubr.bf16.mxu0 %v6983_v30 }
 0x1ca   : > { %v7206_v40 = vpack.c.bf16 %v1061_v24, %v1061_v24  ;;  %v1895_v37 = vsel %vm9216_vm7, %v1627_v50, %v1894_v34  ;;  %v6732_v42 = vcombine.low %v9507_v27, %v1984_v43  ;;  %v6733_v35 = vcombine.low %v9515_v44, %v1985_v45  ;;  %v1924_v6 = vld [vmem:[#allocation2 + $0x128] sm:$0xf]  ;;  %v1927_v4 = vld [vmem:[#allocation2 + $0x12c] sm:$0x1] }
 0x1cb   : > { %v1898_v47 = vsel %vm9043_vm4, %v1628_v7, %v1897_v22  ;;  %1896 = vst [vmem:[#allocation2 + $0x100] sm:$0xf] %v1895_v37  ;;  %v1027_v34 = vadd.f32 %v9413_v51, %v988_v10  ;;  %4906 = vmatmul.mubr.bf16.gmra.mxu1 %v6971_v33  ;;  %v6764_v22 = vcombine.low %v2016_v63, %v1984_v43  ;;  %v9535_v11 = vld [vmem:[#allocation2 + $0xc] sm:$0x1]  ;;  %v9537_v7 = vld [vmem:[#allocation2 + $0xb8] sm:$0xf] }
 0x1cc   : > { %1899 = vst [vmem:[#allocation2 + $0x104] sm:$0x1] %v1898_v47  ;;  %v1662_v16 = vshrl.u32 %v7206_v40, 16  ;;  %v1665_v12 = vshll.u32 %v7206_v40, 16  ;;  %v6765_v13 = vcombine.low %v2017_v57, %v1985_v45  ;;  %v2498_v48 = vshrl.u32 %v6732_v42, 16 }
 0x1cd   : > { %v2500_v53 = vshll.u32 %v6732_v42, 16  ;;  %v2505_v24 = vshrl.u32 %v6733_v35, 16  ;;  %v1059_v0 = vmax.f32 %v1027_v34, 0.0  ;;  %v2507_v9 = vshll.u32 %v6733_v35, 16  ;;  %v9539_v47 = vld [vmem:[#allocation2 + $0xb0] sm:$0xf] }
 0x1ce   : > { %v1664_v49 = vrot.slane %v1662_v16, 7  ;;  %v2721_v61 = vrot.slane %v6764_v22, 1  ;;  %v2722_v50 = vrot.slane %v6765_v13, 1  ;;  %v1987_v10 = vld [vmem:[#allocation2 + $0xbc] sm:$0x1] }
 0x1cf   : > { %v2502_v37 = vrot.slane %v2500_v53, 1  ;;  %v7204_v43 = vpack.c.bf16 %v1059_v0, %v1059_v0  ;;  %v2509_v45 = vrot.slane %v2507_v9, 1  ;;  %v1986_v57 = vld [vmem:[#allocation2 + $0xb4] sm:$0x1]  ;;  %v2018_v33 = vld [vmem:[#allocation2 + $0xb0] sm:$0xe] }
 0x1d0   : > { %v1667_v40 = vor.u32 %v1665_v12, %v1664_v49  ;;  %v1668_v30 = vrot.slane %v1664_v49, 4  ;;  %v6982_v63 = vcombine.low %v2721_v61, %v2722_v50  ;;  %v8324_v16 = vld [vmem:[#allocation2 + $0x8] sm:$0xf]  ;;  %v9548_v22 = vld [vmem:[#allocation2 + $0xb8] sm:$0xf]  ;;  %v6766_v50 = vcombine.low %v2018_v33, %v1986_v57 }
 0x1d1   : > { %v9542_v42 = vcombine.low %v8324_v16, %v9535_v11  ;;  %v2503_v34 = vor.u32 %v2502_v37, %v2498_v48  ;;  %v9550_v13 = vld [vmem:[#allocation2 + $0xc0] sm:$0xf]  ;;  %v2019_v49 = vld [vmem:[#allocation2 + $0xb8] sm:$0xe]  ;;  %v1646_v53 = vshrl.u32 %v7204_v43, 16  ;;  %v1649_v0 = vshll.u32 %v7204_v43, 16 }
 0x1d2   : > { %v1925_v35 = vsel %vm9216_vm7, %v1667_v40, %v1924_v6  ;;  %v1928_v12 = vsel %vm9043_vm4, %v1668_v30, %v1927_v4  ;;  %v2510_v9 = vor.u32 %v2509_v45, %v2505_v24  ;;  %5075 = vmatmul.mubr.bf16.gmra.mxu0 %v6982_v63  ;;  %v6992_v61 = vcombine.low %v9548_v22, %v9550_v13  ;;  %v7820_v40 = vpop.f32.mrf.mxu0  ;;  %v1213_v30 = vld [vmem:[#allocation2 + $0x130] sm:$0x1]  ;;  %v1912_v16 = vld [vmem:[#allocation2 + $0x118] sm:$0xf]  ;;  %v1335_v45 = vld [vmem:[#allocation2 + $0x134] sm:$0x1] }
 0x1d3   : > { %1926 = vst [vmem:[#allocation2 + $0x128] sm:$0xf] %v1925_v35  ;;  %1929 = vst [vmem:[#allocation2 + $0x12c] sm:$0x1] %v1928_v12  ;;  %v6980_v6 = vcombine.low %v9507_v27, %v9515_v44  ;;  %v6734_v4 = vcombine.low %v9539_v47, %v1986_v57  ;;  %v6735_v48 = vcombine.low %v9537_v7, %v1987_v10  ;;  %v1648_v37 = vrot.slane %v1646_v53, 7 }
 0x1d4   : > { %v6981_v35 = vcombine.low %v2503_v34, %v2510_v9  ;;  %5082 = vmatprep.mubr.bf16.mxu0 %v6992_v61  ;;  %v6767_v43 = vcombine.low %v2019_v49, %v1987_v10  ;;  %v991_v24 = vmul.f32 %v9403_v58, %v7820_v40  ;;  %v1915_v63 = vld [vmem:[#allocation2 + $0x11c] sm:$0x1]  ;;  %v1207_v44 = vld [vmem:[#allocation2 + $0x120] sm:$0x1]  ;;  %v2723_v57 = vrot.slane %v6766_v50, 1  ;;  %v941_v9 = vpop.f32.mrf.mxu0 }
 0x1d5   : > { %v2512_v12 = vshrl.u32 %v6734_v4, 16  ;;  %v2514_v38 = vshll.u32 %v6734_v4, 16  ;;  %v2519_v23 = vshrl.u32 %v6735_v48, 16  ;;  %v2521_v27 = vshll.u32 %v6735_v48, 16  ;;  %v9562_v61 = vld [vmem:[#allocation2 + $0xc0] sm:$0xf] }
 0x1d6   : > { %v1651_v14 = vor.u32 %v1649_v0, %v1648_v37  ;;  %v1652_v2 = vrot.slane %v1648_v37, 4  ;;  %4913 = vmatprep.mubr.bf16.mxu1 %v6981_v35  ;;  %v2724_v33 = vrot.slane %v6767_v43, 1  ;;  %v1030_v10 = vadd.f32 %v9413_v51, %v991_v24  ;;  %v2020_v50 = vld [vmem:[#allocation2 + $0xc0] sm:$0xe]  ;;  %v9570_v35 = vld [vmem:[#allocation2 + $0xc8] sm:$0xf] }
 0x1d7   : > { %4914 = vmatmul.mubr.bf16.gmra.mxu1 %v6980_v6  ;;  %v2516_v53 = vrot.slane %v2514_v38, 1  ;;  %v2523_v34 = vrot.slane %v2521_v27, 1  ;;  %v1214_v49 = vsel %vm9043_vm4, 0, %v1213_v30  ;;  %v1336_v38 = vsel %vm9050_vm5, 0, %v1335_v45  ;;  %v1988_v6 = vld [vmem:[#allocation2 + $0xc4] sm:$0x1] }
 0x1d8   : > { %v1913_v4 = vsel %vm9216_vm7, %v1651_v14, %v1912_v16  ;;  %v1916_v0 = vsel %vm9043_vm4, %v1652_v2, %v1915_v63  ;;  %v6991_v48 = vcombine.low %v2723_v57, %v2724_v33  ;;  %1215 = vst [vmem:[#allocation2 + $0x130] sm:$0x1] %v1214_v49  ;;  %v1062_v37 = vmax.f32 %v1030_v10, 0.0  ;;  %1337 = vst [vmem:[#allocation2 + $0x134] sm:$0x1] %v1336_v38 }
 0x1d9   : > { %1914 = vst [vmem:[#allocation2 + $0x118] sm:$0xf] %v1913_v4  ;;  %1917 = vst [vmem:[#allocation2 + $0x11c] sm:$0x1] %v1916_v0  ;;  %v2517_v40 = vor.u32 %v2516_v53, %v2512_v12  ;;  %v2524_v30 = vor.u32 %v2523_v34, %v2519_v23  ;;  %v9572_v43 = vld [vmem:[#allocation2 + $0xd0] sm:$0xf]  ;;  %v989_v14 = vmul.f32 %v9403_v58, %v941_v9 }
 0x1da   : > { %5083 = vmatmul.mubr.bf16.gmra.mxu0 %v6991_v48  ;;  %v7001_v2 = vcombine.low %v9570_v35, %v9572_v43  ;;  %v1208_v16 = vsel %vm9043_vm4, 0, %v1207_v44  ;;  %v9579_v24 = vld [vmem:[#allocation2 + $0xc8] sm:$0xf]  ;;  %v1989_v45 = vld [vmem:[#allocation2 + $0xcc] sm:$0x1]  ;;  %v7207_v23 = vpack.c.bf16 %v1062_v37, %v1062_v37  ;;  %v1330_v12 = vsel %vm9050_vm5, 0, %v1329_v54 }
 0x1db   : > { %v6990_v63 = vcombine.low %v2517_v40, %v2524_v30  ;;  %1209 = vst [vmem:[#allocation2 + $0x120] sm:$0x1] %v1208_v16  ;;  %v2021_v27 = vld [vmem:[#allocation2 + $0xc8] sm:$0xe]  ;;  %v1028_v33 = vadd.f32 %v9413_v51, %v989_v14  ;;  %1331 = vst [vmem:[#allocation2 + $0x124] sm:$0x1] %v1330_v12  ;;  %v6989_v58 = vcombine.low %v9539_v47, %v9537_v7 }
 0x1dc   : > { %5090 = vmatprep.mubr.bf16.mxu0 %v7001_v2  ;;  %v6736_v44 = vcombine.low %v9562_v61, %v1988_v6  ;;  %v9588_v53 = vld [vmem:[#allocation2 + $0x14] sm:$0x1]  ;;  %v1670_v34 = vshrl.u32 %v7207_v23, 16  ;;  %v1673_v10 = vshll.u32 %v7207_v23, 16  ;;  %v6737_v49 = vcombine.low %v9579_v24, %v1989_v45  ;;  %v8325_v7 = vld [vmem:[#allocation2 + $0x10] sm:$0xf] }
 0x1dd   : > { %4921 = vmatprep.mubr.bf16.mxu1 %v6990_v63  ;;  %v6768_v54 = vcombine.low %v2020_v50, %v1988_v6  ;;  %v1060_v9 = vmax.f32 %v1028_v33, 0.0  ;;  %v6769_v48 = vcombine.low %v2021_v27, %v1989_v45  ;;  %v9592_v47 = vcombine.low %v8325_v7, %v9588_v53  ;;  %v9594_v23 = vld [vmem:[#allocation2 + $0xd8] sm:$0xf]  ;;  %v9596_v45 = vld [vmem:[#allocation2 + $0xd0] sm:$0xf] }
 0x1de   : > { %v2526_v4 = vshrl.u32 %v6736_v44, 16  ;;  %v2528_v0 = vshll.u32 %v6736_v44, 16  ;;  %v1672_v38 = vrot.slane %v1670_v34, 7  ;;  %v2533_v51 = vshrl.u32 %v6737_v49, 16  ;;  %v1991_v27 = vld [vmem:[#allocation2 + $0xdc] sm:$0x1] }
 0x1df   : > { %4922 = vmatmul.mubr.bf16.gmra.mxu1 %v6989_v58  ;;  %v2535_v40 = vshll.u32 %v6737_v49, 16  ;;  %v2725_v30 = vrot.slane %v6768_v54, 1  ;;  %v1930_v37 = vld [vmem:[#allocation2 + $0x130] sm:$0xf]  ;;  %v1933_v2 = vld [vmem:[#allocation2 + $0x134] sm:$0x1]  ;;  %v7205_v14 = vpack.c.bf16 %v1060_v9, %v1060_v9 }
 0x1e0   : > { %v2530_v16 = vrot.slane %v2528_v0, 1  ;;  %v2726_v63 = vrot.slane %v6769_v48, 1  ;;  %v1675_v6 = vor.u32 %v1673_v10, %v1672_v38  ;;  %v1676_v50 = vrot.slane %v1672_v38, 4  ;;  %v1990_v49 = vld [vmem:[#allocation2 + $0xd4] sm:$0x1] }
 0x1e1   : > { %v2537_v12 = vrot.slane %v2535_v40, 1  ;;  %v1654_v33 = vshrl.u32 %v7205_v14, 16  ;;  %v1657_v58 = vshll.u32 %v7205_v14, 16  ;;  %v2022_v54 = vld [vmem:[#allocation2 + $0xd0] sm:$0xe]  ;;  %v11695_v5 = vshll.u32 %v9542_v42, 16 }
 0x1e2   : > { %v2531_v44 = vor.u32 %v2530_v16, %v2526_v4  ;;  %v7000_v34 = vcombine.low %v2725_v30, %v2726_v63  ;;  %v1931_v7 = vsel %vm9216_vm7, %v1675_v6, %v1930_v37  ;;  %v1934_v9 = vsel %vm9043_vm4, %v1676_v50, %v1933_v2  ;;  %v9602_v48 = vld [vmem:[#allocation2 + $0xd8] sm:$0xf]  ;;  %v9604_v10 = vld [vmem:[#allocation2 + $0xe0] sm:$0xf]  ;;  %v1921_v16 = vld [vmem:[#allocation2 + $0x124] sm:$0x1] }
 0x1e3   : > { %v2538_v0 = vor.u32 %v2537_v12, %v2533_v51  ;;  %v2023_v38 = vld [vmem:[#allocation2 + $0xd8] sm:$0xe]  ;;  %1932 = vst [vmem:[#allocation2 + $0x130] sm:$0xf] %v1931_v7  ;;  %1935 = vst [vmem:[#allocation2 + $0x134] sm:$0x1] %v1934_v9  ;;  %v7010_v30 = vcombine.low %v9602_v48, %v9604_v10  ;;  %v6738_v51 = vcombine.low %v9596_v45, %v1990_v49 }
 0x1e4   : > { %v1656_v4 = vrot.slane %v1654_v33, 7  ;;  %5091 = vmatmul.mubr.bf16.gmra.mxu0 %v7000_v34  ;;  %v1918_v37 = vld [vmem:[#allocation2 + $0x120] sm:$0xf]  ;;  %v6739_v63 = vcombine.low %v9594_v23, %v1991_v27  ;;  %v6770_v6 = vcombine.low %v2022_v54, %v1990_v49  ;;  %v9612_v50 = vld [vmem:[#allocation2 + $0x1c] sm:$0x1]  ;;  %v6998_v33 = vcombine.low %v9562_v61, %v9579_v24 }
 0x1e5   : > { %v6999_v2 = vcombine.low %v2531_v44, %v2538_v0  ;;  %v9614_v12 = vld [vmem:[#allocation2 + $0x24] sm:$0x1]  ;;  %5098 = vmatprep.mubr.bf16.mxu0 %v7010_v30  ;;  %v6771_v34 = vcombine.low %v2023_v38, %v1991_v27  ;;  %v9618_v9 = vld [vmem:[#allocation2 + $0x2c] sm:$0x1]  ;;  %v2540_v44 = vshrl.u32 %v6738_v51, 16  ;;  %v2542_v0 = vshll.u32 %v6738_v51, 16 }
 0x1e6   : > { %v1659_v57 = vor.u32 %v1657_v58, %v1656_v4  ;;  %v1660_v7 = vrot.slane %v1656_v4, 4  ;;  %11686 = vst [vmem:[#allocation46_spill] sm:$0xff] %v9618_v9  ;;  %v2547_v14 = vshrl.u32 %v6739_v63, 16  ;;  %v2549_v40 = vshll.u32 %v6739_v63, 16  ;;  %v1189_v61 = vld [vmem:[#allocation2 + $0xf0] sm:$0x1] }
 0x1e7   : > { %4929 = vmatprep.mubr.bf16.mxu1 %v6999_v2  ;;  %v2727_v54 = vrot.slane %v6770_v6, 1  ;;  %v2728_v4 = vrot.slane %v6771_v34, 1  ;;  %v1311_v24 = vld [vmem:[#allocation2 + $0xf4] sm:$0x1]  ;;  %v2544_v27 = vrot.slane %v2542_v0, 1  ;;  %v9678_v62 = vrot.slane %v11695_v5, 1 }
 0x1e8   : > { %v1919_v49 = vsel %vm9216_vm7, %v1659_v57, %v1918_v37  ;;  %v1922_v58 = vsel %vm9043_vm4, %v1660_v7, %v1921_v16  ;;  %4930 = vmatmul.mubr.bf16.gmra.mxu1 %v6998_v33  ;;  %v2551_v38 = vrot.slane %v2549_v40, 1  ;;  %v9626_v30 = vld [vmem:[#allocation2 + $0xf8] sm:$0xf]  ;;  %v9628_v2 = vld [vmem:[#allocation2 + $0xfc] sm:$0x1] }
 0x1e9   : > { %1920 = vst [vmem:[#allocation2 + $0x120] sm:$0xf] %v1919_v49  ;;  %1923 = vst [vmem:[#allocation2 + $0x124] sm:$0x1] %v1922_v58  ;;  %v8326_v51 = vld [vmem:[#allocation2 + $0x18] sm:$0xf]  ;;  %v7009_v37 = vcombine.low %v2727_v54, %v2728_v4  ;;  %v2545_v0 = vor.u32 %v2544_v27, %v2540_v44  ;;  %v9659_v29 = vcombine.low %v9626_v30, %v9628_v2 }
 0x1ea   : > { %v9631_v18 = vcombine.low %v8326_v51, %v9612_v50  ;;  %v9633_v57 = vld [vmem:[#allocation2 + $0x34] sm:$0x1]  ;;  %v9635_v16 = vld [vmem:[#allocation2 + $0xf8] sm:$0xf]  ;;  %v9637_v63 = vld [vmem:[#allocation2 + $0x100] sm:$0xf]  ;;  %v2552_v49 = vor.u32 %v2551_v38, %v2547_v14 }
 0x1eb   : > { %11688 = vst [vmem:[#allocation48_spill] sm:$0xff] %v9633_v57  ;;  %11689 = vst [vmem:[#allocation49_spill] sm:$0xff] %v9635_v16  ;;  %v8327_v6 = vld [vmem:[#allocation2 + $0x20] sm:$0xf]  ;;  %v9642_v40 = vld [vmem:[#allocation2 + $0x44] sm:$0x1]  ;;  %v7019_v58 = vcombine.low %v9635_v16, %v9637_v63 }
 0x1ec   : > { %11690 = vst [vmem:[#allocation50_spill] sm:$0xff] %v9637_v63  ;;  %v9640_v7 = vcombine.low %v8327_v6, %v9614_v12  ;;  %11691 = vst [vmem:[#allocation51_spill] sm:$0xff] %v9642_v40  ;;  %v9644_v33 = vld [vmem:[#allocation2 + $0x5c] sm:$0x1]  ;;  %v9646_v34 = vld [vmem:[#allocation2 + $0x64] sm:$0x1]  ;;  %5099 = vmatmul.mubr.bf16.gmra.mxu0 %v7009_v37  ;;  %v7008_v25 = vcombine.low %v2545_v0, %v2552_v49  ;;  %v7007_v49 = vcombine.low %v9596_v45, %v9594_v23 }
 0x1ed   : > { %11692 = vst [vmem:[#allocation52_spill] sm:$0xff] %v9644_v33  ;;  %11693 = vst [vmem:[#allocation53_spill] sm:$0xff] %v9646_v34  ;;  %v8328_v54 = vld [vmem:[#allocation2 + $0x28] sm:$0xf]  ;;  %v1190_v51 = vsel %vm9043_vm4, 0, %v1189_v61  ;;  %v1312_v6 = vsel %vm9050_vm5, 0, %v1311_v24  ;;  %5106 = vmatprep.mubr.bf16.mxu0 %v7019_v58 }
 0x1ee   : > { %v9651_v4 = vcombine.low %v8328_v54, %v9618_v9  ;;  %v9661_v44 = vld [vmem:[#allocation2 + $0x100] sm:$0xf]  ;;  %v9663_v14 = vld [vmem:[#allocation2 + $0x104] sm:$0x1]  ;;  %v8329_v38 = vld [vmem:[#allocation2 + $0x30] sm:$0xf]  ;;  %4937 = vmatprep.mubr.bf16.mxu1 %v7008_v25 }
 0x1ef   : > { %v9667_v54 = vcombine.low %v8329_v38, %v9633_v57  ;;  %v8330_v37 = vld [vmem:[#allocation2 + $0x38] sm:$0xf]  ;;  %1191 = vst [vmem:[#allocation2 + $0xf0] sm:$0x1] %v1190_v51  ;;  %1313 = vst [vmem:[#allocation2 + $0xf4] sm:$0x1] %v1312_v6 }
 0x1f0   : > { %v9670_v61 = vcombine.low %v8330_v37, %v9620_v41  ;;  %v9672_v24 = vld [vmem:[#allocation2 + $0x108] sm:$0xf]  ;;  %v9674_v20 = vld [vmem:[#allocation2 + $0x10c] sm:$0x1]  ;;  %v8331_v27 = vld [vmem:[#allocation2 + $0x40] sm:$0xf]  ;;  %v9684_v37 = vcombine.low %v8332_v56, %v9644_v33  ;;  %v9703_v56 = vcombine.low %v9661_v44, %v9663_v14  ;;  %4938 = vmatmul.mubr.bf16.gmra.mxu1 %v7007_v49  ;;  %v9721_v49 = vcombine.low %v9421_v3, %v9699_v1 }
 0x1f1   : > { %v9681_v38 = vcombine.low %v8331_v27, %v9642_v40  ;;  %v9686_v0 = vld [vmem:[#allocation2 + $0x6c] sm:$0x1]  ;;  %v2025_v58 = vld [vmem:[#allocation2 + $0xf8] sm:$0xe]  ;;  %v11699_v51 = vshll.u32 %v9592_v47, 16  ;;  %v9697_v27 = vcombine.low %v9397_v17, %v9646_v34  ;;  %v6743_v5 = vcombine.low %v9672_v24, %v9674_v20 }
 0x1f2   : > { %11694 = vst [vmem:[#allocation54_spill] sm:$0xff] %v9670_v61  ;;  %11697 = vst [vmem:[#allocation56_spill] sm:$0xff] %v9684_v37  ;;  %v9714_v25 = vcombine.low %v9419_v15, %v9686_v0  ;;  %v6773_v52 = vcombine.low %v2025_v58, %v9628_v2  ;;  %v2570_v31 = vshll.u32 %v9703_v56, 16  ;;  %v2026_v15 = vld [vmem:[#allocation2 + $0x100] sm:$0xe]  ;;  %v2561_v58 = vshrl.u32 %v9659_v29, 16 }
 0x1f3   : > { %11696 = vst [vmem:[#allocation55_spill] sm:$0xff] %v9681_v38  ;;  %11698 = vst [vmem:[#allocation57_spill] sm:$0xff] %v9686_v0  ;;  %v9692_v6 = vrot.slane %v11699_v51, 1  ;;  %v2563_v51 = vshll.u32 %v9659_v29, 16  ;;  %v2577_v26 = vshll.u32 %v6743_v5, 16  ;;  %v2568_v29 = vshrl.u32 %v9703_v56, 16 }
 0x1f4   : > { %11700 = vst [vmem:[#allocation58_spill] sm:$0xff] %v9697_v27  ;;  %11702 = vst [vmem:[#allocation60_spill] sm:$0xff] %v9714_v25  ;;  %v2027_v46 = vld [vmem:[#allocation2 + $0x108] sm:$0xe]  ;;  %v9730_v23 = vld [vmem:[#allocation2 + $0x110] sm:$0xf]  ;;  %v6774_v37 = vcombine.low %v2026_v15, %v9663_v14 }
 0x1f5   : > { %11703 = vst [vmem:[#allocation61_spill] sm:$0xff] %v9721_v49  ;;  %v2565_v45 = vrot.slane %v2563_v51, 1  ;;  %v9733_v1 = vld [vmem:[#allocation2 + $0x8c] sm:$0x1]  ;;  %v9735_v34 = vld [vmem:[#allocation2 + $0x94] sm:$0x1]  ;;  %v6775_v56 = vcombine.low %v2027_v46, %v9674_v20 }
 0x1f6   : > { %v9727_v0 = vld [vmem:[#allocation2 + $0xf0] sm:$0xf]  ;;  %v1992_v2 = vld [vmem:[#allocation2 + $0xf4] sm:$0x1]  ;;  %11705 = vst [vmem:[#allocation63_spill] sm:$0xff] %v9733_v1  ;;  %11706 = vst [vmem:[#allocation64_spill] sm:$0xff] %v9735_v34  ;;  %v9768_v14 = vcombine.low %v9465_v60, %v9733_v1  ;;  %v9772_v46 = vcombine.low %v9467_v21, %v9735_v34 }
 0x1f7   : > { %v6740_v17 = vcombine.low %v9727_v0, %v1992_v2  ;;  %v6772_v33 = vcombine.low %v2024_v32, %v1992_v2  ;;  %v2730_v40 = vrot.slane %v6773_v52, 1  ;;  %v9738_v41 = vld [vmem:[#allocation2 + $0x118] sm:$0xf]  ;;  %v9740_v27 = vld [vmem:[#allocation2 + $0x114] sm:$0x1]  ;;  %v2572_v51 = vrot.slane %v2570_v31, 1 }
 0x1f8   : > { %v2575_v57 = vshrl.u32 %v6743_v5, 16  ;;  %v9744_v9 = vld [vmem:[#allocation2 + $0x11c] sm:$0x1]  ;;  %v9746_v3 = vld [vmem:[#allocation2 + $0x84] sm:$0x1]  ;;  %v2579_v16 = vrot.slane %v2577_v26, 1  ;;  %v9750_v32 = vcombine.low %v9451_v36, %v9725_v55  ;;  %v2566_v2 = vor.u32 %v2565_v45, %v2561_v58 }
 0x1f9   : > { %11707 = vst [vmem:[#allocation65_spill] sm:$0xff] %v9746_v3  ;;  %v2554_v25 = vshrl.u32 %v6740_v17, 16  ;;  %v2556_v63 = vshll.u32 %v6740_v17, 16  ;;  %v2729_v38 = vrot.slane %v6772_v33, 1  ;;  %v2080_v52 = vld [vmem:[#allocation2 + $0xac] sm:$0x1]  ;;  %v6744_v33 = vcombine.low %v9730_v23, %v9740_v27 }
 0x1fa   : > { %v9754_v49 = vld [vmem:[#allocation2 + $0x108] sm:$0xf]  ;;  %v9756_v61 = vld [vmem:[#allocation2 + $0x110] sm:$0xf]  ;;  %v6745_v26 = vcombine.low %v9738_v41, %v9744_v9  ;;  %v9764_v36 = vcombine.low %v9453_v19, %v9746_v3  ;;  %v2573_v45 = vor.u32 %v2572_v51, %v2568_v29  ;;  %v2580_v17 = vor.u32 %v2579_v16, %v2575_v57  ;;  %v9782_v34 = vld [vmem:[#allocation2 + $0x12c] sm:$0x1] }
 0x1fb   : > { %v2558_v31 = vrot.slane %v2556_v63, 1  ;;  %v7018_v5 = vcombine.low %v2729_v38, %v2730_v40  ;;  %11708 = vst [vmem:[#allocation66_spill] sm:$0xff] %v9756_v61  ;;  %v7028_v20 = vcombine.low %v9754_v49, %v9756_v61  ;;  %v2081_v63 = vld [vmem:[#allocation2 + $0xb4] sm:$0x1]  ;;  %v2082_v40 = vld [vmem:[#allocation2 + $0xbc] sm:$0x1]  ;;  %v9778_v58 = vcombine.low %v9513_v59, %v2080_v52 }
 0x1fc   : > { %v2584_v15 = vshll.u32 %v6744_v33, 16  ;;  %v2591_v60 = vshll.u32 %v6745_v26, 16  ;;  %v2028_v1 = vld [vmem:[#allocation2 + $0x110] sm:$0xe]  ;;  %v9780_v21 = vld [vmem:[#allocation2 + $0x128] sm:$0xf]  ;;  %v9799_v61 = vcombine.low %v9548_v22, %v2082_v40 }
 0x1fd   : > { %v2559_v38 = vor.u32 %v2558_v31, %v2554_v25  ;;  %5107 = vmatmul.mubr.bf16.gmra.mxu0 %v7018_v5  ;;  %v7016_v25 = vcombine.low %v9727_v0, %v9626_v30  ;;  %v2731_v31 = vrot.slane %v6774_v37, 1  ;;  %v2732_v29 = vrot.slane %v6775_v56, 1  ;;  %v9786_v57 = vld [vmem:[#allocation2 + $0x120] sm:$0xf]  ;;  %v9788_v16 = vld [vmem:[#allocation2 + $0x124] sm:$0x1] }
 0x1fe   : > { %5114 = vmatprep.mubr.bf16.mxu0 %v7028_v20  ;;  %v9790_v51 = vld [vmem:[#allocation2 + $0x10] sm:$0xf]  ;;  %v2582_v59 = vshrl.u32 %v6744_v33, 16  ;;  %v2586_v52 = vrot.slane %v2584_v15, 1  ;;  %v2589_v5 = vshrl.u32 %v6745_v26, 16  ;;  %v2593_v20 = vrot.slane %v2591_v60, 1 }
 0x1ff   : > { %v7017_v3 = vcombine.low %v2559_v38, %v2566_v2  ;;  %v2029_v19 = vld [vmem:[#allocation2 + $0x118] sm:$0xe]  ;;  %v7026_v30 = vcombine.low %v2573_v45, %v2580_v17  ;;  %v2161_v37 = vld [vmem:[#allocation2 + $0x14] sm:$0x1]  ;;  %v9796_v0 = vcombine.low %v9521_v28, %v2081_v63  ;;  %v2083_v56 = vld [vmem:[#allocation2 + $0xc4] sm:$0x1]  ;;  %v9803_v33 = vcombine.low %v9786_v57, %v9788_v16 }
 0x200   : > { %11709 = vst [vmem:[#allocation67_spill] sm:$0xff] %v9799_v61  ;;  %v9807_v26 = vcombine.low %v9780_v21, %v9782_v34  ;;  %v9809_v15 = vld [vmem:[#allocation2 + $0x18] sm:$0xf]  ;;  %v7027_v28 = vcombine.low %v2731_v31, %v2732_v29  ;;  %v9814_v22 = vld [vmem:[#allocation2 + $0x120] sm:$0xf]  ;;  %v6776_v40 = vcombine.low %v2028_v1, %v9740_v27  ;;  %v6777_v17 = vcombine.low %v2029_v19, %v9744_v9 }
 0x201   : > { %4945 = vmatprep.mubr.bf16.mxu1 %v7017_v3  ;;  %v2162_v3 = vld [vmem:[#allocation2 + $0x1c] sm:$0x1]  ;;  %v9812_v63 = vld [vmem:[#allocation2 + $0x118] sm:$0xf]  ;;  %v2084_v60 = vld [vmem:[#allocation2 + $0xcc] sm:$0x1]  ;;  %v2587_v38 = vor.u32 %v2586_v52, %v2582_v59  ;;  %v2594_v2 = vor.u32 %v2593_v20, %v2589_v5  ;;  %v9821_v55 = vcombine.low %v9790_v51, %v2161_v37  ;;  %v9832_v59 = vcombine.low %v9550_v13, %v2083_v56 }
 0x202   : > { %4946 = vmatmul.mubr.bf16.gmra.mxu1 %v7016_v25  ;;  %v7037_v25 = vcombine.low %v9812_v63, %v9814_v22  ;;  %v2598_v29 = vshll.u32 %v9803_v33, 16  ;;  %v2605_v1 = vshll.u32 %v9807_v26, 16  ;;  %v2030_v9 = vld [vmem:[#allocation2 + $0x120] sm:$0xe]  ;;  %v2031_v27 = vld [vmem:[#allocation2 + $0x128] sm:$0xe]  ;;  %v9839_v5 = vcombine.low %v9570_v35, %v2084_v60 }
 0x203   : > { %4953 = vmatprep.mubr.bf16.mxu1 %v7026_v30  ;;  %v11710_v30 = vshrl.u32 %v9592_v47, 16  ;;  %11711 = vst [vmem:[#allocation68_spill] sm:$0xff] %v9832_v59  ;;  %v9836_v47 = vcombine.low %v9809_v15, %v2162_v3  ;;  %v7025_v20 = vcombine.low %v9661_v44, %v9672_v24  ;;  %v2733_v37 = vrot.slane %v6776_v40, 1  ;;  %v2163_v19 = vld [vmem:[#allocation2 + $0x24] sm:$0x1] }
 0x204   : > { %v7035_v13 = vcombine.low %v2587_v38, %v2594_v2  ;;  %v6778_v56 = vcombine.low %v2030_v9, %v9788_v16  ;;  %v3412_v3 = vshll.u32 %v9821_v55, 16  ;;  %v2164_v52 = vld [vmem:[#allocation2 + $0x2c] sm:$0x1]  ;;  %v2195_v45 = vld [vmem:[#allocation2 + $0x20] sm:$0xe]  ;;  %v2596_v35 = vshrl.u32 %v9803_v33, 16 }
 0x205   : > { %v9826_v31 = vor.u32 %v9692_v6, %v11710_v30  ;;  %5115 = vmatmul.mubr.bf16.gmra.mxu0 %v7027_v28  ;;  %v2085_v6 = vld [vmem:[#allocation2 + $0xd4] sm:$0x1]  ;;  %v2734_v28 = vrot.slane %v6777_v17, 1  ;;  %v9843_v30 = vld [vmem:[#allocation2 + $0x28] sm:$0xf]  ;;  %v2600_v60 = vrot.slane %v2598_v29, 1 }
 0x206   : > { %5122 = vmatprep.mubr.bf16.mxu0 %v7037_v25  ;;  %v6779_v25 = vcombine.low %v2031_v27, %v9782_v34  ;;  %v2603_v61 = vshrl.u32 %v9807_v26, 16  ;;  %v2607_v44 = vrot.slane %v2605_v1, 1  ;;  %v2196_v24 = vld [vmem:[#allocation2 + $0x28] sm:$0xe]  ;;  %v11712_v40 = vshrl.u32 %v9542_v42, 16 }
 0x207   : > { %v9857_v34 = vcombine.low %v9572_v43, %v2085_v6  ;;  %v9859_v2 = vld [vmem:[#allocation2 + $0x128] sm:$0xf]  ;;  %v9861_v38 = vld [vmem:[#allocation2 + $0x130] sm:$0xf]  ;;  %v3419_v33 = vshll.u32 %v9836_v47, 16  ;;  %v7036_v29 = vcombine.low %v2733_v37, %v2734_v28  ;;  %v6878_v1 = vcombine.low %v2195_v45, %v2163_v19 }
 0x208   : > { %v9853_v17 = vor.u32 %v9678_v62, %v11712_v40  ;;  %v7046_v62 = vcombine.low %v9859_v2, %v9861_v38  ;;  %v9867_v42 = vld [vmem:[#allocation2 + $0x20] sm:$0xf]  ;;  %v2086_v9 = vld [vmem:[#allocation2 + $0xdc] sm:$0x1]  ;;  %v2735_v43 = vrot.slane %v6778_v56, 1  ;;  %v2736_v27 = vrot.slane %v6779_v25, 1 }
 0x209   : > { %v3414_v6 = vrot.slane %v3412_v3, 1  ;;  %v2601_v40 = vor.u32 %v2600_v60, %v2596_v35  ;;  %v2608_v16 = vor.u32 %v2607_v44, %v2603_v61  ;;  %v2097_v59 = vld [vmem:[#allocation2 + $0x10] sm:$0xe]  ;;  %v6879_v26 = vcombine.low %v2196_v24, %v2164_v52 }
 0x20a   : > { %4954 = vmatmul.mubr.bf16.gmra.mxu1 %v7025_v20  ;;  %v9870_v20 = vcombine.low %v9843_v30, %v2164_v52  ;;  %v6912_v37 = vcombine.low %v9853_v17, %v9826_v31  ;;  %v3410_v45 = vshrl.u32 %v9821_v55, 16  ;;  %v3421_v56 = vrot.slane %v3419_v33, 1  ;;  %v2096_v52 = vld [vmem:[#allocation2 + $0x8] sm:$0xe]  ;;  %v11730_v17 = vld [vmem:[#allocation56_spill] sm:$0xff] }
 0x20b   : > { %4961 = vmatprep.mubr.bf16.mxu1 %v7035_v13  ;;  %v2087_v13 = vld [vmem:[#allocation2 + $0xe4] sm:$0x1]  ;;  %v9877_v25 = vcombine.low %v9867_v42, %v2163_v19  ;;  %v9880_v3 = vcombine.low %v9602_v48, %v2086_v9  ;;  %v7034_v61 = vcombine.low %v9730_v23, %v9738_v41  ;;  %v9884_v35 = vrot.slane %v6878_v1, 1  ;;  %v9891_v19 = vld [vmem:[#allocation2 + $0x30] sm:$0xf] }
 0x20c   : > { %v9886_v60 = vrot.slane %v6879_v26, 1  ;;  %v3415_v44 = vor.u32 %v3414_v6, %v3410_v45  ;;  %v3417_v24 = vshrl.u32 %v9836_v47, 16  ;;  %v6813_v55 = vcombine.low %v2097_v59, %v9588_v53  ;;  %v9898_v26 = vld [vmem:[#allocation2 + $0x38] sm:$0xf]  ;;  %v2166_v59 = vld [vmem:[#allocation2 + $0x3c] sm:$0x1] }
 0x20d   : > { %5123 = vmatmul.mubr.bf16.gmra.mxu0 %v7036_v29  ;;  %11713 = vst [vmem:[#allocation69_spill] sm:$0xff] %v9884_v35  ;;  %v3433_v33 = vshll.u32 %v9870_v20, 16  ;;  %v2165_v29 = vld [vmem:[#allocation2 + $0x34] sm:$0x1]  ;;  %v9894_v48 = vcombine.low %v9604_v10, %v2087_v13  ;;  %v7045_v41 = vcombine.low %v2735_v43, %v2736_v27  ;;  %v6812_v47 = vcombine.low %v2096_v52, %v9535_v11  ;;  %v1126_v45 = vld [vmem:[#allocation2 + $0x48] sm:$0x1] }
 0x20e   : > { %5130 = vmatprep.mubr.bf16.mxu0 %v7046_v62  ;;  %11714 = vst [vmem:[#allocation70_spill] sm:$0xff] %v9886_v60  ;;  %v7044_v62 = vcombine.low %v2601_v40, %v2608_v16  ;;  %v3422_v1 = vor.u32 %v3421_v56, %v3417_v24  ;;  %v3426_v53 = vshll.u32 %v9877_v25, 16  ;;  %v11715_v9 = vshll.u32 %v9631_v18, 16  ;;  %v1248_v13 = vld [vmem:[#allocation2 + $0x4c] sm:$0x1] }
 0x20f   : > { %v9905_v10 = vcombine.low %v9891_v19, %v2165_v29  ;;  %v2912_v16 = vshrl.u32 %v9631_v18, 16  ;;  %v2919_v43 = vshrl.u32 %v9640_v7, 16  ;;  %v11716_v27 = vshll.u32 %v9640_v7, 16  ;;  %v2099_v24 = vld [vmem:[#allocation2 + $0x20] sm:$0xe]  ;;  %v11735_v35 = vld [vmem:[#allocation51_spill] sm:$0xff] }
 0x210   : > { %v2916_v6 = vrot.slane %v11715_v9, 1  ;;  %v6915_v11 = vcombine.low %v3415_v44, %v3422_v1  ;;  %v3218_v56 = vrot.slane %v6813_v55, 1  ;;  %v3435_v52 = vrot.slane %v3433_v33, 1  ;;  %v2098_v33 = vld [vmem:[#allocation2 + $0x18] sm:$0xe] }
 0x211   : > { %v2923_v40 = vrot.slane %v11716_v27, 1  ;;  %v1127_v18 = vsel %vm9043_vm4, 0, %v1126_v45  ;;  %v3217_v44 = vrot.slane %v6812_v47, 1  ;;  %v3428_v55 = vrot.slane %v3426_v53, 1  ;;  %v9934_v27 = vld [vmem:[#allocation2 + $0x40] sm:$0xf] }
 0x212   : > { %4962 = vmatmul.mubr.bf16.gmra.mxu1 %v7034_v61  ;;  %v3431_v61 = vshrl.u32 %v9870_v20, 16  ;;  %v9915_v29 = vor.u32 %v2916_v6, %v2912_v16  ;;  %1128 = vst [vmem:[#allocation2 + $0x48] sm:$0x1] %v1127_v18  ;;  %v1249_v20 = vsel %vm9050_vm5, 0, %v1248_v13  ;;  %v11717_v6 = vshll.u32 %v9651_v4, 16 }
 0x213   : > { %4969 = vmatprep.mubr.bf16.mxu1 %v7044_v62  ;;  %v9913_v62 = vcombine.low %v9898_v26, %v2166_v59  ;;  %v9917_v9 = vor.u32 %v2923_v40, %v2919_v43  ;;  %1250 = vst [vmem:[#allocation2 + $0x4c] sm:$0x1] %v1249_v20  ;;  %v2926_v59 = vshrl.u32 %v9651_v4, 16  ;;  %v7043_v47 = vcombine.low %v9786_v57, %v9780_v21  ;;  %v2167_v40 = vld [vmem:[#allocation2 + $0x44] sm:$0x1] }
 0x214   : > { %v2930_v45 = vrot.slane %v11717_v6, 1  ;;  %v3424_v53 = vshrl.u32 %v9877_v25, 16  ;;  %v3436_v16 = vor.u32 %v3435_v52, %v3431_v61  ;;  %v6815_v43 = vcombine.low %v2099_v24, %v9614_v12  ;;  %v9936_v13 = vld [vmem:[#allocation2 + $0xfc] sm:$0x1]  ;;  %v11720_v25 = vld [vmem:[#allocation54_spill] sm:$0xff] }
 0x215   : > { %5131 = vmatmul.mubr.bf16.gmra.mxu0 %v7045_v41  ;;  %v3440_v41 = vshll.u32 %v9905_v10, 16  ;;  %11718 = vst [vmem:[#allocation71_spill] sm:$0xff] %v9936_v13  ;;  %v3447_v18 = vshll.u32 %v9913_v62, 16  ;;  %v2933_v20 = vshrl.u32 %v9667_v54, 16  ;;  %v11719_v4 = vshll.u32 %v9667_v54, 16 }
 0x216   : > { %5332 = vmatprep.mubr.bf16.mxu0 %v6915_v11  ;;  %v6913_v11 = vcombine.low %v3217_v44, %v3218_v56  ;;  %v6914_v21 = vcombine.low %v9790_v51, %v9809_v15  ;;  %v3429_v57 = vor.u32 %v3428_v55, %v3424_v53  ;;  %v6814_v12 = vcombine.low %v2098_v33, %v9612_v50  ;;  %v9952_v54 = vld [vmem:[#allocation2 + $0x104] sm:$0x1]  ;;  %v2100_v50 = vld [vmem:[#allocation2 + $0x28] sm:$0xe]  ;;  %v2101_v55 = vld [vmem:[#allocation2 + $0x30] sm:$0xe] }
 0x217   : > { %v2937_v6 = vrot.slane %v11719_v4, 1  ;;  %v2940_v61 = vshrl.u32 %v11720_v25, 16  ;;  %v3442_v52 = vrot.slane %v3440_v41, 1  ;;  %v9946_v24 = vor.u32 %v2930_v45, %v2926_v59  ;;  %11722 = vst [vmem:[#allocation54_spill] sm:$0xff] %v9952_v54 }
 0x218   : > { %v11721_v44 = vshll.u32 %v11720_v25, 16  ;;  %v6924_v51 = vcombine.low %v3429_v57, %v3436_v16  ;;  %v3220_v15 = vrot.slane %v6815_v43, 1  ;;  %v9959_v33 = vcombine.low %v9934_v27, %v2167_v40 }
 0x219   : > { %v9948_v56 = vor.u32 %v2937_v6, %v2933_v20  ;;  %v3438_v41 = vshrl.u32 %v9905_v10, 16  ;;  %v3445_v59 = vshrl.u32 %v9913_v62, 16  ;;  %v3449_v45 = vrot.slane %v3447_v18, 1  ;;  %v9963_v53 = vld [vmem:[#allocation2 + $0x48] sm:$0xf]  ;;  %v11726_v62 = vld [vmem:[#allocation50_spill] sm:$0xff] }
 0x21a   : > { %4970 = vmatmul.mubr.bf16.gmra.mxu1 %v7043_v47  ;;  %v2944_v23 = vrot.slane %v11721_v44, 1  ;;  %v11723_v47 = vld [vmem:[#allocation49_spill] sm:$0xff]  ;;  %v3219_v20 = vrot.slane %v6814_v12, 1  ;;  %v2168_v16 = vld [vmem:[#allocation2 + $0x4c] sm:$0x1]  ;;  %v9975_v18 = vcombine.low %v11726_v62, %v9952_v54  ;;  %v3454_v7 = vshll.u32 %v9959_v33, 16 }
 0x21b   : > { %5171 = vmatprep.mubr.bf16.mxu1 %v6913_v11  ;;  %v9956_v4 = vcombine.low %v11723_v47, %v9936_v13  ;;  %v11724_v6 = vld [vmem:[#allocation55_spill] sm:$0xff]  ;;  %v3443_v25 = vor.u32 %v3442_v52, %v3438_v41  ;;  %v6851_v44 = vcombine.low %v9963_v53, %v2168_v16  ;;  %v8186_v47 = vld [vmem:[#allocation8 + $0x230] sm:$0xff]   ;;  %v2169_v12 = vld [vmem:[#allocation2 + $0x64] sm:$0x1]  ;;  %v3450_v28 = vor.u32 %v3449_v45, %v3445_v59 }
 0x21c   : > { %v9967_v43 = vor.u32 %v2944_v23, %v2940_v61  ;;  %v2947_v57 = vshrl.u32 %v11724_v6, 16  ;;  %v11725_v40 = vshll.u32 %v11724_v6, 16  ;;  %11727 = vst [vmem:[#allocation49_spill] sm:$0xff] %v9975_v18  ;;  %v6922_v61 = vcombine.low %v3219_v20, %v3220_v15  ;;  %v9982_v6 = vld [vmem:[#allocation2 + $0x68] sm:$0xf]  ;;  %v11728_v62 = vld [vmem:[#allocation46_spill] sm:$0xff] }
 0x21d   : > { %5333 = vmatmul.mubr.bf16.vlgmr.msra.gmra.mxu0 %v6914_v21  ;;  %v6816_v11 = vcombine.low %v2100_v50, %v11728_v62  ;;  %v11729_v52 = vld [vmem:[#allocation48_spill] sm:$0xff]  ;;  %v3461_v16 = vshll.u32 %v6851_v44, 16  ;;  %v3068_v1 = vshll.u32 %v9956_v4, 16  ;;  %v6923_v15 = vcombine.low %v9867_v42, %v9843_v30  ;;  %v8333_v45 = vld [vmem:[#allocation8 + $0x238] sm:$0xff]   ;;  %v8197_v62 = vld [vmem:[#allocation8 + $0x228] sm:$0xff]  }
 0x21e   : > { %5340 = vmatprep.mubr.bf16.mxu0 %v6924_v51  ;;  %v2951_v21 = vrot.slane %v11725_v40, 1  ;;  %v9978_v51 = vld [vmem:[#allocation2 + $0x60] sm:$0xf]  ;;  %v2170_v40 = vld [vmem:[#allocation2 + $0x6c] sm:$0x1]  ;;  %v6817_v41 = vcombine.low %v2101_v55, %v11729_v52  ;;  %v6933_v50 = vcombine.low %v3443_v25, %v3450_v28  ;;  %v3452_v55 = vshrl.u32 %v9959_v33, 16 }
 0x21f   : > { %v9995_v20 = vcombine.low %v9978_v51, %v2169_v12  ;;  %v10001_v31 = vcombine.low %v9982_v6, %v2170_v40  ;;  %v3456_v30 = vrot.slane %v3454_v7, 1  ;;  %v3459_v42 = vshrl.u32 %v6851_v44, 16  ;;  %v11732_v25 = vld [vmem:[#allocation58_spill] sm:$0xff]  ;;  %v11734_v40 = vld [vmem:[#allocation47_spill] sm:$0xff]  ;;  %v1278_v13 = vld [vmem:[#allocation2 + $0x9c] sm:$0x1] }
 0x220   : > { %v9984_v10 = vor.u32 %v2951_v21, %v2947_v57  ;;  %v2102_v57 = vld [vmem:[#allocation2 + $0x38] sm:$0xe]  ;;  %v2103_v21 = vld [vmem:[#allocation2 + $0x40] sm:$0xe]  ;;  %v3463_v12 = vrot.slane %v3461_v16, 1  ;;  %v11731_v52 = vshll.u32 %v11730_v17, 16 }
 0x221   : > { %v3222_v28 = vrot.slane %v6817_v41, 1  ;;  %v2961_v33 = vshrl.u32 %v11732_v25, 16  ;;  %v6818_v60 = vcombine.low %v2102_v57, %v11734_v40  ;;  %v6819_v7 = vcombine.low %v2103_v21, %v11735_v35  ;;  %v10012_v16 = vld [vmem:[#allocation2 + $0x70] sm:$0xf] }
 0x222   : > { %5172 = vmatmul.mubr.bf16.vlgmr.msra.gmra.mxu1 %v6912_v37  ;;  %v2954_v37 = vshrl.u32 %v11730_v17, 16  ;;  %v2958_v23 = vrot.slane %v11731_v52, 1  ;;  %v3468_v44 = vshll.u32 %v9995_v20, 16  ;;  %v3475_v41 = vshll.u32 %v10001_v31, 16  ;;  %v10019_v17 = vld [vmem:[#allocation2 + $0x78] sm:$0xf] }
 0x223   : > { %7822 = vmatpush3.bf16.msra.mxu1 %v8333_v45  ;;  %5179 = vmatprep.mubr.bf16.mxu1 %v6922_v61  ;;  %v3221_v61 = vrot.slane %v6816_v11, 1  ;;  %v11733_v45 = vshll.u32 %v11732_v25, 16  ;;  %v3075_v11 = vshll.u32 %v9975_v18, 16  ;;  %v10023_v57 = vrot.slane %v3068_v1, 1  ;;  %v8208_v25 = vld [vmem:[#allocation8 + $0x220] sm:$0xff]   ;;  %v11737_v40 = vld [vmem:[#allocation60_spill] sm:$0xff] }
 0x224   : > { %7823 = vmatprep.subr.bf16.mxu1 %v8186_v47  ;;  %v10014_v54 = vor.u32 %v2958_v23, %v2954_v37  ;;  %v6932_v35 = vcombine.low %v9891_v19, %v9898_v26  ;;  %v3457_v21 = vor.u32 %v3456_v30, %v3452_v55  ;;  %v3464_v52 = vor.u32 %v3463_v12, %v3459_v42  ;;  %v2171_v23 = vld [vmem:[#allocation2 + $0x74] sm:$0x1]  ;;  %v2172_v37 = vld [vmem:[#allocation2 + $0x7c] sm:$0x1]  ;;  %v1156_v1 = vld [vmem:[#allocation2 + $0x98] sm:$0x1] }
 0x225   : > { %5341 = vmatmul.mubr.bf16.gmra.mxu0 %v6923_v15  ;;  %v2965_v59 = vrot.slane %v11733_v45, 1  ;;  %11736 = vst [vmem:[#allocation55_spill] sm:$0xff] %v10023_v57  ;;  %v6931_v45 = vcombine.low %v3221_v61, %v3222_v28  ;;  %v2968_v15 = vshrl.u32 %v11737_v40, 16  ;;  %v10032_v18 = vld [vmem:[#allocation2 + $0x10c] sm:$0x1]  ;;  %v11740_v19 = vcombine.low %v9915_v29, %v9917_v9 }
 0x226   : > { %5348 = vmatprep.mubr.bf16.mxu0 %v6933_v50  ;;  %11739 = vst [vmem:[#allocation50_spill] sm:$0xff] %v10032_v18  ;;  %v3223_v26 = vrot.slane %v6818_v60, 1  ;;  %v3224_v55 = vrot.slane %v6819_v7, 1  ;;  %v3466_v30 = vshrl.u32 %v9995_v20, 16  ;;  %v3470_v42 = vrot.slane %v3468_v44, 1 }
 0x227   : > { %7824 = vmatpush3.bf16.msra.mxu1 %v8186_v47  ;;  %v10021_v50 = vor.u32 %v2965_v59, %v2961_v33  ;;  %v11738_v59 = vshll.u32 %v11737_v40, 16  ;;  %v3473_v12 = vshrl.u32 %v10001_v31, 16  ;;  %v3477_v61 = vrot.slane %v3475_v41, 1  ;;  %v10039_v28 = vld [vmem:[#allocation2 + $0x58] sm:$0xe] }
 0x228   : > { %7825 = vmatprep.subr.bf16.mxu1 %v8197_v62  ;;  %v10042_v40 = vcombine.low %v10012_v16, %v2171_v23  ;;  %v6942_v57 = vcombine.low %v3457_v21, %v3464_v52  ;;  %v2105_v29 = vld [vmem:[#allocation2 + $0x60] sm:$0xe]  ;;  %v10046_v60 = vcombine.low %v10019_v17, %v2172_v37  ;;  %v8219_v31 = vld [vmem:[#allocation8 + $0x218] sm:$0xff]   ;;  %v10052_v44 = vrot.slane %v3075_v11, 1  ;;  %v11744_v37 = vld [vmem:[#allocation52_spill] sm:$0xff] }
 0x229   : > { %v2972_v33 = vrot.slane %v11738_v59, 1  ;;  %v11741_v59 = vld [vmem:[#allocation61_spill] sm:$0xff]  ;;  %v10056_v41 = vcombine.low %v9754_v49, %v10032_v18  ;;  %v1157_v21 = vsel %vm9043_vm4, 0, %v1156_v1  ;;  %v6940_v52 = vcombine.low %v3223_v26, %v3224_v55  ;;  %v2174_v49 = vld [vmem:[#allocation2 + $0x8c] sm:$0x1]  ;;  %v8252_v18 = vld [vmem:[#allocation8 + $0x200] sm:$0xff]  }
 0x22a   : > { %5180 = vmatmul.mubr.bf16.gmra.mxu1 %v11740_v19  ;;  %v2975_v47 = vshrl.u32 %v11741_v59, 16  ;;  %v11742_v20 = vshll.u32 %v11741_v59, 16  ;;  %v3471_v23 = vor.u32 %v3470_v42, %v3466_v30  ;;  %v6820_v11 = vcombine.low %v10039_v28, %v11744_v37  ;;  %1158 = vst [vmem:[#allocation2 + $0x98] sm:$0x1] %v1157_v21  ;;  %v11749_v21 = vld [vmem:[#allocation66_spill] sm:$0xff] }
 0x22b   : > { %5187 = vmatprep.mubr.bf16.mxu1 %v6931_v45  ;;  %7826 = vmatpush3.bf16.msra.mxu1 %v8197_v62  ;;  %v10048_v9 = vor.u32 %v2972_v33, %v2968_v15  ;;  %11743 = vst [vmem:[#allocation46_spill] sm:$0xff] %v10056_v41  ;;  %v10058_v62 = vld [vmem:[#allocation2 + $0x80] sm:$0xf]  ;;  %v1279_v15 = vsel %vm9050_vm5, 0, %v1278_v13  ;;  %v10066_v45 = vld [vmem:[#allocation2 + $0x88] sm:$0xf]  ;;  %v3478_v1 = vor.u32 %v3477_v61, %v3473_v12 }
 0x22c   : > { %v2979_v7 = vrot.slane %v11742_v20, 1  ;;  %7827 = vmatprep.subr.bf16.mxu1 %v8208_v25  ;;  %v2173_v33 = vld [vmem:[#allocation2 + $0x84] sm:$0x1]  ;;  %1280 = vst [vmem:[#allocation2 + $0x9c] sm:$0x1] %v1279_v15  ;;  %v3482_v59 = vshll.u32 %v10042_v40, 16 }
 0x22d   : > { %5349 = vmatmul.mubr.bf16.gmra.mxu0 %v6932_v35  ;;  %v10070_v35 = vld [vmem:[#allocation2 + $0x114] sm:$0x1]  ;;  %v2982_v13 = vshrl.u32 %v9750_v32, 16  ;;  %v3489_v55 = vshll.u32 %v10046_v60, 16  ;;  %v11747_v42 = vshll.u32 %v9764_v36, 16  ;;  %v11748_v61 = vld [vmem:[#allocation53_spill] sm:$0xff] }
 0x22e   : > { %5356 = vmatprep.mubr.bf16.mxu0 %v6942_v57  ;;  %v10068_v19 = vor.u32 %v2979_v7, %v2975_v47  ;;  %11745 = vst [vmem:[#allocation48_spill] sm:$0xff] %v10070_v35  ;;  %v11746_v57 = vshll.u32 %v9750_v32, 16  ;;  %v2989_v47 = vshrl.u32 %v9764_v36, 16  ;;  %v8230_v12 = vld [vmem:[#allocation8 + $0x210] sm:$0xff]   ;;  %v6821_v20 = vcombine.low %v2105_v29, %v11748_v61 }
 0x22f   : > { %7828 = vmatpush3.bf16.msra.mxu1 %v8208_v25  ;;  %v2993_v28 = vrot.slane %v11747_v42, 1  ;;  %v10084_v7 = vcombine.low %v10058_v62, %v2173_v33  ;;  %v10087_v32 = vcombine.low %v10066_v45, %v2174_v49  ;;  %v10093_v15 = vcombine.low %v11749_v21, %v10070_v35  ;;  %v2175_v35 = vld [vmem:[#allocation2 + $0x94] sm:$0x1] }
 0x230   : > { %v2986_v26 = vrot.slane %v11746_v57, 1  ;;  %7829 = vmatprep.subr.bf16.mxu1 %v8219_v31  ;;  %v11751_v36 = vcombine.low %v9946_v24, %v9948_v56  ;;  %v6941_v29 = vcombine.low %v9934_v27, %v9963_v53  ;;  %v6951_v49 = vcombine.low %v3471_v23, %v3478_v1  ;;  %v2106_v57 = vld [vmem:[#allocation2 + $0x68] sm:$0xe] }
 0x231   : > { %11750 = vst [vmem:[#allocation56_spill] sm:$0xff] %v10093_v15  ;;  %v10101_v33 = vor.u32 %v2993_v28, %v2989_v47  ;;  %v11752_v42 = vshll.u32 %v9768_v14, 16  ;;  %v3484_v21 = vrot.slane %v3482_v59, 1  ;;  %v3487_v24 = vshrl.u32 %v10046_v60, 16  ;;  %v8241_v53 = vld [vmem:[#allocation8 + $0x208] sm:$0xff]   ;;  %v11753_v59 = vld [vmem:[#allocation57_spill] sm:$0xff] }
 0x232   : > { %v10089_v25 = vor.u32 %v2986_v26, %v2982_v13  ;;  %5188 = vmatmul.mubr.bf16.gmra.mxu1 %v11751_v36  ;;  %v3480_v13 = vshrl.u32 %v10042_v40, 16  ;;  %v2996_v26 = vshrl.u32 %v9768_v14, 16  ;;  %v3491_v56 = vrot.slane %v3489_v55, 1  ;;  %v2107_v36 = vld [vmem:[#allocation2 + $0x70] sm:$0xe] }
 0x233   : > { %5195 = vmatprep.mubr.bf16.mxu1 %v6940_v52  ;;  %v3000_v61 = vrot.slane %v11752_v42, 1  ;;  %7830 = vmatpush3.bf16.msra.mxu1 %v8219_v31  ;;  %v3225_v52 = vrot.slane %v6820_v11, 1  ;;  %v3226_v40 = vrot.slane %v6821_v20, 1  ;;  %v3496_v23 = vshll.u32 %v10084_v7, 16  ;;  %v10116_v47 = vld [vmem:[#allocation2 + $0x90] sm:$0xf] }
 0x234   : > { %7831 = vmatprep.subr.bf16.mxu1 %v8230_v12  ;;  %v3503_v1 = vshll.u32 %v10087_v32, 16  ;;  %v3082_v14 = vshll.u32 %v10056_v41, 16  ;;  %v3089_v60 = vshll.u32 %v10093_v15, 16  ;;  %v6822_v55 = vcombine.low %v2106_v57, %v11753_v59  ;;  %v10118_v28 = vld [vmem:[#allocation2 + $0x11c] sm:$0x1]  ;;  %v11756_v11 = vld [vmem:[#allocation59_spill] sm:$0xff] }
 0x235   : > { %5357 = vmatmul.mubr.bf16.gmra.mxu0 %v6941_v29  ;;  %11754 = vst [vmem:[#allocation58_spill] sm:$0xff] %v10118_v28  ;;  %v10120_v29 = vld [vmem:[#allocation2 + $0x124] sm:$0x1]  ;;  %v6823_v20 = vcombine.low %v2107_v36, %v11756_v11  ;;  %v10123_v42 = vor.u32 %v3000_v61, %v2996_v26  ;;  %v3003_v37 = vshrl.u32 %v9772_v46, 16  ;;  %v11757_v27 = vshll.u32 %v9772_v46, 16 }
 0x236   : > { %5364 = vmatprep.mubr.bf16.mxu0 %v6951_v49  ;;  %11755 = vst [vmem:[#allocation47_spill] sm:$0xff] %v10120_v29  ;;  %v3485_v30 = vor.u32 %v3484_v21, %v3480_v13  ;;  %v3492_v49 = vor.u32 %v3491_v56, %v3487_v24  ;;  %v3494_v57 = vshrl.u32 %v10084_v7, 16  ;;  %v3501_v59 = vshrl.u32 %v10087_v32, 16  ;;  %v10130_v26 = vld [vmem:[#allocation2 + $0x98] sm:$0xf] }
 0x237   : > { %v3007_v31 = vrot.slane %v11757_v27, 1  ;;  %7832 = vmatpush3.bf16.msra.mxu1 %v8230_v12  ;;  %v6949_v15 = vcombine.low %v3225_v52, %v3226_v40  ;;  %v3498_v41 = vrot.slane %v3496_v23, 1  ;;  %v3505_v36 = vrot.slane %v3503_v1, 1  ;;  %v2176_v61 = vld [vmem:[#allocation2 + $0x9c] sm:$0x1] }
 0x238   : > { %7833 = vmatprep.subr.bf16.mxu1 %v8241_v53  ;;  %v10134_v46 = vrot.slane %v3082_v14, 1  ;;  %v10138_v12 = vcombine.low %v9812_v63, %v10118_v28  ;;  %v10142_v7 = vcombine.low %v9814_v22, %v10120_v29  ;;  %v11758_v32 = vcombine.low %v9967_v43, %v9984_v10  ;;  %v2108_v21 = vld [vmem:[#allocation2 + $0x78] sm:$0xe]  ;;  %v10162_v14 = vld [vmem:[#allocation2 + $0xb0] sm:$0xf] }
 0x239   : > { %v10132_v11 = vor.u32 %v3007_v31, %v3003_v37  ;;  %v6950_v13 = vcombine.low %v9978_v51, %v9982_v6  ;;  %v2109_v37 = vld [vmem:[#allocation2 + $0x80] sm:$0xe]  ;;  %v10150_v24 = vcombine.low %v10116_v47, %v2175_v35  ;;  %v3010_v56 = vshrl.u32 %v9778_v58, 16  ;;  %v11761_v23 = vld [vmem:[#allocation65_spill] sm:$0xff] }
 0x23a   : > { %5196 = vmatmul.mubr.bf16.gmra.mxu1 %v11758_v32  ;;  %v11759_v22 = vshll.u32 %v9778_v58, 16  ;;  %v6960_v43 = vcombine.low %v3485_v30, %v3492_v49  ;;  %v3227_v10 = vrot.slane %v6822_v55, 1  ;;  %v3228_v52 = vrot.slane %v6823_v20, 1  ;;  %v10164_v31 = vld [vmem:[#allocation2 + $0xb8] sm:$0xf] }
 0x23b   : > { %5203 = vmatprep.mubr.bf16.mxu1 %v6949_v15  ;;  %7834 = vmatpush3.bf16.msra.mxu1 %v8241_v53  ;;  %v10158_v51 = vcombine.low %v10130_v26, %v2176_v61  ;;  %v3499_v6 = vor.u32 %v3498_v41, %v3494_v57  ;;  %v3506_v35 = vor.u32 %v3505_v36, %v3501_v59  ;;  %v11760_v15 = vld [vmem:[#allocation62_spill] sm:$0xff]  ;;  %v10166_v58 = vrot.slane %v3089_v60, 1  ;;  %v2177_v30 = vld [vmem:[#allocation2 + $0xb4] sm:$0x1]  ;;  %v2178_v61 = vld [vmem:[#allocation2 + $0xbc] sm:$0x1] }
 0x23c   : > { %v3014_v27 = vrot.slane %v11759_v22, 1  ;;  %7835 = vmatprep.subr.bf16.mxu1 %v8252_v18  ;;  %v6824_v40 = vcombine.low %v2108_v21, %v11760_v15  ;;  %v6825_v1 = vcombine.low %v2109_v37, %v11761_v23  ;;  %v3017_v55 = vshrl.u32 %v9796_v0, 16  ;;  %v2110_v21 = vld [vmem:[#allocation2 + $0x88] sm:$0xe] }
 0x23d   : > { %5365 = vmatmul.mubr.bf16.gmra.mxu0 %v6950_v13  ;;  %v11762_v20 = vshll.u32 %v9796_v0, 16  ;;  %v3510_v36 = vshll.u32 %v10150_v24, 16  ;;  %v6958_v60 = vcombine.low %v3227_v10, %v3228_v52  ;;  %v6959_v32 = vcombine.low %v10012_v16, %v10019_v17  ;;  %v11764_v52 = vld [vmem:[#allocation67_spill] sm:$0xff] }
 0x23e   : > { %5372 = vmatprep.mubr.bf16.mxu0 %v6960_v43  ;;  %v10168_v53 = vor.u32 %v3014_v27, %v3010_v56  ;;  %v3517_v13 = vshll.u32 %v10158_v51, 16  ;;  %v6969_v56 = vcombine.low %v3499_v6, %v3506_v35  ;;  %v3229_v22 = vrot.slane %v6824_v40, 1  ;;  %v11765_v23 = vld [vmem:[#allocation63_spill] sm:$0xff] }
 0x23f   : > { %v3021_v41 = vrot.slane %v11762_v20, 1  ;;  %7836 = vmatpush3.bf16.msra.mxu1 %v8252_v18  ;;  %v3230_v27 = vrot.slane %v6825_v1, 1  ;;  %v10183_v43 = vcombine.low %v10162_v14, %v2177_v30  ;;  %v11763_v15 = vcombine.low %v10014_v54, %v10021_v50  ;;  %v1186_v54 = vld [vmem:[#allocation2 + $0xe8] sm:$0x1] }
 0x240   : > { %v7437_v37 = vpop.f32.mrf.mxu0  ;;  %v3508_v18 = vshrl.u32 %v10150_v24, 16  ;;  %v10190_v16 = vcombine.low %v10164_v31, %v2178_v61  ;;  %v3024_v6 = vshrl.u32 %v11764_v52, 16  ;;  %v3512_v35 = vrot.slane %v3510_v36, 1  ;;  %v11767_v61 = vld [vmem:[#allocation68_spill] sm:$0xff]  ;;  %v10218_v10 = vld [vmem:[#allocation2 + $0xc8] sm:$0xf] }
 0x241   : > { %v10180_v0 = vor.u32 %v3021_v41, %v3017_v55  ;;  %v3515_v40 = vshrl.u32 %v10158_v51, 16  ;;  %v6826_v1 = vcombine.low %v2110_v21, %v11765_v23  ;;  %v3519_v50 = vrot.slane %v3517_v13, 1  ;;  %v2111_v55 = vld [vmem:[#allocation2 + $0x90] sm:$0xe]  ;;  %v1308_v13 = vld [vmem:[#allocation2 + $0xec] sm:$0x1] }
 0x242   : > { %5204 = vmatmul.mubr.bf16.gmra.mxu1 %v11763_v15  ;;  %v7438_v17 = vpop.f32.mrf.mxu0  ;;  %v11766_v20 = vshll.u32 %v11764_v52, 16  ;;  %v3031_v15 = vshrl.u32 %v11767_v61, 16  ;;  %v11768_v59 = vshll.u32 %v11767_v61, 16  ;;  %v6967_v36 = vcombine.low %v3229_v22, %v3230_v27 }
 0x243   : > { %5211 = vmatprep.mubr.bf16.mxu1 %v6958_v60  ;;  %v7439_v30 = vadd.f32 %v7438_v17, %v7437_v37  ;;  %v3103_v60 = vshll.u32 %v10142_v7, 16  ;;  %v6968_v51 = vcombine.low %v10058_v62, %v10066_v45  ;;  %v3524_v21 = vshll.u32 %v10183_v43, 16  ;;  %v10216_v62 = vld [vmem:[#allocation2 + $0xc0] sm:$0xf] }
 0x244   : > { %v7440_v24 = vpop.f32.mrf.mxu0  ;;  %v3028_v41 = vrot.slane %v11766_v20, 1  ;;  %v3035_v49 = vrot.slane %v11768_v59, 1  ;;  %v3531_v37 = vshll.u32 %v10190_v16, 16  ;;  %v1187_v59 = vsel %vm9043_vm4, 0, %v1186_v54 }
 0x245   : > { %5373 = vmatmul.mubr.bf16.gmra.mxu0 %v6959_v32  ;;  %v3513_v20 = vor.u32 %v3512_v35, %v3508_v18  ;;  %v11769_v32 = vld [vmem:[#allocation64_spill] sm:$0xff]  ;;  %v10214_v27 = vrot.slane %v6826_v1, 1  ;;  %1188 = vst [vmem:[#allocation2 + $0xe8] sm:$0x1] %v1187_v59  ;;  %v1309_v18 = vsel %vm9050_vm5, 0, %v1308_v13  ;;  %v3038_v35 = vshrl.u32 %v9839_v5, 16 }
 0x246   : > { %5380 = vmatprep.mubr.bf16.mxu0 %v6969_v56  ;;  %v7441_v17 = vpop.f32.mrf.mxu0  ;;  %v10207_v52 = vor.u32 %v3028_v41, %v3024_v6  ;;  %v10209_v23 = vor.u32 %v3035_v49, %v3031_v15  ;;  %v6827_v22 = vcombine.low %v2111_v55, %v11769_v32  ;;  %v7325_v45 = vpop.f32.mrf.mxu1  ;;  %v3520_v56 = vor.u32 %v3519_v50, %v3515_v40  ;;  %v10220_v6 = vld [vmem:[#allocation2 + $0xc4] sm:$0x1]  ;;  %v10228_v55 = vld [vmem:[#allocation2 + $0xcc] sm:$0x1] }
 0x247   : > { %v7442_v61 = vadd.f32 %v7441_v17, %v7440_v24  ;;  %v3522_v1 = vshrl.u32 %v10183_v43, 16  ;;  %v3526_v54 = vrot.slane %v3524_v21, 1  ;;  %1310 = vst [vmem:[#allocation2 + $0xec] sm:$0x1] %v1309_v18  ;;  %v11770_v40 = vshll.u32 %v9839_v5, 16 }
 0x248   : > { %v7443_v49 = vpop.f32.mrf.mxu0  ;;  %v7326_v24 = vpop.f32.mrf.mxu1  ;;  %v3045_v15 = vshrl.u32 %v9857_v34, 16  ;;  %v10233_v17 = vld [vmem:[#allocation2 + $0x12c] sm:$0x1]  ;;  %v11772_v59 = vcombine.low %v10048_v9, %v10068_v19  ;;  %v3529_v13 = vshrl.u32 %v10190_v16, 16  ;;  %v3533_v32 = vrot.slane %v3531_v37, 1 }
 0x249   : > { %v3042_v50 = vrot.slane %v11770_v40, 1  ;;  %11771 = vst [vmem:[#allocation51_spill] sm:$0xff] %v10233_v17  ;;  %v7327_v43 = vadd.f32 %v7326_v24, %v7325_v45  ;;  %v11773_v41 = vshll.u32 %v9857_v34, 16  ;;  %v3232_v18 = vrot.slane %v6827_v22, 1  ;;  %v10247_v9 = vld [vmem:[#allocation2 + $0x134] sm:$0x1] }
 0x24a   : > { %5212 = vmatmul.mubr.bf16.gmra.mxu1 %v11772_v59  ;;  %v7444_v21 = vpop.f32.mrf.mxu0  ;;  %v10243_v5 = vcombine.low %v10216_v62, %v10220_v6  ;;  %v7328_v40 = vpop.f32.mrf.mxu1  ;;  %11774 = vst [vmem:[#allocation60_spill] sm:$0xff] %v10247_v9  ;;  %v6978_v19 = vcombine.low %v3513_v20, %v3520_v56  ;;  %v10251_v16 = vcombine.low %v10218_v10, %v10228_v55  ;;  %v11776_v22 = vshll.u32 %v10138_v12, 16  ;;  %v2113_v24 = vld [vmem:[#allocation2 + $0xb0] sm:$0xe] }
 0x24b   : > { %v3049_v63 = vrot.slane %v11773_v41, 1  ;;  %5219 = vmatprep.mubr.bf16.mxu1 %v6967_v36  ;;  %v7445_v57 = vadd.f32 %v7444_v21, %v7443_v49  ;;  %v10245_v29 = vor.u32 %v3042_v50, %v3038_v35  ;;  %v10253_v37 = vadd.f32 %v7439_v30, %v7327_v43  ;;  %v2112_v30 = vld [vmem:[#allocation2 + $0xa8] sm:$0xe]  ;;  %v10279_v43 = vld [vmem:[#allocation2 + $0xd0] sm:$0xf] }
 0x24c   : > { %v7446_v34 = vpop.f32.mrf.mxu0  ;;  %v10259_v45 = vrot.slane %v11776_v22, 1  ;;  %v10261_v41 = vrot.slane %v3103_v60, 1  ;;  %v10265_v49 = vcombine.low %v9859_v2, %v10233_v17  ;;  %v3527_v20 = vor.u32 %v3526_v54, %v3522_v1  ;;  %v7329_v56 = vpop.f32.mrf.mxu1  ;;  %v10281_v21 = vld [vmem:[#allocation2 + $0xd4] sm:$0x1]  ;;  %v2115_v17 = vld [vmem:[#allocation2 + $0xc0] sm:$0xe] }
 0x24d   : > { %11775 = vst [vmem:[#allocation61_spill] sm:$0xff] %v10253_v37  ;;  %v10255_v36 = vor.u32 %v3049_v63, %v3045_v15  ;;  %5381 = vmatmul.mubr.bf16.gmra.mxu0 %v6968_v51  ;;  %v3534_v35 = vor.u32 %v3533_v32, %v3529_v13  ;;  %v7330_v50 = vadd.f32 %v7329_v56, %v7328_v40  ;;  %v3052_v59 = vshrl.u32 %v9880_v3, 16  ;;  %v8335_v56 = vld [vmem:[#allocation2 + $0xb4] sm:$0x1] }
 0x24e   : > { %5388 = vmatprep.mubr.bf16.mxu0 %v6978_v19  ;;  %v7447_v63 = vpop.f32.mrf.mxu0  ;;  %v10272_v60 = vcombine.low %v9861_v38, %v10247_v9  ;;  %v6976_v2 = vcombine.low %v10214_v27, %v3232_v18  ;;  %v3538_v51 = vshll.u32 %v10243_v5, 16  ;;  %v7331_v1 = vpop.f32.mrf.mxu1  ;;  %v6977_v13 = vcombine.low %v10116_v47, %v10130_v26  ;;  %v8334_v27 = vld [vmem:[#allocation2 + $0xac] sm:$0x1] }
 0x24f   : > { %v7448_v54 = vadd.f32 %v7447_v63, %v7446_v34  ;;  %v3545_v32 = vshll.u32 %v10251_v16, 16  ;;  %v10283_v40 = vadd.f32 %v7442_v61, %v7330_v50  ;;  %v11778_v38 = vshll.u32 %v9880_v3, 16  ;;  %v10287_v34 = vld [vmem:[#allocation2 + $0xd8] sm:$0xf]  ;;  %v10289_v63 = vld [vmem:[#allocation2 + $0xdc] sm:$0x1] }
 0x250   : > { %v7449_v19 = vpop.f32.mrf.mxu0  ;;  %v6828_v18 = vcombine.low %v2112_v30, %v8334_v27  ;;  %v6829_v15 = vcombine.low %v2113_v24, %v8335_v56  ;;  %v7332_v47 = vpop.f32.mrf.mxu1  ;;  %v3059_v26 = vshrl.u32 %v9894_v48, 16  ;;  %v11779_v37 = vshll.u32 %v9894_v48, 16  ;;  %v2114_v30 = vld [vmem:[#allocation2 + $0xb8] sm:$0xe] }
 0x251   : > { %11777 = vst [vmem:[#allocation52_spill] sm:$0xff] %v10283_v40  ;;  %v3056_v22 = vrot.slane %v11778_v38, 1  ;;  %v11780_v61 = vcombine.low %v10089_v25, %v10101_v33  ;;  %v6987_v3 = vcombine.low %v3527_v20, %v3534_v35  ;;  %v3536_v50 = vshrl.u32 %v10243_v5, 16 }
 0x252   : > { %v3063_v9 = vrot.slane %v11779_v37, 1  ;;  %v7333_v38 = vadd.f32 %v7332_v47, %v7331_v1  ;;  %v7450_v24 = vpop.f32.mrf.mxu0  ;;  %v3540_v56 = vrot.slane %v3538_v51, 1  ;;  %v3543_v40 = vshrl.u32 %v10251_v16, 16  ;;  %v7334_v37 = vpop.f32.mrf.mxu1  ;;  %v8336_v1 = vld [vmem:[#allocation2 + $0xbc] sm:$0x1] }
 0x253   : > { %5220 = vmatmul.mubr.bf16.gmra.mxu1 %v11780_v61  ;;  %v10298_v27 = vor.u32 %v3056_v22, %v3052_v59  ;;  %v10303_v48 = vcombine.low %v10279_v43, %v10281_v21  ;;  %v7451_v25 = vadd.f32 %v7450_v24, %v7449_v19  ;;  %v3547_v33 = vrot.slane %v3545_v32, 1  ;;  %v8337_v32 = vld [vmem:[#allocation2 + $0xc4] sm:$0x1] }
 0x254   : > { %5227 = vmatprep.mubr.bf16.mxu1 %v6976_v2  ;;  %v10307_v5 = vcombine.low %v10287_v34, %v10289_v63  ;;  %v10309_v20 = vadd.f32 %v7445_v57, %v7333_v38  ;;  %v7452_v35 = vpop.f32.mrf.mxu0  ;;  %v10311_v59 = vor.u32 %v3063_v9, %v3059_v26  ;;  %v3233_v16 = vrot.slane %v6828_v18, 1  ;;  %v7335_v47 = vpop.f32.mrf.mxu1  ;;  %v10319_v18 = vld [vmem:[#allocation2 + $0xe0] sm:$0xf] }
 0x255   : > { %5389 = vmatmul.mubr.bf16.gmra.mxu0 %v6977_v13  ;;  %v3234_v51 = vrot.slane %v6829_v15, 1  ;;  %v6830_v22 = vcombine.low %v2114_v30, %v8336_v1  ;;  %v3110_v19 = vshll.u32 %v10265_v49, 16  ;;  %v6831_v61 = vcombine.low %v2115_v17, %v8337_v32  ;;  %v10321_v15 = vld [vmem:[#allocation2 + $0xe4] sm:$0x1]  ;;  %v10324_v17 = vld [vmem:[#allocation2 + $0xe8] sm:$0xf] }
 0x256   : > { %11781 = vst [vmem:[#allocation53_spill] sm:$0xff] %v10309_v20  ;;  %11782 = vst [vmem:[#allocation66_spill] sm:$0xff] %v10311_v59  ;;  %5396 = vmatprep.mubr.bf16.mxu0 %v6987_v3  ;;  %v7336_v24 = vadd.f32 %v7335_v47, %v7334_v37  ;;  %v7453_v28 = vpop.f32.mrf.mxu0  ;;  %v3117_v9 = vshll.u32 %v10272_v60, 16  ;;  %v3541_v26 = vor.u32 %v3540_v56, %v3536_v50  ;;  %v3552_v13 = vshll.u32 %v10303_v48, 16  ;;  %v7337_v30 = vpop.f32.mrf.mxu1  ;;  %v10326_v37 = vld [vmem:[#allocation2 + $0xec] sm:$0x1] }
 0x257   : > { %v7454_v38 = vadd.f32 %v7453_v28, %v7452_v35  ;;  %v3548_v1 = vor.u32 %v3547_v33, %v3543_v40  ;;  %v3559_v3 = vshll.u32 %v10307_v5, 16  ;;  %v11784_v32 = vshrl.u32 %v9956_v4, 16  ;;  %v11785_v50 = vld [vmem:[#allocation55_spill] sm:$0xff]  ;;  %v11786_v33 = vld [vmem:[#allocation49_spill] sm:$0xff] }
 0x258   : > { %v10328_v47 = vadd.f32 %v7448_v54, %v7336_v24  ;;  %v6985_v57 = vcombine.low %v3233_v16, %v3234_v51  ;;  %v6986_v2 = vcombine.low %v10162_v14, %v10164_v31  ;;  %v10337_v20 = vrot.slane %v6830_v22, 1  ;;  %v2116_v28 = vld [vmem:[#allocation2 + $0xc8] sm:$0xe]  ;;  %v7338_v40 = vpop.f32.mrf.mxu1  ;;  %v2117_v16 = vld [vmem:[#allocation2 + $0xd0] sm:$0xe] }
 0x259   : > { %v10333_v56 = vor.u32 %v11785_v50, %v11784_v32  ;;  %v11787_v35 = vshrl.u32 %v11786_v33, 16  ;;  %v11788_v54 = vcombine.low %v10123_v42, %v10132_v11  ;;  %v3236_v4 = vrot.slane %v6831_v61, 1  ;;  %v8338_v61 = vld [vmem:[#allocation2 + $0xcc] sm:$0x1]  ;;  %v10370_v42 = vld [vmem:[#allocation2 + $0x104] sm:$0x1] }
 0x25a   : > { %11783 = vst [vmem:[#allocation57_spill] sm:$0xff] %v10328_v47  ;;  %v3550_v24 = vshrl.u32 %v10303_v48, 16  ;;  %v10350_v14 = vcombine.low %v10319_v18, %v10321_v15  ;;  %v7339_v31 = vadd.f32 %v7338_v40, %v7337_v30  ;;  %v3554_v51 = vrot.slane %v3552_v13, 1  ;;  %v7340_v32 = vpop.f32.mrf.mxu1  ;;  %v8339_v30 = vld [vmem:[#allocation2 + $0xd4] sm:$0x1] }
 0x25b   : > { %v10342_v59 = vor.u32 %v10052_v44, %v11787_v35  ;;  %5228 = vmatmul.mubr.bf16.gmra.mxu1 %v11788_v54  ;;  %v3557_v22 = vshrl.u32 %v10307_v5, 16  ;;  %v10355_v44 = vcombine.low %v10324_v17, %v10326_v37  ;;  %v6996_v11 = vcombine.low %v3541_v26, %v3548_v1  ;;  %v10361_v35 = vld [vmem:[#allocation2 + $0x100] sm:$0xf]  ;;  %v10368_v54 = vld [vmem:[#allocation2 + $0x108] sm:$0xf] }
 0x25c   : > { %5235 = vmatprep.mubr.bf16.mxu1 %v6985_v57  ;;  %v3561_v48 = vrot.slane %v3559_v3, 1  ;;  %v6832_v50 = vcombine.low %v2116_v28, %v8338_v61  ;;  %v10359_v33 = vadd.f32 %v7451_v25, %v7339_v31  ;;  %v10363_v57 = vrot.slane %v3110_v19, 1  ;;  %v7341_v26 = vpop.f32.mrf.mxu1  ;;  %v10373_v1 = vld [vmem:[#allocation2 + $0x10c] sm:$0x1]  ;;  %v11790_v19 = vld [vmem:[#allocation46_spill] sm:$0xff] }
 0x25d   : > { %v10366_v13 = vrot.slane %v3117_v9, 1  ;;  %5397 = vmatmul.mubr.bf16.gmra.mxu0 %v6986_v2  ;;  %v6833_v40 = vcombine.low %v2117_v16, %v8339_v30  ;;  %v3566_v25 = vshll.u32 %v10350_v14, 16  ;;  %v7342_v3 = vadd.f32 %v7341_v26, %v7340_v32  ;;  %v11792_v9 = vld [vmem:[#allocation56_spill] sm:$0xff]  ;;  %v1216_v61 = vld [vmem:[#allocation2 + $0x138] sm:$0x1] }
 0x25e   : > { %11789 = vst [vmem:[#allocation59_spill] sm:$0xff] %v10359_v33  ;;  %5404 = vmatprep.mubr.bf16.mxu0 %v6996_v11  ;;  %v11791_v28 = vshrl.u32 %v11790_v19, 16  ;;  %v11793_v2 = vshrl.u32 %v11792_v9, 16  ;;  %v6994_v30 = vcombine.low %v10337_v20, %v3236_v4  ;;  %v6995_v11 = vcombine.low %v10216_v62, %v10218_v10  ;;  %v10389_v32 = vld [vmem:[#allocation2 + $0x110] sm:$0xf] }
 0x25f   : > { %v3555_v5 = vor.u32 %v3554_v51, %v3550_v24  ;;  %v3573_v33 = vshll.u32 %v10355_v44, 16  ;;  %v1338_v26 = vld [vmem:[#allocation2 + $0x13c] sm:$0x1]  ;;  %v3562_v19 = vor.u32 %v3561_v48, %v3557_v22  ;;  %v10395_v9 = vld [vmem:[#allocation2 + $0x118] sm:$0xf]  ;;  %v10401_v4 = vrot.slane %v6833_v40, 1 }
 0x260   : > { %v10378_v31 = vor.u32 %v10134_v46, %v11791_v28  ;;  %v10383_v16 = vor.u32 %v10166_v58, %v11793_v2  ;;  %v10391_v46 = vrot.slane %v6832_v50, 1  ;;  %v10393_v28 = vadd.f32 %v7454_v38, %v7342_v3  ;;  %v10397_v58 = vld [vmem:[#allocation2 + $0x114] sm:$0x1]  ;;  %v7455_v62 = vpop.f32.mrf.mxu0  ;;  %v10408_v51 = vld [vmem:[#allocation2 + $0x11c] sm:$0x1] }
 0x261   : > { %v3564_v10 = vshrl.u32 %v10350_v14, 16  ;;  %v10406_v24 = vcombine.low %v10361_v35, %v10370_v42  ;;  %v1217_v38 = vsel %vm9043_vm4, 0, %v1216_v61  ;;  %v11795_v22 = vcombine.low %v10168_v53, %v10180_v0  ;;  %v10416_v40 = vld [vmem:[#allocation2 + $0xd8] sm:$0xe]  ;;  %v7343_v61 = vpop.f32.mrf.mxu1 }
 0x262   : > { %11794 = vst [vmem:[#allocation62_spill] sm:$0xff] %v10393_v28  ;;  %v3568_v48 = vrot.slane %v3566_v25, 1  ;;  %v3571_v50 = vshrl.u32 %v10355_v44, 16  ;;  %v10420_v14 = vcombine.low %v10368_v54, %v10373_v1  ;;  %1218 = vst [vmem:[#allocation2 + $0x138] sm:$0x1] %v1217_v38  ;;  %v1339_v3 = vsel %vm9050_vm5, 0, %v1338_v26  ;;  %v7456_v2 = vpop.f32.mrf.mxu0 }
 0x263   : > { %5236 = vmatmul.mubr.bf16.gmra.mxu1 %v11795_v22  ;;  %v3575_v8 = vrot.slane %v3573_v33, 1  ;;  %v10426_v53 = vcombine.low %v10389_v32, %v10397_v58  ;;  %1340 = vst [vmem:[#allocation2 + $0x13c] sm:$0x1] %v1339_v3  ;;  %v11796_v0 = vshrl.u32 %v10138_v12, 16  ;;  %v11797_v25 = vshrl.u32 %v10142_v7, 16 }
 0x264   : > { %5243 = vmatprep.mubr.bf16.mxu1 %v6994_v30  ;;  %v7005_v39 = vcombine.low %v3555_v5, %v3562_v19  ;;  %v7004_v33 = vcombine.low %v10279_v43, %v10287_v34  ;;  %v2119_v30 = vld [vmem:[#allocation2 + $0xe0] sm:$0xe]  ;;  %v7457_v26 = vadd.f32 %v7456_v2, %v7455_v62  ;;  %v10442_v22 = vcombine.low %v10395_v9, %v10408_v51  ;;  %v7458_v3 = vpop.f32.mrf.mxu0  ;;  %v7344_v5 = vpop.f32.mrf.mxu1  ;;  %v2120_v43 = vld [vmem:[#allocation2 + $0xf8] sm:$0xe] }
 0x265   : > { %v10431_v44 = vor.u32 %v10259_v45, %v11796_v0  ;;  %v10436_v38 = vor.u32 %v10261_v41, %v11797_v25  ;;  %5405 = vmatmul.mubr.bf16.gmra.mxu0 %v6995_v11  ;;  %v7003_v12 = vcombine.low %v10391_v46, %v10401_v4  ;;  %v8340_v45 = vld [vmem:[#allocation2 + $0xdc] sm:$0x1]  ;;  %v3580_v41 = vshll.u32 %v10406_v24, 16  ;;  %v10451_v62 = vld [vmem:[#allocation2 + $0x120] sm:$0xf] }
 0x266   : > { %v6834_v7 = vcombine.low %v10416_v40, %v8340_v45  ;;  %5412 = vmatprep.mubr.bf16.mxu0 %v7005_v39  ;;  %v3587_v34 = vshll.u32 %v10420_v14, 16  ;;  %v7345_v19 = vadd.f32 %v7344_v5, %v7343_v61  ;;  %v10453_v11 = vld [vmem:[#allocation2 + $0x124] sm:$0x1]  ;;  %v11799_v46 = vshrl.u32 %v10265_v49, 16  ;;  %v2121_v61 = vld [vmem:[#allocation2 + $0x100] sm:$0xe]  ;;  %v7459_v5 = vpop.f32.mrf.mxu0  ;;  %v7346_v20 = vpop.f32.mrf.mxu1 }
 0x267   : > { %11798 = vst [vmem:[#allocation65_spill] sm:$0xff] %v10436_v38  ;;  %v11801_v40 = vshrl.u32 %v10272_v60, 16  ;;  %v3569_v0 = vor.u32 %v3568_v48, %v3564_v10  ;;  %v3576_v25 = vor.u32 %v3575_v8, %v3571_v50  ;;  %v8341_v39 = vld [vmem:[#allocation2 + $0xe4] sm:$0x1]  ;;  %v3594_v28 = vshll.u32 %v10426_v53, 16 }
 0x268   : > { %v10458_v4 = vor.u32 %v10363_v57, %v11799_v46  ;;  %v6835_v45 = vcombine.low %v2119_v30, %v8341_v39  ;;  %v10466_v47 = vadd.f32 %v7457_v26, %v7345_v19  ;;  %v7460_v49 = vadd.f32 %v7459_v5, %v7458_v3  ;;  %v10469_v46 = vld [vmem:[#allocation2 + $0x128] sm:$0xf]  ;;  %v10471_v60 = vld [vmem:[#allocation2 + $0x12c] sm:$0x1]  ;;  %v7461_v8 = vpop.f32.mrf.mxu0  ;;  %v7347_v30 = vpop.f32.mrf.mxu1  ;;  %v11806_v5 = vld [vmem:[#allocation54_spill] sm:$0xff] }
 0x269   : > { %v10463_v2 = vor.u32 %v10366_v13, %v11801_v40  ;;  %v3601_v57 = vshll.u32 %v10442_v22, 16  ;;  %v3578_v10 = vshrl.u32 %v10406_v24, 16  ;;  %v3582_v48 = vrot.slane %v3580_v41, 1  ;;  %v11805_v40 = vld [vmem:[#allocation71_spill] sm:$0xff] }
 0x26a   : > { %11800 = vst [vmem:[#allocation67_spill] sm:$0xff] %v10458_v4  ;;  %11803 = vst [vmem:[#allocation68_spill] sm:$0xff] %v10466_v47  ;;  %v3585_v50 = vshrl.u32 %v10420_v14, 16  ;;  %v10479_v26 = vcombine.low %v10451_v62, %v10453_v11  ;;  %v11804_v3 = vcombine.low %v10207_v52, %v10209_v23  ;;  %v3589_v19 = vrot.slane %v3587_v34, 1  ;;  %v2122_v4 = vld [vmem:[#allocation2 + $0x108] sm:$0xe] }
 0x26b   : > { %11802 = vst [vmem:[#allocation63_spill] sm:$0xff] %v10463_v2  ;;  %v6836_v39 = vcombine.low %v2120_v43, %v11805_v40  ;;  %v6837_v13 = vcombine.low %v2121_v61, %v11806_v5  ;;  %v7348_v47 = vadd.f32 %v7347_v30, %v7346_v20  ;;  %v7014_v24 = vcombine.low %v3569_v0, %v3576_v25  ;;  %v7462_v2 = vpop.f32.mrf.mxu0  ;;  %v2123_v25 = vld [vmem:[#allocation2 + $0x110] sm:$0xe]  ;;  %v11807_v30 = vld [vmem:[#allocation50_spill] sm:$0xff] }
 0x26c   : > { %5244 = vmatmul.mubr.bf16.gmra.mxu1 %v11804_v3  ;;  %v3592_v14 = vshrl.u32 %v10426_v53, 16  ;;  %v3599_v41 = vshrl.u32 %v10442_v22, 16  ;;  %v10490_v38 = vcombine.low %v10469_v46, %v10471_v60  ;;  %v3596_v52 = vrot.slane %v3594_v28, 1 }
 0x26d   : > { %5251 = vmatprep.mubr.bf16.mxu1 %v7003_v12  ;;  %v3603_v23 = vrot.slane %v3601_v57, 1  ;;  %v10492_v34 = vadd.f32 %v7460_v49, %v7348_v47  ;;  %v7463_v43 = vadd.f32 %v7462_v2, %v7461_v8  ;;  %5413 = vmatmul.mubr.bf16.gmra.mxu0 %v7004_v33  ;;  %v3239_v61 = vrot.slane %v6834_v7, 1  ;;  %v7349_v12 = vpop.f32.mrf.mxu1  ;;  %v7464_v0 = vpop.f32.mrf.mxu0  ;;  %v11808_v8 = vld [vmem:[#allocation48_spill] sm:$0xff] }
 0x26e   : > { %v3240_v20 = vrot.slane %v6835_v45, 1  ;;  %v3608_v53 = vshll.u32 %v10479_v26, 16  ;;  %5420 = vmatprep.mubr.bf16.mxu0 %v7014_v24  ;;  %v3583_v22 = vor.u32 %v3582_v48, %v3578_v10  ;;  %v6838_v3 = vcombine.low %v2122_v4, %v11807_v30  ;;  %v2212_v30 = vld [vmem:[#allocation2 + $0xc8] sm:$0xe] }
 0x26f   : > { %v3590_v40 = vor.u32 %v3589_v19, %v3585_v50  ;;  %v10496_v5 = vrot.slane %v6836_v39, 1  ;;  %v10498_v28 = vrot.slane %v6837_v13, 1  ;;  %v7350_v47 = vpop.f32.mrf.mxu1  ;;  %v7465_v49 = vpop.f32.mrf.mxu0  ;;  %v3615_v33 = vshll.u32 %v10490_v38, 16  ;;  %v10507_v19 = vld [vmem:[#allocation2 + $0x130] sm:$0xf] }
 0x270   : > { %v10501_v7 = vor.u32 %v3596_v52, %v3592_v14  ;;  %v10503_v2 = vor.u32 %v3603_v23, %v3599_v41  ;;  %v7351_v45 = vadd.f32 %v7350_v47, %v7349_v12  ;;  %v7012_v57 = vcombine.low %v3239_v61, %v3240_v20  ;;  %v10509_v13 = vld [vmem:[#allocation2 + $0x134] sm:$0x1]  ;;  %v2211_v39 = vld [vmem:[#allocation2 + $0xc0] sm:$0xe]  ;;  %v2213_v61 = vld [vmem:[#allocation2 + $0xd0] sm:$0xe] }
 0x271   : > { %v6839_v10 = vcombine.low %v2123_v25, %v11808_v8  ;;  %v7352_v48 = vpop.f32.mrf.mxu1  ;;  %v7467_v24 = vpop.f32.mrf.mxu0  ;;  %v3606_v4 = vshrl.u32 %v10479_v26, 16  ;;  %v3610_v50 = vrot.slane %v3608_v53, 1  ;;  %v11809_v14 = vcombine.low %v10245_v29, %v10255_v36  ;;  %v2214_v20 = vld [vmem:[#allocation2 + $0xd8] sm:$0xe] }
 0x272   : > { %v7013_v41 = vcombine.low %v10319_v18, %v10324_v17  ;;  %v10518_v23 = vrot.slane %v6838_v3, 1  ;;  %v10520_v26 = vadd.f32 %v7463_v43, %v7351_v45  ;;  %v7023_v12 = vcombine.low %v3583_v22, %v3590_v40  ;;  %v8286_v18 = vld [vmem:[#allocation9 + $0x70] ss:$8 sps:$4 sm:$0xff]   ;;  %v8288_v17 = vld [vmem:[#allocation9 + $0x74] ss:$8 sps:$4 sm:$0xff]  }
 0x273   : > { %v7021_v53 = vcombine.low %v10496_v5, %v10498_v28  ;;  %v3613_v29 = vshrl.u32 %v10490_v38, 16  ;;  %v3617_v36 = vrot.slane %v3615_v33, 1  ;;  %v7353_v25 = vpop.f32.mrf.mxu1  ;;  %v7468_v47 = vpop.f32.mrf.mxu0  ;;  %v7032_v3 = vcombine.low %v10501_v7, %v10503_v2  ;;  %v10531_v38 = vld [vmem:[#allocation2 + $0x138] sm:$0xf]  ;;  %v10533_v28 = vld [vmem:[#allocation2 + $0x13c] sm:$0x1]  ;;  %5978 = vmatprep.subr.bf16.mxu0 %v8288_v17 }
 0x274   : > { %5252 = vmatmul.mubr.bf16.gmra.mxu1 %v11809_v14  ;;  %v7466_v8 = vadd.f32 %v7465_v49, %v7464_v0  ;;  %v7354_v43 = vadd.f32 %v7353_v25, %v7352_v48  ;;  %v7469_v45 = vadd.f32 %v7468_v47, %v7467_v24  ;;  %v2215_v14 = vld [vmem:[#allocation2 + $0xe0] sm:$0xe]  ;;  %v10529_v22 = vor.u32 %v3610_v50, %v3606_v4  ;;  %v2216_v24 = vld [vmem:[#allocation2 + $0xe8] sm:$0xe]  ;;  %v2219_v25 = vld [vmem:[#allocation2 + $0x110] sm:$0xe] }
 0x275   : > { %5259 = vmatprep.mubr.bf16.mxu1 %v7012_v57  ;;  %5421 = vmatmul.mubr.bf16.gmra.mxu0 %v7013_v41  ;;  %v10527_v57 = vrot.slane %v6839_v10, 1  ;;  %v7355_v40 = vpop.f32.mrf.mxu1  ;;  %v7470_v5 = vpop.f32.mrf.mxu0  ;;  %v6894_v33 = vcombine.low %v2211_v39, %v10220_v6  ;;  %v6895_v52 = vcombine.low %v2212_v30, %v10228_v55  ;;  %v10541_v49 = vcombine.low %v10507_v19, %v10509_v13  ;;  %v2217_v4 = vld [vmem:[#allocation2 + $0x100] sm:$0xe] }
 0x276   : > { %5428 = vmatprep.mubr.bf16.mxu0 %v7023_v12  ;;  %v10537_v0 = vadd.f32 %v7466_v8, %v7354_v43  ;;  %v6896_v10 = vcombine.low %v2213_v61, %v10281_v21  ;;  %v6897_v48 = vcombine.low %v2214_v20, %v10289_v63  ;;  %v10545_v50 = vor.u32 %v3617_v36, %v3613_v29  ;;  %v2218_v12 = vld [vmem:[#allocation2 + $0x108] sm:$0xe]  ;;  %v2220_v20 = vld [vmem:[#allocation2 + $0x118] sm:$0xe]  ;;  %v2221_v29 = vld [vmem:[#allocation2 + $0x120] sm:$0xe] }
 0x277   : > { %v7356_v41 = vpop.f32.mrf.mxu1  ;;  %v7471_v6 = vpop.f32.mrf.mxu0  ;;  %v10547_v39 = vrot.slane %v6894_v33, 1  ;;  %v10549_v55 = vrot.slane %v6895_v52, 1  ;;  %v6898_v30 = vcombine.low %v2215_v14, %v10321_v15  ;;  %5979 = vmatpush1.bf16.msra.mxu0 %v8286_v18  ;;  %v10554_v21 = vcombine.low %v10531_v38, %v10533_v28  ;;  %v11810_v43 = vld [vmem:[#allocation66_spill] sm:$0xff] }
 0x278   : > { %v7357_v47 = vadd.f32 %v7356_v41, %v7355_v40  ;;  %v10556_v63 = vrot.slane %v6896_v10, 1  ;;  %v10558_v61 = vrot.slane %v6897_v48, 1  ;;  %v7472_v36 = vadd.f32 %v7471_v6, %v7470_v5  ;;  %v2222_v48 = vld [vmem:[#allocation2 + $0x128] sm:$0xe] }
 0x279   : > { %v7358_v17 = vpop.f32.mrf.mxu1  ;;  %v7473_v52 = vpop.f32.mrf.mxu0  ;;  %v6997_v15 = vcombine.low %v10547_v39, %v10549_v55  ;;  %v6899_v8 = vcombine.low %v2216_v24, %v10326_v37  ;;  %v10563_v18 = vrot.slane %v6898_v30, 1  ;;  %v11811_v14 = vcombine.low %v10298_v27, %v11810_v43  ;;  %v2223_v30 = vld [vmem:[#allocation2 + $0x130] sm:$0xe] }
 0x27a   : > { %v10568_v40 = vadd.f32 %v7469_v45, %v7357_v47  ;;  %v7006_v33 = vcombine.low %v10556_v63, %v10558_v61  ;;  %v6900_v5 = vcombine.low %v2217_v4, %v10370_v42  ;;  %v6901_v10 = vcombine.low %v2218_v12, %v10373_v1  ;;  %v2224_v1 = vld [vmem:[#allocation2 + $0x138] sm:$0xe] }
 0x27b   : > { %v7359_v41 = vpop.f32.mrf.mxu1  ;;  %v7474_v6 = vpop.f32.mrf.mxu0  ;;  %v10574_v37 = vrot.slane %v6899_v8, 1  ;;  %v6902_v24 = vcombine.low %v2219_v25, %v10397_v58  ;;  %v6903_v27 = vcombine.low %v2220_v20, %v10408_v51  ;;  %v6904_v45 = vcombine.low %v2221_v29, %v10453_v11  ;;  %v2124_v20 = vld [vmem:[#allocation2 + $0x118] sm:$0xe]  ;;  %v2125_v29 = vld [vmem:[#allocation2 + $0x120] sm:$0xe] }
 0x27c   : > { %5260 = vmatmul.mubr.bf16.gmra.mxu1 %v11811_v14  ;;  %v7360_v47 = vadd.f32 %v7359_v41, %v7358_v17  ;;  %v7475_v43 = vadd.f32 %v7474_v6, %v7473_v52  ;;  %v10579_v14 = vrot.slane %v6900_v5, 1  ;;  %v10581_v42 = vrot.slane %v6901_v10, 1  ;;  %v11813_v41 = vld [vmem:[#allocation58_spill] sm:$0xff]  ;;  %v11814_v6 = vld [vmem:[#allocation47_spill] sm:$0xff] }
 0x27d   : > { %5267 = vmatprep.mubr.bf16.mxu1 %v7021_v53  ;;  %v11812_v53 = vcombine.low %v10361_v35, %v10368_v54  ;;  %v7361_v4 = vpop.f32.mrf.mxu1  ;;  %v7476_v12 = vpop.f32.mrf.mxu0  ;;  %v7015_v58 = vcombine.low %v10563_v18, %v10574_v37  ;;  %v10588_v51 = vrot.slane %v6902_v24, 1  ;;  %v10590_v11 = vrot.slane %v6903_v27, 1 }
 0x27e   : > { %v6905_v25 = vcombine.low %v2222_v48, %v10471_v60  ;;  %v10596_v17 = vadd.f32 %v7472_v36, %v7360_v47  ;;  %v7024_v35 = vcombine.low %v10579_v14, %v10581_v42  ;;  %v10600_v54 = vrot.slane %v6904_v45, 1 }
 0x27f   : > { %5429 = vmatmul.mubr.bf16.gmra.mxu0 %v11812_v53  ;;  %v6906_v52 = vcombine.low %v2223_v30, %v10509_v13  ;;  %v3622_v8 = vshll.u32 %v10541_v49, 16  ;;  %v7362_v5 = vpop.f32.mrf.mxu1  ;;  %v6907_v7 = vcombine.low %v2224_v1, %v10533_v28  ;;  %v7030_v2 = vcombine.low %v10518_v23, %v10527_v57  ;;  %v7477_v27 = vpop.f32.mrf.mxu0 }
 0x280   : > { %5436 = vmatprep.mubr.bf16.mxu0 %v7032_v3  ;;  %v10606_v10 = vrot.slane %v6905_v25, 1  ;;  %v3629_v3 = vshll.u32 %v10554_v21, 16  ;;  %v7363_v36 = vadd.f32 %v7362_v5, %v7361_v4  ;;  %v6840_v13 = vcombine.low %v2124_v20, %v11813_v41 }
 0x281   : > { %v10612_v48 = vrot.slane %v6906_v52, 1  ;;  %v6841_v24 = vcombine.low %v2125_v29, %v11814_v6  ;;  %v7364_v45 = vpop.f32.mrf.mxu1  ;;  %v10618_v47 = vrot.slane %v6907_v7, 1  ;;  %v11815_v28 = vcombine.low %v10333_v56, %v10342_v59  ;;  %v8289_v29 = vld [vmem:[#allocation9 + $0x60] ss:$8 sps:$4 sm:$0xff]   ;;  %v8291_v52 = vld [vmem:[#allocation9 + $0x64] ss:$8 sps:$4 sm:$0xff]  }
 0x282   : > { %v7031_v23 = vcombine.low %v10389_v32, %v10395_v9  ;;  %v10625_v57 = vadd.f32 %v7475_v43, %v7363_v36  ;;  %v7041_v1 = vcombine.low %v10529_v22, %v10545_v50  ;;  %v3620_v53 = vshrl.u32 %v10541_v49, 16  ;;  %5980 = vmatprep.subr.bf16.mxu0 %v8291_v52  ;;  %v2126_v22 = vld [vmem:[#allocation2 + $0x128] sm:$0xe]  ;;  %v2127_v50 = vld [vmem:[#allocation2 + $0x130] sm:$0xe] }
 0x283   : > { %v3624_v4 = vrot.slane %v3622_v8, 1  ;;  %v7365_v25 = vpop.f32.mrf.mxu1  ;;  %v3627_v59 = vshrl.u32 %v10554_v21, 16  ;;  %v3631_v56 = vrot.slane %v3629_v3, 1  ;;  %v7478_v5 = vadd.f32 %v7477_v27, %v7476_v12  ;;  %5981 = vmatpush1.bf16.msra.mxu0 %v8289_v29  ;;  %v11816_v36 = vld [vmem:[#allocation51_spill] sm:$0xff]  ;;  %v11817_v6 = vld [vmem:[#allocation60_spill] sm:$0xff] }
 0x284   : > { %5268 = vmatmul.mubr.bf16.gmra.mxu1 %v11815_v28  ;;  %v7366_v32 = vadd.f32 %v7365_v25, %v7364_v45  ;;  %v3245_v9 = vrot.slane %v6840_v13, 1  ;;  %v3246_v43 = vrot.slane %v6841_v24, 1  ;;  %v6842_v41 = vcombine.low %v2126_v22, %v11816_v36  ;;  %v2194_v25 = vld [vmem:[#allocation2 + $0x18] sm:$0xe] }
 0x285   : > { %5275 = vmatprep.mubr.bf16.mxu1 %v7030_v2  ;;  %v3625_v8 = vor.u32 %v3624_v4, %v3620_v53  ;;  %v3632_v7 = vor.u32 %v3631_v56, %v3627_v59  ;;  %v6843_v21 = vcombine.low %v2127_v50, %v11817_v6  ;;  %v11818_v12 = vcombine.low %v10378_v31, %v10383_v16  ;;  %v2193_v4 = vld [vmem:[#allocation2 + $0x10] sm:$0xe]  ;;  %v8342_v31 = vld [vmem:[#allocation2 + $0x14] sm:$0x1] }
 0x286   : > { %v10633_v49 = vadd.f32 %v7478_v5, %v7366_v32  ;;  %v7039_v2 = vcombine.low %v3245_v9, %v3246_v43  ;;  %v7040_v13 = vcombine.low %v10451_v62, %v10469_v46  ;;  %v3247_v28 = vrot.slane %v6842_v41, 1  ;;  %v11819_v5 = vld [vmem:[#allocation65_spill] sm:$0xff] }
 0x287   : > { %5437 = vmatmul.mubr.bf16.gmra.mxu0 %v7031_v23  ;;  %v7479_v3 = vpop.f32.mrf.mxu0  ;;  %v7050_v27 = vcombine.low %v3625_v8, %v3632_v7  ;;  %v3248_v23 = vrot.slane %v6843_v21, 1  ;;  %v6876_v16 = vcombine.low %v2193_v4, %v8342_v31  ;;  %v11820_v62 = vcombine.low %v10431_v44, %v11819_v5  ;;  %v8343_v9 = vld [vmem:[#allocation2 + $0x1c] sm:$0x1]  ;;  %v8292_v50 = vld [vmem:[#allocation9 + $0x50] ss:$8 sps:$4 sm:$0xff]  }
 0x288   : > { %5444 = vmatprep.mubr.bf16.mxu0 %v7041_v1  ;;  %v7049_v32 = vcombine.low %v10507_v19, %v10531_v38  ;;  %v6877_v43 = vcombine.low %v2194_v25, %v8343_v9  ;;  %v8294_v8 = vld [vmem:[#allocation9 + $0x54] ss:$8 sps:$4 sm:$0xff]   ;;  %v2197_v21 = vld [vmem:[#allocation2 + $0x30] sm:$0xe]  ;;  %v11823_v25 = vld [vmem:[#allocation63_spill] sm:$0xff]  ;;  %v11830_v42 = vcombine.low %v10600_v54, %v10606_v10 }
 0x289   : > { %v7480_v24 = vpop.f32.mrf.mxu0  ;;  %v7048_v59 = vcombine.low %v3247_v28, %v3248_v23  ;;  %v3729_v36 = vrot.slane %v6876_v16, 1  ;;  %5982 = vmatprep.subr.bf16.mxu0 %v8294_v8  ;;  %v8344_v28 = vld [vmem:[#allocation2 + $0x34] sm:$0x1]  ;;  %v2200_v5 = vld [vmem:[#allocation2 + $0x48] sm:$0xe] }
 0x28a   : > { %v7481_v45 = vadd.f32 %v7480_v24, %v7479_v3  ;;  %v2198_v3 = vld [vmem:[#allocation2 + $0x38] sm:$0xe]  ;;  %5983 = vmatpush1.bf16.msra.mxu0 %v8292_v50  ;;  %v3730_v19 = vrot.slane %v6877_v43, 1  ;;  %v6880_v23 = vcombine.low %v2197_v21, %v8344_v28  ;;  %v2201_v50 = vld [vmem:[#allocation2 + $0x60] sm:$0xe] }
 0x28b   : > { %v7482_v1 = vpop.f32.mrf.mxu0  ;;  %v7367_v53 = vpop.f32.mrf.mxu1  ;;  %v2202_v8 = vld [vmem:[#allocation2 + $0x68] sm:$0xe]  ;;  %v8348_v28 = vld [vmem:[#allocation2 + $0x64] sm:$0x1] }
 0x28c   : > { %5276 = vmatmul.mubr.bf16.gmra.mxu1 %v11818_v12  ;;  %v11821_v12 = vmov 0  }
 0x28d   : > { %5283 = vmatprep.mubr.bf16.mxu1 %v7039_v2  ;;  %v7368_v29 = vpop.f32.mrf.mxu1  ;;  %v7483_v52 = vpop.f32.mrf.mxu0 }
 0x28e   : > { %v7369_v56 = vadd.f32 %v7368_v29, %v7367_v53  ;;  %v7484_v41 = vadd.f32 %v7483_v52, %v7482_v1  ;;  %v8345_v53 = vld [vmem:[#allocation2 + $0x3c] sm:$0x1]  ;;  %v11822_v1 = vld [vmem:[#allocation67_spill] sm:$0xff] }
 0x28f   : > { %5445 = vmatmul.mubr.bf16.gmra.mxu0 %v7040_v13  ;;  %v7370_v46 = vpop.f32.mrf.mxu1  ;;  %v6881_v4 = vcombine.low %v2198_v3, %v8345_v53  ;;  %v11824_v29 = vcombine.low %v11822_v1, %v11823_v25  ;;  %v8349_v53 = vld [vmem:[#allocation2 + $0x6c] sm:$0x1]  ;;  %v11826_v1 = vld [vmem:[#allocation70_spill] sm:$0xff] }
 0x290   : > { %5452 = vmatprep.mubr.bf16.mxu0 %v7050_v27  ;;  %v10647_v22 = vadd.f32 %v7481_v45, %v7369_v56  ;;  %v6916_v27 = vcombine.low %v3729_v36, %v3730_v19  ;;  %v2199_v56 = vld [vmem:[#allocation2 + $0x40] sm:$0xe]  ;;  %v8346_v36 = vld [vmem:[#allocation2 + $0x44] sm:$0x1] }
 0x291   : > { %v7371_v2 = vpop.f32.mrf.mxu1 }
 0x292   : > { %v7485_v7 = vpop.f32.mrf.mxu0  ;;  %v7372_v6 = vadd.f32 %v7371_v2, %v7370_v46  ;;  %v3734_v46 = vrot.slane %v6881_v4, 1  ;;  %v6885_v4 = vcombine.low %v2202_v8, %v8349_v53  ;;  %v2205_v8 = vld [vmem:[#allocation2 + $0x80] sm:$0xe] }
 0x294   : > { %5284 = vmatmul.mubr.bf16.gmra.mxu1 %v11820_v62  ;;  %v7486_v44 = vpop.f32.mrf.mxu0  ;;  %v10650_v38 = vadd.f32 %v7484_v41, %v7372_v6  ;;  %v3733_v62 = vrot.slane %v6880_v23, 1  ;;  %v6882_v41 = vcombine.low %v2199_v56, %v8346_v36  ;;  %v8347_v6 = vld [vmem:[#allocation2 + $0x4c] sm:$0x1]  ;;  %v6884_v23 = vcombine.low %v2201_v50, %v8348_v28 }
 0x295   : > { %5291 = vmatprep.mubr.bf16.mxu1 %v7048_v59  ;;  %v7487_v13 = vadd.f32 %v7486_v44, %v7485_v7  ;;  %v6883_v44 = vcombine.low %v2200_v5, %v8347_v6 }
 0x296   : > { %v7488_v24 = vpop.f32.mrf.mxu0 }
 0x297   : > { %5453 = vmatmul.mubr.bf16.gmra.mxu0 %v7049_v32  ;;  %v7373_v45 = vpop.f32.mrf.mxu1 }
 0x298   : > { %6010 = vmatprep.mubr.bf16.mxu0 %v11821_v12  ;;  %v7489_v52 = vpop.f32.mrf.mxu0 }
 0x299   : > { %v7374_v59 = vpop.f32.mrf.mxu1  ;;  %v7490_v21 = vadd.f32 %v7489_v52, %v7488_v24  ;;  %v8295_v24 = vld [vmem:[#allocation9 + $0x40] ss:$8 sps:$4 sm:$0xff]   ;;  %v8297_v52 = vld [vmem:[#allocation9 + $0x44] ss:$8 sps:$4 sm:$0xff]  }
 0x29a   : > { %v7375_v31 = vadd.f32 %v7374_v59, %v7373_v45  ;;  %v7491_v16 = vpop.f32.mrf.mxu0  ;;  %5984 = vmatprep.subr.bf16.mxu0 %v8297_v52 }
 0x29b   : > { %v7376_v32 = vpop.f32.mrf.mxu1  ;;  %5985 = vmatpush1.bf16.msra.mxu0 %v8295_v24 }
 0x29c   : > { %5292 = vmatmul.mubr.bf16.gmra.mxu1 %v11824_v29  ;;  %v10655_v9 = vadd.f32 %v7487_v13, %v7375_v31  ;;  %v7492_v43 = vpop.f32.mrf.mxu0  ;;  %v11825_v13 = vld [vmem:[#allocation69_spill] sm:$0xff]  ;;  %v3735_v31 = vrot.slane %v6882_v41, 1  ;;  %v8350_v41 = vld [vmem:[#allocation2 + $0x74] sm:$0x1] }
 0x29d   : > { %7837 = vmatprep.mubr.bf16.mxu1 %v6916_v27  ;;  %v7377_v7 = vpop.f32.mrf.mxu1  ;;  %v7493_v2 = vadd.f32 %v7492_v43, %v7491_v16  ;;  %v6934_v27 = vcombine.low %v3733_v62, %v3734_v46  ;;  %v11827_v25 = vcombine.low %v11825_v13, %v11826_v1  ;;  %v3736_v16 = vrot.slane %v6883_v44, 1  ;;  %v2203_v62 = vld [vmem:[#allocation2 + $0x70] sm:$0xe]  ;;  %v2204_v46 = vld [vmem:[#allocation2 + $0x78] sm:$0xe] }
 0x29e   : > { %v7378_v3 = vadd.f32 %v7377_v7, %v7376_v32  ;;  %v7494_v19 = vpop.f32.mrf.mxu0  ;;  %v3737_v32 = vrot.slane %v6884_v23, 1  ;;  %v3738_v43 = vrot.slane %v6885_v4, 1  ;;  %v2206_v7 = vld [vmem:[#allocation2 + $0x88] sm:$0xe]  ;;  %v6886_v44 = vcombine.low %v2203_v62, %v8350_v41  ;;  %v8352_v1 = vld [vmem:[#allocation2 + $0x84] sm:$0x1] }
 0x29f   : > { %v7379_v45 = vpop.f32.mrf.mxu1  ;;  %v6888_v23 = vcombine.low %v2205_v8, %v8352_v1  ;;  %v8353_v4 = vld [vmem:[#allocation2 + $0x8c] sm:$0x1]  ;;  %v2209_v8 = vld [vmem:[#allocation2 + $0xb0] sm:$0xe]  ;;  %v8356_v1 = vld [vmem:[#allocation2 + $0xb4] sm:$0x1] }
 0x2a0   : > { %v10660_v29 = vadd.f32 %v7490_v21, %v7378_v3  ;;  %v7495_v59 = vpop.f32.mrf.mxu0  ;;  %v6943_v21 = vcombine.low %v3735_v31, %v3736_v16  ;;  %v3739_v31 = vrot.slane %v6886_v44, 1 }
 0x2a1   : > { %v7380_v56 = vpop.f32.mrf.mxu1  ;;  %v7496_v53 = vadd.f32 %v7495_v59, %v7494_v19  ;;  %v2207_v59 = vld [vmem:[#allocation2 + $0x90] sm:$0xe] }
 0x2a2   : > { %v7381_v5 = vadd.f32 %v7380_v56, %v7379_v45  ;;  %v6952_v56 = vcombine.low %v3737_v32, %v3738_v43  ;;  %v2210_v32 = vld [vmem:[#allocation2 + $0xb8] sm:$0xe] }
 0x2a3   : > { %v7382_v50 = vpop.f32.mrf.mxu1 }
 0x2a4   : > { %7838 = vmatmul.mubr.bf16.vlgmr.msra.gmra.mxu1 %v11827_v25  ;;  %v10662_v36 = vadd.f32 %v7493_v2, %v7381_v5  ;;  %v7497_v6 = vpop.f32.mrf.mxu0  ;;  %v6889_v25 = vcombine.low %v2206_v7, %v8353_v4  ;;  %v3741_v5 = vrot.slane %v6888_v23, 1  ;;  %v6892_v23 = vcombine.low %v2209_v8, %v8356_v1 }
 0x2a5   : > { %7841 = vmatprep.mubr.bf16.mxu1 %v6934_v27  ;;  %v7383_v3 = vpop.f32.mrf.mxu1  ;;  %v8351_v27 = vld [vmem:[#allocation2 + $0x7c] sm:$0x1] }
 0x2a6   : > { %v6887_v28 = vcombine.low %v2204_v46, %v8351_v27  ;;  %v7384_v45 = vadd.f32 %v7383_v3, %v7382_v50  ;;  %v7498_v13 = vpop.f32.mrf.mxu0  ;;  %v3742_v62 = vrot.slane %v6889_v25, 1  ;;  %v2208_v3 = vld [vmem:[#allocation2 + $0x98] sm:$0xe] }
 0x2a7   : > { %v7499_v20 = vadd.f32 %v7498_v13, %v7497_v6  ;;  %v8354_v6 = vld [vmem:[#allocation2 + $0x94] sm:$0x1] }
 0x2a8   : > { %v10664_v2 = vadd.f32 %v7496_v53, %v7384_v45  ;;  %v7385_v52 = vpop.f32.mrf.mxu1  ;;  %v7500_v24 = vpop.f32.mrf.mxu0  ;;  %v3740_v16 = vrot.slane %v6887_v28, 1  ;;  %v6970_v53 = vcombine.low %v3741_v5, %v3742_v62  ;;  %v8355_v28 = vld [vmem:[#allocation2 + $0x9c] sm:$0x1] }
 0x2a9   : > { %v6891_v13 = vcombine.low %v2208_v3, %v8355_v28 }
 0x2aa   : > { %v7386_v46 = vpop.f32.mrf.mxu1  ;;  %v7501_v19 = vpop.f32.mrf.mxu0  ;;  %v6961_v27 = vcombine.low %v3739_v31, %v3740_v16  ;;  %v8300_v31 = vld [vmem:[#allocation9 + $0x34] ss:$8 sps:$4 sm:$0xff]  }
 0x2ab   : > { %v7387_v50 = vadd.f32 %v7386_v46, %v7385_v52  ;;  %v7502_v4 = vadd.f32 %v7501_v19, %v7500_v24  ;;  %v8357_v52 = vld [vmem:[#allocation2 + $0xbc] sm:$0x1]  ;;  %v3744_v5 = vrot.slane %v6891_v13, 1  ;;  %5986 = vmatprep.subr.bf16.mxu0 %v8300_v31 }
 0x2ac   : > { %7842 = vmatmul.mubr.bf16.gmra.mxu1 %v6943_v21  ;;  %v7388_v41 = vpop.f32.mrf.mxu1  ;;  %v7503_v7 = vpop.f32.mrf.mxu0  ;;  %v6890_v21 = vcombine.low %v2207_v59, %v8354_v6  ;;  %v6893_v46 = vcombine.low %v2210_v32, %v8357_v52  ;;  %v8298_v59 = vld [vmem:[#allocation9 + $0x30] ss:$8 sps:$4 sm:$0xff]  }
 0x2ad   : > { %7845 = vmatprep.mubr.bf16.mxu1 %v6952_v56  ;;  %v10666_v43 = vadd.f32 %v7499_v20, %v7387_v50  ;;  %v3745_v50 = vrot.slane %v6892_v23, 1  ;;  %5987 = vmatpush1.bf16.msra.mxu0 %v8298_v59  ;;  %v8303_v23 = vld [vmem:[#allocation9 + $0x24] ss:$8 sps:$4 sm:$0xff]  }
 0x2ae   : > { %v7389_v45 = vpop.f32.mrf.mxu1  ;;  %v7504_v44 = vpop.f32.mrf.mxu0  ;;  %v3743_v16 = vrot.slane %v6890_v21, 1  ;;  %v3746_v3 = vrot.slane %v6893_v46, 1  ;;  %5988 = vmatprep.subr.bf16.mxu0 %v8303_v23 }
 0x2af   : > { %v7390_v25 = vadd.f32 %v7389_v45, %v7388_v41  ;;  %v7505_v56 = vadd.f32 %v7504_v44, %v7503_v7 }
 0x2b0   : > { %v7391_v30 = vpop.f32.mrf.mxu1  ;;  %v7506_v60 = vpop.f32.mrf.mxu0  ;;  %v6979_v41 = vcombine.low %v3743_v16, %v3744_v5  ;;  %v6988_v32 = vcombine.low %v3745_v50, %v3746_v3 }
 0x2b1   : > { %v10668_v20 = vadd.f32 %v7502_v4, %v7390_v25  ;;  %v10680_v4 = vld [vmem:[#allocation11 + $0x30] ss:$8 sps:$4 sm:$0xff]  }
 0x2b2   : > { %v7392_v62 = vpop.f32.mrf.mxu1  ;;  %v7507_v24 = vpop.f32.mrf.mxu0  ;;  %11828 = vst [vmem:[#allocation64_spill] sm:$0xff] %v10680_v4 }
 0x2b3   : > { %v7393_v6 = vadd.f32 %v7392_v62, %v7391_v30 }
 0x2b4   : > { %7846 = vmatmul.mubr.bf16.gmra.mxu1 %v6961_v27  ;;  %v7394_v19 = vpop.f32.mrf.mxu1  ;;  %v7508_v27 = vadd.f32 %v7507_v24, %v7506_v60  ;;  %v8301_v60 = vld [vmem:[#allocation9 + $0x20] ss:$8 sps:$4 sm:$0xff]  }
 0x2b5   : > { %7849 = vmatprep.mubr.bf16.mxu1 %v6970_v53  ;;  %v10670_v8 = vadd.f32 %v7505_v56, %v7393_v6  ;;  %v10682_v56 = vld [vmem:[#allocation11 + $0x34] ss:$8 sps:$4 sm:$0xff]   ;;  %5989 = vmatpush1.bf16.msra.mxu0 %v8301_v60 }
 0x2b6   : > { %v7395_v7 = vpop.f32.mrf.mxu1  ;;  %7869 = vmatprep.subr.bf16.mxu1 %v10682_v56 }
 0x2b7   : > { %v7396_v53 = vadd.f32 %v7395_v7, %v7394_v19  ;;  %7873 = vmatpush1.bf16.msra.mxu1 %v10680_v4 }
 0x2b9   : > { %v10672_v45 = vadd.f32 %v7508_v27, %v7396_v53 }
 0x2bc   : > { %7850 = vmatmul.mubr.bf16.gmra.mxu1 %v6979_v41 }
 0x2bd   : > { %7853 = vmatprep.mubr.bf16.mxu1 %v6988_v32  ;;  %v7509_v21 = vpop.f32.mrf.mxu0 }
 0x2bf   : > { %v7510_v44 = vpop.f32.mrf.mxu0 }
 0x2c0   : > { %v7511_v28 = vadd.f32 %v7510_v44, %v7509_v21  ;;  %v8307_v21 = vld [vmem:[#allocation9 + $0x10] ss:$8 sps:$4 sm:$0xff]   ;;  %v8309_v44 = vld [vmem:[#allocation9 + $0x14] ss:$8 sps:$4 sm:$0xff]  }
 0x2c1   : > { %v7512_v13 = vpop.f32.mrf.mxu0  ;;  %5990 = vmatprep.subr.bf16.mxu0 %v8309_v44 }
 0x2c2   : > { %v7397_v30 = vpop.f32.mrf.mxu1  ;;  %5991 = vmatpush1.bf16.msra.mxu0 %v8307_v21 }
 0x2c3   : > { %v7513_v1 = vpop.f32.mrf.mxu0 }
 0x2c4   : > { %7854 = vmatmul.mubr.bf16.gmra.mxu1 %v6997_v15  ;;  %v7398_v25 = vpop.f32.mrf.mxu1  ;;  %v7514_v15 = vadd.f32 %v7513_v1, %v7512_v13 }
 0x2c5   : > { %7857 = vmatprep.mubr.bf16.mxu1 %v7006_v33  ;;  %v7399_v52 = vadd.f32 %v7398_v25, %v7397_v30  ;;  %v7515_v46 = vpop.f32.mrf.mxu0  ;;  %v10708_v30 = vld [vmem:[#allocation11 + $0x24] ss:$8 sps:$4 sm:$0xff]  }
 0x2c6   : > { %v7400_v59 = vpop.f32.mrf.mxu1  ;;  %11832 = vst [vmem:[#allocation49_spill] sm:$0xff] %v10708_v30  ;;  %7870 = vmatprep.subr.bf16.mxu1 %v10708_v30 }
 0x2c7   : > { %v10685_v39 = vadd.f32 %v7511_v28, %v7399_v52  ;;  %v7516_v55 = vpop.f32.mrf.mxu0  ;;  %v10706_v28 = vld [vmem:[#allocation11 + $0x20] ss:$8 sps:$4 sm:$0xff]  }
 0x2c8   : > { %v7401_v63 = vpop.f32.mrf.mxu1  ;;  %v7517_v61 = vadd.f32 %v7516_v55, %v7515_v46  ;;  %11831 = vst [vmem:[#allocation55_spill] sm:$0xff] %v10706_v28  ;;  %7874 = vmatpush1.bf16.msra.mxu1 %v10706_v28  ;;  %v11833_v55 = vcombine.low %v10612_v48, %v10618_v47 }
 0x2c9   : > { %v7402_v33 = vadd.f32 %v7401_v63, %v7400_v59  ;;  %v7518_v31 = vpop.f32.mrf.mxu0 }
 0x2ca   : > { %v7403_v16 = vpop.f32.mrf.mxu1 }
 0x2cb   : > { %v10691_v5 = vadd.f32 %v7514_v15, %v7402_v33  ;;  %v7519_v62 = vpop.f32.mrf.mxu0 }
 0x2cc   : > { %7858 = vmatmul.mubr.bf16.gmra.mxu1 %v7015_v58  ;;  %v7404_v50 = vpop.f32.mrf.mxu1  ;;  %v7520_v27 = vadd.f32 %v7519_v62, %v7518_v31  ;;  %v11829_v58 = vcombine.low %v10588_v51, %v10590_v11 }
 0x2cd   : > { %7861 = vmatprep.mubr.bf16.mxu1 %v7024_v35  ;;  %v7405_v3 = vadd.f32 %v7404_v50, %v7403_v16  ;;  %v7521_v6 = vpop.f32.mrf.mxu0 }
 0x2ce   : > { %v7406_v24 = vpop.f32.mrf.mxu1 }
 0x2cf   : > { %v10696_v19 = vadd.f32 %v7517_v61, %v7405_v3  ;;  %v7522_v41 = vpop.f32.mrf.mxu0 }
 0x2d0   : > { %v7407_v7 = vpop.f32.mrf.mxu1  ;;  %v7523_v32 = vadd.f32 %v7522_v41, %v7521_v6 }
 0x2d1   : > { %v7408_v53 = vadd.f32 %v7407_v7, %v7406_v24  ;;  %v7524_v18 = vpop.f32.mrf.mxu0 }
 0x2d2   : > { %v7409_v37 = vpop.f32.mrf.mxu1 }
 0x2d3   : > { %v10701_v14 = vadd.f32 %v7520_v27, %v7408_v53  ;;  %v7525_v35 = vpop.f32.mrf.mxu0 }
 0x2d4   : > { %7862 = vmatmul.mubr.bf16.gmra.mxu1 %v11829_v58  ;;  %v7410_v13 = vpop.f32.mrf.mxu1  ;;  %v7526_v25 = vadd.f32 %v7525_v35, %v7524_v18 }
 0x2d5   : > { %7865 = vmatprep.mubr.bf16.mxu1 %v11830_v42  ;;  %v7411_v1 = vadd.f32 %v7410_v13, %v7409_v37  ;;  %v7527_v60 = vpop.f32.mrf.mxu0  ;;  %v11834_v37 = vld [vmem:[#allocation61_spill] sm:$0xff]  ;;  %v8313_v13 = vld [vmem:[#allocation9] ss:$8 sps:$4 sm:$0xff]  }
 0x2d6   : > { %v7412_v23 = vpop.f32.mrf.mxu1 }
 0x2d7   : > { %v10711_v51 = vadd.f32 %v7523_v32, %v7411_v1  ;;  %v7528_v11 = vpop.f32.mrf.mxu0  ;;  %v8315_v1 = vld [vmem:[#allocation9 + $0x4] ss:$8 sps:$4 sm:$0xff]  }
 0x2d8   : > { %v7413_v54 = vpop.f32.mrf.mxu1  ;;  %v7529_v10 = vadd.f32 %v7528_v11, %v7527_v60  ;;  %v10741_v60 = vld [vmem:[#allocation11 + $0x10] ss:$8 sps:$4 sm:$0xff]   ;;  %v10743_v11 = vld [vmem:[#allocation11 + $0x14] ss:$8 sps:$4 sm:$0xff]   ;;  %5992 = vmatprep.subr.bf16.mxu0 %v8315_v1 }
 0x2d9   : > { %v7414_v52 = vadd.f32 %v7413_v54, %v7412_v23  ;;  %v7530_v46 = vpop.f32.mrf.mxu0  ;;  %11835 = vst [vmem:[#allocation46_spill] sm:$0xff] %v10741_v60  ;;  %11836 = vst [vmem:[#allocation56_spill] sm:$0xff] %v10743_v11  ;;  %v11837_v54 = vld [vmem:[#allocation52_spill] sm:$0xff]  ;;  %7871 = vmatprep.subr.bf16.mxu1 %v10743_v11  ;;  %5993 = vmatpush1.bf16.msra.mxu0 %v8313_v13  ;;  %v11850_v11 = vld [vmem:[#allocation26_spill] sm:$0xff] }
 0x2da   : > { %v7415_v59 = vpop.f32.mrf.mxu1  ;;  %7875 = vmatpush1.bf16.msra.mxu1 %v10741_v60  ;;  %6267 = vmatprep.subr.bf16.mxu0 %v10682_v56 }
 0x2db   : > { %v10717_v63 = vadd.f32 %v7526_v25, %v7414_v52  ;;  %v7531_v61 = vpop.f32.mrf.mxu0 }
 0x2dc   : > { %7866 = vmatmul.mubr.bf16.gmra.mxu1 %v11833_v55  ;;  %v7416_v15 = vpop.f32.mrf.mxu1  ;;  %v7532_v6 = vadd.f32 %v7531_v61, %v7530_v46  ;;  %v11838_v61 = vld [vmem:[#allocation53_spill] sm:$0xff] }
 0x2dd   : > { %6301 = vmatprep.mubr.bf16.mxu1 %v11821_v12  ;;  %v7417_v33 = vadd.f32 %v7416_v15, %v7415_v59  ;;  %v10720_v31 = vpop.f32.mrf.mxu0 }
 0x2de   : > { %v7418_v16 = vpop.f32.mrf.mxu1 }
 0x2df   : > { %v10722_v62 = vadd.f32 %v7529_v10, %v7417_v33  ;;  %v10724_v50 = vpop.f32.mrf.mxu0 }
 0x2e0   : > { %v7419_v3 = vpop.f32.mrf.mxu1 }
 0x2e1   : > { %v7420_v24 = vadd.f32 %v7419_v3, %v7418_v16  ;;  %v10726_v41 = vpop.f32.mrf.mxu0 }
 0x2e2   : > { %v7549_v48 = vpop.f32.mrf.mxu1 }
 0x2e3   : > { %v10728_v47 = vadd.f32 %v7532_v6, %v7420_v24  ;;  %v10730_v7 = vpop.f32.mrf.mxu0 }
 0x2e4   : > { %v7550_v32 = vpop.f32.mrf.mxu1 }
 0x2e5   : > { %v7551_v27 = vadd.f32 %v7550_v32, %v7549_v48  ;;  %v10732_v53 = vpop.f32.mrf.mxu0  ;;  %v11839_v48 = vld [vmem:[#allocation57_spill] sm:$0xff] }
 0x2e6   : > { %v7552_v18 = vpop.f32.mrf.mxu1 }
 0x2e7   : > { %v10735_v58 = vadd.f32 %v7551_v27, %v11834_v37  ;;  %v10737_v42 = vpop.f32.mrf.mxu0 }
 0x2e8   : > { %v7553_v35 = vpop.f32.mrf.mxu1 }
 0x2e9   : > { %v7554_v21 = vadd.f32 %v7553_v35, %v7552_v18  ;;  %v10739_v44 = vpop.f32.mrf.mxu0 }
 0x2ea   : > { %v7555_v23 = vpop.f32.mrf.mxu1 }
 0x2eb   : > { %v10746_v10 = vadd.f32 %v7554_v21, %v11837_v54  ;;  %v10748_v25 = vpop.f32.mrf.mxu0  ;;  %v11840_v21 = vld [vmem:[#allocation59_spill] sm:$0xff] }
 0x2ec   : > { %v7556_v52 = vpop.f32.mrf.mxu1 }
 0x2ed   : > { %v7557_v46 = vadd.f32 %v7556_v52, %v7555_v23  ;;  %v10751_v59 = vpop.f32.mrf.mxu0 }
 0x2ee   : > { %v7558_v55 = vpop.f32.mrf.mxu1 }
 0x2ef   : > { %v10756_v15 = vadd.f32 %v7557_v46, %v11838_v61  ;;  %v10758_v33 = vpop.f32.mrf.mxu0  ;;  %v10776_v46 = vld [vmem:[#allocation11] ss:$8 sps:$4 sm:$0xff]  }
 0x2f0   : > { %v7559_v16 = vpop.f32.mrf.mxu1  ;;  %11842 = vst [vmem:[#allocation54_spill] sm:$0xff] %v10776_v46 }
 0x2f1   : > { %v7560_v3 = vadd.f32 %v7559_v16, %v7558_v55  ;;  %v10760_v6 = vpop.f32.mrf.mxu0  ;;  %v10778_v55 = vld [vmem:[#allocation11 + $0x4] ss:$8 sps:$4 sm:$0xff]  }
 0x2f2   : > { %v7561_v24 = vpop.f32.mrf.mxu1  ;;  %11843 = vst [vmem:[#allocation50_spill] sm:$0xff] %v10778_v55  ;;  %v11844_v16 = vld [vmem:[#allocation62_spill] sm:$0xff]  ;;  %7872 = vmatprep.subr.bf16.mxu1 %v10778_v55 }
 0x2f3   : > { %v10763_v32 = vadd.f32 %v7560_v3, %v11839_v48  ;;  %v10765_v27 = vpop.f32.mrf.mxu0  ;;  %7876 = vmatpush1.bf16.msra.mxu1 %v10776_v46 }
 0x2f4   : > { %v7562_v18 = vpop.f32.mrf.mxu1 }
 0x2f5   : > { %v7563_v37 = vadd.f32 %v7562_v18, %v7561_v24  ;;  %v10767_v35 = vpop.f32.mrf.mxu0 }
 0x2f6   : > { %v7564_v56 = vpop.f32.mrf.mxu1  ;;  %7153 = vmatmul.mubr.msk.bf16.vlgmr.msra.gmra.mxu1 %vm743_vm0, %v11850_v11 }
 0x2f7   : > { %v10770_v13 = vadd.f32 %v7563_v37, %v11840_v21  ;;  %v10772_v1 = vpop.f32.mrf.mxu0  ;;  %v11848_v21 = vld [vmem:[#allocation68_spill] sm:$0xff]  ;;  %6311 = vmatprep.mubr.bf16.mxu1 %v11821_v12 }
 0x2f8   : > { %v7565_v23 = vpop.f32.mrf.mxu1 }
 0x2f9   : > { %11841 = vst [vmem:[#allocation71_spill] sm:$0xff] %v10770_v13  ;;  %v7566_v54 = vadd.f32 %v7565_v23, %v7564_v56  ;;  %v10774_v52 = vpop.f32.mrf.mxu0 }
 0x2fa   : > { %v7567_v61 = vpop.f32.mrf.mxu1 }
 0x2fb   : > { %v10781_v3 = vadd.f32 %v7566_v54, %v11844_v16  ;;  %v10783_v24 = vpop.f32.mrf.mxu0 }
 0x2fc   : > { %11846 = vst [vmem:[#allocation66_spill] sm:$0xff] %v10783_v24  ;;  %v7568_v48 = vpop.f32.mrf.mxu1 }
 0x2fd   : > { %11845 = vst [vmem:[#allocation48_spill] sm:$0xff] %v10781_v3  ;;  %v7569_v18 = vadd.f32 %v7568_v48, %v7567_v61  ;;  %v10787_v37 = vpop.f32.mrf.mxu0 }
 0x2fe   : > { %11847 = vst [vmem:[#allocation58_spill] sm:$0xff] %v10787_v37  ;;  %v7570_v56 = vpop.f32.mrf.mxu1 }
 0x2ff   : > { %v10790_v23 = vadd.f32 %v7569_v18, %v11848_v21  ;;  %v10792_v60 = vpop.f32.mrf.mxu0  ;;  %v10807_v18 = vld [vmem:[%s11529_s10] ss:$0 sm:$0xff] }
 0x300   : > { %11849 = vst [vmem:[#allocation47_spill] sm:$0xff] %v10792_v60  ;;  %v7571_v54 = vpop.f32.mrf.mxu1  ;;  %v11854_v21 = vld [vmem:[#allocation22_spill] sm:$0xff] }
 0x301   : > { %v7572_v16 = vadd.f32 %v7571_v54, %v7570_v56  ;;  %v10797_v55 = vpop.f32.mrf.mxu0  ;;  %v11855_v11 = vunpack.c.l.bf16 %v11854_v21  ;;  %v11856_v56 = vunpack.c.h.bf16 %v11854_v21 }
 0x302   : > { %11851 = vst [vmem:[#allocation51_spill] sm:$0xff] %v10797_v55  ;;  %v7573_v28 = vpop.f32.mrf.mxu1 }
 0x303   : > { %v10800_v61 = vadd.f32 %v7572_v16, %v10492_v34  ;;  %v10802_v48 = vpop.f32.mrf.mxu0  ;;  %v5743_v30 = vmul.f32 %v10807_v18, %v11855_v11  ;;  %v5744_v54 = vmul.f32 %v10807_v18, %v11856_v56  ;;  %v10827_v11 = vld [vmem:[%s11530_s11] ss:$0 sm:$0xff] }
 0x304   : > { %11853 = vst [vmem:[#allocation65_spill] sm:$0xff] %v10802_v48  ;;  %v7574_v46 = vpop.f32.mrf.mxu1 }
 0x305   : > { %11852 = vst [vmem:[#allocation60_spill] sm:$0xff] %v10800_v61  ;;  %v7575_v4 = vadd.f32 %v7574_v46, %v7573_v28  ;;  %v10815_v55 = vpop.f32.mrf.mxu0  ;;  %v5782_v21 = vadd.f32 %v10827_v11, %v5743_v30  ;;  %v5783_v28 = vadd.f32 %v10827_v11, %v5744_v54 }
 0x306   : > { %11857 = vst [vmem:[#allocation67_spill] sm:$0xff] %v10815_v55  ;;  %v7576_v34 = vpop.f32.mrf.mxu1 }
 0x307   : > { %v10818_v16 = vadd.f32 %v7575_v4, %v10520_v26  ;;  %v10820_v48 = vpop.f32.mrf.mxu0  ;;  %v5814_v4 = vmax.f32 %v5782_v21, 0.0 }
 0x308   : > { %11859 = vst [vmem:[#allocation69_spill] sm:$0xff] %v10820_v48  ;;  %v7577_v60 = vpop.f32.mrf.mxu1 }
 0x309   : > { %11858 = vst [vmem:[#allocation63_spill] sm:$0xff] %v10818_v16  ;;  %v7578_v37 = vadd.f32 %v7577_v60, %v7576_v34  ;;  %v10822_v3 = vpop.f32.mrf.mxu0  ;;  %v5815_v16 = vmax.f32 %v5783_v28, 0.0  ;;  %v11862_v34 = vld [vmem:[#allocation23_spill] sm:$0xff] }
 0x30a   : > { %11860 = vst [vmem:[#allocation70_spill] sm:$0xff] %v10822_v3  ;;  %v7579_v46 = vpop.f32.mrf.mxu1  ;;  %v11863_v3 = vunpack.c.l.bf16 %v11862_v34  ;;  %v11864_v55 = vunpack.c.h.bf16 %v11862_v34 }
 0x30b   : > { %v10832_v56 = vadd.f32 %v7578_v37, %v10537_v0  ;;  %v10834_v26 = vpop.f32.mrf.mxu0  ;;  %v5844_v54 = vpack.c.bf16 %v5815_v16, %v5814_v4 }
 0x30c   : > { %v7580_v60 = vpop.f32.mrf.mxu1  ;;  %v5745_v48 = vmul.f32 %v10807_v18, %v11863_v3  ;;  %v5746_v61 = vmul.f32 %v10807_v18, %v11864_v55 }
 0x30d   : > { %11861 = vst [vmem:[#allocation61_spill] sm:$0xff] %v10832_v56  ;;  %v7581_v30 = vadd.f32 %v7580_v60, %v7579_v46  ;;  %v10842_v13 = vpop.f32.mrf.mxu0  ;;  %7154 = vmatmul.mubr.msk.bf16.gmra.mxu1 %vm743_vm0, %v5844_v54 }
 0x30e   : > { %11865 = vst [vmem:[#allocation52_spill] sm:$0xff] %v10842_v13  ;;  %v7582_v24 = vpop.f32.mrf.mxu1  ;;  %6321 = vmatprep.mubr.bf16.mxu1 %v11821_v12  ;;  %v5784_v55 = vadd.f32 %v10827_v11, %v5745_v48  ;;  %v5785_v46 = vadd.f32 %v10827_v11, %v5746_v61 }
 0x30f   : > { %v10845_v0 = vadd.f32 %v7581_v30, %v10568_v40  ;;  %v10847_v37 = vpop.f32.mrf.mxu0 }
 0x310   : > { %11866 = vst [vmem:[#allocation53_spill] sm:$0xff] %v10847_v37  ;;  %v7583_v21 = vpop.f32.mrf.mxu1  ;;  %v5816_v4 = vmax.f32 %v5784_v55, 0.0  ;;  %v5817_v34 = vmax.f32 %v5785_v46, 0.0 }
 0x311   : > { %v7584_v3 = vadd.f32 %v7583_v21, %v7582_v24  ;;  %v10851_v28 = vpop.f32.mrf.mxu0  ;;  %v11869_v24 = vld [vmem:[#allocation24_spill] sm:$0xff] }
 0x312   : > { %11867 = vst [vmem:[#allocation57_spill] sm:$0xff] %v10851_v28  ;;  %v5845_v13 = vpack.c.bf16 %v5817_v34, %v5816_v4  ;;  %v11870_v21 = vunpack.c.l.bf16 %v11869_v24  ;;  %v11871_v48 = vunpack.c.h.bf16 %v11869_v24 }
 0x313   : > { %v7585_v60 = vpop.f32.mrf.mxu1  ;;  %v10856_v16 = vadd.f32 %v7584_v3, %v10596_v17  ;;  %v10858_v40 = vpop.f32.mrf.mxu0 }
 0x314   : > { %11868 = vst [vmem:[#allocation59_spill] sm:$0xff] %v10858_v40  ;;  %v5747_v28 = vmul.f32 %v10807_v18, %v11870_v21  ;;  %v5748_v61 = vmul.f32 %v10807_v18, %v11871_v48 }
 0x315   : > { %v7586_v30 = vpop.f32.mrf.mxu1  ;;  %v10860_v37 = vpop.f32.mrf.mxu0  ;;  %7155 = vmatmul.mubr.msk.bf16.gmra.mxu1 %vm743_vm0, %v5845_v13  ;;  %v11877_v13 = vld [vmem:[#allocation27_spill] sm:$0xff] }
 0x316   : > { %v7587_v54 = vadd.f32 %v7586_v30, %v7585_v60  ;;  %6331 = vmatprep.mubr.bf16.mxu1 %v11821_v12  ;;  %v5786_v34 = vadd.f32 %v10827_v11, %v5747_v28  ;;  %v5787_v30 = vadd.f32 %v10827_v11, %v5748_v61 }
 0x317   : > { %v7588_v56 = vpop.f32.mrf.mxu1  ;;  %v10871_v3 = vpop.f32.mrf.mxu0 }
 0x318   : > { %v10869_v17 = vadd.f32 %v7587_v54, %v10625_v57  ;;  %11873 = vst [vmem:[#allocation68_spill] sm:$0xff] %v10871_v3  ;;  %v5818_v21 = vmax.f32 %v5786_v34, 0.0  ;;  %v5819_v48 = vmax.f32 %v5787_v30, 0.0 }
 0x319   : > { %v7589_v55 = vpop.f32.mrf.mxu1  ;;  %v10875_v60 = vpop.f32.mrf.mxu0 }
 0x31a   : > { %11872 = vst [vmem:[#allocation62_spill] sm:$0xff] %v10869_v17  ;;  %v7590_v46 = vadd.f32 %v7589_v55, %v7588_v56  ;;  %11874 = vst [vmem:[#allocation26_spill] sm:$0xff] %v10875_v60  ;;  %v11878_v17 = vunpack.c.l.bf16 %v11877_v13  ;;  %v11879_v56 = vunpack.c.h.bf16 %v11877_v13  ;;  %v5846_v3 = vpack.c.bf16 %v5819_v48, %v5818_v21 }
 0x31b   : > { %v7591_v4 = vpop.f32.mrf.mxu1  ;;  %v10882_v57 = vpop.f32.mrf.mxu0 }
 0x31c   : > { %v10880_v24 = vadd.f32 %v7590_v46, %v10633_v49  ;;  %11876 = vst [vmem:[#allocation23_spill] sm:$0xff] %v10882_v57  ;;  %v5749_v40 = vmul.f32 %v10807_v18, %v11878_v17  ;;  %v5750_v55 = vmul.f32 %v10807_v18, %v11879_v56 }
 0x31d   : > { %v7592_v54 = vpop.f32.mrf.mxu1  ;;  %v10890_v28 = vpop.f32.mrf.mxu0  ;;  %7156 = vmatmul.mubr.msk.bf16.gmra.mxu1 %vm743_vm0, %v5846_v3 }
 0x31e   : > { %11875 = vst [vmem:[#allocation22_spill] sm:$0xff] %v10880_v24  ;;  %v7593_v60 = vadd.f32 %v7592_v54, %v7591_v4  ;;  %11880 = vst [vmem:[#allocation24_spill] sm:$0xff] %v10890_v28  ;;  %6341 = vmatprep.mubr.bf16.mxu1 %v11821_v12  ;;  %v5788_v17 = vadd.f32 %v10827_v11, %v5749_v40  ;;  %v5789_v13 = vadd.f32 %v10827_v11, %v5750_v55  ;;  %v11886_v24 = vld [vmem:[#allocation29_spill] sm:$0xff] }
 0x31f   : > { %v7594_v61 = vpop.f32.mrf.mxu1  ;;  %v10896_v30 = vpop.f32.mrf.mxu0  ;;  %v11887_v57 = vunpack.c.l.bf16 %v11886_v24 }
 0x320   : > { %v10893_v49 = vadd.f32 %v7593_v60, %v10647_v22  ;;  %11881 = vst [vmem:[#allocation27_spill] sm:$0xff] %v10896_v30  ;;  %v5820_v21 = vmax.f32 %v5788_v17, 0.0  ;;  %v5821_v48 = vmax.f32 %v5789_v13, 0.0  ;;  %v11882_v60 = vld [vmem:[#allocation28_spill] sm:$0xff]  ;;  %v11888_v17 = vunpack.c.h.bf16 %v11886_v24 }
 0x321   : > { %v7595_v46 = vpop.f32.mrf.mxu1  ;;  %v11883_v56 = vunpack.c.l.bf16 %v11882_v60  ;;  %v10910_v30 = vpop.f32.mrf.mxu0 }
 0x322   : > { %v7596_v34 = vadd.f32 %v7595_v46, %v7594_v61  ;;  %v11884_v61 = vunpack.c.h.bf16 %v11882_v60  ;;  %11885 = vst [vmem:[#allocation28_spill] sm:$0xff] %v10910_v30  ;;  %v5847_v28 = vpack.c.bf16 %v5821_v48, %v5820_v21  ;;  %v5754_v13 = vmul.f32 %v10807_v18, %v11888_v17 }
 0x323   : > { %v7597_v4 = vpop.f32.mrf.mxu1  ;;  %v5751_v3 = vmul.f32 %v10807_v18, %v11883_v56  ;;  %v10922_v60 = vpop.f32.mrf.mxu0 }
 0x324   : > { %v10902_v54 = vadd.f32 %v7596_v34, %v10650_v38  ;;  %v5752_v46 = vmul.f32 %v10807_v18, %v11884_v61  ;;  %v5753_v38 = vmul.f32 %v10807_v18, %v11887_v57  ;;  %11889 = vst [vmem:[#allocation29_spill] sm:$0xff] %v10922_v60 }
 0x325   : > { %v7598_v22 = vpop.f32.mrf.mxu1  ;;  %7157 = vmatmul.mubr.msk.bf16.gmra.mxu1 %vm743_vm0, %v5847_v28  ;;  %v5793_v28 = vadd.f32 %v10827_v11, %v5754_v13 }
 0x326   : > { %v7599_v40 = vadd.f32 %v7598_v22, %v7597_v4  ;;  %6351 = vmatprep.mubr.bf16.mxu1 %v11821_v12  ;;  %v5790_v4 = vadd.f32 %v10827_v11, %v5751_v3  ;;  %v5791_v21 = vadd.f32 %v10827_v11, %v5752_v46  ;;  %v5792_v18 = vadd.f32 %v10827_v11, %v5753_v38 }
 0x327   : > { %v7600_v55 = vpop.f32.mrf.mxu1  ;;  %v5825_v3 = vmax.f32 %v5793_v28, 0.0 }
 0x328   : > { %v10916_v34 = vadd.f32 %v7599_v40, %v10655_v9  ;;  %v5822_v48 = vmax.f32 %v5790_v4, 0.0  ;;  %v5823_v24 = vmax.f32 %v5791_v21, 0.0  ;;  %v10932_v40 = vpop.f32.mrf.mxu0  ;;  %v11890_v21 = vld [vmem:[#allocation30_spill] sm:$0xff] }
 0x329   : > { %v7601_v56 = vpop.f32.mrf.mxu1 }
 0x32a   : > { %v7602_v61 = vadd.f32 %v7601_v56, %v7600_v55  ;;  %v5848_v17 = vpack.c.bf16 %v5823_v24, %v5822_v48  ;;  %v5824_v56 = vmax.f32 %v5792_v18, 0.0  ;;  %v11891_v48 = vld [vmem:[#allocation31_spill] sm:$0xff] }
 0x32c   : > { %v7603_v57 = vpop.f32.mrf.mxu1  ;;  %v10928_v9 = vadd.f32 %v7602_v61, %v10660_v29  ;;  %v5849_v29 = vpack.c.bf16 %v5825_v3, %v5824_v56  ;;  %v10938_v61 = vpop.f32.mrf.mxu0 }
 0x32d   : > { %7158 = vmatmul.mubr.msk.bf16.gmra.mxu1 %vm743_vm0, %v5848_v17 }
 0x32e   : > { %v7604_v22 = vpop.f32.mrf.mxu1  ;;  %6361 = vmatprep.mubr.bf16.mxu1 %v11821_v12  ;;  %v10948_v18 = vpop.f32.mrf.mxu0 }
 0x32f   : > { %v7605_v55 = vadd.f32 %v7604_v22, %v7603_v57  ;;  %v5794_v57 = vadd.f32 %v10827_v11, %v11890_v21 }
 0x330   : > { %v7606_v60 = vpop.f32.mrf.mxu1 }
 0x331   : > { %v10935_v46 = vadd.f32 %v7605_v55, %v10662_v36  ;;  %v5795_v36 = vadd.f32 %v10827_v11, %v11891_v48  ;;  %v5826_v28 = vmax.f32 %v5794_v57, 0.0  ;;  %v11895_v48 = vld [vmem:[#allocation33_spill] sm:$0xff] }
 0x332   : > { %v7607_v30 = vpop.f32.mrf.mxu1 }
 0x333   : > { %v7608_v38 = vadd.f32 %v7607_v30, %v7606_v60  ;;  %v5827_v55 = vmax.f32 %v5795_v36, 0.0 }
 0x334   : > { %v7609_v13 = vpop.f32.mrf.mxu1 }
 0x335   : > { %v10942_v4 = vadd.f32 %v7608_v38, %v10664_v2  ;;  %v5850_v60 = vpack.c.bf16 %v5827_v55, %v5826_v28  ;;  %7159 = vmatmul.mubr.msk.bf16.gmra.mxu1 %vm743_vm0, %v5849_v29  ;;  %v10954_v2 = vpop.f32.mrf.mxu0 }
 0x336   : > { %v7610_v24 = vpop.f32.mrf.mxu1  ;;  %6371 = vmatprep.mubr.bf16.mxu1 %v11821_v12 }
 0x337   : > { %v7611_v22 = vadd.f32 %v7610_v24, %v7609_v13  ;;  %v11894_v13 = vld [vmem:[#allocation32_spill] sm:$0xff]  ;;  %v10964_v24 = vpop.f32.mrf.mxu0 }
 0x338   : > { %v7612_v17 = vpop.f32.mrf.mxu1  ;;  %v5796_v57 = vadd.f32 %v10827_v11, %v11894_v13 }
 0x339   : > { %v10951_v30 = vadd.f32 %v7611_v22, %v10666_v43  ;;  %v5797_v43 = vadd.f32 %v10827_v11, %v11895_v48 }
 0x33a   : > { %v7613_v56 = vpop.f32.mrf.mxu1  ;;  %v5828_v29 = vmax.f32 %v5796_v57, 0.0 }
 0x33b   : > { %11892 = vst [vmem:[#allocation30_spill] sm:$0xff] %v10951_v30  ;;  %v7614_v3 = vadd.f32 %v7613_v56, %v7612_v17  ;;  %v5829_v28 = vmax.f32 %v5797_v43, 0.0  ;;  %v11899_v43 = vld [vmem:[#allocation35_spill] sm:$0xff] }
 0x33c   : > { %v7615_v38 = vpop.f32.mrf.mxu1 }
 0x33d   : > { %v10958_v21 = vadd.f32 %v7614_v3, %v10668_v20  ;;  %v5851_v56 = vpack.c.bf16 %v5829_v28, %v5828_v29  ;;  %7160 = vmatmul.mubr.msk.bf16.gmra.mxu1 %vm743_vm0, %v5850_v60  ;;  %v10970_v20 = vpop.f32.mrf.mxu0 }
 0x33e   : > { %v7616_v36 = vpop.f32.mrf.mxu1  ;;  %6381 = vmatprep.mubr.bf16.mxu1 %v11821_v12 }
 0x33f   : > { %11893 = vst [vmem:[#allocation31_spill] sm:$0xff] %v10958_v21  ;;  %v7617_v22 = vadd.f32 %v7616_v36, %v7615_v38  ;;  %v11898_v38 = vld [vmem:[#allocation34_spill] sm:$0xff] }
 0x340   : > { %v7618_v55 = vpop.f32.mrf.mxu1  ;;  %v5798_v57 = vadd.f32 %v10827_v11, %v11898_v38 }
 0x341   : > { %v10967_v17 = vadd.f32 %v7617_v22, %v10670_v8  ;;  %v5799_v8 = vadd.f32 %v10827_v11, %v11899_v43  ;;  %v10980_v22 = vpop.f32.mrf.mxu0 }
 0x342   : > { %v7619_v30 = vpop.f32.mrf.mxu1  ;;  %v5830_v60 = vmax.f32 %v5798_v57, 0.0 }
 0x343   : > { %11896 = vst [vmem:[#allocation32_spill] sm:$0xff] %v10967_v17  ;;  %v7620_v3 = vadd.f32 %v7619_v30, %v7618_v55  ;;  %v5831_v28 = vmax.f32 %v5799_v8, 0.0  ;;  %v11903_v8 = vld [vmem:[#allocation37_spill] sm:$0xff] }
 0x344   : > { %v7621_v13 = vpop.f32.mrf.mxu1 }
 0x345   : > { %v10974_v48 = vadd.f32 %v7620_v3, %v10672_v45  ;;  %v5852_v55 = vpack.c.bf16 %v5831_v28, %v5830_v60  ;;  %7161 = vmatmul.mubr.msk.bf16.gmra.mxu1 %vm743_vm0, %v5851_v56  ;;  %v10986_v45 = vpop.f32.mrf.mxu0 }
 0x346   : > { %v7622_v36 = vpop.f32.mrf.mxu1  ;;  %6391 = vmatprep.mubr.bf16.mxu1 %v11821_v12 }
 0x347   : > { %11897 = vst [vmem:[#allocation33_spill] sm:$0xff] %v10974_v48  ;;  %v7623_v29 = vadd.f32 %v7622_v36, %v7621_v13  ;;  %v11902_v13 = vld [vmem:[#allocation36_spill] sm:$0xff] }
 0x348   : > { %v7624_v21 = vpop.f32.mrf.mxu1  ;;  %v5800_v57 = vadd.f32 %v10827_v11, %v11902_v13 }
 0x349   : > { %v10983_v30 = vadd.f32 %v7623_v29, %v10685_v39  ;;  %v5801_v39 = vadd.f32 %v10827_v11, %v11903_v8  ;;  %v10996_v29 = vpop.f32.mrf.mxu0 }
 0x34a   : > { %v7625_v17 = vpop.f32.mrf.mxu1  ;;  %v5832_v56 = vmax.f32 %v5800_v57, 0.0 }
 0x34b   : > { %11900 = vst [vmem:[#allocation34_spill] sm:$0xff] %v10983_v30  ;;  %v7626_v3 = vadd.f32 %v7625_v17, %v7624_v21  ;;  %v5833_v28 = vmax.f32 %v5801_v39, 0.0  ;;  %v11906_v39 = vld [vmem:[#allocation39_spill] sm:$0xff] }
 0x34c   : > { %v7627_v38 = vpop.f32.mrf.mxu1 }
 0x34d   : > { %v10990_v43 = vadd.f32 %v7626_v3, %v10691_v5  ;;  %v5853_v17 = vpack.c.bf16 %v5833_v28, %v5832_v56  ;;  %7162 = vmatmul.mubr.msk.bf16.gmra.mxu1 %vm743_vm0, %v5852_v55  ;;  %v11002_v5 = vpop.f32.mrf.mxu0 }
 0x34e   : > { %v7628_v36 = vpop.f32.mrf.mxu1  ;;  %6401 = vmatprep.mubr.bf16.mxu1 %v11821_v12 }
 0x34f   : > { %11901 = vst [vmem:[#allocation35_spill] sm:$0xff] %v10990_v43  ;;  %v7629_v60 = vadd.f32 %v7628_v36, %v7627_v38  ;;  %v11905_v38 = vld [vmem:[#allocation38_spill] sm:$0xff] }
 0x350   : > { %v7630_v30 = vpop.f32.mrf.mxu1  ;;  %v5802_v57 = vadd.f32 %v10827_v11, %v11905_v38 }
 0x351   : > { %v10999_v21 = vadd.f32 %v7629_v60, %v10696_v19  ;;  %v5803_v19 = vadd.f32 %v10827_v11, %v11906_v39  ;;  %v11012_v60 = vpop.f32.mrf.mxu0 }
 0x352   : > { %v7631_v48 = vpop.f32.mrf.mxu1  ;;  %v5834_v55 = vmax.f32 %v5802_v57, 0.0 }
 0x353   : > { %11904 = vst [vmem:[#allocation36_spill] sm:$0xff] %v10999_v21  ;;  %v7632_v3 = vadd.f32 %v7631_v48, %v7630_v30  ;;  %v5835_v28 = vmax.f32 %v5803_v19, 0.0  ;;  %v11910_v19 = vld [vmem:[#allocation41_spill] sm:$0xff] }
 0x354   : > { %v7633_v13 = vpop.f32.mrf.mxu1 }
 0x355   : > { %v11006_v8 = vadd.f32 %v7632_v3, %v10701_v14  ;;  %v5854_v30 = vpack.c.bf16 %v5835_v28, %v5834_v55  ;;  %7163 = vmatmul.mubr.msk.bf16.gmra.mxu1 %vm743_vm0, %v5853_v17  ;;  %v11018_v14 = vpop.f32.mrf.mxu0 }
 0x356   : > { %v7634_v36 = vpop.f32.mrf.mxu1  ;;  %6411 = vmatprep.mubr.bf16.mxu1 %v11821_v12 }
 0x357   : > { %v7635_v56 = vadd.f32 %v7634_v36, %v7633_v13  ;;  %v11909_v13 = vld [vmem:[#allocation40_spill] sm:$0xff] }
 0x358   : > { %v7636_v43 = vpop.f32.mrf.mxu1  ;;  %v5804_v57 = vadd.f32 %v10827_v11, %v11909_v13 }
 0x359   : > { %v11015_v48 = vadd.f32 %v7635_v56, %v10711_v51  ;;  %v5805_v51 = vadd.f32 %v10827_v11, %v11910_v19  ;;  %v11028_v56 = vpop.f32.mrf.mxu0 }
 0x35a   : > { %v7637_v21 = vpop.f32.mrf.mxu1  ;;  %v5836_v17 = vmax.f32 %v5804_v57, 0.0  ;;  %v11912_v57 = vld [vmem:[#allocation43_spill] sm:$0xff] }
 0x35b   : > { %11907 = vst [vmem:[#allocation37_spill] sm:$0xff] %v11015_v48  ;;  %v7638_v3 = vadd.f32 %v7637_v21, %v7636_v43  ;;  %v5837_v28 = vmax.f32 %v5805_v51, 0.0  ;;  %v7669_v43 = vadd.f32 %v10737_v42, %v10732_v53  ;;  %v11038_v19 = vpop.f32.mrf.mxu0  ;;  %v7672_v53 = vadd.f32 %v10748_v25, %v10739_v44 }
 0x35c   : > { %v7639_v38 = vpop.f32.mrf.mxu1  ;;  %v5807_v51 = vadd.f32 %v10827_v11, %v11912_v57  ;;  %v7666_v44 = vadd.f32 %v10730_v7, %v10726_v41 }
 0x35d   : > { %v11022_v39 = vadd.f32 %v7638_v3, %v10717_v63  ;;  %v5855_v63 = vpack.c.bf16 %v5837_v28, %v5836_v17  ;;  %v7663_v3 = vadd.f32 %v10724_v50, %v10720_v31  ;;  %7164 = vmatmul.mubr.msk.bf16.gmra.mxu1 %vm743_vm0, %v5854_v30 }
 0x35e   : > { %v7640_v36 = vpop.f32.mrf.mxu1  ;;  %6421 = vmatprep.mubr.bf16.mxu1 %v11821_v12 }
 0x35f   : > { %11908 = vst [vmem:[#allocation38_spill] sm:$0xff] %v11022_v39  ;;  %v7641_v55 = vadd.f32 %v7640_v36, %v7639_v38  ;;  %v5343_v38 = vadd.f32 %v7669_v43, %v10756_v15  ;;  %v5335_v31 = vadd.f32 %v7663_v3, %v10735_v58  ;;  %v11059_v36 = vpop.f32.mrf.mxu0  ;;  %v5346_v58 = vadd.f32 %v7672_v53, %v10763_v32 }
 0x360   : > { %v7642_v48 = vpop.f32.mrf.mxu1  ;;  %v5839_v43 = vmax.f32 %v5807_v51, 0.0  ;;  %v7681_v3 = vadd.f32 %v10772_v1, %v10767_v35 }
 0x361   : > { %v11033_v21 = vadd.f32 %v7641_v55, %v10722_v62  ;;  %v11047_v62 = vld [vmem:[%s11526_s7] ss:$0 sm:$0xff] }
 0x362   : > { %v7643_v13 = vpop.f32.mrf.mxu1  ;;  %v5359_v35 = vadd.f32 %v7681_v3, %v10790_v23  ;;  %v11915_v23 = vld [vmem:[#allocation60_spill] sm:$0xff] }
 0x363   : > { %v7644_v39 = vadd.f32 %v7643_v13, %v7642_v48  ;;  %v11911_v48 = vld [vmem:[#allocation42_spill] sm:$0xff]  ;;  %v5338_v13 = vadd.f32 %v7666_v44, %v10746_v10  ;;  %v7678_v10 = vadd.f32 %v10765_v27, %v10760_v6  ;;  %v11918_v27 = vld [vmem:[#allocation45_spill] sm:$0xff] }
 0x364   : > { %v7839_v42 = vpop.f32.mrf.mxu1  ;;  %v5806_v15 = vadd.f32 %v10827_v11, %v11911_v48 }
 0x365   : > { %v11051_v50 = vadd.f32 %v7644_v39, %v10728_v47  ;;  %v5504_v30 = vadd.f32 %v7839_v42, %v5343_v38  ;;  %v11066_v39 = vld [vmem:[%s11527_s8] ss:$0 sm:$0xff]  ;;  %v7675_v38 = vadd.f32 %v10758_v33, %v10751_v59  ;;  %7165 = vmatmul.mubr.msk.bf16.gmra.mxu1 %vm743_vm0, %v5855_v63  ;;  %v11075_v42 = vpop.f32.mrf.mxu0  ;;  %v11914_v63 = vld [vmem:[#allocation71_spill] sm:$0xff] }
 0x366   : > { %v5495_v25 = vpop.f32.mrf.mxu1  ;;  %v5838_v47 = vmax.f32 %v5806_v15, 0.0  ;;  %6431 = vmatprep.mubr.bf16.mxu1 %v11821_v12  ;;  %v11913_v59 = vld [vmem:[#allocation66_spill] sm:$0xff] }
 0x367   : > { %v5631_v55 = vmul.f32 %v11047_v62, %v5504_v30  ;;  %v5496_v17 = vadd.f32 %v5495_v25, %v5335_v31  ;;  %v7684_v33 = vadd.f32 %v11913_v59, %v10774_v52  ;;  %v5351_v15 = vadd.f32 %v7675_v38, %v11914_v63  ;;  %v11919_v38 = vld [vmem:[#allocation67_spill] sm:$0xff] }
 0x368   : > { %v7840_v28 = vpop.f32.mrf.mxu1  ;;  %v5856_v53 = vpack.c.bf16 %v5839_v43, %v5838_v47  ;;  %v5809_v52 = vadd.f32 %v10827_v11, %v11918_v27  ;;  %v11095_v43 = vpop.f32.mrf.mxu0 }
 0x369   : > { %v5629_v41 = vmul.f32 %v11047_v62, %v5496_v17  ;;  %v5507_v7 = vadd.f32 %v7840_v28, %v5346_v58  ;;  %v5670_v31 = vadd.f32 %v11066_v39, %v5631_v55  ;;  %v5362_v17 = vadd.f32 %v7684_v33, %v11915_v23  ;;  %v11916_v58 = vld [vmem:[#allocation48_spill] sm:$0xff]  ;;  %v11921_v23 = vld [vmem:[#allocation58_spill] sm:$0xff] }
 0x36a   : > { %v5498_v32 = vpop.f32.mrf.mxu1  ;;  %v5354_v47 = vadd.f32 %v7678_v10, %v11916_v58  ;;  %v11917_v28 = vld [vmem:[#allocation44_spill] sm:$0xff]  ;;  %v5841_v59 = vmax.f32 %v5809_v52, 0.0  ;;  %v11922_v58 = vld [vmem:[#allocation47_spill] sm:$0xff] }
 0x36b   : > { %v5632_v30 = vmul.f32 %v11047_v62, %v5507_v7  ;;  %v5499_v48 = vadd.f32 %v5498_v32, %v5338_v13  ;;  %v5668_v57 = vadd.f32 %v11066_v39, %v5629_v41  ;;  %v5808_v6 = vadd.f32 %v10827_v11, %v11917_v28  ;;  %v11920_v32 = vld [vmem:[#allocation69_spill] sm:$0xff] }
 0x36c   : > { %v7843_v1 = vpop.f32.mrf.mxu1  ;;  %v5702_v3 = vmax.f32 %v5670_v31, 0.0  ;;  %v7687_v31 = vadd.f32 %v11922_v58, %v11921_v23 }
 0x36d   : > { %v5671_v51 = vadd.f32 %v11066_v39, %v5632_v30  ;;  %v5630_v44 = vmul.f32 %v11047_v62, %v5499_v48  ;;  %v5520_v25 = vadd.f32 %v7843_v1, %v5359_v35  ;;  %v7693_v30 = vadd.f32 %v11920_v32, %v11919_v38  ;;  %7166 = vmatmul.mubr.msk.bf16.gmra.mxu1 %vm743_vm0, %v5856_v53 }
 0x36e   : > { %v5511_v55 = vpop.f32.mrf.mxu1  ;;  %v5840_v10 = vmax.f32 %v5808_v6, 0.0  ;;  %v5700_v33 = vmax.f32 %v5668_v57, 0.0  ;;  %6441 = vmatprep.mubr.bf16.mxu1 %v11821_v12 }
 0x36f   : > { %v5703_v41 = vmax.f32 %v5671_v51, 0.0  ;;  %v5669_v7 = vadd.f32 %v11066_v39, %v5630_v44  ;;  %v5512_v13 = vadd.f32 %v5511_v55, %v5351_v15  ;;  %v5635_v48 = vmul.f32 %v11047_v62, %v5520_v25  ;;  %v11105_v44 = vpop.f32.mrf.mxu0 }
 0x370   : > { %v7844_v35 = vpop.f32.mrf.mxu1  ;;  %v5857_v15 = vpack.c.bf16 %v5841_v59, %v5840_v10  ;;  %v5375_v6 = vadd.f32 %v7693_v30, %v10845_v0  ;;  %v11926_v0 = vld [vmem:[#allocation65_spill] sm:$0xff] }
 0x371   : > { %v5867_v1 = vpack.c.bf16 %v5703_v41, %v5702_v3  ;;  %v5701_v63 = vmax.f32 %v5669_v7, 0.0  ;;  %v5633_v11 = vmul.f32 %v11047_v62, %v5512_v13  ;;  %v5523_v51 = vadd.f32 %v7844_v35, %v5362_v17  ;;  %v11923_v3 = vld [vmem:[#allocation63_spill] sm:$0xff]  ;;  %v11924_v17 = vld [vmem:[#allocation70_spill] sm:$0xff]  ;;  %v11121_v10 = vpop.f32.mrf.mxu0 }
 0x372   : > { %v5514_v28 = vpop.f32.mrf.mxu1  ;;  %v5674_v57 = vadd.f32 %v11066_v39, %v5635_v48  ;;  %v5367_v41 = vadd.f32 %v7687_v31, %v11923_v3  ;;  %v7696_v7 = vadd.f32 %v10834_v26, %v11924_v17  ;;  %v11927_v48 = vld [vmem:[#allocation64_spill] sm:$0xff]  ;;  %v11932_v17 = vld [vmem:[#allocation53_spill] sm:$0xff] }
 0x373   : > { %v5866_v55 = vpack.c.bf16 %v5701_v63, %v5700_v33  ;;  %v5515_v25 = vadd.f32 %v5514_v28, %v5354_v47  ;;  %v5636_v27 = vmul.f32 %v11047_v62, %v5523_v51  ;;  %v5672_v53 = vadd.f32 %v11066_v39, %v5633_v11  ;;  %v11925_v47 = vld [vmem:[#allocation51_spill] sm:$0xff]  ;;  %v11928_v11 = vld [vmem:[#allocation49_spill] sm:$0xff]  ;;  %v11931_v3 = vld [vmem:[#allocation52_spill] sm:$0xff] }
 0x374   : > { %v7847_v52 = vpop.f32.mrf.mxu1  ;;  %v7690_v32 = vadd.f32 %v11926_v0, %v11925_v47  ;;  %v5378_v63 = vadd.f32 %v7696_v7, %v10856_v16  ;;  %v5706_v23 = vmax.f32 %v5674_v57, 0.0  ;;  %v11929_v51 = vld [vmem:[#allocation61_spill] sm:$0xff]  ;;  %v11933_v7 = vld [vmem:[#allocation55_spill] sm:$0xff]  ;;  %v11137_v57 = vpop.f32.mrf.mxu0 }
 0x375   : > { %v5634_v13 = vmul.f32 %v11047_v62, %v5515_v25  ;;  %v5536_v38 = vadd.f32 %v7847_v52, %v5375_v6  ;;  %6011 = vmatmul.mubr.bf16.vlgmr.msra.gmra.mxu0 %v5866_v55  ;;  %v5675_v30 = vadd.f32 %v11066_v39, %v5636_v27  ;;  %v11930_v55 = vld [vmem:[#allocation68_spill] sm:$0xff]  ;;  %v5704_v6 = vmax.f32 %v5672_v53, 0.0  ;;  %7167 = vmatmul.mubr.msk.bf16.gmra.mxu1 %vm743_vm0, %v5857_v15 }
 0x376   : > { %6268 = vmatpush1.bf16.msra.mxu0 %v11927_v48  ;;  %v5527_v35 = vpop.f32.mrf.mxu1  ;;  %6020 = vmatprep.mubr.bf16.mxu0 %v11821_v12  ;;  %v5370_v28 = vadd.f32 %v7690_v32, %v11929_v51  ;;  %v7705_v25 = vadd.f32 %v11930_v55, %v10860_v37  ;;  %v11934_v32 = vld [vmem:[#allocation56_spill] sm:$0xff]  ;;  %v11936_v48 = vld [vmem:[#allocation23_spill] sm:$0xff] }
 0x377   : > { %v5673_v26 = vadd.f32 %v11066_v39, %v5634_v13  ;;  %v5639_v59 = vmul.f32 %v11047_v62, %v5536_v38  ;;  %v5528_v33 = vadd.f32 %v5527_v35, %v5367_v41  ;;  %6269 = vmatprep.subr.bf16.mxu0 %v11928_v11  ;;  %v5707_v58 = vmax.f32 %v5675_v30, 0.0  ;;  %v11935_v30 = vld [vmem:[#allocation26_spill] sm:$0xff]  ;;  %v11938_v11 = vld [vmem:[#allocation59_spill] sm:$0xff] }
 0x378   : > { %v7848_v31 = vpop.f32.mrf.mxu1  ;;  %v7699_v13 = vadd.f32 %v11932_v17, %v11931_v3  ;;  %v5391_v0 = vadd.f32 %v7705_v25, %v10893_v49  ;;  %v7708_v35 = vadd.f32 %v11936_v48, %v11935_v30  ;;  %v11941_v17 = vld [vmem:[#allocation50_spill] sm:$0xff] }
 0x379   : > { %v5705_v27 = vmax.f32 %v5673_v26, 0.0  ;;  %v5539_v52 = vadd.f32 %v7848_v31, %v5378_v63  ;;  %v11132_v38 = vpack.c.bf16 %v5707_v58, %v5706_v23  ;;  %v5637_v16 = vmul.f32 %v11047_v62, %v5528_v33  ;;  %v11937_v63 = vld [vmem:[#allocation57_spill] sm:$0xff]  ;;  %v11939_v31 = vld [vmem:[#allocation62_spill] sm:$0xff] }
 0x37a   : > { %v5530_v41 = vpop.f32.mrf.mxu1  ;;  %6270 = vmatpush1.bf16.msra.mxu0 %v11933_v7  ;;  %v5678_v37 = vadd.f32 %v11066_v39, %v5639_v59  ;;  %v7702_v23 = vadd.f32 %v11938_v11, %v11937_v63  ;;  %v5383_v59 = vadd.f32 %v7699_v13, %v11939_v31  ;;  %v5394_v25 = vadd.f32 %v7708_v35, %v10902_v54  ;;  %v11945_v63 = vld [vmem:[#allocation27_spill] sm:$0xff] }
 0x37b   : > { %v5868_v47 = vpack.c.bf16 %v5705_v27, %v5704_v6  ;;  %v5640_v53 = vmul.f32 %v11047_v62, %v5539_v52  ;;  %6271 = vmatprep.subr.bf16.mxu0 %v11934_v32  ;;  %v5531_v26 = vadd.f32 %v5530_v41, %v5370_v28  ;;  %v5676_v51 = vadd.f32 %v11066_v39, %v5637_v16  ;;  %v11940_v28 = vld [vmem:[#allocation46_spill] sm:$0xff]  ;;  %v11154_v6 = vpop.f32.mrf.mxu0 }
 0x37c   : > { %v7851_v33 = vpop.f32.mrf.mxu1  ;;  %v5710_v27 = vmax.f32 %v5678_v37, 0.0  ;;  %v11942_v41 = vld [vmem:[#allocation22_spill] sm:$0xff]  ;;  %v7717_v54 = vadd.f32 %v10938_v61, %v10932_v40 }
 0x37d   : > { %v5679_v15 = vadd.f32 %v11066_v39, %v5640_v53  ;;  %v5552_v58 = vadd.f32 %v7851_v33, %v5391_v0  ;;  %6021 = vmatmul.mubr.bf16.gmra.mxu0 %v5867_v1  ;;  %v5638_v49 = vmul.f32 %v11047_v62, %v5531_v26  ;;  %v5386_v7 = vadd.f32 %v7702_v23, %v11942_v41  ;;  %v11943_v26 = vld [vmem:[#allocation54_spill] sm:$0xff]  ;;  %v11944_v33 = vld [vmem:[#allocation24_spill] sm:$0xff] }
 0x37e   : > { %v5543_v55 = vpop.f32.mrf.mxu1  ;;  %6030 = vmatprep.mubr.bf16.mxu0 %v11821_v12  ;;  %6272 = vmatpush1.bf16.msra.mxu0 %v11940_v28  ;;  %v5708_v37 = vmax.f32 %v5676_v51, 0.0  ;;  %v7711_v11 = vadd.f32 %v11945_v63, %v11944_v33  ;;  %v5407_v61 = vadd.f32 %v7717_v54, %v10935_v46  ;;  %v11946_v28 = vld [vmem:[#allocation28_spill] sm:$0xff] }
 0x37f   : > { %v5711_v52 = vmax.f32 %v5679_v15, 0.0  ;;  %v5643_v3 = vmul.f32 %v11047_v62, %v5552_v58  ;;  %v5544_v1 = vadd.f32 %v5543_v55, %v5383_v59  ;;  %6273 = vmatprep.subr.bf16.mxu0 %v11941_v17  ;;  %v5677_v13 = vadd.f32 %v11066_v39, %v5638_v49  ;;  %v11169_v15 = vpop.f32.mrf.mxu0 }
 0x380   : > { %v7852_v16 = vpop.f32.mrf.mxu1 }
 0x381   : > { %v11162_v53 = vpack.c.bf16 %v5711_v52, %v5710_v27  ;;  %v5641_v0 = vmul.f32 %v11047_v62, %v5544_v1  ;;  %v5555_v32 = vadd.f32 %v7852_v16, %v5394_v25  ;;  %v5709_v30 = vmax.f32 %v5677_v13, 0.0  ;;  %v11947_v27 = vld [vmem:[#allocation29_spill] sm:$0xff]  ;;  %v11184_v17 = vpop.f32.mrf.mxu0 }
 0x382   : > { %v5682_v48 = vadd.f32 %v11066_v39, %v5643_v3  ;;  %v5546_v35 = vpop.f32.mrf.mxu1  ;;  %6274 = vmatpush1.bf16.msra.mxu0 %v11943_v26  ;;  %v5399_v25 = vadd.f32 %v7711_v11, %v10916_v34  ;;  %v7714_v52 = vadd.f32 %v11947_v27, %v11946_v28  ;;  %v7720_v3 = vadd.f32 %v10954_v2, %v10948_v18  ;;  %v11950_v28 = vld [vmem:[#allocation33_spill] sm:$0xff] }
 0x383   : > { %v5644_v23 = vmul.f32 %v11047_v62, %v5555_v32  ;;  %v5547_v40 = vadd.f32 %v5546_v35, %v5386_v7  ;;  %v11173_v58 = vpack.c.bf16 %v5709_v30, %v5708_v37  ;;  %v5680_v31 = vadd.f32 %v11066_v39, %v5641_v0  ;;  %v11198_v33 = vpop.f32.mrf.mxu0 }
 0x384   : > { %v7855_v59 = vpop.f32.mrf.mxu1  ;;  %v5714_v46 = vmax.f32 %v5682_v48, 0.0  ;;  %v7729_v34 = vadd.f32 %v11002_v5, %v10996_v29  ;;  %v5410_v54 = vadd.f32 %v7720_v3, %v10942_v4  ;;  %v5402_v18 = vadd.f32 %v7714_v52, %v10928_v9  ;;  %v11948_v9 = vld [vmem:[#allocation32_spill] sm:$0xff] }
 0x385   : > { %v5683_v51 = vadd.f32 %v11066_v39, %v5644_v23  ;;  %v5642_v49 = vmul.f32 %v11047_v62, %v5547_v40  ;;  %v5568_v55 = vadd.f32 %v7855_v59, %v5407_v61  ;;  %6031 = vmatmul.mubr.bf16.gmra.mxu0 %v5868_v47  ;;  %v5712_v7 = vmax.f32 %v5680_v31, 0.0 }
 0x386   : > { %v5559_v1 = vpop.f32.mrf.mxu1  ;;  %6040 = vmatprep.mubr.bf16.mxu0 %v11821_v12  ;;  %v7723_v48 = vadd.f32 %v10970_v20, %v10964_v24  ;;  %v5423_v63 = vadd.f32 %v7729_v34, %v11948_v9  ;;  %v7732_v40 = vadd.f32 %v11018_v14, %v11012_v60  ;;  %v11949_v20 = vld [vmem:[#allocation30_spill] sm:$0xff]  ;;  %v7726_v59 = vadd.f32 %v10986_v45, %v10980_v22  ;;  %v11951_v34 = vld [vmem:[#allocation31_spill] sm:$0xff] }
 0x387   : > { %v5715_v13 = vmax.f32 %v5683_v51, 0.0  ;;  %v5681_v16 = vadd.f32 %v11066_v39, %v5642_v49  ;;  %v5647_v41 = vmul.f32 %v11047_v62, %v5568_v55  ;;  %v5560_v47 = vadd.f32 %v5559_v1, %v5399_v25  ;;  %v7751_v55 = vpop.f32.mrf.mxu0 }
 0x388   : > { %v7856_v0 = vpop.f32.mrf.mxu1  ;;  %v5415_v31 = vadd.f32 %v7723_v48, %v11949_v20  ;;  %v5426_v27 = vadd.f32 %v7732_v40, %v11950_v28 }
 0x389   : > { %v11192_v2 = vpack.c.bf16 %v5715_v13, %v5714_v46  ;;  %v5713_v32 = vmax.f32 %v5681_v16, 0.0  ;;  %v5686_v37 = vadd.f32 %v11066_v39, %v5647_v41  ;;  %v5645_v30 = vmul.f32 %v11047_v62, %v5560_v47 }
 0x38a   : > { %v5571_v35 = vadd.f32 %v7856_v0, %v5410_v54  ;;  %v5562_v26 = vpop.f32.mrf.mxu1  ;;  %v7735_v41 = vadd.f32 %v11038_v19, %v11028_v56  ;;  %v7752_v0 = vpop.f32.mrf.mxu0 }
 0x38b   : > { %v11200_v29 = vpack.c.bf16 %v5713_v32, %v5712_v7  ;;  %v5684_v4 = vadd.f32 %v11066_v39, %v5645_v30  ;;  %v5563_v5 = vadd.f32 %v5562_v26, %v5402_v18  ;;  %v5718_v52 = vmax.f32 %v5686_v37, 0.0  ;;  %v11952_v32 = vld [vmem:[#allocation36_spill] sm:$0xff]  ;;  %v11953_v26 = vld [vmem:[#allocation34_spill] sm:$0xff] }
 0x38c   : > { %v5648_v11 = vmul.f32 %v11047_v62, %v5571_v35  ;;  %v7859_v23 = vpop.f32.mrf.mxu1  ;;  %v5418_v7 = vadd.f32 %v7726_v59, %v11951_v34  ;;  %v7744_v30 = vadd.f32 %v11137_v57, %v11121_v10  ;;  %v7754_v10 = vpop.f32.mrf.mxu0 }
 0x38d   : > { %v5646_v61 = vmul.f32 %v11047_v62, %v5563_v5  ;;  %v5584_v24 = vadd.f32 %v7859_v23, %v5423_v63  ;;  %6041 = vmatmul.mubr.bf16.gmra.mxu0 %v11132_v38  ;;  %v7741_v38 = vadd.f32 %v11105_v44, %v11095_v43  ;;  %v5716_v3 = vmax.f32 %v5684_v4, 0.0 }
 0x38e   : > { %v5687_v51 = vadd.f32 %v11066_v39, %v5648_v11  ;;  %v5575_v49 = vpop.f32.mrf.mxu1  ;;  %6050 = vmatprep.mubr.bf16.mxu0 %v11821_v12  ;;  %v5431_v4 = vadd.f32 %v7735_v41, %v11953_v26  ;;  %v7738_v5 = vadd.f32 %v11075_v42, %v11059_v36  ;;  %v5442_v11 = vadd.f32 %v7744_v30, %v11006_v8  ;;  %v7755_v28 = vpop.f32.mrf.mxu0 }
 0x38f   : > { %v5685_v25 = vadd.f32 %v11066_v39, %v5646_v61  ;;  %v5651_v60 = vmul.f32 %v11047_v62, %v5584_v24  ;;  %v5576_v14 = vadd.f32 %v5575_v49, %v5415_v31  ;;  %v5439_v37 = vadd.f32 %v7741_v38, %v11952_v32  ;;  %v11954_v31 = vld [vmem:[#allocation35_spill] sm:$0xff]  ;;  %v11956_v32 = vld [vmem:[#allocation38_spill] sm:$0xff] }
 0x390   : > { %v5719_v46 = vmax.f32 %v5687_v51, 0.0  ;;  %v7860_v22 = vpop.f32.mrf.mxu1  ;;  %v7753_v24 = vadd.f32 %v7752_v0, %v7751_v55  ;;  %v5434_v59 = vadd.f32 %v7738_v5, %v11954_v31  ;;  %v7747_v49 = vadd.f32 %v11169_v15, %v11154_v6  ;;  %v11955_v6 = vld [vmem:[#allocation37_spill] sm:$0xff] }
 0x391   : > { %v5717_v45 = vmax.f32 %v5685_v25, 0.0  ;;  %v5690_v1 = vadd.f32 %v11066_v39, %v5651_v60  ;;  %v5649_v13 = vmul.f32 %v11047_v62, %v5576_v14  ;;  %v5587_v16 = vadd.f32 %v7860_v22, %v5426_v27 }
 0x392   : > { %v11223_v47 = vpack.c.bf16 %v5719_v46, %v5718_v52  ;;  %v5578_v54 = vpop.f32.mrf.mxu1  ;;  %v5455_v52 = vadd.f32 %v7753_v24, %v11033_v21  ;;  %v5447_v15 = vadd.f32 %v7747_v49, %v11955_v6 }
 0x393   : > { %v11226_v43 = vpack.c.bf16 %v5717_v45, %v5716_v3  ;;  %v5688_v44 = vadd.f32 %v11066_v39, %v5649_v13  ;;  %v5652_v18 = vmul.f32 %v11047_v62, %v5587_v16  ;;  %v5579_v48 = vadd.f32 %v5578_v54, %v5418_v7 }
 0x394   : > { %v7863_v35 = vpop.f32.mrf.mxu1  ;;  %v5722_v57 = vmax.f32 %v5690_v1, 0.0  ;;  %v7750_v13 = vadd.f32 %v11198_v33, %v11184_v17  ;;  %v7756_v16 = vadd.f32 %v7755_v28, %v7754_v10 }
 0x395   : > { %v5691_v56 = vadd.f32 %v11066_v39, %v5652_v18  ;;  %v5600_v19 = vadd.f32 %v7863_v35, %v5439_v37  ;;  %6051 = vmatmul.mubr.bf16.gmra.mxu0 %v11173_v58  ;;  %v5650_v9 = vmul.f32 %v11047_v62, %v5579_v48  ;;  %v5720_v25 = vmax.f32 %v5688_v44, 0.0 }
 0x396   : > { %v5591_v63 = vpop.f32.mrf.mxu1  ;;  %6060 = vmatprep.mubr.bf16.mxu0 %v11821_v12  ;;  %v5458_v18 = vadd.f32 %v7756_v16, %v11051_v50  ;;  %v5450_v37 = vadd.f32 %v7750_v13, %v11956_v32 }
 0x397   : > { %v5723_v23 = vmax.f32 %v5691_v56, 0.0  ;;  %v5655_v40 = vmul.f32 %v11047_v62, %v5600_v19  ;;  %v5592_v61 = vadd.f32 %v5591_v63, %v5431_v4  ;;  %v5689_v58 = vadd.f32 %v11066_v39, %v5650_v9 }
 0x398   : > { %v7864_v20 = vpop.f32.mrf.mxu1 }
 0x399   : > { %v11244_v36 = vpack.c.bf16 %v5723_v23, %v5722_v57  ;;  %v5694_v42 = vadd.f32 %v11066_v39, %v5655_v40  ;;  %v5653_v8 = vmul.f32 %v11047_v62, %v5592_v61  ;;  %v5603_v51 = vadd.f32 %v7864_v20, %v5442_v11 }
 0x39a   : > { %v5721_v60 = vmax.f32 %v5689_v58, 0.0  ;;  %v5594_v14 = vpop.f32.mrf.mxu1 }
 0x39b   : > { %v5692_v55 = vadd.f32 %v11066_v39, %v5653_v8  ;;  %v5656_v27 = vmul.f32 %v11047_v62, %v5603_v51  ;;  %v5595_v38 = vadd.f32 %v5594_v14, %v5434_v59  ;;  %v5726_v41 = vmax.f32 %v5694_v42, 0.0  ;;  %v11957_v42 = vld [vmem:[#allocation25_spill] sm:$0xff] }
 0x39c   : > { %v5876_v3 = vpack.c.bf16 %v5721_v60, %v5720_v25  ;;  %v7867_v46 = vpop.f32.mrf.mxu1 }
 0x39d   : > { %v5695_v22 = vadd.f32 %v11066_v39, %v5656_v27  ;;  %v5654_v45 = vmul.f32 %v11047_v62, %v5595_v38  ;;  %v5616_v1 = vadd.f32 %v7867_v46, %v5455_v52  ;;  %6061 = vmatmul.mubr.bf16.gmra.mxu0 %v11162_v53  ;;  %v5724_v44 = vmax.f32 %v5692_v55, 0.0 }
 0x39e   : > { %v5607_v34 = vpop.f32.mrf.mxu1  ;;  %6070 = vmatprep.mubr.bf16.mxu0 %v11821_v12 }
 0x39f   : > { %v5727_v21 = vmax.f32 %v5695_v22, 0.0  ;;  %v5693_v7 = vadd.f32 %v11066_v39, %v5654_v45  ;;  %v5659_v54 = vmul.f32 %v11047_v62, %v5616_v1  ;;  %v5608_v0 = vadd.f32 %v5607_v34, %v5447_v15 }
 0x3a0   : > { %v7868_v53 = vpop.f32.mrf.mxu1 }
 0x3a1   : > { %v5879_v30 = vpack.c.bf16 %v5727_v21, %v5726_v41  ;;  %v5725_v48 = vmax.f32 %v5693_v7, 0.0  ;;  %v5698_v17 = vadd.f32 %v11066_v39, %v5659_v54  ;;  %v5657_v33 = vmul.f32 %v11047_v62, %v5608_v0 }
 0x3a2   : > { %v5619_v35 = vadd.f32 %v7868_v53, %v5458_v18  ;;  %v5610_v56 = vpop.f32.mrf.mxu1 }
 0x3a3   : > { %v5878_v19 = vpack.c.bf16 %v5725_v48, %v5724_v44  ;;  %v5696_v26 = vadd.f32 %v11066_v39, %v5657_v33  ;;  %v5611_v4 = vadd.f32 %v5610_v56, %v5450_v37  ;;  %v5730_v11 = vmax.f32 %v5698_v17, 0.0 }
 0x3a4   : > { %v5660_v5 = vmul.f32 %v11047_v62, %v5619_v35 }
 0x3a5   : > { %v5658_v9 = vmul.f32 %v11047_v62, %v5611_v4  ;;  %6071 = vmatmul.mubr.bf16.gmra.mxu0 %v11200_v29  ;;  %v5728_v57 = vmax.f32 %v5696_v26, 0.0 }
 0x3a6   : > { %v5699_v50 = vadd.f32 %v11066_v39, %v5660_v5  ;;  %6080 = vmatprep.mubr.bf16.mxu0 %v11821_v12 }
 0x3a7   : > { %v5697_v63 = vadd.f32 %v11066_v39, %v5658_v9 }
 0x3a8   : > { %v5731_v10 = vmax.f32 %v5699_v50, 0.0 }
 0x3a9   : > { %v5729_v23 = vmax.f32 %v5697_v63, 0.0 }
 0x3aa   : > { %v5881_v40 = vpack.c.bf16 %v5731_v10, %v5730_v11 }
 0x3ab   : > { %v5880_v61 = vpack.c.bf16 %v5729_v23, %v5728_v57 }
 0x3ad   : > { %6081 = vmatmul.mubr.bf16.gmra.mxu0 %v11192_v2 }
 0x3ae   : > { %6090 = vmatprep.mubr.bf16.mxu0 %v11821_v12 }
 0x3b5   : > { %6091 = vmatmul.mubr.bf16.gmra.mxu0 %v11226_v43 }
 0x3b6   : > { %6100 = vmatprep.mubr.bf16.mxu0 %v11821_v12  ;;  %v6303_v62 = vpop.f32.mrf.mxu1 }
 0x3b8   : > { %v6305_v39 = vpop.f32.mrf.mxu1 }
 0x3ba   : > { %v6307_v29 = vpop.f32.mrf.mxu1 }
 0x3bc   : > { %v6309_v2 = vpop.f32.mrf.mxu1 }
 0x3bd   : > { %6101 = vmatmul.mubr.bf16.gmra.mxu0 %v11223_v47 }
 0x3be   : > { %6110 = vmatprep.mubr.bf16.mxu0 %v11821_v12 }
 0x3c5   : > { %6111 = vmatmul.mubr.bf16.gmra.mxu0 %v5876_v3 }
 0x3c6   : > { %6120 = vmatprep.mubr.bf16.mxu0 %v11821_v12 }
 0x3cd   : > { %6121 = vmatmul.mubr.bf16.gmra.mxu0 %v11244_v36  ;;  %v6313_v24 = vpop.f32.mrf.mxu1 }
 0x3ce   : > { %6130 = vmatprep.mubr.bf16.mxu0 %v11821_v12 }
 0x3cf   : > { %v6315_v43 = vpop.f32.mrf.mxu1 }
 0x3d1   : > { %v6317_v47 = vpop.f32.mrf.mxu1 }
 0x3d3   : > { %v6319_v58 = vpop.f32.mrf.mxu1 }
 0x3d5   : > { %6131 = vmatmul.mubr.bf16.gmra.mxu0 %v5878_v19  ;;  %v6323_v20 = vpop.f32.mrf.mxu1 }
 0x3d6   : > { %6140 = vmatprep.mubr.bf16.mxu0 %v11821_v12 }
 0x3d7   : > { %v11285_v31 = vpop.f32.mrf.mxu1 }
 0x3d9   : > { %v11287_v59 = vpop.f32.mrf.mxu1 }
 0x3db   : > { %v11290_v36 = vpop.f32.mrf.mxu1 }
 0x3dd   : > { %6141 = vmatmul.mubr.bf16.gmra.mxu0 %v5879_v30  ;;  %v11294_v8 = vpop.f32.mrf.mxu1 }
 0x3de   : > { %6150 = vmatprep.mubr.bf16.mxu0 %v11821_v12 }
 0x3df   : > { %v11296_v51 = vpop.f32.mrf.mxu1 }
 0x3e1   : > { %v11298_v49 = vpop.f32.mrf.mxu1 }
 0x3e3   : > { %v11300_v25 = vpop.f32.mrf.mxu1 }
 0x3e5   : > { %6151 = vmatmul.mubr.bf16.gmra.mxu0 %v5880_v61  ;;  %v11302_v60 = vpop.f32.mrf.mxu1 }
 0x3e6   : > { %6160 = vmatprep.mubr.bf16.mxu0 %v11821_v12 }
 0x3e7   : > { %v11304_v14 = vpop.f32.mrf.mxu1 }
 0x3e9   : > { %v11306_v28 = vpop.f32.mrf.mxu1 }
 0x3ed   : > { %6161 = vmatmul.mubr.bf16.gmra.mxu0 %v5881_v40 }
 0x3ee   : > { %6291 = vmatprep.mubr.bf16.mxu0 %v11821_v12  ;;  %v11308_v12 = vpop.f32.mrf.mxu1 }
 0x3f0   : > { %v11310_v55 = vpop.f32.mrf.mxu1 }
 0x3f2   : > { %v11312_v27 = vpop.f32.mrf.mxu1 }
 0x3f4   : > { %v11314_v38 = vpop.f32.mrf.mxu1 }
 0x3f5   : > { %7152 = vmatmul.mubr.msk.bf16.vlgmr.msra.gmra.mxu0 %vm743_vm0, %v11957_v42 }
 0x3f6   : > { %v11316_v52 = vpop.f32.mrf.mxu1 }
 0x3f8   : > { %v11318_v3 = vpop.f32.mrf.mxu1 }
 0x3fa   : > { %v11320_v46 = vpop.f32.mrf.mxu1 }
 0x3fc   : > { %v11322_v22 = vpop.f32.mrf.mxu1 }
 0x3fe   : > { %v11324_v45 = vpop.f32.mrf.mxu1 }
 0x400   : > { %v11328_v6 = vpop.f32.mrf.mxu1 }
 0x402   : > { %v11334_v16 = vpop.f32.mrf.mxu1 }
 0x404   : > { %v11339_v21 = vpop.f32.mrf.mxu1 }
 0x406   : > { %v11344_v18 = vpop.f32.mrf.mxu1 }
 0x408   : > { %v11348_v48 = vpop.f32.mrf.mxu1 }
 0x40a   : > { %v11352_v19 = vpop.f32.mrf.mxu1 }
 0x40c   : > { %v11356_v50 = vpop.f32.mrf.mxu1 }
 0x40e   : > { %v11361_v23 = vpop.f32.mrf.mxu1 }
 0x435   : > { %v11326_v1 = vpop.f32.mrf.mxu0 }
 0x437   : > { %v11330_v15 = vpop.f32.mrf.mxu0 }
 0x439   : > { %v11332_v13 = vpop.f32.mrf.mxu0 }
 0x43b   : > { %v11337_v41 = vpop.f32.mrf.mxu0 }
 0x43d   : > { %v6022_v34 = vpop.f32.mrf.mxu0 }
 0x43e   : > { %v6304_v7 = vadd.f32 %v6303_v62, %v6022_v34 }
 0x43f   : > { %v6024_v54 = vpop.f32.mrf.mxu0 }
 0x440   : > { %6456 = vst [vmem:[%s11341_s22 + $0x20] sm:$0xff] %v6304_v7  ;;  %v6306_v0 = vadd.f32 %v6305_v39, %v6024_v54 }
 0x441   : > { %v6026_v44 = vpop.f32.mrf.mxu0 }
 0x442   : > { %6457 = vst [vmem:[%s11341_s22 + $0x28] sm:$0xff] %v6306_v0  ;;  %v6308_v53 = vadd.f32 %v6307_v29, %v6026_v44  ;;  %v11367_v29 = vpop.f32.mrf.mxu1 }
 0x443   : > { %v6028_v32 = vpop.f32.mrf.mxu0 }
 0x444   : > { %6458 = vst [vmem:[%s11341_s22 + $0x30] sm:$0xff] %v6308_v53  ;;  %v6310_v37 = vadd.f32 %v6309_v2, %v6028_v32 }
 0x445   : > { %v6032_v30 = vpop.f32.mrf.mxu0 }
 0x446   : > { %6459 = vst [vmem:[%s11341_s22 + $0x38] sm:$0xff] %v6310_v37  ;;  %v6314_v17 = vadd.f32 %v6313_v24, %v6032_v30 }
 0x447   : > { %v6034_v33 = vpop.f32.mrf.mxu0 }
 0x448   : > { %6460 = vst [vmem:[%s11341_s22 + $0x40] sm:$0xff] %v6314_v17  ;;  %v6316_v35 = vadd.f32 %v6315_v43, %v6034_v33 }
 0x449   : > { %v6036_v56 = vpop.f32.mrf.mxu0 }
 0x44a   : > { %6461 = vst [vmem:[%s11341_s22 + $0x48] sm:$0xff] %v6316_v35  ;;  %v6318_v26 = vadd.f32 %v6317_v47, %v6036_v56 }
 0x44b   : > { %v6038_v4 = vpop.f32.mrf.mxu0 }
 0x44c   : > { %6462 = vst [vmem:[%s11341_s22 + $0x50] sm:$0xff] %v6318_v26  ;;  %v6320_v5 = vadd.f32 %v6319_v58, %v6038_v4  ;;  %v11373_v58 = vpop.f32.mrf.mxu1 }
 0x44d   : > { %v6042_v9 = vpop.f32.mrf.mxu0 }
 0x44e   : > { %6463 = vst [vmem:[%s11341_s22 + $0x58] sm:$0xff] %v6320_v5  ;;  %v6324_v63 = vadd.f32 %v6323_v20, %v6042_v9  ;;  %v11379_v42 = vpop.f32.mrf.mxu1 }
 0x44f   : > { %v6044_v11 = vpop.f32.mrf.mxu0 }
 0x450   : > { %6464 = vst [vmem:[%s11341_s22 + $0x60] sm:$0xff] %v6324_v63  ;;  %v6326_v10 = vadd.f32 %v11285_v31, %v6044_v11 }
 0x451   : > { %v6046_v57 = vpop.f32.mrf.mxu0 }
 0x452   : > { %6465 = vst [vmem:[%s11341_s22 + $0x68] sm:$0xff] %v6326_v10  ;;  %v6328_v40 = vadd.f32 %v11287_v59, %v6046_v57 }
 0x453   : > { %v6048_v61 = vpop.f32.mrf.mxu0 }
 0x454   : > { %6466 = vst [vmem:[%s11341_s22 + $0x70] sm:$0xff] %v6328_v40  ;;  %v6330_v62 = vadd.f32 %v11290_v36, %v6048_v61 }
 0x455   : > { %v6052_v39 = vpop.f32.mrf.mxu0 }
 0x456   : > { %6467 = vst [vmem:[%s11341_s22 + $0x78] sm:$0xff] %v6330_v62  ;;  %v6334_v2 = vadd.f32 %v11294_v8, %v6052_v39 }
 0x457   : > { %v6054_v24 = vpop.f32.mrf.mxu0 }
 0x458   : > { %6468 = vst [vmem:[%s11341_s22 + $0x80] sm:$0xff] %v6334_v2  ;;  %v6336_v43 = vadd.f32 %v11296_v51, %v6054_v24 }
 0x459   : > { %v6056_v47 = vpop.f32.mrf.mxu0 }
 0x45a   : > { %6469 = vst [vmem:[%s11341_s22 + $0x88] sm:$0xff] %v6336_v43  ;;  %v6338_v20 = vadd.f32 %v11298_v49, %v6056_v47  ;;  %v11385_v49 = vpop.f32.mrf.mxu1 }
 0x45b   : > { %v6058_v31 = vpop.f32.mrf.mxu0 }
 0x45c   : > { %6470 = vst [vmem:[%s11341_s22 + $0x90] sm:$0xff] %v6338_v20  ;;  %v6340_v59 = vadd.f32 %v11300_v25, %v6058_v31 }
 0x45d   : > { %v6062_v36 = vpop.f32.mrf.mxu0 }
 0x45e   : > { %6471 = vst [vmem:[%s11341_s22 + $0x98] sm:$0xff] %v6340_v59  ;;  %v6344_v8 = vadd.f32 %v11302_v60, %v6062_v36  ;;  %v11391_v60 = vpop.f32.mrf.mxu1 }
 0x45f   : > { %v6064_v51 = vpop.f32.mrf.mxu0 }
 0x460   : > { %6472 = vst [vmem:[%s11341_s22 + $0xa0] sm:$0xff] %v6344_v8  ;;  %v6346_v34 = vadd.f32 %v11304_v14, %v6064_v51 }
 0x461   : > { %v6066_v7 = vpop.f32.mrf.mxu0 }
 0x462   : > { %6473 = vst [vmem:[%s11341_s22 + $0xa8] sm:$0xff] %v6346_v34  ;;  %v6348_v54 = vadd.f32 %v11306_v28, %v6066_v7  ;;  %v11397_v28 = vpop.f32.mrf.mxu1 }
 0x463   : > { %v6068_v25 = vpop.f32.mrf.mxu0 }
 0x464   : > { %6474 = vst [vmem:[%s11341_s22 + $0xb0] sm:$0xff] %v6348_v54  ;;  %v6350_v0 = vadd.f32 %v11308_v12, %v6068_v25 }
 0x465   : > { %v6072_v44 = vpop.f32.mrf.mxu0 }
 0x466   : > { %6475 = vst [vmem:[%s11341_s22 + $0xb8] sm:$0xff] %v6350_v0  ;;  %v6354_v53 = vadd.f32 %v11310_v55, %v6072_v44  ;;  %v11403_v55 = vpop.f32.mrf.mxu1 }
 0x467   : > { %v6074_v14 = vpop.f32.mrf.mxu0 }
 0x468   : > { %6476 = vst [vmem:[%s11341_s22 + $0xc0] sm:$0xff] %v6354_v53  ;;  %v6356_v32 = vadd.f32 %v11312_v27, %v6074_v14 }
 0x469   : > { %v6076_v37 = vpop.f32.mrf.mxu0 }
 0x46a   : > { %6477 = vst [vmem:[%s11341_s22 + $0xc8] sm:$0xff] %v6356_v32  ;;  %v6358_v30 = vadd.f32 %v11314_v38, %v6076_v37  ;;  %v6409_v38 = vpop.f32.mrf.mxu1 }
 0x46b   : > { %v6078_v12 = vpop.f32.mrf.mxu0 }
 0x46c   : > { %6478 = vst [vmem:[%s11341_s22 + $0xd0] sm:$0xff] %v6358_v30  ;;  %v6360_v17 = vadd.f32 %v11316_v52, %v6078_v12  ;;  %v6413_v63 = vpop.f32.mrf.mxu1 }
 0x46d   : > { %v6082_v33 = vpop.f32.mrf.mxu0 }
 0x46e   : > { %6479 = vst [vmem:[%s11341_s22 + $0xd8] sm:$0xff] %v6360_v17  ;;  %v6364_v35 = vadd.f32 %v11318_v3, %v6082_v33  ;;  %v6415_v57 = vpop.f32.mrf.mxu1 }
 0x46f   : > { %v6084_v27 = vpop.f32.mrf.mxu0 }
 0x470   : > { %6480 = vst [vmem:[%s11341_s22 + $0xe0] sm:$0xff] %v6364_v35  ;;  %v6366_v56 = vadd.f32 %v11320_v46, %v6084_v27  ;;  %v6417_v62 = vpop.f32.mrf.mxu1 }
 0x471   : > { %v6086_v26 = vpop.f32.mrf.mxu0 }
 0x472   : > { %6481 = vst [vmem:[%s11341_s22 + $0xe8] sm:$0xff] %v6366_v56  ;;  %v6368_v4 = vadd.f32 %v11322_v22, %v6086_v26  ;;  %v6419_v24 = vpop.f32.mrf.mxu1 }
 0x473   : > { %v6088_v52 = vpop.f32.mrf.mxu0 }
 0x474   : > { %6482 = vst [vmem:[%s11341_s22 + $0xf0] sm:$0xff] %v6368_v4  ;;  %v6370_v5 = vadd.f32 %v11324_v45, %v6088_v52  ;;  %v6423_v20 = vpop.f32.mrf.mxu1 }
 0x475   : > { %v6092_v9 = vpop.f32.mrf.mxu0 }
 0x476   : > { %6483 = vst [vmem:[%s11341_s22 + $0xf8] sm:$0xff] %v6370_v5  ;;  %v6374_v3 = vadd.f32 %v11328_v6, %v6092_v9  ;;  %v6425_v36 = vpop.f32.mrf.mxu1 }
 0x477   : > { %v6094_v11 = vpop.f32.mrf.mxu0 }
 0x478   : > { %6484 = vst [vmem:[%s11341_s22 + $0x100] sm:$0xff] %v6374_v3  ;;  %v6376_v46 = vadd.f32 %v11334_v16, %v6094_v11  ;;  %v6427_v34 = vpop.f32.mrf.mxu1 }
 0x479   : > { %v6096_v10 = vpop.f32.mrf.mxu0 }
 0x47a   : > { %6485 = vst [vmem:[%s11341_s22 + $0x108] sm:$0xff] %v6376_v46  ;;  %v6378_v22 = vadd.f32 %v11339_v21, %v6096_v10  ;;  %v6429_v25 = vpop.f32.mrf.mxu1 }
 0x47b   : > { %v6098_v40 = vpop.f32.mrf.mxu0 }
 0x47c   : > { %6486 = vst [vmem:[%s11341_s22 + $0x110] sm:$0xff] %v6378_v22  ;;  %v6380_v45 = vadd.f32 %v11344_v18, %v6098_v40  ;;  %v6433_v53 = vpop.f32.mrf.mxu1 }
 0x47d   : > { %v6102_v61 = vpop.f32.mrf.mxu0 }
 0x47e   : > { %6487 = vst [vmem:[%s11341_s22 + $0x118] sm:$0xff] %v6380_v45  ;;  %v6384_v6 = vadd.f32 %v11348_v48, %v6102_v61 }
 0x47f   : > { %v6104_v39 = vpop.f32.mrf.mxu0 }
 0x480   : > { %6488 = vst [vmem:[%s11341_s22 + $0x120] sm:$0xff] %v6384_v6  ;;  %v6386_v16 = vadd.f32 %v11352_v19, %v6104_v39 }
 0x481   : > { %v6106_v2 = vpop.f32.mrf.mxu0 }
 0x482   : > { %6489 = vst [vmem:[%s11341_s22 + $0x128] sm:$0xff] %v6386_v16  ;;  %v6388_v21 = vadd.f32 %v11356_v50, %v6106_v2 }
 0x483   : > { %v6108_v43 = vpop.f32.mrf.mxu0 }
 0x484   : > { %6490 = vst [vmem:[%s11341_s22 + $0x130] sm:$0xff] %v6388_v21  ;;  %v6390_v18 = vadd.f32 %v11361_v23, %v6108_v43 }
 0x485   : > { %v6112_v47 = vpop.f32.mrf.mxu0 }
 0x486   : > { %6491 = vst [vmem:[%s11341_s22 + $0x138] sm:$0xff] %v6390_v18  ;;  %v6394_v48 = vadd.f32 %v11367_v29, %v6112_v47 }
 0x487   : > { %v6114_v31 = vpop.f32.mrf.mxu0 }
 0x488   : > { %6492 = vst [vmem:[%s11341_s22 + $0x140] sm:$0xff] %v6394_v48  ;;  %v6396_v19 = vadd.f32 %v11373_v58, %v6114_v31 }
 0x489   : > { %v6116_v59 = vpop.f32.mrf.mxu0 }
 0x48a   : > { %6493 = vst [vmem:[%s11341_s22 + $0x148] sm:$0xff] %v6396_v19  ;;  %v6398_v50 = vadd.f32 %v11379_v42, %v6116_v59 }
 0x48b   : > { %v6118_v8 = vpop.f32.mrf.mxu0 }
 0x48c   : > { %6494 = vst [vmem:[%s11341_s22 + $0x150] sm:$0xff] %v6398_v50  ;;  %v6400_v23 = vadd.f32 %v11385_v49, %v6118_v8 }
 0x48d   : > { %v6122_v51 = vpop.f32.mrf.mxu0 }
 0x48e   : > { %6495 = vst [vmem:[%s11341_s22 + $0x158] sm:$0xff] %v6400_v23  ;;  %v6404_v29 = vadd.f32 %v11391_v60, %v6122_v51 }
 0x48f   : > { %v6124_v7 = vpop.f32.mrf.mxu0 }
 0x490   : > { %6496 = vst [vmem:[%s11341_s22 + $0x160] sm:$0xff] %v6404_v29  ;;  %v6406_v58 = vadd.f32 %v11397_v28, %v6124_v7  ;;  %v6435_v28 = vpop.f32.mrf.mxu1 }
 0x491   : > { %v6126_v54 = vpop.f32.mrf.mxu0 }
 0x492   : > { %6497 = vst [vmem:[%s11341_s22 + $0x168] sm:$0xff] %v6406_v58  ;;  %v6408_v42 = vadd.f32 %v11403_v55, %v6126_v54  ;;  %v6437_v55 = vpop.f32.mrf.mxu1 }
 0x493   : > { %v6128_v0 = vpop.f32.mrf.mxu0 }
 0x494   : > { %6498 = vst [vmem:[%s11341_s22 + $0x170] sm:$0xff] %v6408_v42  ;;  %v6410_v49 = vadd.f32 %v6409_v38, %v6128_v0  ;;  %v6439_v38 = vpop.f32.mrf.mxu1 }
 0x495   : > { %v6132_v44 = vpop.f32.mrf.mxu0 }
 0x496   : > { %6499 = vst [vmem:[%s11341_s22 + $0x178] sm:$0xff] %v6410_v49  ;;  %v6414_v60 = vadd.f32 %v6413_v63, %v6132_v44  ;;  %v6443_v63 = vpop.f32.mrf.mxu1 }
 0x497   : > { %v6134_v14 = vpop.f32.mrf.mxu0 }
 0x498   : > { %6500 = vst [vmem:[%s11341_s22 + $0x180] sm:$0xff] %v6414_v60  ;;  %v6416_v32 = vadd.f32 %v6415_v57, %v6134_v14  ;;  %v6445_v57 = vpop.f32.mrf.mxu1 }
 0x499   : > { %v6136_v37 = vpop.f32.mrf.mxu0 }
 0x49a   : > { %6501 = vst [vmem:[%s11341_s22 + $0x188] sm:$0xff] %v6416_v32  ;;  %v6418_v30 = vadd.f32 %v6417_v62, %v6136_v37  ;;  %v6447_v62 = vpop.f32.mrf.mxu1 }
 0x49b   : > { %v6138_v12 = vpop.f32.mrf.mxu0 }
 0x49c   : > { %6502 = vst [vmem:[%s11341_s22 + $0x190] sm:$0xff] %v6418_v30  ;;  %v6420_v17 = vadd.f32 %v6419_v24, %v6138_v12  ;;  %v6449_v24 = vpop.f32.mrf.mxu1 }
 0x49d   : > { %v6142_v33 = vpop.f32.mrf.mxu0 }
 0x49e   : > { %6503 = vst [vmem:[%s11341_s22 + $0x198] sm:$0xff] %v6420_v17  ;;  %v6424_v35 = vadd.f32 %v6423_v20, %v6142_v33 }
 0x49f   : > { %v6144_v27 = vpop.f32.mrf.mxu0 }
 0x4a0   : > { %6504 = vst [vmem:[%s11341_s22 + $0x1a0] sm:$0xff] %v6424_v35  ;;  %v6426_v56 = vadd.f32 %v6425_v36, %v6144_v27 }
 0x4a1   : > { %v6146_v26 = vpop.f32.mrf.mxu0 }
 0x4a2   : > { %6505 = vst [vmem:[%s11341_s22 + $0x1a8] sm:$0xff] %v6426_v56  ;;  %v6428_v4 = vadd.f32 %v6427_v34, %v6146_v26 }
 0x4a3   : > { %v6148_v52 = vpop.f32.mrf.mxu0 }
 0x4a4   : > { %6506 = vst [vmem:[%s11341_s22 + $0x1b0] sm:$0xff] %v6428_v4  ;;  %v6430_v5 = vadd.f32 %v6429_v25, %v6148_v52 }
 0x4a5   : > { %v6152_v9 = vpop.f32.mrf.mxu0 }
 0x4a6   : > { %6507 = vst [vmem:[%s11341_s22 + $0x1b8] sm:$0xff] %v6430_v5  ;;  %v6434_v3 = vadd.f32 %v6433_v53, %v6152_v9 }
 0x4a7   : > { %v6154_v11 = vpop.f32.mrf.mxu0 }
 0x4a8   : > { %6508 = vst [vmem:[%s11341_s22 + $0x1c0] sm:$0xff] %v6434_v3  ;;  %v6436_v46 = vadd.f32 %v6435_v28, %v6154_v11 }
 0x4a9   : > { %v6156_v10 = vpop.f32.mrf.mxu0 }
 0x4aa   : > { %6509 = vst [vmem:[%s11341_s22 + $0x1c8] sm:$0xff] %v6436_v46  ;;  %v6438_v22 = vadd.f32 %v6437_v55, %v6156_v10 }
 0x4ab   : > { %v6158_v40 = vpop.f32.mrf.mxu0 }
 0x4ac   : > { %6510 = vst [vmem:[%s11341_s22 + $0x1d0] sm:$0xff] %v6438_v22  ;;  %v6440_v45 = vadd.f32 %v6439_v38, %v6158_v40 }
 0x4ad   : > { %v6162_v61 = vpop.f32.mrf.mxu0 }
 0x4ae   : > { %6511 = vst [vmem:[%s11341_s22 + $0x1d8] sm:$0xff] %v6440_v45  ;;  %v6444_v6 = vadd.f32 %v6443_v63, %v6162_v61 }
 0x4af   : > { %v6164_v39 = vpop.f32.mrf.mxu0 }
 0x4b0   : > { %6512 = vst [vmem:[%s11341_s22 + $0x1e0] sm:$0xff] %v6444_v6  ;;  %v6446_v16 = vadd.f32 %v6445_v57, %v6164_v39 }
 0x4b1   : > { %v6166_v2 = vpop.f32.mrf.mxu0 }
 0x4b2   : > { %6513 = vst [vmem:[%s11341_s22 + $0x1e8] sm:$0xff] %v6446_v16  ;;  %v6448_v21 = vadd.f32 %v6447_v62, %v6166_v2 }
 0x4b3   : > { %v6168_v43 = vpop.f32.mrf.mxu0 }
 0x4b4   : > { %6514 = vst [vmem:[%s11341_s22 + $0x1f0] sm:$0xff] %v6448_v21  ;;  %v6450_v18 = vadd.f32 %v6449_v24, %v6168_v43 }
 0x4b5   : > { %v6293_v47 = vpop.f32.mrf.mxu0 }
 0x4b6   : > { %6515 = vst [vmem:[%s11341_s22 + $0x1f8] sm:$0xff] %v6450_v18  ;;  %v6294_v20 = vadd.f32 %v6293_v47, %v11326_v1 }
 0x4b7   : > { %v6295_v48 = vpop.f32.mrf.mxu0 }
 0x4b8   : > { %6452 = vst [vmem:[%s11341_s22] sm:$0xff] %v6294_v20  ;;  %v6296_v31 = vadd.f32 %v6295_v48, %v11330_v15 }
 0x4b9   : > { %v6297_v19 = vpop.f32.mrf.mxu0 }
 0x4ba   : > { %6453 = vst [vmem:[%s11341_s22 + $0x8] sm:$0xff] %v6296_v31  ;;  %v6298_v59 = vadd.f32 %v6297_v19, %v11332_v13 }
 0x4bb   : > { %v6299_v36 = vpop.f32.mrf.mxu0 }
 0x4bc   : > { %6454 = vst [vmem:[%s11341_s22 + $0x10] sm:$0xff] %v6298_v59  ;;  %v6300_v1 = vadd.f32 %v6299_v36, %v11337_v41 }
 0x4be   : > { %6455 = vst [vmem:[%s11341_s22 + $0x18] sm:$0xff] %v6300_v1 }
 0x4bf   : > { %8505 = shalt.err (!%p8502_p3)
}
 0x4c0   : > { %s8506_s16 = scalar_lea.hbm %s11471_s23, 8192  ;;  %s8510_s17 = scalar_lea.hbm %s11532_s13, 16384 }
 0x4c1   : > { %p8507_p6 = scmp.ne.s32.totalorder %s11471_s23, %s8506_s16  ;;  %p8511_p13 = scmp.lt.s32.totalorder %s11471_s23, %s11532_s13 }
 0x4c2   : > { %p8512_p11 = scmp.lt.s32.totalorder %s8510_s17, %s8506_s16 }
 0x4c3   : > { %p8508_p4 = pnand %p8507_p6, %p11958_p2 }
 0x4c4   : > { %p8513_p5 = por %p8512_p11, %p8511_p13 }
 0x4c5   : > { %p8509_p8 = pneg %p8508_p4 }
 0x4c7   : > { %p8514_p1 = pnand %p8513_p5, %p8509_p8 }
 0x4c9   : > { %8517 = shalt.err (!%p8514_p1)
}
 0x4ca   : > { %s8577_s22 = smov 256   ;;  %s8578_s19 = smov 16  }
 0x4cb   : > { %7895 = dma.vmem_to_hbm [thread:$0]  (%p11958_p2), %s11473_s30, 8192, %s11471_s23, %s6517_s29, %s8577_s22, %s8577_s22, %s8578_s19  }
 0x4cc PF: > { %s11959_s3 = sld [smem:[#allocation19_spill]]  ;;  %s6546_s15 = sand.u32 1, %s8552_s25  }
 0x4cd   : > { %s11960_s28 = sld [smem:[#allocation18_spill]]  ;;  %s6547_s9 = scalar_lea.sflag [#allocation5], %s6546_s15 }
 0x4d2   : > { %p11961_p12 = scmp.ne.s32.totalorder %s11959_s3, 0 }
 0x4d3   : > { %p11962_p7 = scmp.ge.s32.totalorder %s11960_s28, 2 }
 0x4d5   : > { %p7915_p9 = pnand %p11962_p7, %p11961_p12 }
 0x4d7   : > { %p7916_p0 = pneg %p7915_p9 }
 0x4d9   : > { %8547 = dma.done.wait (%p7916_p0), %s6547_s9, 8192  }
 0x4da   : > { %8549 = vsyncadd (%p7916_p0), %s6547_s9, 4294959104  ;;  %s11963_s28 = sld [smem:[#allocation20_spill]]  ;;  %s11966_s25 = smov %s8556_s26 }
 0x4db   : > { %s11964_s12 = sld [smem:[#allocation17_spill]] }
 0x4dc   : > { %s11965_s27 = sld [smem:[#allocation21_spill]] }
 0x4e0   : > { %p28_p10 = scmp.ge.s32.totalorder %s11963_s28, 4  }
 0x4e1   : > { %s11967_s26 = smov %s11964_s12 }
 0x4e2   :  { %30 = sbr.rel (!%p28_p10) target bundleno = 12 (0xc), region = 136 }
 0x4e7   :  { %6552 = vsyncpa [#allocation4], 1 }
 0x4e8   :  { %6554 = vsyncpa [#allocation4 + $0x1], 1 }
 0x4e9   :  { %6555 = vsyncpa [#allocation7], 1 }
 0x4ea   :  { %6556 = vsyncpa [#allocation10], 1 }
 0x4eb   :  { %6557 = vsyncpa [#allocation5], 1 }
 0x4ec   :  { %6559 = vsyncpa [#allocation5 + $0x1], 1 }

</bundles_post_ra>
